<compile_context>
chip_gen: v7x
topology: tpu7x:2x2x1
jax: 0.10.0
libtpu: 0.0.40
codegen_flags: <defaults>
</compile_context>

<pallas_src>
import math
import functools

import jax
import jax.numpy as jnp
from jax import lax
from jax.experimental import pallas as pl
from jax.experimental.pallas import tpu as pltpu


# ----------------------------- small helpers --------------------------------

def _gelu_tanh(x):
    # nn.GELU(approximate='tanh')
    c = math.sqrt(2.0 / math.pi)
    return 0.5 * x * (1.0 + jnp.tanh(c * (x + 0.044715 * x * x * x)))


def _layernorm(v, w, eps=1e-5):
    # two-pass (centered) variance: avoids the E[x^2]-mu^2 cancellation that
    # the one-pass form suffers when |mean| >> std.
    mu = jnp.mean(v, axis=-1, keepdims=True)
    d = v - mu
    var = jnp.mean(d * d, axis=-1, keepdims=True)
    return d * lax.rsqrt(var + eps) * w


def _bf16_elementwise_ok():
    # v6e / v7x have bf16 VPU + EUP; v4/v5e/v5p do not (keep f32 there).
    try:
        kind = jax.devices()[0].device_kind.lower()
    except Exception:
        return False
    return ("v6" in kind) or ("v7" in kind)


def _vmem_limit_bytes():
    # ~25% headroom below physical VMEM (v7x: 64 MiB -> ~48 MiB); cap at
    # 100 MiB on the 128 MiB generations (v5e/v6e).
    try:
        cap = int(pltpu.get_tpu_info().vmem_capacity_bytes)
    except Exception:
        cap = 128 * 1024 * 1024
    return int(min(cap * 3 // 4, 100 * 1024 * 1024))


def _invariant_spec(shape, index_map):
    # Grid-invariant blocks (weights / biases / full tables): the block index
    # never changes, so double buffering only doubles their VMEM footprint.
    if hasattr(pl, "Buffered"):
        try:
            return pl.BlockSpec(shape, index_map, pipeline_mode=pl.Buffered(1))
        except TypeError:
            pass
    return pl.BlockSpec(shape, index_map)


def _largest_tile(n, cap):
    # largest divisor of n that is <= cap (cap is a power of two).
    return max(math.gcd(n, cap), 1)


# -------------------- kernel 1: norm1 + qkv + rotary -------------------------

def _qkv_rotary_kernel(x_ref, mod_ref, cos_ref, sin_ref, w_n1_ref, w_qkv_ref,
                       q_ref, k_ref, v_ref, *, n_heads, rotary_bf16):
    x = x_ref[...]                                  # (ts, D) f32
    ts, D = x.shape
    hd = D // n_heads
    half = hd // 2

    shift_msa = mod_ref[0:1, :]
    scale_msa = mod_ref[1:2, :]

    # norm1 + adaLN modulate + fused qkv projection (bf16 MXU, f32 accumulate)
    h = _layernorm(x, w_n1_ref[...]) * (1.0 + scale_msa) + shift_msa
    qkv = jnp.dot(h.astype(jnp.bfloat16), w_qkv_ref[...],
                  preferred_element_type=jnp.float32)            # (ts, 3D) f32

    sm_scale = 1.0 / math.sqrt(hd)
    q = (qkv[:, 0:D] * sm_scale).reshape(ts, n_heads, hd)  # fold softmax scale
    k = qkv[:, D:2 * D].reshape(ts, n_heads, hd)
    v = qkv[:, 2 * D:3 * D].reshape(ts, n_heads, hd)

    # rotate_half via one lane roll per tensor; the sign is folded into sin:
    #   rot(t) = t * [cos,cos] + roll(t, hd/2) * [-sin, sin]
    cosf = cos_ref[...][:, None, :]                 # (ts, 1, hd)
    sinf = sin_ref[...][:, None, :]
    q_roll = pltpu.roll(q, half, 2)                 # XLU lane rotation (f32)
    k_roll = pltpu.roll(k, half, 2)
    cdt = jnp.bfloat16 if rotary_bf16 else jnp.float32   # bf16 VPU on v6e/v7x
    q = q.astype(cdt) * cosf.astype(cdt) + q_roll.astype(cdt) * sinf.astype(cdt)
    k = k.astype(cdt) * cosf.astype(cdt) + k_roll.astype(cdt) * sinf.astype(cdt)

    # store head-major (H, ts, hd) bf16 so the flash kernel is transpose-free.
    q_ref[...] = jnp.transpose(q, (1, 0, 2)).astype(jnp.bfloat16)
    k_ref[...] = jnp.transpose(k, (1, 0, 2)).astype(jnp.bfloat16)
    v_ref[...] = jnp.transpose(v, (1, 0, 2)).astype(jnp.bfloat16)


# ------------- kernel 2: flash attention + out-proj + norm2 + MLP ------------

def _flash_attn_mlp_kernel(q_ref, k_ref, v_ref, x_ref, mod_ref,
                           w_n2_ref, w_out_ref,
                           w_m1_ref, b_m1_ref, w_m2_ref, b_m2_ref,
                           o_ref, m_scr, l_scr, acc_scr,
                           *, n_heads, head_dim, n_mlp_chunks, exp_bf16):
    ki = pl.program_id(2)

    @pl.when(ki == 0)
    def _init():
        m_scr[...] = jnp.full(m_scr.shape, -jnp.inf, m_scr.dtype)
        l_scr[...] = jnp.zeros(l_scr.shape, l_scr.dtype)
        acc_scr[...] = jnp.zeros(acc_scr.shape, acc_scr.dtype)

    # ---- one KV block of online softmax, all heads batched ----
    q = q_ref[...]                                   # (H, tq, hd) bf16
    k = k_ref[...]                                   # (H, tk, hd) bf16
    v = v_ref[...]                                   # (H, tk, hd) bf16
    # contraction over the last dim of both operands -> MXU transposed-RHS
    # path, no XLU transpose of k is required.
    s = jnp.einsum("hqd,hkd->hqk", q, k,
                   preferred_element_type=jnp.float32)   # (H, tq, tk) f32

    m_prev = m_scr[...]
    m_new = jnp.maximum(m_prev, jnp.max(s, axis=-1, keepdims=True))
    alpha = jnp.exp(m_prev - m_new)                  # (H, tq, 1) f32, tiny EUP
    s = s - m_new
    if exp_bf16:
        p = jnp.exp(s.astype(jnp.bfloat16))          # bf16 EUP (v6e/v7x)
    else:
        p = jnp.exp(s)                               # f32 EUP (v5e has no bf16)
    l_scr[...] = alpha * l_scr[...] + jnp.sum(
        p.astype(jnp.float32), axis=-1, keepdims=True)
    pv = jnp.einsum("hqk,hkd->hqd", p.astype(jnp.bfloat16), v,
                    preferred_element_type=jnp.float32)  # (H, tq, hd) f32
    acc_scr[...] = alpha * acc_scr[...] + pv
    m_scr[...] = m_new

    # ---- epilogue on the last KV block ----
    @pl.when(ki == pl.num_programs(2) - 1)
    def _finalize():
        tq = q.shape[1]
        D = n_heads * head_dim

        gate_msa = mod_ref[2:3, :]
        shift_mlp = mod_ref[3:4, :]
        scale_mlp = mod_ref[4:5, :]
        gate_mlp = mod_ref[5:6, :]

        # normalize after p@v (S*hd multiply, EUP reciprocal)
        attn = acc_scr[...] * pl.reciprocal(l_scr[...], approx=True)
        # fold all heads into ONE (tq, D) @ (D, D) out-projection: K=D fills
        # the 256-deep MXU (vs n_heads separate K=hd matmuls).
        attn = jnp.transpose(attn, (1, 0, 2)).reshape(tq, D)
        attn_proj = jnp.dot(attn.astype(jnp.bfloat16), w_out_ref[...],
                            preferred_element_type=jnp.float32)

        # bias_dropout_add_scale (inference): residual + gate * attn_out
        x1 = x_ref[...] + gate_msa * attn_proj

        # norm2 + modulate + MLP tiled over the hidden dim (no (tq, 4D) f32
        # intermediate; only (tq, chunk) temporaries per step).
        h2 = _layernorm(x1, w_n2_ref[...]) * (1.0 + scale_mlp) + shift_mlp
        h2 = h2.astype(jnp.bfloat16)

        def mlp_chunk(ci, acc):
            t = jnp.dot(h2, w_m1_ref[ci],
                        preferred_element_type=jnp.float32) + b_m1_ref[ci]
            t = _gelu_tanh(t)
            return acc + jnp.dot(t.astype(jnp.bfloat16), w_m2_ref[ci],
                                 preferred_element_type=jnp.float32)

        mlp = lax.fori_loop(0, n_mlp_chunks, mlp_chunk,
                            jnp.zeros((tq, D), jnp.float32))
        mlp = mlp + b_m2_ref[...]

        o_ref[...] = x1 + gate_mlp * mlp
        # TODO(synk): training-mode dropout (stateful PRNG) not implemented;
        # this is the inference path (F.dropout(training=False) is identity).
        # TODO(synk): varlen seqlens / exclude_last_token paths not implemented.


# --------------------------------- wrapper -----------------------------------

def ddit_block(x, c, cos, sin, params, n_heads, *,
               q_tile=None, kv_tile=None, s_tile=None):
    B, S, D = x.shape
    hd = D // n_heads
    mlp_hidden = params["w_mlp1"].shape[1]
    bf16, f32 = jnp.bfloat16, jnp.float32

    use_bf16_elem = _bf16_elementwise_ok()
    vmem_limit = _vmem_limit_bytes()

    # generation-aware tiles (v5e: 128-wide MXU -> keep 128/256 tiles).
    if s_tile is None:
        s_tile = _largest_tile(S, 256)
    if q_tile is None:
        q_tile = _largest_tile(S, 256 if use_bf16_elem else 128)
    if kv_tile is None:
        kv_tile = _largest_tile(S, 512 if use_bf16_elem else 256)
    assert S % s_tile == 0 and S % q_tile == 0 and S % kv_tile == 0

    # hoisted adaLN modulation (plain JAX): (B, 6, D) shift/scale/gate rows.
    mod = (c @ params["w_ada"] + params["b_ada"][0]).reshape(B, 6, D)

    # full-head-dim rotary tables with the rotate_half sign folded into sin.
    cos_full = jnp.concatenate([cos, cos], axis=-1)       # (S, hd)
    sin_signed = jnp.concatenate([-sin, sin], axis=-1)    # (S, hd)

    # MLP weights pre-chunked along the hidden dim for in-kernel streaming.
    mlp_chunk = _largest_tile(mlp_hidden, 512)
    n_mlp_chunks = mlp_hidden // mlp_chunk
    w_m1_c = jnp.transpose(
        params["w_mlp1"].reshape(D, n_mlp_chunks, mlp_chunk),
        (1, 0, 2)).astype(bf16)                            # (nc, D, chunk)
    b_m1_c = params["b_mlp1"].reshape(n_mlp_chunks, 1, mlp_chunk)
    w_m2_c = params["w_mlp2"].reshape(n_mlp_chunks, mlp_chunk, D).astype(bf16)

    cparams1 = pltpu.CompilerParams(
        dimension_semantics=("parallel", "parallel"),
        vmem_limit_bytes=vmem_limit)
    cparams2 = pltpu.CompilerParams(
        dimension_semantics=("parallel", "parallel", "arbitrary"),
        vmem_limit_bytes=vmem_limit)

    # ------------------ kernel 1: norm1 + qkv + rotary ------------------
    n_s = S // s_tile
    k1 = functools.partial(_qkv_rotary_kernel, n_heads=n_heads,
                           rotary_bf16=use_bf16_elem)
    qkv_grid = pltpu.PrefetchScalarGridSpec(
        num_scalar_prefetch=0,
        grid=(B, n_s),
        in_specs=[
            pl.BlockSpec((pl.Squeezed(), s_tile, D), lambda b, si: (b, si, 0)),
            pl.BlockSpec((pl.Squeezed(), 6, D), lambda b, si: (b, 0, 0)),
            pl.BlockSpec((s_tile, hd), lambda b, si: (si, 0)),
            pl.BlockSpec((s_tile, hd), lambda b, si: (si, 0)),
            _invariant_spec((1, D), lambda b, si: (0, 0)),
            _invariant_spec((D, 3 * D), lambda b, si: (0, 0)),
        ],
        out_specs=[pl.BlockSpec((pl.Squeezed(), n_heads, s_tile, hd),
                                lambda b, si: (b, 0, si, 0))] * 3,
    )
    q, k, v = pl.pallas_call(
        k1,
        out_shape=(jax.ShapeDtypeStruct((B, n_heads, S, hd), bf16),) * 3,
        grid_spec=qkv_grid,
        compiler_params=cparams1,
    )(x, mod, cos_full, sin_signed,
      params["w_norm1"], params["w_qkv"].astype(bf16))

    # -------- kernel 2: flash attention + out-proj + norm2 + MLP --------
    n_q, n_kv = S // q_tile, S // kv_tile
    k2 = functools.partial(_flash_attn_mlp_kernel, n_heads=n_heads,
                           head_dim=hd, n_mlp_chunks=n_mlp_chunks,
                           exp_bf16=use_bf16_elem)
    attn_grid = pltpu.PrefetchScalarGridSpec(
        num_scalar_prefetch=0,
        grid=(B, n_q, n_kv),
        in_specs=[
            pl.BlockSpec((pl.Squeezed(), n_heads, q_tile, hd),
                         lambda b, qi, ki: (b, 0, qi, 0)),              # q
            pl.BlockSpec((pl.Squeezed(), n_heads, kv_tile, hd),
                         lambda b, qi, ki: (b, 0, ki, 0)),              # k
            pl.BlockSpec((pl.Squeezed(), n_heads, kv_tile, hd),
                         lambda b, qi, ki: (b, 0, ki, 0)),              # v
            pl.BlockSpec((pl.Squeezed(), q_tile, D),
                         lambda b, qi, ki: (b, qi, 0)),                 # x_skip
            pl.BlockSpec((pl.Squeezed(), 6, D),
                         lambda b, qi, ki: (b, 0, 0)),                  # mod
            _invariant_spec((1, D), lambda b, qi, ki: (0, 0)),          # norm2 w
            _invariant_spec((D, D), lambda b, qi, ki: (0, 0)),          # out W
            _invariant_spec((n_mlp_chunks, D, mlp_chunk),
                            lambda b, qi, ki: (0, 0, 0)),               # mlp1 W
            _invariant_spec((n_mlp_chunks, 1, mlp_chunk),
                            lambda b, qi, ki: (0, 0, 0)),               # mlp1 b
            _invariant_spec((n_mlp_chunks, mlp_chunk, D),
                            lambda b, qi, ki: (0, 0, 0)),               # mlp2 W
            _invariant_spec((1, D), lambda b, qi, ki: (0, 0)),          # mlp2 b
        ],
        out_specs=pl.BlockSpec((pl.Squeezed(), q_tile, D),
                               lambda b, qi, ki: (b, qi, 0)),
        scratch_shapes=[
            pltpu.VMEM((n_heads, q_tile, 1), f32),     # running max
            pltpu.VMEM((n_heads, q_tile, 1), f32),     # running sum
            pltpu.VMEM((n_heads, q_tile, hd), f32),    # output accumulator
        ],
    )
    return pl.pallas_call(
        k2,
        out_shape=jax.ShapeDtypeStruct((B, S, D), f32),
        grid_spec=attn_grid,
        compiler_params=cparams2,
    )(q, k, v, x, mod,
      params["w_norm2"], params["w_out"].astype(bf16),
      w_m1_c, b_m1_c, w_m2_c, params["b_mlp2"])


# ------------------------ pure-JAX reference (checks) -------------------------

def ddit_block_ref(x, c, cos, sin, params, n_heads):
    B, S, D = x.shape
    hd = D // n_heads
    half = hd // 2
    mod = c @ params["w_ada"] + params["b_ada"][0]               # (B, 6D)
    sh_msa, sc_msa, g_msa, sh_mlp, sc_mlp, g_mlp = jnp.split(mod, 6, axis=-1)
    sh_msa, sc_msa, g_msa = sh_msa[:, None], sc_msa[:, None], g_msa[:, None]
    sh_mlp, sc_mlp, g_mlp = sh_mlp[:, None], sc_mlp[:, None], g_mlp[:, None]

    def ln(v, w):
        mu = v.mean(-1, keepdims=True)
        var = ((v - mu) ** 2).mean(-1, keepdims=True)
        return (v - mu) / jnp.sqrt(var + 1e-5) * w[0]

    x_skip = x
    h = ln(x, params["w_norm1"]) * (1 + sc_msa) + sh_msa
    qkv = h @ params["w_qkv"]
    q, k, v = jnp.split(qkv, 3, axis=-1)
    q = q.reshape(B, S, n_heads, hd)
    k = k.reshape(B, S, n_heads, hd)
    v = v.reshape(B, S, n_heads, hd)

    def rot(t):
        t1, t2 = t[..., :half], t[..., half:]
        cs = cos[None, :, None, :]
        sn = sin[None, :, None, :]
        return jnp.concatenate([t1 * cs - t2 * sn, t1 * sn + t2 * cs], axis=-1)

    q, k = rot(q), rot(k)
    s = jnp.einsum("bqhd,bkhd->bhqk", q, k) / math.sqrt(hd)
    p = jax.nn.softmax(s, axis=-1)
    attn = jnp.einsum("bhqk,bkhd->bqhd", p, v).reshape(B, S, D)
    x1 = x_skip + g_msa * (attn @ params["w_out"])

    h2 = ln(x1, params["w_norm2"]) * (1 + sc_mlp) + sh_mlp
    m = h2 @ params["w_mlp1"] + params["b_mlp1"][0]
    cgel = math.sqrt(2.0 / math.pi)
    m = 0.5 * m * (1.0 + jnp.tanh(cgel * (m + 0.044715 * m ** 3)))
    m = m @ params["w_mlp2"] + params["b_mlp2"][0]
    return x1 + g_mlp * m


# ---------------------------------- main --------------------------------------

if __name__ == "__main__":
    # Lane-aligned shapes that exercise the tiling: 2 S-tiles, 2 Q-tiles,
    # 2 KV-tiles and 2 MLP hidden chunks.
    B, S, D = 2, 256, 256
    n_heads = 2
    hd = D // n_heads
    cond_dim = 128
    mlp_ratio = 4

    key = jax.random.PRNGKey(0)
    ks = jax.random.split(key, 12)

    x = jax.random.normal(ks[0], (B, S, D), jnp.float32)
    c = jax.random.normal(ks[1], (B, cond_dim), jnp.float32)

    # rotary tables (already sliced to [S, head_dim // 2])
    inv_freq = 1.0 / (10000.0 ** (jnp.arange(0, hd, 2, dtype=jnp.float32) / hd))
    t = jnp.arange(S, dtype=jnp.float32)
    freqs = jnp.outer(t, inv_freq)                       # (S, hd//2)
    cos, sin = jnp.cos(freqs), jnp.sin(freqs)

    def init(k, shape, scale):
        return (jax.random.normal(k, shape, jnp.float32) * scale)

    params = {
        "w_ada": init(ks[2], (cond_dim, 6 * D), 0.05),   # nonzero (see NOTE)
        "b_ada": init(ks[3], (1, 6 * D), 0.05),
        "w_norm1": jnp.ones((1, D), jnp.float32),
        "w_norm2": jnp.ones((1, D), jnp.float32),
        "w_qkv": init(ks[4], (D, 3 * D), 1.0 / math.sqrt(D)),
        "w_out": init(ks[5], (D, D), 1.0 / math.sqrt(D)),
        "w_mlp1": init(ks[6], (D, mlp_ratio * D), 1.0 / math.sqrt(D)),
        "b_mlp1": init(ks[7], (1, mlp_ratio * D), 0.02),
        "w_mlp2": init(ks[8], (mlp_ratio * D, D), 1.0 / math.sqrt(mlp_ratio * D)),
        "b_mlp2": init(ks[9], (1, D), 0.02),
    }

    out = ddit_block(x, c, cos, sin, params, n_heads,
                     q_tile=128, kv_tile=128, s_tile=128)
    out = jax.block_until_ready(out)

    ref = ddit_block_ref(x, c, cos, sin, params, n_heads)
    assert out.shape == (B, S, D)
    # bf16 MXU matmuls + (on v6e/v7x) bf16 exp + approx reciprocal -> loosened
    # tolerance vs the f32 reference.
    assert jnp.allclose(out, ref, rtol=5e-2, atol=5e-2), (
        f"max abs err = {jnp.max(jnp.abs(out - ref))}")

    print("KERNEL_OK")
</pallas_src>

<mosaic_0001>
module attributes {stable_mosaic.version = 11 : i64} {
  func.func @_qkv_rotary_kernel(%arg0: i32, %arg1: i32, %arg2: memref<1x128x256xf32, #tpu.memory_space<vmem>>, %arg3: memref<1x6x256xf32, #tpu.memory_space<vmem>>, %arg4: memref<128x128xf32, #tpu.memory_space<vmem>>, %arg5: memref<128x128xf32, #tpu.memory_space<vmem>>, %arg6: memref<1x256xf32, #tpu.memory_space<vmem>>, %arg7: memref<256x768xbf16, #tpu.memory_space<vmem>>, %arg8: memref<1x2x128x128xbf16, #tpu.memory_space<vmem>>, %arg9: memref<1x2x128x128xbf16, #tpu.memory_space<vmem>>, %arg10: memref<1x2x128x128xbf16, #tpu.memory_space<vmem>>) attributes {dimension_semantics = [#tpu.dimension_semantics<parallel>, #tpu.dimension_semantics<parallel>], iteration_bounds = array<i64: 2, 2>, scalar_prefetch = 0 : i64, scratch_operands = 0 : i64, tpu.core_type = #tpu.core_type<tc>, window_params = [{transform_indices = @transform_0, window_bounds = array<i64: 1, 128, 256>}, {transform_indices = @transform_1, window_bounds = array<i64: 1, 6, 256>}, {transform_indices = @transform_2, window_bounds = array<i64: 128, 128>}, {transform_indices = @transform_3, window_bounds = array<i64: 128, 128>}, {pipeline_mode = #tpu.pipeline_mode<synchronous>, transform_indices = @transform_4, window_bounds = array<i64: 1, 256>}, {pipeline_mode = #tpu.pipeline_mode<synchronous>, transform_indices = @transform_5, window_bounds = array<i64: 256, 768>}, {transform_indices = @transform_6, window_bounds = array<i64: 1, 2, 128, 128>}, {transform_indices = @transform_7, window_bounds = array<i64: 1, 2, 128, 128>}, {transform_indices = @transform_8, window_bounds = array<i64: 1, 2, 128, 128>}]} {
    %c0 = arith.constant 0 : index
    %c0_0 = arith.constant 0 : index
    %c0_1 = arith.constant 0 : index
    %0 = vector.load %arg2[%c0, %c0_0, %c0_1] : memref<1x128x256xf32, #tpu.memory_space<vmem>>, vector<1x128x256xf32>
    %1 = vector.shape_cast %0 : vector<1x128x256xf32> to vector<128x256xf32>
    %c0_2 = arith.constant 0 : index
    %c0_3 = arith.constant 0 : index
    %c0_4 = arith.constant 0 : index
    %2 = vector.load %arg3[%c0_2, %c0_3, %c0_4] : memref<1x6x256xf32, #tpu.memory_space<vmem>>, vector<1x1x256xf32>
    %3 = vector.shape_cast %2 : vector<1x1x256xf32> to vector<1x256xf32>
    %c0_5 = arith.constant 0 : index
    %c1 = arith.constant 1 : index
    %c0_6 = arith.constant 0 : index
    %4 = vector.load %arg3[%c0_5, %c1, %c0_6] : memref<1x6x256xf32, #tpu.memory_space<vmem>>, vector<1x1x256xf32>
    %5 = vector.shape_cast %4 : vector<1x1x256xf32> to vector<1x256xf32>
    %c0_7 = arith.constant 0 : index
    %c0_8 = arith.constant 0 : index
    %6 = vector.load %arg6[%c0_7, %c0_8] : memref<1x256xf32, #tpu.memory_space<vmem>>, vector<1x256xf32>
    %cst = arith.constant dense<0.000000e+00> : vector<128xf32>
    %7 = vector.multi_reduction <add>, %1, %cst [1] : vector<128x256xf32> to vector<128xf32>
    %8 = vector.shape_cast %7 : vector<128xf32> to vector<128x1xf32>
    %cst_9 = arith.constant 2.560000e+02 : f32
    %9 = vector.broadcast %cst_9 : f32 to vector<128x1xf32>
    %10 = arith.divf %8, %9 : vector<128x1xf32>
    %11 = vector.broadcast %10 : vector<128x1xf32> to vector<128x256xf32>
    %12 = arith.subf %1, %11 : vector<128x256xf32>
    %13 = arith.mulf %12, %12 : vector<128x256xf32>
    %cst_10 = arith.constant dense<0.000000e+00> : vector<128xf32>
    %14 = vector.multi_reduction <add>, %13, %cst_10 [1] : vector<128x256xf32> to vector<128xf32>
    %15 = vector.shape_cast %14 : vector<128xf32> to vector<128x1xf32>
    %cst_11 = arith.constant 2.560000e+02 : f32
    %16 = vector.broadcast %cst_11 : f32 to vector<128x1xf32>
    %17 = arith.divf %15, %16 : vector<128x1xf32>
    %cst_12 = arith.constant 9.99999974E-6 : f32
    %18 = vector.broadcast %cst_12 : f32 to vector<128x1xf32>
    %19 = arith.addf %17, %18 : vector<128x1xf32>
    %20 = math.rsqrt %19 : vector<128x1xf32>
    %21 = vector.broadcast %20 : vector<128x1xf32> to vector<128x256xf32>
    %22 = arith.mulf %12, %21 : vector<128x256xf32>
    %23 = vector.broadcast %6 : vector<1x256xf32> to vector<128x256xf32>
    %24 = arith.mulf %22, %23 : vector<128x256xf32>
    %cst_13 = arith.constant 1.000000e+00 : f32
    %25 = vector.broadcast %cst_13 : f32 to vector<1x256xf32>
    %26 = arith.addf %25, %5 : vector<1x256xf32>
    %27 = vector.broadcast %26 : vector<1x256xf32> to vector<128x256xf32>
    %28 = arith.mulf %24, %27 : vector<128x256xf32>
    %29 = vector.broadcast %3 : vector<1x256xf32> to vector<128x256xf32>
    %30 = arith.addf %28, %29 : vector<128x256xf32>
    %31 = arith.truncf %30 : vector<128x256xf32> to vector<128x256xbf16>
    %c0_14 = arith.constant 0 : index
    %c0_15 = arith.constant 0 : index
    %32 = vector.load %arg7[%c0_14, %c0_15] : memref<256x768xbf16, #tpu.memory_space<vmem>>, vector<256x768xbf16>
    %cst_16 = arith.constant dense<0.000000e+00> : vector<128x768xf32>
    %33 = tpu.matmul %31, %32, %cst_16 {dimension_numbers = #tpu.dot_dimension_numbers<[1], [0], [0], [1], [0, 0, 1, 1], [], []>} : vector<128x256xbf16>, vector<256x768xbf16>, vector<128x768xf32> -> vector<128x768xf32>
    %34 = vector.extract_strided_slice %33 {offsets = [0, 0], sizes = [128, 256], strides = [1, 1]} : vector<128x768xf32> to vector<128x256xf32>
    %cst_17 = arith.constant 0.0883883461 : f32
    %35 = vector.broadcast %cst_17 : f32 to vector<128x256xf32>
    %36 = arith.mulf %34, %35 : vector<128x256xf32>
    %37 = vector.shape_cast %36 : vector<128x256xf32> to vector<128x2x128xf32>
    %38 = vector.extract_strided_slice %33 {offsets = [0, 256], sizes = [128, 256], strides = [1, 1]} : vector<128x768xf32> to vector<128x256xf32>
    %39 = vector.shape_cast %38 : vector<128x256xf32> to vector<128x2x128xf32>
    %40 = vector.extract_strided_slice %33 {offsets = [0, 512], sizes = [128, 256], strides = [1, 1]} : vector<128x768xf32> to vector<128x256xf32>
    %41 = vector.shape_cast %40 : vector<128x256xf32> to vector<128x2x128xf32>
    %c0_18 = arith.constant 0 : index
    %c0_19 = arith.constant 0 : index
    %42 = vector.load %arg4[%c0_18, %c0_19] : memref<128x128xf32, #tpu.memory_space<vmem>>, vector<128x128xf32>
    %43 = vector.shape_cast %42 : vector<128x128xf32> to vector<128x1x128xf32>
    %c0_20 = arith.constant 0 : index
    %c0_21 = arith.constant 0 : index
    %44 = vector.load %arg5[%c0_20, %c0_21] : memref<128x128xf32, #tpu.memory_space<vmem>>, vector<128x128xf32>
    %45 = vector.shape_cast %44 : vector<128x128xf32> to vector<128x1x128xf32>
    %c64_i32 = arith.constant 64 : i32
    %46 = tpu.dynamic_rotate %37 by %c64_i32 dim 2 : vector<128x2x128xf32>, i32 -> vector<128x2x128xf32>
    %c64_i32_22 = arith.constant 64 : i32
    %47 = tpu.dynamic_rotate %39 by %c64_i32_22 dim 2 : vector<128x2x128xf32>, i32 -> vector<128x2x128xf32>
    %48 = vector.broadcast %43 : vector<128x1x128xf32> to vector<128x2x128xf32>
    %49 = arith.mulf %37, %48 : vector<128x2x128xf32>
    %50 = vector.broadcast %45 : vector<128x1x128xf32> to vector<128x2x128xf32>
    %51 = arith.mulf %46, %50 : vector<128x2x128xf32>
    %52 = arith.addf %49, %51 : vector<128x2x128xf32>
    %53 = vector.broadcast %43 : vector<128x1x128xf32> to vector<128x2x128xf32>
    %54 = arith.mulf %39, %53 : vector<128x2x128xf32>
    %55 = vector.broadcast %45 : vector<128x1x128xf32> to vector<128x2x128xf32>
    %56 = arith.mulf %47, %55 : vector<128x2x128xf32>
    %57 = arith.addf %54, %56 : vector<128x2x128xf32>
    %58 = tpu.transpose %52, [1, 0, 2] : vector<128x2x128xf32> -> vector<2x128x128xf32>
    %59 = arith.truncf %58 : vector<2x128x128xf32> to vector<2x128x128xbf16>
    %c0_23 = arith.constant 0 : index
    %c0_24 = arith.constant 0 : index
    %c0_25 = arith.constant 0 : index
    %c0_26 = arith.constant 0 : index
    %60 = vector.load %arg8[%c0_23, %c0_24, %c0_25, %c0_26] : memref<1x2x128x128xbf16, #tpu.memory_space<vmem>>, vector<1x2x128x128xbf16>
    %61 = vector.shape_cast %60 : vector<1x2x128x128xbf16> to vector<2x128x128xbf16>
    %62 = vector.shape_cast %59 : vector<2x128x128xbf16> to vector<1x2x128x128xbf16>
    tpu.vector_store %arg8[%c0_23, %c0_24, %c0_25, %c0_26], %62 {strides = array<i32>} : memref<1x2x128x128xbf16, #tpu.memory_space<vmem>>, vector<1x2x128x128xbf16>,
    %63 = tpu.transpose %57, [1, 0, 2] : vector<128x2x128xf32> -> vector<2x128x128xf32>
    %64 = arith.truncf %63 : vector<2x128x128xf32> to vector<2x128x128xbf16>
    %c0_27 = arith.constant 0 : index
    %c0_28 = arith.constant 0 : index
    %c0_29 = arith.constant 0 : index
    %c0_30 = arith.constant 0 : index
    %65 = vector.load %arg9[%c0_27, %c0_28, %c0_29, %c0_30] : memref<1x2x128x128xbf16, #tpu.memory_space<vmem>>, vector<1x2x128x128xbf16>
    %66 = vector.shape_cast %65 : vector<1x2x128x128xbf16> to vector<2x128x128xbf16>
    %67 = vector.shape_cast %64 : vector<2x128x128xbf16> to vector<1x2x128x128xbf16>
    tpu.vector_store %arg9[%c0_27, %c0_28, %c0_29, %c0_30], %67 {strides = array<i32>} : memref<1x2x128x128xbf16, #tpu.memory_space<vmem>>, vector<1x2x128x128xbf16>,
    %68 = tpu.transpose %41, [1, 0, 2] : vector<128x2x128xf32> -> vector<2x128x128xf32>
    %69 = arith.truncf %68 : vector<2x128x128xf32> to vector<2x128x128xbf16>
    %c0_31 = arith.constant 0 : index
    %c0_32 = arith.constant 0 : index
    %c0_33 = arith.constant 0 : index
    %c0_34 = arith.constant 0 : index
    %70 = vector.load %arg10[%c0_31, %c0_32, %c0_33, %c0_34] : memref<1x2x128x128xbf16, #tpu.memory_space<vmem>>, vector<1x2x128x128xbf16>
    %71 = vector.shape_cast %70 : vector<1x2x128x128xbf16> to vector<2x128x128xbf16>
    %72 = vector.shape_cast %69 : vector<2x128x128xbf16> to vector<1x2x128x128xbf16>
    tpu.vector_store %arg10[%c0_31, %c0_32, %c0_33, %c0_34], %72 {strides = array<i32>} : memref<1x2x128x128xbf16, #tpu.memory_space<vmem>>, vector<1x2x128x128xbf16>,
    return
  }
  func.func @transform_0(%arg0: i32, %arg1: i32) -> (i32, i32, i32) {
    %c0_i32 = arith.constant 0 : i32
    %c0_i32_0 = arith.constant 0 : i32
    return %arg0, %arg1, %c0_i32 : i32, i32, i32
  }
  func.func @transform_1(%arg0: i32, %arg1: i32) -> (i32, i32, i32) {
    %c0_i32 = arith.constant 0 : i32
    %c0_i32_0 = arith.constant 0 : i32
    %c0_i32_1 = arith.constant 0 : i32
    return %arg0, %c0_i32, %c0_i32_0 : i32, i32, i32
  }
  func.func @transform_2(%arg0: i32, %arg1: i32) -> (i32, i32) {
    %c0_i32 = arith.constant 0 : i32
    %c0_i32_0 = arith.constant 0 : i32
    return %arg1, %c0_i32 : i32, i32
  }
  func.func @transform_3(%arg0: i32, %arg1: i32) -> (i32, i32) {
    %c0_i32 = arith.constant 0 : i32
    %c0_i32_0 = arith.constant 0 : i32
    return %arg1, %c0_i32 : i32, i32
  }
  func.func @transform_4(%arg0: i32, %arg1: i32) -> (i32, i32) {
    %c0_i32 = arith.constant 0 : i32
    %c0_i32_0 = arith.constant 0 : i32
    %c0_i32_1 = arith.constant 0 : i32
    return %c0_i32, %c0_i32_0 : i32, i32
  }
  func.func @transform_5(%arg0: i32, %arg1: i32) -> (i32, i32) {
    %c0_i32 = arith.constant 0 : i32
    %c0_i32_0 = arith.constant 0 : i32
    %c0_i32_1 = arith.constant 0 : i32
    return %c0_i32, %c0_i32_0 : i32, i32
  }
  func.func @transform_6(%arg0: i32, %arg1: i32) -> (i32, i32, i32, i32) {
    %c0_i32 = arith.constant 0 : i32
    %c0_i32_0 = arith.constant 0 : i32
    %c0_i32_1 = arith.constant 0 : i32
    return %arg0, %c0_i32, %arg1, %c0_i32_0 : i32, i32, i32, i32
  }
  func.func @transform_7(%arg0: i32, %arg1: i32) -> (i32, i32, i32, i32) {
    %c0_i32 = arith.constant 0 : i32
    %c0_i32_0 = arith.constant 0 : i32
    %c0_i32_1 = arith.constant 0 : i32
    return %arg0, %c0_i32, %arg1, %c0_i32_0 : i32, i32, i32, i32
  }
  func.func @transform_8(%arg0: i32, %arg1: i32) -> (i32, i32, i32, i32) {
    %c0_i32 = arith.constant 0 : i32
    %c0_i32_0 = arith.constant 0 : i32
    %c0_i32_1 = arith.constant 0 : i32
    return %arg0, %c0_i32, %arg1, %c0_i32_0 : i32, i32, i32, i32
  }
}

</mosaic_0001>

<bundles_post_ra>
// kernel: tpu_custom_call.1
= control target key start
LH: loop header
LB: loop body
LE: loop exit
PB: predicated region body
PF: predicated region fallthrough
CT: control target
= control target key end

     0   :  { %s21086_s0 = inlined_call_operand.hbm [shape: f32[2,256,256], index: 0, kind: input, shape index: {}]   ;;  %s21087_s1 = inlined_call_operand.hbm [shape: f32[2,6,256], index: 1, kind: input, shape index: {}]   ;;  %s21088_s2 = inlined_call_operand.hbm [shape: f32[256,128], index: 2, kind: input, shape index: {}]   ;;  %s21089_s3 = inlined_call_operand.hbm [shape: f32[256,128], index: 3, kind: input, shape index: {}]   ;;  %s21090_s4 = inlined_call_operand.hbm [shape: f32[1,256], index: 4, kind: input, shape index: {}]   ;;  %s21091_s5 = inlined_call_operand.hbm [shape: bf16[256,768], index: 5, kind: input, shape index: {}]   ;;  %s21092_s6 = inlined_call_operand.hbm [shape: bf16[2,2,256,128], index: 6, kind: output, shape index: {0}]   ;;  %s21093_s7 = inlined_call_operand.hbm [shape: bf16[2,2,256,128], index: 7, kind: output, shape index: {1}]   ;;  %s21094_s8 = inlined_call_operand.hbm [shape: bf16[2,2,256,128], index: 8, kind: output, shape index: {2}]  }
   0x1   :  { %21628 = sst [smem:[#allocation197_spill]] %s21086_s0 }
   0x2   :  { %21629 = sst [smem:[#allocation198_spill]] %s21087_s1 }
   0x3   :  { %21630 = sst [smem:[#allocation199_spill]] %s21090_s4 }
   0x4   :  { %21631 = sst [smem:[#allocation200_spill]] %s21091_s5 }
   0x5   :  { %21632 = sst [smem:[#allocation201_spill]] %s21092_s6 }
   0x6   :  { %21633 = sst [smem:[#allocation202_spill]] %s21093_s7 }
   0x7   :  { %21634 = sst [smem:[#allocation203_spill]] %s21094_s8 }
   0x8   :  { %14 = vsyncpa [#allocation3], 0 }
   0x9   :  { %16 = vsyncpa [#allocation3 + $0x1], 0 }
   0xa   :  { %17 = vsyncpa [#allocation6], 0 }
   0xb   :  { %19 = vsyncpa [#allocation6 + $0x1], 0 }
   0xc   :  { %20 = vsyncpa [#allocation9], 0 }
   0xd   :  { %22 = vsyncpa [#allocation9 + $0x1], 0 }
   0xe   :  { %23 = vsyncpa [#allocation12], 0 }
   0xf   :  { %24 = vsyncpa [#allocation4], 0 }
  0x10   :  { %26 = vsyncpa [#allocation4 + $0x1], 0 }
  0x11   :  { %27 = vsyncpa [#allocation15], 0 }
  0x12   :  { %29 = vsyncpa [#allocation15 + $0x1], 0  ;;  %s14049_s27 = smov 0   ;;  %s14051_s28 = smov 0  }
  0x13   :  { %s14053_s29 = smov 0   ;;  %s14055_s30 = smov 0  }
  0x14   :  { %s14057_s9 = smov 0   ;;  %s14059_s10 = smov 0  }
  0x15   :  { %s14061_s11 = smov 0   ;;  %s14063_s12 = smov 0  }
  0x16   :  { %s14065_s13 = smov 0   ;;  %s14067_s14 = smov 0  }
  0x17   :  { %s14069_s15 = smov 0   ;;  %s14071_s16 = smov 0  }
  0x18   :  { %s14073_s17 = smov 0   ;;  %s14075_s18 = smov 0  }
  0x19 LB: > { %21635 = sst [smem:[#allocation31_spill]] %s13916_s28  ;;  %s14118_s19 = sadd.s32 4294967295, %s13964_s18   ;;  %s13964_s18 = sphi %s14075_s18, %s35_s18   ;;  %s13960_s17 = sphi %s14073_s17, %s22627_s17   ;;  %s13956_s16 = sphi %s14071_s16, %s22626_s16   ;;  %s13952_s15 = sphi %s14069_s15, %s22625_s15   ;;  %s13948_s14 = sphi %s14067_s14, %s22624_s14   ;;  %s13944_s13 = sphi %s14065_s13, %s22615_s13   ;;  %s13940_s12 = sphi %s14063_s12, %s22623_s12   ;;  %s13936_s11 = sphi %s14061_s11, %s22622_s11   ;;  %s13932_s10 = sphi %s14059_s10, %s22621_s10   ;;  %s13928_s9 = sphi %s14057_s9, %s22620_s9   ;;  %s13924_s30 = sphi %s14055_s30, %s22612_s30   ;;  %s13920_s29 = sphi %s14053_s29, %s22619_s29   ;;  %s13916_s28 = sphi %s14051_s28, %s22618_s28   ;;  %s13912_s27 = sphi %s14049_s27, %s22611_s27  }
  0x1a   : > { %21636 = sst [smem:[#allocation32_spill]] %s13928_s9  ;;  %p121_p0 = scmp.ne.s32.totalorder %s13916_s28, %s13912_s27 }
  0x1b   : > { %21637 = sst [smem:[#allocation33_spill]] %s13944_s13  ;;  %p21095_p1 = scmp.eq.s32.totalorder %s14118_s19, 0 }
  0x1c   : > { %21638 = sst [smem:[#allocation34_spill]] %s13948_s14  ;;  %p12532_p3 = scmp.ge.s32.totalorder %s13964_s18, 1 }
  0x1d   : > { %21639 = sst [smem:[#allocation35_spill]] %s13952_s15  ;;  %p284_p4 = scmp.lt.s32.totalorder %s13964_s18, 5 }
  0x1e   : > { %p14127_p5 = por %p121_p0, %p21095_p1  ;;  %s13966_s22 = smov [#allocation10]  }
  0x1f   : > { %p14131_p6 = pnand %p12532_p3, %p284_p4  ;;  %s297_s23 = sshll.u32 %s13966_s22, 4  ;;  %s298_s23 = int_to_ptr.vmem [resolvable:$true] %s297_s23 }
  0x20   : > { %s21640_s20 = scalar_select %p14127_p5, 1, 0 }
  0x21   : > { %s21642_s21 = scalar_select %p14131_p6, 1, 0 }
  0x22   : > { %21641 = sst [smem:[#allocation36_spill]] %s21640_s20  ;;  %p13256_p7 = pneg %p14131_p6 }
  0x23   : > { %s21644_s4 = sld [smem:[#allocation199_spill]] }
  0x24   : > { %p14139_p8 = pnand %p13256_p7, %p21095_p1 }
  0x26   : > { %p21108_p10 = pneg %p14139_p8 }
  0x29   : > { %s13646_s27 = scalar_lea.hbm %s21644_s4, 32 }
  0x2a   : > { %p13647_p9 = scmp.ne.s32.totalorder %s21644_s4, %s13646_s27  ;;  %p13653_p13 = scmp.lt.u32.totalorder %s13646_s27, %s21644_s4 }
  0x2c   : > { %p13649_p11 = pnand %p21108_p10, %p13647_p9 }
  0x2e   : > { %p13650_p12 = pneg %p13649_p11 }
  0x30   : > { %p13655_p0 = pnand %p13653_p13, %p13650_p12 }
  0x32   : > { %13658 = shalt.err (!%p13655_p0)
}
  0x33   : > { %s13659_s25 = scalar_lea.vmem %s298_s23, 32  ;;  %p13667_p2 = scmp.lt.s32.totalorder %s298_s23, %s298_s23 }
  0x34   : > { %p13660_p3 = scmp.ne.s32.totalorder %s298_s23, %s13659_s25  ;;  %p13668_p1 = scmp.lt.s32.totalorder %s13659_s25, %s13659_s25 }
  0x36   : > { %p13662_p4 = pnand %p13660_p3, %p21108_p10  ;;  %p13669_p5 = por %p13668_p1, %p13667_p2 }
  0x38   : > { %p13663_p7 = pneg %p13662_p4 }
  0x3a   : > { %p13670_p6 = pnand %p13669_p5, %p13663_p7 }
  0x3c   : > { %13673 = shalt.err (!%p13670_p6)
}
  0x3d   : > { %13259 = dma.hbm_to_vmem [thread:$0]  (!%p14139_p8), %s21644_s4, 32, %s298_s23, [#allocation9]  }
  0x3e   : > { %s44_s6 = sadd.s32 1, %s13956_s16  ;;  %s47_s26 = sadd.s32 1, %s13960_s17 }
  0x3f   : > { %p45_p1 = scmp.ge.s32.totalorder %s44_s6, 2  ;;  %p21107_p2 = scmp.eq.s32.totalorder %s13964_s18, 0 }
  0x40   : > { %s82_s27 = sadd.s32 1, %s13932_s10  ;;  %p89_p5 = scmp.ne.s32.totalorder %s13932_s10, %s13928_s9 }
  0x41   : > { %s22629_s6 = smov (%p45_p1, %s44_s6), 0  ;;  %s22631_s26 = smov (!%p45_p1, %s47_s26), %s13960_s17 }
  0x42   : > { %21645 = sst [smem:[#allocation37_spill]] %s22629_s6  ;;  %s52_s22 = ssub.s32 %s13956_s16, %s22629_s6 }
  0x43   : > { %p14178_p6 = por %p89_p5, %p21107_p2  ;;  %p49_p9 = scmp.ge.s32.totalorder %s22631_s26, 2 }
  0x44   : > { %p95_p11 = scmp.ne.s32.totalorder %s13928_s9, %s13924_s30  ;;  %p106_p12 = scmp.eq.s32.totalorder %s52_s22, 0 }
  0x45   : > { %s108_s25 = sadd.s32 1, %s13920_s29  ;;  %s22633_s26 = smov (%p49_p9, %s22631_s26), 0 }
  0x46   : > { %21647 = sst [smem:[#allocation38_spill]] %s22633_s26  ;;  %p21648_p13 = scmp.eq.s32.totalorder %s14118_s19, 0 }
  0x47   : > { %p115_p3 = scmp.ne.s32.totalorder %s13920_s29, %s13916_s28  ;;  %s51_s8 = ssub.s32 %s13960_s17, %s22633_s26 }
  0x48   : > { %p14189_p0 = por %p95_p11, %p21648_p13  ;;  %p21106_p4 = scmp.lt.s32.totalorder %s13964_s18, 4 }
  0x49   : > { %s53_s4 = sor.u32 %s52_s22, %s51_s8  ;;  %p80_p7 = scmp.eq.s32.totalorder %s51_s8, 0 }
  0x4a   : > { %s21649_s7 = scalar_select %p14189_p0, 1, 0 }
  0x4b   : > { %p14198_p1 = scmp.eq.s32.totalorder %s53_s4, 0  ;;  %p117_p5 = por %p115_p3, %p21107_p2 }
  0x4c   : > { %21650 = sst [smem:[#allocation39_spill]] %s21649_s7  ;;  %s21110_s14 = sand.u32 1, %s13964_s18  }
  0x4d   : > { %s21651_s30 = scalar_select %p14198_p1, 1, 0 }
  0x4e   : > { %s14205_s6 = scalar_select %p80_p7, %s13932_s10, %s82_s27  }
  0x4f   : > { %s14208_s15 = scalar_select %p106_p12, %s13920_s29, %s108_s25  }
  0x50   : > { %21652 = sst [smem:[#allocation40_spill]] %s14205_s6  ;;  %s347_s20 = sand.u32 1, %s13932_s10  }
  0x51   : > { %s12541_s26 = sshll.u32 %s347_s20, 4  ;;  %s12800_s28 = sshll.u32 %s13960_s17, 8 }
  0x52   : > { %s21653_s1 = sld [smem:[#allocation198_spill]]  ;;  %s349_s4 = scalar_lea.vmem [#allocation5], %s12541_s26 }
  0x53   : > { %s357_s8 = sshll.u32 %s349_s4, 4  ;;  %p14224_p9 = pnand %p21106_p4, %p14178_p6  ;;  %s14218_s8 = int_to_ptr.vmem [resolvable:$true] %s357_s8 }
  0x54   : > { %p14230_p11 = pnand %p21106_p4, %p117_p5  ;;  %s14236_s9 = scalar_lea.sflag [#allocation6], %s21110_s14 }
  0x55   : > { %p13676_p13 = pneg %p14224_p9 }
  0x58   : > { %s14216_s22 = scalar_lea.hbm %s21653_s1, %s12800_s28  ;;  %s13679_s25 = scalar_lea.hbm %s21653_s1, 512 }
  0x59   : > { %s21655_s28 = scalar_select %p14230_p11, 1, 0 }
  0x5a   : > { %s13674_s20 = scalar_lea.hbm %s14216_s22, 256  ;;  %p13680_p7 = scmp.lt.u32.totalorder %s14216_s22, %s21653_s1 }
  0x5b   : > { %p13675_p12 = scmp.ne.s32.totalorder %s14216_s22, %s13674_s20  ;;  %p13681_p5 = scmp.lt.u32.totalorder %s13679_s25, %s13674_s20 }
  0x5c   : > { %p13683_p2 = scmp.lt.u32.totalorder %s13674_s20, %s14216_s22 }
  0x5d   : > { %p13677_p6 = pnand %p13676_p13, %p13675_p12  ;;  %p13682_p4 = por %p13681_p5, %p13680_p7 }
  0x5f   : > { %p13678_p3 = pneg %p13677_p6  ;;  %p13684_p10 = por %p13683_p2, %p13682_p4 }
  0x61   : > { %p13685_p0 = pnand %p13684_p10, %p13678_p3 }
  0x63   : > { %13688 = shalt.err (!%p13685_p0)
}
  0x64   : > { %s13689_s14 = scalar_lea.vmem %s14218_s8, 256  ;;  %s13967_s26 = smov [#allocation5]  }
  0x65   : > { %p13690_p12 = scmp.ne.s32.totalorder %s14218_s8, %s13689_s14  ;;  %s13694_s23 = sshll.u32 %s13967_s26, 4  ;;  %s13695_s23 = int_to_ptr.vmem [resolvable:$false] %s13694_s23 }
  0x66   : > { %s13696_s7 = scalar_lea.vmem %s13695_s23, 512  ;;  %p13697_p1 = scmp.lt.s32.totalorder %s14218_s8, %s13695_s23 }
  0x67   : > { %p13692_p6 = pnand %p13690_p12, %p13676_p13  ;;  %p13698_p7 = scmp.lt.s32.totalorder %s13696_s7, %s13689_s14 }
  0x69   : > { %p13693_p11 = pneg %p13692_p6  ;;  %p13699_p5 = por %p13698_p7, %p13697_p1 }
  0x6b   : > { %p13700_p2 = pnand %p13699_p5, %p13693_p11 }
  0x6d   : > { %13703 = shalt.err (!%p13700_p2)
}
  0x6e   : > { %13269 = dma.hbm_to_vmem [thread:$0]  (!%p14224_p9), %s14216_s22, 256, %s14218_s8, %s14236_s9  }
  0x6f   : > { %s13968_s20 = smov [#allocation11]   ;;  %s21656_s5 = sld [smem:[#allocation200_spill]] }
  0x70   : > { %s307_s25 = sshll.u32 %s13968_s20, 4  ;;  %p21657_p0 = pneg %p14139_p8  ;;  %s308_s25 = int_to_ptr.vmem [resolvable:$true] %s307_s25 }
  0x75   : > { %s13704_s26 = scalar_lea.hbm %s21656_s5, 12288 }
  0x76   : > { %p13705_p10 = scmp.ne.s32.totalorder %s21656_s5, %s13704_s26  ;;  %p13711_p11 = scmp.lt.u32.totalorder %s13704_s26, %s21656_s5 }
  0x78   : > { %p13707_p4 = pnand %p13705_p10, %p21657_p0 }
  0x7a   : > { %p13708_p1 = pneg %p13707_p4 }
  0x7c   : > { %p13713_p9 = pnand %p13711_p11, %p13708_p1 }
  0x7e   : > { %13716 = shalt.err (!%p13713_p9)
}
  0x7f   : > { %s13717_s22 = scalar_lea.vmem %s308_s25, 12288  ;;  %p21658_p3 = pmov %p21657_p0 }
  0x80   : > { %p13718_p13 = scmp.ne.s32.totalorder %s308_s25, %s13717_s22  ;;  %p13725_p7 = scmp.lt.s32.totalorder %s308_s25, %s308_s25 }
  0x81   : > { %p13726_p5 = scmp.lt.s32.totalorder %s13717_s22, %s13717_s22 }
  0x82   : > { %p13720_p12 = pnand %p13718_p13, %p21658_p3 }
  0x83   : > { %p13727_p2 = por %p13726_p5, %p13725_p7 }
  0x84   : > { %p13721_p6 = pneg %p13720_p12 }
  0x86   : > { %p13728_p0 = pnand %p13727_p2, %p13721_p6 }
  0x88   : > { %13731 = shalt.err (!%p13728_p0)
}
  0x89   : > { %s13969_s1 = smov 384   ;;  %s13970_s6 = smov 24  }
  0x8a   : > { %13262 = dma.hbm_to_vmem [thread:$0]  (!%p14139_p8), %s21656_s5, 12288, %s308_s25, [#allocation12], %s13969_s1, %s13969_s1, %s13970_s6  }
  0x8b   : > { %s21112_s20 = sadd.s32 4294967294, %s13964_s18   ;;  %s56_s4 = sadd.s32 1, %s13944_s13 }
  0x8c   : > { %p63_p10 = scmp.ne.s32.totalorder %s13944_s13, %s13940_s12  ;;  %p21659_p4 = scmp.ne.s32.totalorder %s21651_s30, 0 }
  0x8d   : > { %p21661_p1 = scmp.eq.s32.totalorder %s13964_s18, 0  ;;  %p69_p9 = scmp.ne.s32.totalorder %s13940_s12, %s13936_s11 }
  0x8e   : > { %s14291_s26 = scalar_select %p21659_p4, %s13944_s13, %s56_s4  }
  0x8f   : > { %p14295_p11 = por %p21661_p1, %p63_p10  ;;  %p21663_p13 = scmp.eq.s32.totalorder %s14118_s19, 3 }
  0x90   : > { %21660 = sst [smem:[#allocation41_spill]] %s14291_s26  ;;  %p221_p8 = scmp.eq.s32.totalorder %s21112_s20, 3 }
  0x91   : > { %p14303_p3 = por %p21663_p13, %p63_p10  ;;  %p21665_p12 = scmp.eq.s32.totalorder %s14118_s19, 0 }
  0x92   : > { %s321_s25 = sand.u32 1, %s13944_s13   ;;  %p14316_p7 = por %p221_p8, %p69_p9 }
  0x93   : > { %s21664_s24 = scalar_select %p14303_p3, 1, 0 }
  0x94   : > { %p14311_p6 = por %p21665_p12, %p69_p9  ;;  %s12536_s27 = sshll.u32 %s321_s25, 8 }
  0x95   : > { %s21667_s14 = scalar_select %p14316_p7, 1, 0 }
  0x96   : > { %s12799_s22 = sshll.u32 %s13956_s16, 5  ;;  %s12539_s1 = sshll.u32 %s13960_s17, 6 }
  0x97   : > { %s332_s6 = sadd.s32 %s12799_s22, %s12539_s1  ;;  %s325_s8 = scalar_lea.vmem [#allocation2], %s12536_s27 }
  0x98   : > { %s335_s7 = sshll.u32 %s325_s8, 4  ;;  %s12540_s4 = sshll.u32 %s332_s6, 7  ;;  %s14322_s7 = int_to_ptr.vmem [resolvable:$true] %s335_s7 }
  0x99   : > { %s21668_s0 = sld [smem:[#allocation197_spill]]  ;;  %p21669_p5 = scmp.lt.s32.totalorder %s13964_s18, 4 }
  0x9a   : > { %s366_s27 = sand.u32 1, %s13920_s29   ;;  %s14338_s22 = scalar_lea.sflag [#allocation3], %s321_s25 }
  0x9b   : > { %p14333_p2 = pnand %p21669_p5, %p14295_p11 }
  0x9d   : > { %p13734_p10 = pneg %p14333_p2 }
  0x9f   : > { %s14327_s26 = scalar_lea.hbm %s21668_s0, %s12540_s4  ;;  %s13737_s23 = scalar_lea.hbm %s21668_s0, 16384 }
  0xa0   : > { %s13732_s1 = scalar_lea.hbm %s14327_s26, 4096  ;;  %p13738_p11 = scmp.lt.u32.totalorder %s14327_s26, %s21668_s0 }
  0xa1   : > { %p13733_p0 = scmp.ne.s32.totalorder %s14327_s26, %s13732_s1  ;;  %p13739_p9 = scmp.lt.u32.totalorder %s13737_s23, %s13732_s1 }
  0xa2   : > { %p13741_p8 = scmp.lt.u32.totalorder %s13732_s1, %s14327_s26 }
  0xa3   : > { %p13735_p4 = pnand %p13734_p10, %p13733_p0  ;;  %p13740_p13 = por %p13739_p9, %p13738_p11 }
  0xa5   : > { %p13736_p1 = pneg %p13735_p4  ;;  %p13742_p12 = por %p13741_p8, %p13740_p13 }
  0xa7   : > { %p13743_p5 = pnand %p13742_p12, %p13736_p1 }
  0xa9   : > { %13746 = shalt.err (!%p13743_p5)
}
  0xaa   : > { %s13747_s25 = scalar_lea.vmem %s14322_s7, 4096  ;;  %s13971_s4 = smov [#allocation2]  }
  0xab   : > { %p13748_p0 = scmp.ne.s32.totalorder %s14322_s7, %s13747_s25  ;;  %s13752_s5 = sshll.u32 %s13971_s4, 4  ;;  %s13753_s5 = int_to_ptr.vmem [resolvable:$false] %s13752_s5 }
  0xac   : > { %s13754_s20 = scalar_lea.vmem %s13753_s5, 8192  ;;  %p13755_p3 = scmp.lt.s32.totalorder %s14322_s7, %s13753_s5 }
  0xad   : > { %p13750_p4 = pnand %p13748_p0, %p13734_p10  ;;  %p13756_p11 = scmp.lt.s32.totalorder %s13754_s20, %s13747_s25 }
  0xaf   : > { %p13751_p7 = pneg %p13750_p4  ;;  %p13757_p9 = por %p13756_p11, %p13755_p3 }
  0xb1   : > { %p13758_p13 = pnand %p13757_p9, %p13751_p7 }
  0xb3   : > { %13761 = shalt.err (!%p13758_p13)
}
  0xb4   : > { %s13972_s1 = smov 256   ;;  %s13973_s23 = smov 16  }
  0xb5   : > { %13266 = dma.hbm_to_vmem [thread:$0]  (!%p14333_p2), %s14327_s26, 4096, %s14322_s7, %s14338_s22, %s13972_s1, %s13972_s1, %s13973_s23  }
  0xb6   : > { %s14368_s6 = sshll.u32 %s366_s27, 7  ;;  %s12801_s8 = sshll.u32 %s13956_s16, 11 }
  0xb7   : > { %s14376_s5 = scalar_lea.hbm %s21088_s2, %s12801_s8  ;;  %s368_s20 = scalar_lea.vmem [#allocation7], %s14368_s6 }
  0xb8   : > { %s375_s0 = sshll.u32 %s368_s20, 4  ;;  %s13762_s13 = scalar_lea.hbm %s14376_s5, 2048  ;;  %s14379_s0 = int_to_ptr.vmem [resolvable:$true] %s375_s0 }
  0xb9   : > { %p13763_p3 = scmp.ne.s32.totalorder %s14376_s5, %s13762_s13  ;;  %p21671_p7 = scmp.ne.s32.totalorder %s21655_s28, 0 }
  0xba   : > { %s13767_s27 = scalar_lea.hbm %s21088_s2, 4096  ;;  %p13768_p8 = scmp.lt.u32.totalorder %s14376_s5, %s21088_s2 }
  0xbb   : > { %p13764_p2 = pneg %p21671_p7  ;;  %p13769_p12 = scmp.lt.u32.totalorder %s13767_s27, %s13762_s13 }
  0xbc   : > { %p13771_p0 = scmp.lt.u32.totalorder %s13762_s13, %s14376_s5 }
  0xbd   : > { %p13765_p10 = pnand %p13764_p2, %p13763_p3  ;;  %p13770_p5 = por %p13769_p12, %p13768_p8 }
  0xbf   : > { %p13766_p1 = pneg %p13765_p10  ;;  %p13772_p4 = por %p13771_p0, %p13770_p5 }
  0xc1   : > { %p13773_p11 = pnand %p13772_p4, %p13766_p1 }
  0xc3   : > { %13776 = shalt.err (!%p13773_p11)
}
  0xc4   : > { %s13777_s23 = scalar_lea.vmem %s14379_s0, 2048  ;;  %s13974_s25 = smov [#allocation7]  }
  0xc5   : > { %p13778_p9 = scmp.ne.s32.totalorder %s14379_s0, %s13777_s23  ;;  %s13782_s4 = sshll.u32 %s13974_s25, 4  ;;  %s13783_s4 = int_to_ptr.vmem [resolvable:$false] %s13782_s4 }
  0xc6   : > { %s13784_s20 = scalar_lea.vmem %s13783_s4, 4096  ;;  %p13785_p10 = scmp.lt.s32.totalorder %s14379_s0, %s13783_s4 }
  0xc7   : > { %p13780_p13 = pnand %p13778_p9, %p13764_p2  ;;  %p13786_p8 = scmp.lt.s32.totalorder %s13784_s20, %s13777_s23 }
  0xc9   : > { %p13781_p3 = pneg %p13780_p13  ;;  %p13787_p12 = por %p13786_p8, %p13785_p10 }
  0xcb   : > { %p13788_p5 = pnand %p13787_p12, %p13781_p3 }
  0xcd   : > { %13791 = shalt.err (!%p13788_p5)
}
  0xce   : > { %s13975_s13 = smov 128   ;;  %s13976_s26 = smov 8  }
  0xcf   : > { %13272 = dma.hbm_to_vmem [thread:$0]  (!%p21671_p7), %s14376_s5, 2048, %s14379_s0, %s14236_s9, %s13975_s13, %s13975_s13, %s13976_s26  }
  0xd0   : > { %s14415_s22 = scalar_lea.hbm %s21089_s3, %s12801_s8  ;;  %s389_s1 = scalar_lea.vmem [#allocation8], %s14368_s6 }
  0xd1   : > { %s396_s23 = sshll.u32 %s389_s1, 4  ;;  %s21672_s25 = sand.u32 1, %s13964_s18   ;;  %s14418_s23 = int_to_ptr.vmem [resolvable:$true] %s396_s23 }
  0xd2   : > { %s14422_s4 = scalar_lea.sflag [#allocation9], %s21672_s25  ;;  %s13792_s20 = scalar_lea.hbm %s14415_s22, 2048 }
  0xd3   : > { %p13793_p1 = scmp.ne.s32.totalorder %s14415_s22, %s13792_s20  ;;  %s13797_s8 = scalar_lea.hbm %s21089_s3, 4096 }
  0xd4   : > { %p13798_p11 = scmp.lt.u32.totalorder %s14415_s22, %s21089_s3  ;;  %p13799_p9 = scmp.lt.u32.totalorder %s13797_s8, %s13792_s20 }
  0xd5   : > { %p13795_p0 = pnand %p13793_p1, %p13764_p2  ;;  %p13801_p3 = scmp.lt.u32.totalorder %s13792_s20, %s14415_s22 }
  0xd6   : > { %p13800_p13 = por %p13799_p9, %p13798_p11 }
  0xd7   : > { %p13796_p4 = pneg %p13795_p0 }
  0xd8   : > { %p13802_p10 = por %p13801_p3, %p13800_p13 }
  0xda   : > { %p13803_p8 = pnand %p13802_p10, %p13796_p4 }
  0xdc   : > { %13806 = shalt.err (!%p13803_p8)
}
  0xdd   : > { %s13807_s6 = scalar_lea.vmem %s14418_s23, 2048  ;;  %s13977_s27 = smov [#allocation8]  }
  0xde   : > { %p13808_p12 = scmp.ne.s32.totalorder %s14418_s23, %s13807_s6  ;;  %s13812_s1 = sshll.u32 %s13977_s27, 4  ;;  %s13813_s1 = int_to_ptr.vmem [resolvable:$false] %s13812_s1 }
  0xdf   : > { %s13814_s25 = scalar_lea.vmem %s13813_s1, 4096  ;;  %p13815_p0 = scmp.lt.s32.totalorder %s14418_s23, %s13813_s1 }
  0xe0   : > { %p13810_p5 = pnand %p13808_p12, %p13764_p2  ;;  %p13816_p11 = scmp.lt.s32.totalorder %s13814_s25, %s13807_s6 }
  0xe2   : > { %p13811_p1 = pneg %p13810_p5  ;;  %p13817_p9 = por %p13816_p11, %p13815_p0 }
  0xe4   : > { %p13818_p13 = pnand %p13817_p9, %p13811_p1 }
  0xe6   : > { %13821 = shalt.err (!%p13818_p13)
}
  0xe7   : > { %13275 = dma.hbm_to_vmem [thread:$0]  (!%p21671_p7), %s14415_s22, 2048, %s14418_s23, %s14422_s4, %s13975_s13, %s13975_s13, %s13976_s26  }
  0xe8   : > { %p21673_p2 = scmp.ne.s32.totalorder %s21642_s21, 0 }
  0xea   : > { %408 = sbr.rel (%p21673_p2) target bundleno = 1678 (0x68e), region = 44 }
  0xf1   : > { %s14454_s20 = sand.u32 1, %s13940_s12  }
  0xf2   : > { %s12551_s0 = sshll.u32 %s14454_s20, 8  ;;  %s411_s9 = scalar_lea.sflag [#allocation3], %s14454_s20 }
  0xf3   : > { %s14458_s8 = scalar_lea.vmem [#allocation2], %s12551_s0 }
  0xf4   : > { %13879 = dma.done.wait (%p14311_p6), %s411_s9, 4096  }
  0xf5   : > { %13881 = vsyncadd (%p14311_p6), %s411_s9, 4294963200  ;;  %s21674_s28 = sld [smem:[#allocation32_spill]]  ;;  %s21675_s13 = sld [smem:[#allocation39_spill]] }
  0xf6   : > { %s14465_s21 = sand.u32 1, %s14118_s19  }
  0xf7   : > { %s420_s23 = scalar_lea.sflag [#allocation6], %s14465_s21 }
  0xfb   : > { %s421_s26 = sand.u32 1, %s21674_s28   ;;  %p21676_p7 = scmp.ne.s32.totalorder %s21675_s13, 0 }
  0xfc   : > { %s14468_s22 = sshll.u32 %s421_s26, 4 }
  0xfd   : > { %s423_s4 = scalar_lea.vmem [#allocation5], %s14468_s22 }
  0xfe   : > { %13883 = dma.done.wait (%p21676_p7), %s420_s23, 256  }
  0xff   : > { %13885 = vsyncadd (%p21676_p7), %s420_s23, 4294967040  ;;  %s21677_s5 = sld [smem:[#allocation31_spill]]  ;;  %s21678_s30 = sld [smem:[#allocation36_spill]] }
 0x105   : > { %s430_s7 = sand.u32 1, %s21677_s5   ;;  %p21679_p6 = scmp.ne.s32.totalorder %s21678_s30, 0 }
 0x106   : > { %s12553_s6 = sshll.u32 %s430_s7, 7 }
 0x107   : > { %s14477_s27 = scalar_lea.vmem [#allocation7], %s12553_s6 }
 0x108   : > { %13887 = dma.done.wait (%p21679_p6), %s420_s23, 2048  }
 0x109   : > { %13889 = vsyncadd (%p21679_p6), %s420_s23, 4294965248  ;;  %s438_s1 = scalar_lea.sflag [#allocation9], %s14465_s21  ;;  %s14484_s25 = scalar_lea.vmem [#allocation8], %s12553_s6 }
 0x10a   : > { %13891 = dma.done.wait (%p21679_p6), %s438_s1, 2048  }
 0x10b   : > { %13893 = vsyncadd (%p21679_p6), %s438_s1, 4294965248  ;;  %p21680_p4 = scmp.eq.s32.totalorder %s14118_s19, 0 }
 0x10d   : > { %13895 = dma.done.wait (%p21680_p4), [#allocation9], 32   ;;  %p21681_p3 = pmov %p21680_p4 }
 0x10f   : > { %13897 = vsyncadd (%p21681_p3), [#allocation9], 4294967264  ;;  %p21682_p10 = pmov %p21681_p3 }
 0x110   : > { %p21683_p8 = pmov %p21681_p3 }
 0x111   : > { %13899 = dma.done.wait (%p21682_p10), [#allocation12], 12288  }
 0x112   : > { %13901 = vsyncadd (%p21683_p8), [#allocation12], 4294955008  ;;  %v14499_v0 = vld [vmem:[%s14458_s8] sm:$0xff]  ;;  %v14502_v1 = vld [vmem:[%s14458_s8 + $0x8] sm:$0xff]  ;;  %s13981_s19 = smov 64   ;;  %s16228_s0 = sshll.u32 %s14454_s20, 7 }
 0x113   : > { %v14505_v2 = vld [vmem:[%s14458_s8 + $0x20] sm:$0xff]  ;;  %v549_v3 = vadd.f32 %v14502_v1, %v14499_v0  ;;  %v14510_v4 = vld [vmem:[%s14458_s8 + $0x28] sm:$0xff]  ;;  %v14513_v5 = vld [vmem:[%s14458_s8 + $0x10] sm:$0xff]  ;;  %s16249_s9 = scalar_lea.vmem [#allocation16], %s16228_s0  ;;  %s17453_s28 = scalar_lea.vmem [#allocation13], %s16228_s0 }
 0x114   : > { %v14516_v6 = vld [vmem:[%s14458_s8 + $0x18] sm:$0xff]  ;;  %v555_v7 = vadd.f32 %v14510_v4, %v14505_v2  ;;  %v14521_v8 = vld [vmem:[%s14458_s8 + $0x30] sm:$0xff]  ;;  %v14531_v12 = vld [vmem:[%s14458_s8 + $0x40] sm:$0xff]  ;;  %s12140_s13 = scalar_lea.sflag [#allocation4], %s14454_s20  ;;  %s12145_s26 = scalar_lea.sflag [#allocation15], %s14465_s21 }
 0x115   : > { %v14524_v9 = vld [vmem:[%s14458_s8 + $0x38] sm:$0xff]  ;;  %550 = vadd.xlane.f32.xlu0 %v549_v3  ;;  %v552_v10 = vadd.f32 %v14516_v6, %v14513_v5  ;;  %v14534_v13 = vld [vmem:[%s14458_s8 + $0x48] sm:$0xff]  ;;  %v14537_v14 = vld [vmem:[%s14458_s8 + $0x50] sm:$0xff] }
 0x116   : > { %556 = vadd.xlane.f32.xlu1 %v555_v7  ;;  %v558_v11 = vadd.f32 %v14524_v9, %v14521_v8  ;;  %v14540_v15 = vld [vmem:[%s14458_s8 + $0x58] sm:$0xff]  ;;  %v561_v16 = vadd.f32 %v14534_v13, %v14531_v12  ;;  %v14547_v18 = vld [vmem:[%s14458_s8 + $0x60] sm:$0xff]  ;;  %v14550_v19 = vld [vmem:[%s14458_s8 + $0x68] sm:$0xff] }
 0x117   : > { %v564_v17 = vadd.f32 %v14540_v15, %v14537_v14  ;;  %v14553_v20 = vld [vmem:[%s14458_s8 + $0x70] sm:$0xff]  ;;  %v14556_v21 = vld [vmem:[%s14458_s8 + $0x78] sm:$0xff]  ;;  %v14559_v22 = vld [vmem:[%s14458_s8 + $0x80] sm:$0xff]  ;;  %v567_v24 = vadd.f32 %v14550_v19, %v14547_v18 }
 0x118   : > { %v14562_v23 = vld [vmem:[%s14458_s8 + $0x88] sm:$0xff]  ;;  %v14567_v25 = vld [vmem:[%s14458_s8 + $0x90] sm:$0xff]  ;;  %v14570_v26 = vld [vmem:[%s14458_s8 + $0x98] sm:$0xff]  ;;  %v570_v27 = vadd.f32 %v14556_v21, %v14553_v20 }
 0x119   : > { %553 = vadd.xlane.f32.xlu0 %v552_v10  ;;  %v14575_v28 = vld [vmem:[%s14458_s8 + $0xa0] sm:$0xff]  ;;  %v14578_v29 = vld [vmem:[%s14458_s8 + $0xa8] sm:$0xff]  ;;  %v573_v30 = vadd.f32 %v14562_v23, %v14559_v22  ;;  %v14583_v31 = vld [vmem:[%s14458_s8 + $0xb0] sm:$0xff]  ;;  %v576_v33 = vadd.f32 %v14570_v26, %v14567_v25 }
 0x11a   : > { %559 = vadd.xlane.f32.xlu1 %v558_v11  ;;  %v14586_v32 = vld [vmem:[%s14458_s8 + $0xb8] sm:$0xff]  ;;  %v14591_v34 = vld [vmem:[%s14458_s8 + $0xc0] sm:$0xff]  ;;  %v14594_v35 = vld [vmem:[%s14458_s8 + $0xc8] sm:$0xff]  ;;  %v579_v36 = vadd.f32 %v14578_v29, %v14575_v28 }
 0x11b   : > { %v14599_v37 = vld [vmem:[%s14458_s8 + $0xd0] sm:$0xff]  ;;  %v14602_v38 = vld [vmem:[%s14458_s8 + $0xd8] sm:$0xff]  ;;  %v582_v39 = vadd.f32 %v14586_v32, %v14583_v31  ;;  %v14607_v40 = vld [vmem:[%s14458_s8 + $0xe0] sm:$0xff]  ;;  %v585_v42 = vadd.f32 %v14594_v35, %v14591_v34 }
 0x11c   : > { %v14610_v41 = vld [vmem:[%s14458_s8 + $0xe8] sm:$0xff]  ;;  %v14615_v43 = vld [vmem:[%s14458_s8 + $0xf0] sm:$0xff]  ;;  %v14618_v44 = vld [vmem:[%s14458_s8 + $0xf8] sm:$0xff]  ;;  %v588_v45 = vadd.f32 %v14602_v38, %v14599_v37  ;;  %s17404_s8 = scalar_lea.vmem [#allocation14], %s16228_s0 }
 0x11d   : > { %562 = vadd.xlane.f32.xlu0 %v561_v16  ;;  %v591_v46 = vadd.f32 %v14610_v41, %v14607_v40  ;;  %v594_v47 = vadd.f32 %v14618_v44, %v14615_v43  ;;  %v13438_v48 = vld [vmem:[#allocation11 + $0x4] ss:$24 sps:$4 sm:$0xff]   ;;  %v13442_v50 = vld [vmem:[#allocation11] ss:$24 sps:$4 sm:$0xff]   ;;  %v13444_v52 = vld [vmem:[#allocation11 + $0x34] ss:$24 sps:$4 sm:$0xff]  }
 0x11e   : > { %565 = vadd.xlane.f32.xlu1 %v564_v17  ;;  %v13440_v49 = vld [vmem:[#allocation11 + $0xc] ss:$24 sps:$4 sm:$0xff]   ;;  %v13443_v51 = vld [vmem:[#allocation11 + $0x8] ss:$24 sps:$4 sm:$0xff]   ;;  %v13446_v53 = vld [vmem:[#allocation11 + $0x3c] ss:$24 sps:$4 sm:$0xff]   ;;  %1528 = vmatprep.subr.bf16.mxu0 %v13438_v48 }
 0x11f   : > { %1641 = vmatprep.subr.bf16.mxu1 %v13440_v49  ;;  %1529 = vmatpush1.bf16.msra.mxu0 %v13442_v50  ;;  %v13448_v54 = vld [vmem:[#allocation11 + $0x30] ss:$24 sps:$4 sm:$0xff]   ;;  %v13450_v56 = vld [vmem:[#allocation11 + $0x64] ss:$24 sps:$4 sm:$0xff]   ;;  %v13454_v58 = vld [vmem:[#allocation11 + $0x60] ss:$24 sps:$4 sm:$0xff]  }
 0x120   : > { %1642 = vmatpush1.bf16.msra.mxu1 %v13443_v51  ;;  %v13449_v55 = vld [vmem:[#allocation11 + $0x38] ss:$24 sps:$4 sm:$0xff]   ;;  %1530 = vmatprep.subr.bf16.mxu0 %v13444_v52  ;;  %v13452_v57 = vld [vmem:[#allocation11 + $0x6c] ss:$24 sps:$4 sm:$0xff]   ;;  %v13455_v59 = vld [vmem:[#allocation11 + $0x68] ss:$24 sps:$4 sm:$0xff]  }
 0x121   : > { %568 = vadd.xlane.f32.xlu0 %v567_v24  ;;  %1643 = vmatprep.subr.bf16.mxu1 %v13446_v53  ;;  %v13456_v60 = vld [vmem:[#allocation11 + $0x94] ss:$24 sps:$4 sm:$0xff]   ;;  %v13460_v62 = vld [vmem:[#allocation11 + $0x90] ss:$24 sps:$4 sm:$0xff]   ;;  %v13462_v3 = vld [vmem:[#allocation11 + $0xc4] ss:$24 sps:$4 sm:$0xff]  }
 0x122   : > { %571 = vadd.xlane.f32.xlu1 %v570_v27  ;;  %v13458_v61 = vld [vmem:[#allocation11 + $0x9c] ss:$24 sps:$4 sm:$0xff]   ;;  %v13461_v63 = vld [vmem:[#allocation11 + $0x98] ss:$24 sps:$4 sm:$0xff]   ;;  %v13464_v7 = vld [vmem:[#allocation11 + $0xcc] ss:$24 sps:$4 sm:$0xff]  }
 0x123   : > { %1531 = vmatpush1.bf16.msra.mxu0 %v13448_v54  ;;  %v13466_v10 = vld [vmem:[#allocation11 + $0xc0] ss:$24 sps:$4 sm:$0xff]   ;;  %v13468_v16 = vld [vmem:[#allocation11 + $0xf4] ss:$24 sps:$4 sm:$0xff]   ;;  %v13472_v24 = vld [vmem:[#allocation11 + $0xf0] ss:$24 sps:$4 sm:$0xff]  }
 0x124   : > { %1644 = vmatpush1.bf16.msra.mxu1 %v13449_v55  ;;  %1532 = vmatprep.subr.bf16.mxu0 %v13450_v56  ;;  %v13467_v11 = vld [vmem:[#allocation11 + $0xc8] ss:$24 sps:$4 sm:$0xff]   ;;  %v13470_v17 = vld [vmem:[#allocation11 + $0xfc] ss:$24 sps:$4 sm:$0xff]   ;;  %v13473_v27 = vld [vmem:[#allocation11 + $0xf8] ss:$24 sps:$4 sm:$0xff]  }
 0x125   : > { %574 = vadd.xlane.f32.xlu0 %v573_v30  ;;  %1645 = vmatprep.subr.bf16.mxu1 %v13452_v57  ;;  %v13474_v30 = vld [vmem:[#allocation11 + $0x124] ss:$24 sps:$4 sm:$0xff]   ;;  %v13490_v50 = vld [vmem:[#allocation11 + $0x180] ss:$24 sps:$4 sm:$0xff]  }
 0x126   : > { %577 = vadd.xlane.f32.xlu1 %v576_v33  ;;  %v13476_v33 = vld [vmem:[#allocation11 + $0x12c] ss:$24 sps:$4 sm:$0xff]   ;;  %v13491_v51 = vld [vmem:[#allocation11 + $0x188] ss:$24 sps:$4 sm:$0xff]  }
 0x127   : > { %1533 = vmatpush1.bf16.msra.mxu0 %v13454_v58  ;;  %v13486_v48 = vld [vmem:[#allocation11 + $0x184] ss:$24 sps:$4 sm:$0xff]  }
 0x128   : > { %1646 = vmatpush1.bf16.msra.mxu1 %v13455_v59  ;;  %1534 = vmatprep.subr.bf16.mxu0 %v13456_v60  ;;  %v13488_v49 = vld [vmem:[#allocation11 + $0x18c] ss:$24 sps:$4 sm:$0xff]  }
 0x129   : > { %580 = vadd.xlane.f32.xlu0 %v579_v36  ;;  %1647 = vmatprep.subr.bf16.mxu1 %v13458_v61  ;;  %v13478_v36 = vld [vmem:[#allocation11 + $0x120] ss:$24 sps:$4 sm:$0xff]  }
 0x12a   : > { %583 = vadd.xlane.f32.xlu1 %v582_v39  ;;  %v13479_v39 = vld [vmem:[#allocation11 + $0x128] ss:$24 sps:$4 sm:$0xff]  }
 0x12b   : > { %1535 = vmatpush1.bf16.msra.mxu0 %v13460_v62 }
 0x12c   : > { %1648 = vmatpush1.bf16.msra.mxu1 %v13461_v63  ;;  %1536 = vmatprep.subr.bf16.mxu0 %v13462_v3 }
 0x12d   : > { %586 = vadd.xlane.f32.xlu0 %v585_v42  ;;  %1649 = vmatprep.subr.bf16.mxu1 %v13464_v7  ;;  %v13480_v42 = vld [vmem:[#allocation11 + $0x154] ss:$24 sps:$4 sm:$0xff]  }
 0x12e   : > { %589 = vadd.xlane.f32.xlu1 %v588_v45  ;;  %v13482_v45 = vld [vmem:[#allocation11 + $0x15c] ss:$24 sps:$4 sm:$0xff]  }
 0x12f   : > { %1537 = vmatpush1.bf16.msra.mxu0 %v13466_v10 }
 0x130   : > { %1650 = vmatpush1.bf16.msra.mxu1 %v13467_v11  ;;  %1538 = vmatprep.subr.bf16.mxu0 %v13468_v16 }
 0x131   : > { %592 = vadd.xlane.f32.xlu0 %v591_v46  ;;  %1651 = vmatprep.subr.bf16.mxu1 %v13470_v17  ;;  %v13484_v46 = vld [vmem:[#allocation11 + $0x150] ss:$24 sps:$4 sm:$0xff]  }
 0x132   : > { %595 = vadd.xlane.f32.xlu1 %v594_v47  ;;  %v13485_v47 = vld [vmem:[#allocation11 + $0x158] ss:$24 sps:$4 sm:$0xff]  }
 0x133   : > { %1539 = vmatpush1.bf16.msra.mxu0 %v13472_v24 }
 0x134   : > { %1652 = vmatpush1.bf16.msra.mxu1 %v13473_v27  ;;  %1540 = vmatprep.subr.bf16.mxu0 %v13474_v30 }
 0x135   : > { %1653 = vmatprep.subr.bf16.mxu1 %v13476_v33 }
 0x137   : > { %1541 = vmatpush1.bf16.msra.mxu0 %v13478_v36 }
 0x138   : > { %1654 = vmatpush1.bf16.msra.mxu1 %v13479_v39  ;;  %1542 = vmatprep.subr.bf16.mxu0 %v13480_v42 }
 0x139   : > { %1655 = vmatprep.subr.bf16.mxu1 %v13482_v45 }
 0x13b   : > { %1543 = vmatpush1.bf16.msra.mxu0 %v13484_v46 }
 0x13c   : > { %1656 = vmatpush1.bf16.msra.mxu1 %v13485_v47  ;;  %1544 = vmatprep.subr.bf16.mxu0 %v13486_v48 }
 0x13d   : > { %1657 = vmatprep.subr.bf16.mxu1 %v13488_v49 }
 0x13f   : > { %1545 = vmatpush1.bf16.msra.mxu0 %v13490_v50 }
 0x140   : > { %1658 = vmatpush1.bf16.msra.mxu1 %v13491_v51 }
 0x1a2   : > { %v551_v52 = vpop.xlane.xlu0 %550 }
 0x1a3   : > { %v598_v53 = vmul.f32 0.00390625, %v551_v52  ;;  %v557_v54 = vpop.xlane.xlu1 %556 }
 0x1a4   : > { %v600_v55 = vmul.f32 0.00390625, %v557_v54 }
 0x1a5   : > { %v14627_v56 = vsub.f32 %v14499_v0, %v598_v53  ;;  %v14630_v57 = vsub.f32 %v14502_v1, %v598_v53 }
 0x1a6   : > { %v14633_v58 = vsub.f32 %v14505_v2, %v600_v55  ;;  %v14636_v59 = vsub.f32 %v14510_v4, %v600_v55  ;;  %v554_v60 = vpop.xlane.xlu0 %553 }
 0x1a7   : > { %v599_v61 = vmul.f32 0.00390625, %v554_v60  ;;  %v560_v62 = vpop.xlane.xlu1 %559  ;;  %v646_v63 = vmul.f32 %v14627_v56, %v14627_v56  ;;  %v647_v3 = vmul.f32 %v14630_v57, %v14630_v57 }
 0x1a8   : > { %v601_v0 = vmul.f32 0.00390625, %v560_v62  ;;  %v650_v1 = vmul.f32 %v14633_v58, %v14633_v58  ;;  %v651_v2 = vmul.f32 %v14636_v59, %v14636_v59 }
 0x1a9   : > { %v14647_v7 = vsub.f32 %v14513_v5, %v599_v61  ;;  %v14650_v4 = vsub.f32 %v14516_v6, %v599_v61  ;;  %v678_v10 = vadd.f32 %v647_v3, %v646_v63 }
 0x1aa   : > { %v14653_v11 = vsub.f32 %v14521_v8, %v601_v0  ;;  %v14656_v16 = vsub.f32 %v14524_v9, %v601_v0  ;;  %v563_v17 = vpop.xlane.xlu0 %562  ;;  %v684_v30 = vadd.f32 %v651_v2, %v650_v1 }
 0x1ab   : > { %v602_v24 = vmul.f32 0.00390625, %v563_v17  ;;  %679 = vadd.xlane.f32.xlu0 %v678_v10  ;;  %v566_v27 = vpop.xlane.xlu1 %565  ;;  %v648_v33 = vmul.f32 %v14647_v7, %v14647_v7  ;;  %v649_v5 = vmul.f32 %v14650_v4, %v14650_v4 }
 0x1ac   : > { %v603_v6 = vmul.f32 0.00390625, %v566_v27  ;;  %v652_v36 = vmul.f32 %v14653_v11, %v14653_v11  ;;  %v653_v8 = vmul.f32 %v14656_v16, %v14656_v16 }
 0x1ad   : > { %v14667_v9 = vsub.f32 %v14531_v12, %v602_v24  ;;  %v14670_v39 = vsub.f32 %v14534_v13, %v602_v24  ;;  %v681_v42 = vadd.f32 %v649_v5, %v648_v33 }
 0x1ae   : > { %v14673_v45 = vsub.f32 %v14537_v14, %v603_v6  ;;  %v14676_v46 = vsub.f32 %v14540_v15, %v603_v6  ;;  %v569_v47 = vpop.xlane.xlu0 %568  ;;  %v687_v50 = vadd.f32 %v653_v8, %v652_v36 }
 0x1af   : > { %v604_v48 = vmul.f32 0.00390625, %v569_v47  ;;  %685 = vadd.xlane.f32.xlu0 %v684_v30  ;;  %682 = vadd.xlane.f32.xlu1 %v681_v42  ;;  %v572_v49 = vpop.xlane.xlu1 %571  ;;  %v654_v12 = vmul.f32 %v14667_v9, %v14667_v9  ;;  %v655_v13 = vmul.f32 %v14670_v39, %v14670_v39  ;;  %v13492_v47 = vld [vmem:[#allocation11 + $0x1b4] ss:$24 sps:$4 sm:$0xff]  }
 0x1b0   : > { %v605_v51 = vmul.f32 0.00390625, %v572_v49  ;;  %v656_v14 = vmul.f32 %v14673_v45, %v14673_v45  ;;  %v657_v15 = vmul.f32 %v14676_v46, %v14676_v46  ;;  %1546 = vmatprep.subr.bf16.mxu0 %v13492_v47  ;;  %v13504_v47 = vld [vmem:[#allocation11 + $0x214] ss:$24 sps:$4 sm:$0xff]  }
 0x1b1   : > { %v14687_v52 = vsub.f32 %v14547_v18, %v604_v48  ;;  %v14690_v53 = vsub.f32 %v14550_v19, %v604_v48  ;;  %v690_v54 = vadd.f32 %v655_v13, %v654_v12  ;;  %v13494_v48 = vld [vmem:[#allocation11 + $0x1bc] ss:$24 sps:$4 sm:$0xff]   ;;  %v13496_v13 = vld [vmem:[#allocation11 + $0x1b0] ss:$24 sps:$4 sm:$0xff]  }
 0x1b2   : > { %v14693_v55 = vsub.f32 %v14553_v20, %v605_v51  ;;  %v14696_v60 = vsub.f32 %v14556_v21, %v605_v51  ;;  %v575_v61 = vpop.xlane.xlu0 %574  ;;  %v693_v3 = vadd.f32 %v657_v15, %v656_v14  ;;  %v13497_v51 = vld [vmem:[#allocation11 + $0x1b8] ss:$24 sps:$4 sm:$0xff]   ;;  %1659 = vmatprep.subr.bf16.mxu1 %v13494_v48  ;;  %1547 = vmatpush1.bf16.msra.mxu0 %v13496_v13  ;;  %v13506_v48 = vld [vmem:[#allocation11 + $0x21c] ss:$24 sps:$4 sm:$0xff]  }
 0x1b3   : > { %v606_v62 = vmul.f32 0.00390625, %v575_v61  ;;  %688 = vadd.xlane.f32.xlu1 %v687_v50  ;;  %691 = vadd.xlane.f32.xlu0 %v690_v54  ;;  %v578_v63 = vpop.xlane.xlu1 %577  ;;  %v658_v18 = vmul.f32 %v14687_v52, %v14687_v52  ;;  %v659_v19 = vmul.f32 %v14690_v53, %v14690_v53  ;;  %v13508_v13 = vld [vmem:[#allocation11 + $0x210] ss:$24 sps:$4 sm:$0xff]  }
 0x1b4   : > { %v607_v0 = vmul.f32 0.00390625, %v578_v63  ;;  %v660_v20 = vmul.f32 %v14693_v55, %v14693_v55  ;;  %v661_v21 = vmul.f32 %v14696_v60, %v14696_v60  ;;  %1660 = vmatpush1.bf16.msra.mxu1 %v13497_v51  ;;  %v13509_v51 = vld [vmem:[#allocation11 + $0x218] ss:$24 sps:$4 sm:$0xff]  }
 0x1b5   : > { %v14707_v1 = vsub.f32 %v14559_v22, %v606_v62  ;;  %v14710_v2 = vsub.f32 %v14562_v23, %v606_v62  ;;  %v696_v10 = vadd.f32 %v659_v19, %v658_v18 }
 0x1b6   : > { %v14713_v17 = vsub.f32 %v14567_v25, %v607_v0  ;;  %v14716_v24 = vsub.f32 %v14570_v26, %v607_v0  ;;  %v581_v27 = vpop.xlane.xlu0 %580  ;;  %v699_v5 = vadd.f32 %v661_v21, %v660_v20  ;;  %v13498_v20 = vld [vmem:[#allocation11 + $0x1e4] ss:$24 sps:$4 sm:$0xff]  }
 0x1b7   : > { %v608_v30 = vmul.f32 0.00390625, %v581_v27  ;;  %694 = vadd.xlane.f32.xlu1 %v693_v3  ;;  %697 = vadd.xlane.f32.xlu0 %v696_v10  ;;  %v584_v33 = vpop.xlane.xlu1 %583  ;;  %v662_v22 = vmul.f32 %v14707_v1, %v14707_v1  ;;  %v663_v23 = vmul.f32 %v14710_v2, %v14710_v2  ;;  %v13500_v21 = vld [vmem:[#allocation11 + $0x1ec] ss:$24 sps:$4 sm:$0xff]  }
 0x1b8   : > { %v609_v6 = vmul.f32 0.00390625, %v584_v33  ;;  %v664_v25 = vmul.f32 %v14713_v17, %v14713_v17  ;;  %v665_v26 = vmul.f32 %v14716_v24, %v14716_v24  ;;  %v13502_v33 = vld [vmem:[#allocation11 + $0x1e0] ss:$24 sps:$4 sm:$0xff]   ;;  %1548 = vmatprep.subr.bf16.mxu0 %v13498_v20  ;;  %1661 = vmatprep.subr.bf16.mxu1 %v13500_v21  ;;  %v13522_v20 = vld [vmem:[#allocation11 + $0x2a4] ss:$24 sps:$4 sm:$0xff]  }
 0x1b9   : > { %v14727_v36 = vsub.f32 %v14575_v28, %v608_v30  ;;  %v14730_v8 = vsub.f32 %v14578_v29, %v608_v30  ;;  %v702_v42 = vadd.f32 %v663_v23, %v662_v22  ;;  %1549 = vmatpush1.bf16.msra.mxu0 %v13502_v33  ;;  %v13524_v21 = vld [vmem:[#allocation11 + $0x2ac] ss:$24 sps:$4 sm:$0xff]   ;;  %v13533_v33 = vld [vmem:[#allocation11 + $0x2d8] ss:$24 sps:$4 sm:$0xff]  }
 0x1ba   : > { %v14733_v49 = vsub.f32 %v14583_v31, %v609_v6  ;;  %v14736_v50 = vsub.f32 %v14586_v32, %v609_v6  ;;  %v587_v12 = vpop.xlane.xlu0 %586  ;;  %v705_v15 = vadd.f32 %v665_v26, %v664_v25  ;;  %1550 = vmatprep.subr.bf16.mxu0 %v13504_v47 }
 0x1bb   : > { %v610_v14 = vmul.f32 0.00390625, %v587_v12  ;;  %700 = vadd.xlane.f32.xlu1 %v699_v5  ;;  %703 = vadd.xlane.f32.xlu0 %v702_v42  ;;  %v590_v28 = vpop.xlane.xlu1 %589  ;;  %v666_v29 = vmul.f32 %v14727_v36, %v14727_v36  ;;  %v667_v54 = vmul.f32 %v14730_v8, %v14730_v8 }
 0x1bc   : > { %v611_v61 = vmul.f32 0.00390625, %v590_v28  ;;  %v668_v31 = vmul.f32 %v14733_v49, %v14733_v49  ;;  %v669_v32 = vmul.f32 %v14736_v50, %v14736_v50  ;;  %v13510_v28 = vld [vmem:[#allocation11 + $0x244] ss:$24 sps:$4 sm:$0xff]  }
 0x1bd   : > { %v14747_v62 = vsub.f32 %v14591_v34, %v610_v14  ;;  %v14750_v63 = vsub.f32 %v14594_v35, %v610_v14  ;;  %v708_v3 = vadd.f32 %v667_v54, %v666_v29  ;;  %1551 = vmatpush1.bf16.msra.mxu0 %v13508_v13  ;;  %v13514_v54 = vld [vmem:[#allocation11 + $0x240] ss:$24 sps:$4 sm:$0xff]  }
 0x1be   : > { %v14753_v18 = vsub.f32 %v14599_v37, %v611_v61  ;;  %v14756_v19 = vsub.f32 %v14602_v38, %v611_v61  ;;  %v593_v0 = vpop.xlane.xlu0 %592  ;;  %v711_v27 = vadd.f32 %v669_v32, %v668_v31  ;;  %v13503_v37 = vld [vmem:[#allocation11 + $0x1e8] ss:$24 sps:$4 sm:$0xff]   ;;  %1552 = vmatprep.subr.bf16.mxu0 %v13510_v28  ;;  %v13516_v31 = vld [vmem:[#allocation11 + $0x274] ss:$24 sps:$4 sm:$0xff]  }
 0x1bf   : > { %v612_v10 = vmul.f32 0.00390625, %v593_v0  ;;  %706 = vadd.xlane.f32.xlu1 %v705_v15  ;;  %709 = vadd.xlane.f32.xlu0 %v708_v3  ;;  %v596_v34 = vpop.xlane.xlu1 %595  ;;  %v670_v35 = vmul.f32 %v14747_v62, %v14747_v62  ;;  %v671_v30 = vmul.f32 %v14750_v63, %v14750_v63  ;;  %v13512_v15 = vld [vmem:[#allocation11 + $0x24c] ss:$24 sps:$4 sm:$0xff]   ;;  %v13515_v61 = vld [vmem:[#allocation11 + $0x248] ss:$24 sps:$4 sm:$0xff]  }
 0x1c0   : > { %v613_v5 = vmul.f32 0.00390625, %v596_v34  ;;  %v672_v38 = vmul.f32 %v14753_v18, %v14753_v18  ;;  %v673_v22 = vmul.f32 %v14756_v19, %v14756_v19  ;;  %1662 = vmatpush1.bf16.msra.mxu1 %v13503_v37  ;;  %v13518_v32 = vld [vmem:[#allocation11 + $0x27c] ss:$24 sps:$4 sm:$0xff]   ;;  %v13520_v3 = vld [vmem:[#allocation11 + $0x270] ss:$24 sps:$4 sm:$0xff]  }
 0x1c1   : > { %v14767_v23 = vsub.f32 %v14607_v40, %v612_v10  ;;  %v14770_v6 = vsub.f32 %v14610_v41, %v612_v10  ;;  %v714_v25 = vadd.f32 %v671_v30, %v670_v35  ;;  %1663 = vmatprep.subr.bf16.mxu1 %v13506_v48  ;;  %1553 = vmatpush1.bf16.msra.mxu0 %v13514_v54  ;;  %v13521_v0 = vld [vmem:[#allocation11 + $0x278] ss:$24 sps:$4 sm:$0xff]   ;;  %v13527_v34 = vld [vmem:[#allocation11 + $0x2a8] ss:$24 sps:$4 sm:$0xff]   ;;  %v13530_v35 = vld [vmem:[#allocation11 + $0x2dc] ss:$24 sps:$4 sm:$0xff]  }
 0x1c2   : > { %v14773_v26 = vsub.f32 %v14615_v43, %v613_v5  ;;  %v14776_v42 = vsub.f32 %v14618_v44, %v613_v5  ;;  %v717_v12 = vadd.f32 %v673_v22, %v672_v38  ;;  %1554 = vmatprep.subr.bf16.mxu0 %v13516_v31  ;;  %v13526_v10 = vld [vmem:[#allocation11 + $0x2a0] ss:$24 sps:$4 sm:$0xff]   ;;  %v13532_v30 = vld [vmem:[#allocation11 + $0x2d0] ss:$24 sps:$4 sm:$0xff]   ;;  %v13536_v37 = vld [vmem:[#allocation11 + $0x14] ss:$24 sps:$4 sm:$0xff]   ;;  %v807_v22 = vlaneseq }
 0x1c3   : > { %712 = vadd.xlane.f32.xlu1 %v711_v27  ;;  %715 = vadd.xlane.f32.xlu0 %v714_v25  ;;  %v674_v40 = vmul.f32 %v14767_v23, %v14767_v23  ;;  %v675_v41 = vmul.f32 %v14770_v6, %v14770_v6  ;;  %v13528_v27 = vld [vmem:[#allocation11 + $0x2d4] ss:$24 sps:$4 sm:$0xff]   ;;  %v548_v31 = vld [vmem:[#allocation10] sm:$0x3] }
 0x1c4   : > { %v676_v43 = vmul.f32 %v14773_v26, %v14773_v26  ;;  %v677_v44 = vmul.f32 %v14776_v42, %v14776_v42  ;;  %1664 = vmatpush1.bf16.msra.mxu1 %v13509_v51 }
 0x1c5   : > { %v720_v14 = vadd.f32 %v675_v41, %v674_v40  ;;  %1665 = vmatprep.subr.bf16.mxu1 %v13512_v15  ;;  %1555 = vmatpush1.bf16.msra.mxu0 %v13520_v3  ;;  %v14786_v41 = vshrl.u32 %v807_v22, 7  ;;  %v12560_v15 = vld [vmem:[%s423_s4 + $0x1] ss:$8 sm:$0x3] }
 0x1c6   : > { %v723_v29 = vadd.f32 %v677_v44, %v676_v43  ;;  %1556 = vmatprep.subr.bf16.mxu0 %v13522_v20 }
 0x1c7   : > { %718 = vadd.xlane.f32.xlu1 %v717_v12  ;;  %721 = vadd.xlane.f32.xlu0 %v720_v14  ;;  %21684 = vst [vmem:[#allocation42_spill] sm:$0xff] %v14786_v41  ;;  %v813_v54 = vsub.s32 1, %v14786_v41 }
 0x1c8   : > { %1666 = vmatpush1.bf16.msra.mxu1 %v13515_v61 }
 0x1c9   : > { %1667 = vmatprep.subr.bf16.mxu1 %v13518_v32  ;;  %1557 = vmatpush1.bf16.msra.mxu0 %v13526_v10 }
 0x1ca   : > { %1558 = vmatprep.subr.bf16.mxu0 %v13528_v27 }
 0x1cb   : > { %724 = vadd.xlane.f32.xlu1 %v723_v29  ;;  %v14791_v29 = vsub.s32 0, %v14786_v41 }
 0x1cc   : > { %1668 = vmatpush1.bf16.msra.mxu1 %v13521_v0 }
 0x1cd   : > { %1669 = vmatprep.subr.bf16.mxu1 %v13524_v21  ;;  %1559 = vmatpush1.bf16.msra.mxu0 %v13532_v30  ;;  %21685 = vst [vmem:[#allocation43_spill] sm:$0xff] %v14791_v29  ;;  %v849_v21 = vadd.f32 1.0, %v12560_v15  ;;  %v14797_v27 = vrot.slane %v548_v31, %v14791_v29 }
 0x1ce   : > { %1754 = vmatprep.subr.bf16.mxu0 %v13536_v37 }
 0x1d0   : > { %1670 = vmatpush1.bf16.msra.mxu1 %v13527_v34  ;;  %v14794_v34 = vrot.slane %v548_v31, %v813_v54 }
 0x1d1   : > { %1671 = vmatprep.subr.bf16.mxu1 %v13530_v35 }
 0x1d4   : > { %1672 = vmatpush1.bf16.msra.mxu1 %v13533_v33 }
 0x1d5   : > { %13184 = vmatprep.subr.bf16.mxu1 %v13536_v37 }
 0x238   : > { %v680_v5 = vpop.xlane.xlu0 %679 }
 0x239   : > { %v726_v38 = vmul.f32 0.00390625, %v680_v5 }
 0x23b   : > { %v742_v25 = vadd.f32 1e-05, %v726_v38 }
 0x23c   : > { %v683_v47 = vpop.xlane.xlu1 %682  ;;  %v686_v48 = vpop.xlane.xlu0 %685 }
 0x23d   : > { %13614 = vrsqrt.f32 %v742_v25  ;;  %v727_v12 = vmul.f32 0.00390625, %v683_v47  ;;  %v728_v40 = vmul.f32 0.00390625, %v686_v48  ;;  %v545_v25 = vld [vmem:[%s423_s4] ss:$8 sm:$0x3]  ;;  %v14803_v47 = vrot.slane %v849_v21, %v813_v54 }
 0x23e   : > { %v14806_v48 = vrot.slane %v849_v21, %v14791_v29 }
 0x23f   : > { %v743_v13 = vadd.f32 1e-05, %v727_v12  ;;  %v744_v51 = vadd.f32 1e-05, %v728_v40 }
 0x240   : > { %v689_v43 = vpop.xlane.xlu1 %688  ;;  %v692_v44 = vpop.xlane.xlu0 %691 }
 0x241   : > { %13616 = vrsqrt.f32 %v743_v13  ;;  %v729_v14 = vmul.f32 0.00390625, %v689_v43  ;;  %v730_v28 = vmul.f32 0.00390625, %v692_v44 }
 0x242   : > { %13618 = vrsqrt.f32 %v744_v51 }
 0x243   : > { %v745_v61 = vadd.f32 1e-05, %v729_v14  ;;  %v746_v0 = vadd.f32 1e-05, %v730_v28  ;;  %v14811_v28 = vrot.slane %v545_v25, %v813_v54 }
 0x244   : > { %v695_v32 = vpop.xlane.xlu1 %694  ;;  %v698_v3 = vpop.xlane.xlu0 %697 }
 0x245   : > { %13620 = vrsqrt.f32 %v745_v61  ;;  %v731_v20 = vmul.f32 0.00390625, %v695_v32  ;;  %v732_v10 = vmul.f32 0.00390625, %v698_v3  ;;  %v14815_v61 = vrot.slane %v545_v25, %v14791_v29 }
 0x246   : > { %13622 = vrsqrt.f32 %v746_v0 }
 0x247   : > { %v13615_v35 = vpop.eup %13614  ;;  %v747_v30 = vadd.f32 1e-05, %v731_v20  ;;  %v748_v12 = vadd.f32 1e-05, %v732_v10 }
 0x248   : > { %v701_v33 = vpop.xlane.xlu1 %700  ;;  %v704_v37 = vpop.xlane.xlu0 %703  ;;  %v775_v5 = vmul.f32 %v13615_v35, %v14630_v57  ;;  %v774_v38 = vmul.f32 %v13615_v35, %v14627_v56 }
 0x249   : > { %v733_v22 = vmul.f32 0.00390625, %v701_v33  ;;  %13624 = vrsqrt.f32 %v747_v30  ;;  %v734_v57 = vmul.f32 0.00390625, %v704_v37 }
 0x24a   : > { %v818_v40 = vmul.f32 %v14794_v34, %v775_v5  ;;  %v817_v13 = vmul.f32 %v14797_v27, %v774_v38  ;;  %13626 = vrsqrt.f32 %v748_v12 }
 0x24b   : > { %v13617_v51 = vpop.eup %13616  ;;  %v749_v43 = vadd.f32 1e-05, %v733_v22  ;;  %v750_v54 = vadd.f32 1e-05, %v734_v57 }
 0x24c   : > { %v13619_v44 = vpop.eup %13618  ;;  %v707_v56 = vpop.xlane.xlu1 %706  ;;  %v777_v14 = vmul.f32 %v13617_v51, %v14650_v4  ;;  %v776_v15 = vmul.f32 %v13617_v51, %v14647_v7  ;;  %v862_v32 = vmul.f32 %v14803_v47, %v818_v40  ;;  %v861_v3 = vmul.f32 %v14806_v48, %v817_v13 }
 0x24d   : > { %v735_v31 = vmul.f32 0.00390625, %v707_v56  ;;  %v779_v0 = vmul.f32 %v13619_v44, %v14636_v59  ;;  %13628 = vrsqrt.f32 %v749_v43  ;;  %v710_v10 = vpop.xlane.xlu0 %709  ;;  %v778_v59 = vmul.f32 %v13619_v44, %v14633_v58 }
 0x24e   : > { %v820_v20 = vmul.f32 %v14794_v34, %v777_v14  ;;  %v819_v21 = vmul.f32 %v14797_v27, %v776_v15  ;;  %v905_v38 = vadd.f32 %v14811_v28, %v862_v32  ;;  %v904_v22 = vadd.f32 %v14815_v61, %v861_v3  ;;  %v13534_v14 = vld [vmem:[#allocation11 + $0x10] ss:$24 sps:$4 sm:$0xff]  }
 0x24f   : > { %v13621_v4 = vpop.eup %13620  ;;  %v822_v7 = vmul.f32 %v14794_v34, %v779_v0  ;;  %v751_v5 = vadd.f32 1e-05, %v735_v31  ;;  %13630 = vrsqrt.f32 %v750_v54  ;;  %v736_v57 = vmul.f32 0.00390625, %v710_v10  ;;  %v13539_v0 = vld [vmem:[#allocation11 + $0x44] ss:$24 sps:$4 sm:$0xff]  }
 0x250   : > { %v713_v35 = vpop.xlane.xlu1 %712  ;;  %v864_v30 = vmul.f32 %v14803_v47, %v820_v20  ;;  %v863_v33 = vmul.f32 %v14806_v48, %v819_v21  ;;  %v781_v37 = vmul.f32 %v13621_v4, %v14656_v16  ;;  %v13623_v43 = vpop.eup %13622  ;;  %v780_v16 = vmul.f32 %v13621_v4, %v14653_v11 }
 0x251   : > { %v866_v25 = vmul.f32 %v14803_v47, %v822_v7  ;;  %v737_v12 = vmul.f32 0.00390625, %v713_v35  ;;  %v821_v31 = vmul.f32 %v14797_v27, %v778_v59  ;;  %13632 = vrsqrt.f32 %v751_v5  ;;  %v716_v32 = vpop.xlane.xlu0 %715  ;;  %v13537_v5 = vld [vmem:[#allocation11 + $0x40] ss:$24 sps:$4 sm:$0xff]  }
 0x252   : > { %v907_v40 = vadd.f32 %v14811_v28, %v864_v30  ;;  %v906_v13 = vadd.f32 %v14815_v61, %v863_v33  ;;  %v824_v51 = vmul.f32 %v14794_v34, %v781_v37  ;;  %v823_v20 = vmul.f32 %v14797_v27, %v780_v16 }
 0x253   : > { %v13625_v58 = vpop.eup %13624  ;;  %v909_v3 = vadd.f32 %v14811_v28, %v866_v25  ;;  %v753_v21 = vadd.f32 1e-05, %v737_v12  ;;  %v865_v4 = vmul.f32 %v14806_v48, %v821_v31  ;;  %v783_v10 = vmul.f32 %v13623_v43, %v14670_v39  ;;  %v13540_v31 = vld [vmem:[#allocation11 + $0x70] ss:$24 sps:$4 sm:$0xff]  }
 0x254   : > { %v14834_v44 = vpack.c.bf16 %v907_v40, %v905_v38  ;;  %v14836_v56 = vpack.c.bf16 %v906_v13, %v904_v22  ;;  %v868_v15 = vmul.f32 %v14803_v47, %v824_v51  ;;  %v719_v54 = vpop.xlane.xlu1 %718  ;;  %v752_v7 = vadd.f32 1e-05, %v736_v57  ;;  %v13627_v33 = vpop.eup %13626  ;;  %v13542_v40 = vld [vmem:[#allocation11 + $0x74] ss:$24 sps:$4 sm:$0xff]  }
 0x255   : > { %v867_v35 = vmul.f32 %v14806_v48, %v823_v20  ;;  %v785_v30 = vmul.f32 %v13625_v58, %v14676_v46  ;;  %v738_v37 = vmul.f32 0.00390625, %v716_v32  ;;  %v826_v38 = vmul.f32 %v14794_v34, %v783_v10 }
 0x256   : > { %1560 = vmatprep.mubr.bf16.mxu0 %v14834_v44  ;;  %1673 = vmatprep.mubr.bf16.mxu1 %v14834_v44  ;;  %v911_v11 = vadd.f32 %v14811_v28, %v868_v15  ;;  %v739_v39 = vmul.f32 0.00390625, %v719_v54  ;;  %v908_v25 = vadd.f32 %v14815_v61, %v865_v4  ;;  %13634 = vrsqrt.f32 %v753_v21  ;;  %v13545_v21 = vld [vmem:[#allocation11 + $0xa4] ss:$24 sps:$4 sm:$0xff]  }
 0x257   : > { %1561 = vmatmul.mubr.bf16.vlgmr.msra.gmra.mrb[0].mxu0 %v14836_v56  ;;  %1674 = vmatmul.mubr.bf16.vlgmr.msra.gmra.mrb[0].mxu1 %v14836_v56  ;;  %v13629_v22 = vpop.eup %13628  ;;  %v910_v12 = vadd.f32 %v14815_v61, %v867_v35  ;;  %v828_v46 = vmul.f32 %v14794_v34, %v785_v30  ;;  %v870_v13 = vmul.f32 %v14803_v47, %v826_v38  ;;  %13636 = vrsqrt.f32 %v752_v7  ;;  %v13543_v38 = vld [vmem:[#allocation11 + $0xa0] ss:$24 sps:$4 sm:$0xff]  }
 0x258   : > { %1755 = vmatpush1.bf16.msra.mxu0 %v13534_v14  ;;  %13200 = vmatpush1.bf16.msra.mxu1 %v13534_v14  ;;  %v14851_v59 = vpack.c.bf16 %v911_v11, %v909_v3  ;;  %v782_v51 = vmul.f32 %v13623_v43, %v14667_v9  ;;  %v784_v57 = vmul.f32 %v13625_v58, %v14673_v45  ;;  %v755_v9 = vadd.f32 1e-05, %v739_v39 }
 0x259   : > { %1756 = vmatprep.subr.bf16.mxu0 %v13539_v0  ;;  %13185 = vmatprep.subr.bf16.mxu1 %v13539_v0  ;;  %v14862_v16 = vpack.c.bf16 %v910_v12, %v908_v25  ;;  %v872_v14 = vmul.f32 %v14803_v47, %v828_v46  ;;  %v787_v15 = vmul.f32 %v13627_v33, %v14690_v53  ;;  %v13631_v20 = vpop.eup %13630  ;;  %v725_v53 = vpop.xlane.xlu1 %724  ;;  %v754_v35 = vadd.f32 1e-05, %v738_v37 }
 0x25a   : > { %1570 = vmatprep.mubr.bf16.mxu0 %v14851_v59  ;;  %1683 = vmatprep.mubr.bf16.mxu1 %v14851_v59  ;;  %v913_v32 = vadd.f32 %v14811_v28, %v870_v13  ;;  %v825_v3 = vmul.f32 %v14797_v27, %v782_v51  ;;  %v827_v0 = vmul.f32 %v14797_v27, %v784_v57  ;;  %13638 = vrsqrt.f32 %v755_v9 }
 0x25b   : > { %v915_v45 = vadd.f32 %v14811_v28, %v872_v14  ;;  %v789_v43 = vmul.f32 %v13629_v22, %v14696_v60  ;;  %v830_v58 = vmul.f32 %v14794_v34, %v787_v15  ;;  %v786_v4 = vmul.f32 %v13627_v33, %v14687_v52  ;;  %v13633_v7 = vpop.eup %13632  ;;  %v13548_v33 = vld [vmem:[#allocation11 + $0xd4] ss:$24 sps:$4 sm:$0xff]  }
 0x25c   : > { %1757 = vmatpush1.bf16.msra.mxu0 %v13537_v5  ;;  %13201 = vmatpush1.bf16.msra.mxu1 %v13537_v5  ;;  %v869_v54 = vmul.f32 %v14806_v48, %v825_v3  ;;  %v871_v11 = vmul.f32 %v14806_v48, %v827_v0  ;;  %v788_v10 = vmul.f32 %v13629_v22, %v14693_v55  ;;  %v722_v5 = vpop.xlane.xlu0 %721  ;;  %v741_v55 = vmul.f32 0.00390625, %v725_v53  ;;  %v13546_v0 = vld [vmem:[#allocation11 + $0xd0] ss:$24 sps:$4 sm:$0xff]  }
 0x25d   : > { %1758 = vmatprep.subr.bf16.mxu0 %v13542_v40  ;;  %13186 = vmatprep.subr.bf16.mxu1 %v13542_v40  ;;  %v14878_v30 = vpack.c.bf16 %v915_v45, %v913_v32  ;;  %v832_v60 = vmul.f32 %v14794_v34, %v789_v43  ;;  %v874_v52 = vmul.f32 %v14803_v47, %v830_v58  ;;  %13640 = vrsqrt.f32 %v754_v35  ;;  %v13551_v43 = vld [vmem:[#allocation11 + $0x104] ss:$24 sps:$4 sm:$0xff]  }
 0x25e   : > { %v914_v39 = vadd.f32 %v14815_v61, %v871_v11  ;;  %v831_v22 = vmul.f32 %v14797_v27, %v788_v10  ;;  %v912_v25 = vadd.f32 %v14815_v61, %v869_v54  ;;  %v829_v12 = vmul.f32 %v14797_v27, %v786_v4  ;;  %v13549_v10 = vld [vmem:[#allocation11 + $0x100] ss:$24 sps:$4 sm:$0xff]  }
 0x25f   : > { %1571 = vmatmul.mubr.bf16.gmra.mrb[4].mxu0 %v14862_v16  ;;  %1684 = vmatmul.mubr.bf16.gmra.mrb[4].mxu1 %v14862_v16  ;;  %v876_v37 = vmul.f32 %v14803_v47, %v832_v60  ;;  %v791_v40 = vmul.f32 %v13631_v20, %v14710_v2  ;;  %v740_v46 = vmul.f32 0.00390625, %v722_v5  ;;  %v793_v51 = vmul.f32 %v13633_v7, %v14716_v24 }
 0x260   : > { %1759 = vmatpush1.bf16.msra.mxu0 %v13540_v31  ;;  %13202 = vmatpush1.bf16.msra.mxu1 %v13540_v31  ;;  %v13635_v57 = vpop.eup %13634  ;;  %v14892_v14 = vpack.c.bf16 %v914_v39, %v912_v25  ;;  %v917_v15 = vadd.f32 %v14811_v28, %v874_v52  ;;  %v757_v3 = vadd.f32 1e-05, %v741_v55  ;;  %v875_v2 = vmul.f32 %v14806_v48, %v831_v22 }
 0x261   : > { %1580 = vmatprep.mubr.bf16.mxu0 %v14878_v30  ;;  %1693 = vmatprep.mubr.bf16.mxu1 %v14878_v30  ;;  %v919_v13 = vadd.f32 %v14811_v28, %v876_v37  ;;  %v834_v31 = vmul.f32 %v14794_v34, %v791_v40  ;;  %v13637_v32 = vpop.eup %13636  ;;  %v836_v9 = vmul.f32 %v14794_v34, %v793_v51  ;;  %v756_v53 = vadd.f32 1e-05, %v740_v46 }
 0x262   : > { %1760 = vmatprep.subr.bf16.mxu0 %v13545_v21  ;;  %13187 = vmatprep.subr.bf16.mxu1 %v13545_v21  ;;  %v792_v24 = vmul.f32 %v13633_v7, %v14713_v17  ;;  %v873_v58 = vmul.f32 %v14806_v48, %v829_v12  ;;  %v790_v54 = vmul.f32 %v13631_v20, %v14707_v1  ;;  %13642 = vrsqrt.f32 %v757_v3  ;;  %v13554_v1 = vld [vmem:[#allocation11 + $0x134] ss:$24 sps:$4 sm:$0xff]   ;;  %v13557_v12 = vld [vmem:[#allocation11 + $0x164] ss:$24 sps:$4 sm:$0xff]  }
 0x263   : > { %v14899_v45 = vpack.c.bf16 %v919_v13, %v917_v15  ;;  %v880_v21 = vmul.f32 %v14803_v47, %v836_v9  ;;  %v797_v11 = vmul.f32 %v13635_v57, %v14736_v50  ;;  %v878_v17 = vmul.f32 %v14803_v47, %v834_v31  ;;  %v13555_v15 = vld [vmem:[#allocation11 + $0x160] ss:$24 sps:$4 sm:$0xff]   ;;  %v13560_v3 = vld [vmem:[#allocation11 + $0x194] ss:$24 sps:$4 sm:$0xff]  }
 0x264   : > { %1761 = vmatpush1.bf16.msra.mxu0 %v13543_v38  ;;  %13203 = vmatpush1.bf16.msra.mxu1 %v13543_v38  ;;  %v795_v4 = vmul.f32 %v13637_v32, %v14730_v8  ;;  %v918_v7 = vadd.f32 %v14815_v61, %v875_v2  ;;  %v835_v35 = vmul.f32 %v14797_v27, %v792_v24  ;;  %v13639_v60 = vpop.eup %13638  ;;  %13644 = vrsqrt.f32 %v756_v53  ;;  %v13558_v53 = vld [vmem:[#allocation11 + $0x190] ss:$24 sps:$4 sm:$0xff]  }
 0x265   : > { %1762 = vmatprep.subr.bf16.mxu0 %v13548_v33  ;;  %13188 = vmatprep.subr.bf16.mxu1 %v13548_v33  ;;  %v923_v50 = vadd.f32 %v14811_v28, %v880_v21  ;;  %v840_v20 = vmul.f32 %v14794_v34, %v797_v11  ;;  %v916_v5 = vadd.f32 %v14815_v61, %v873_v58  ;;  %v13552_v33 = vld [vmem:[#allocation11 + $0x130] ss:$24 sps:$4 sm:$0xff]  }
 0x266   : > { %v833_v8 = vmul.f32 %v14797_v27, %v790_v54  ;;  %v921_v38 = vadd.f32 %v14811_v28, %v878_v17  ;;  %v838_v39 = vmul.f32 %v14794_v34, %v795_v4  ;;  %v879_v37 = vmul.f32 %v14806_v48, %v835_v35  ;;  %v13563_v17 = vld [vmem:[#allocation11 + $0x1c4] ss:$24 sps:$4 sm:$0xff]  }
 0x267   : > { %1581 = vmatmul.mubr.bf16.gmra.mrb[8].mxu0 %v14892_v14  ;;  %1694 = vmatmul.mubr.bf16.gmra.mrb[8].mxu1 %v14892_v14  ;;  %v13641_v52 = vpop.eup %13640  ;;  %v14919_v55 = vpack.c.bf16 %v918_v7, %v916_v5  ;;  %v796_v22 = vmul.f32 %v13635_v57, %v14733_v49  ;;  %v884_v40 = vmul.f32 %v14803_v47, %v840_v20 }
 0x268   : > { %1590 = vmatprep.mubr.bf16.mxu0 %v14899_v45  ;;  %1703 = vmatprep.mubr.bf16.mxu1 %v14899_v45  ;;  %v14923_v25 = vpack.c.bf16 %v923_v50, %v921_v38  ;;  %v801_v46 = vmul.f32 %v13639_v60, %v14756_v19  ;;  %v877_v13 = vmul.f32 %v14806_v48, %v833_v8  ;;  %v13561_v50 = vld [vmem:[#allocation11 + $0x1c0] ss:$24 sps:$4 sm:$0xff]  }
 0x269   : > { %1763 = vmatpush1.bf16.msra.mxu0 %v13546_v0  ;;  %13204 = vmatpush1.bf16.msra.mxu1 %v13546_v0  ;;  %v794_v51 = vmul.f32 %v13637_v32, %v14727_v36  ;;  %v882_v49 = vmul.f32 %v14803_v47, %v838_v39  ;;  %v799_v57 = vmul.f32 %v13641_v52, %v14750_v63 }
 0x26a   : > { %1764 = vmatprep.subr.bf16.mxu0 %v13551_v43  ;;  %13189 = vmatprep.subr.bf16.mxu1 %v13551_v43  ;;  %v922_v19 = vadd.f32 %v14815_v61, %v879_v37  ;;  %v839_v31 = vmul.f32 %v14797_v27, %v796_v22  ;;  %v927_v36 = vadd.f32 %v14811_v28, %v884_v40  ;;  %v13569_v40 = vld [vmem:[#allocation11 + $0x224] ss:$24 sps:$4 sm:$0xff]  }
 0x26b   : > { %v844_v32 = vmul.f32 %v14794_v34, %v801_v46  ;;  %v920_v2 = vadd.f32 %v14815_v61, %v877_v13  ;;  %v837_v9 = vmul.f32 %v14797_v27, %v794_v51  ;;  %v925_v63 = vadd.f32 %v14811_v28, %v882_v49  ;;  %v13567_v51 = vld [vmem:[#allocation11 + $0x220] ss:$24 sps:$4 sm:$0xff]  }
 0x26c   : > { %v13643_v0 = vpop.eup %13642  ;;  %v842_v24 = vmul.f32 %v14794_v34, %v799_v57  ;;  %v883_v21 = vmul.f32 %v14806_v48, %v839_v31  ;;  %v800_v54 = vmul.f32 %v13639_v60, %v14753_v18  ;;  %v798_v35 = vmul.f32 %v13641_v52, %v14747_v62  ;;  %v13566_v60 = vld [vmem:[#allocation11 + $0x1f4] ss:$24 sps:$4 sm:$0xff]  }
 0x26d   : > { %1765 = vmatpush1.bf16.msra.mxu0 %v13549_v10  ;;  %13205 = vmatpush1.bf16.msra.mxu1 %v13549_v10  ;;  %v14943_v58 = vpack.c.bf16 %v922_v19, %v920_v2  ;;  %v14947_v11 = vpack.c.bf16 %v927_v36, %v925_v63  ;;  %v888_v4 = vmul.f32 %v14803_v47, %v844_v32  ;;  %v13570_v36 = vld [vmem:[#allocation11 + $0x250] ss:$24 sps:$4 sm:$0xff]   ;;  %v13575_v2 = vld [vmem:[#allocation11 + $0x284] ss:$24 sps:$4 sm:$0xff]   ;;  %v13578_v63 = vld [vmem:[#allocation11 + $0x2b4] ss:$24 sps:$4 sm:$0xff]  }
 0x26e   : > { %1766 = vmatprep.subr.bf16.mxu0 %v13554_v1  ;;  %13190 = vmatprep.subr.bf16.mxu1 %v13554_v1  ;;  %v13645_v43 = vpop.eup %13644  ;;  %v805_v10 = vmul.f32 %v13643_v0, %v14776_v42  ;;  %v881_v7 = vmul.f32 %v14806_v48, %v837_v9  ;;  %v886_v18 = vmul.f32 %v14803_v47, %v842_v24 }
 0x26f   : > { %1591 = vmatmul.mubr.bf16.gmra.mrb[12].mxu0 %v14919_v55  ;;  %1704 = vmatmul.mubr.bf16.gmra.mrb[12].mxu1 %v14919_v55  ;;  %v803_v1 = vmul.f32 %v13645_v43, %v14770_v6  ;;  %v926_v42 = vadd.f32 %v14815_v61, %v883_v21  ;;  %v843_v20 = vmul.f32 %v14797_v27, %v800_v54  ;;  %v13581_v21 = vld [vmem:[#allocation11 + $0x2e4] ss:$24 sps:$4 sm:$0xff]  }
 0x270   : > { %1600 = vmatprep.mubr.bf16.mxu0 %v14923_v25  ;;  %1713 = vmatprep.mubr.bf16.mxu1 %v14923_v25  ;;  %v931_v62 = vadd.f32 %v14811_v28, %v888_v4  ;;  %v848_v5 = vmul.f32 %v14794_v34, %v805_v10  ;;  %v924_v8 = vadd.f32 %v14815_v61, %v881_v7 }
 0x271   : > { %1767 = vmatpush1.bf16.msra.mxu0 %v13552_v33  ;;  %13206 = vmatpush1.bf16.msra.mxu1 %v13552_v33  ;;  %v841_v38 = vmul.f32 %v14797_v27, %v798_v35  ;;  %v929_v6 = vadd.f32 %v14811_v28, %v886_v18  ;;  %v846_v39 = vmul.f32 %v14794_v34, %v803_v1  ;;  %v13564_v33 = vld [vmem:[#allocation11 + $0x1f0] ss:$24 sps:$4 sm:$0xff]  }
 0x272   : > { %1768 = vmatprep.subr.bf16.mxu0 %v13557_v12  ;;  %13191 = vmatprep.subr.bf16.mxu1 %v13557_v12  ;;  %v14967_v52 = vpack.c.bf16 %v926_v42, %v924_v8  ;;  %v887_v37 = vmul.f32 %v14806_v48, %v843_v20  ;;  %v804_v22 = vmul.f32 %v13643_v0, %v14773_v26 }
 0x273   : > { %v14971_v12 = vpack.c.bf16 %v931_v62, %v929_v6  ;;  %v892_v46 = vmul.f32 %v14803_v47, %v848_v5  ;;  %v885_v34 = vmul.f32 %v14806_v48, %v841_v38  ;;  %v802_v13 = vmul.f32 %v13645_v43, %v14767_v23 }
 0x274   : > { %v890_v26 = vmul.f32 %v14803_v47, %v846_v39  ;;  %v930_v49 = vadd.f32 %v14815_v61, %v887_v37  ;;  %v847_v57 = vmul.f32 %v14797_v27, %v804_v22 }
 0x275   : > { %1769 = vmatpush1.bf16.msra.mxu0 %v13555_v15  ;;  %13207 = vmatpush1.bf16.msra.mxu1 %v13555_v15  ;;  %v13572_v15 = vld [vmem:[#allocation11 + $0x254] ss:$24 sps:$4 sm:$0xff]   ;;  %v935_v19 = vadd.f32 %v14811_v28, %v892_v46  ;;  %v928_v23 = vadd.f32 %v14815_v61, %v885_v34  ;;  %v845_v31 = vmul.f32 %v14797_v27, %v802_v13  ;;  %v13573_v27 = vld [vmem:[#allocation11 + $0x280] ss:$24 sps:$4 sm:$0xff]  }
 0x276   : > { %1770 = vmatprep.subr.bf16.mxu0 %v13560_v3  ;;  %13192 = vmatprep.subr.bf16.mxu1 %v13560_v3  ;;  %v933_v3 = vadd.f32 %v14811_v28, %v890_v26  ;;  %v891_v32 = vmul.f32 %v14806_v48, %v847_v57 }
 0x277   : > { %1601 = vmatmul.mubr.bf16.gmra.mrb[16].mxu0 %v14943_v58  ;;  %1714 = vmatmul.mubr.bf16.gmra.mrb[16].mxu1 %v14943_v58  ;;  %v948_v47 = vpack.c.bf16 %v930_v49, %v928_v23  ;;  %v889_v9 = vmul.f32 %v14806_v48, %v845_v31  ;;  %v13579_v48 = vld [vmem:[#allocation11 + $0x2e0] ss:$24 sps:$4 sm:$0xff]  }
 0x278   : > { %1610 = vmatprep.mubr.bf16.mxu0 %v14947_v11  ;;  %1723 = vmatprep.mubr.bf16.mxu1 %v14947_v11  ;;  %v951_v0 = vpack.c.bf16 %v935_v19, %v933_v3  ;;  %v934_v28 = vadd.f32 %v14815_v61, %v891_v32 }
 0x279   : > { %1771 = vmatpush1.bf16.msra.mxu0 %v13558_v53  ;;  %13208 = vmatpush1.bf16.msra.mxu1 %v13558_v53  ;;  %v932_v24 = vadd.f32 %v14815_v61, %v889_v9  ;;  %v13576_v53 = vld [vmem:[#allocation11 + $0x2b0] ss:$24 sps:$4 sm:$0xff]   ;;  %v13978_v61 = vmov 1983009808  }
 0x27a   : > { %1772 = vmatprep.subr.bf16.mxu0 %v13563_v17  ;;  %13193 = vmatprep.subr.bf16.mxu1 %v13563_v17 }
 0x27b   : > { %v950_v43 = vpack.c.bf16 %v934_v28, %v932_v24 }
 0x27d   : > { %1773 = vmatpush1.bf16.msra.mxu0 %v13561_v50  ;;  %13209 = vmatpush1.bf16.msra.mxu1 %v13561_v50 }
 0x27e   : > { %1774 = vmatprep.subr.bf16.mxu0 %v13566_v60  ;;  %13194 = vmatprep.subr.bf16.mxu1 %v13566_v60 }
 0x27f   : > { %1611 = vmatmul.mubr.bf16.gmra.mrb[20].mxu0 %v14967_v52  ;;  %1724 = vmatmul.mubr.bf16.gmra.mrb[20].mxu1 %v14967_v52 }
 0x280   : > { %1620 = vmatprep.mubr.bf16.mxu0 %v14971_v12  ;;  %1733 = vmatprep.mubr.bf16.mxu1 %v14971_v12 }
 0x281   : > { %1775 = vmatpush1.bf16.msra.mxu0 %v13564_v33  ;;  %13210 = vmatpush1.bf16.msra.mxu1 %v13564_v33 }
 0x282   : > { %1776 = vmatprep.subr.bf16.mxu0 %v13569_v40  ;;  %13195 = vmatprep.subr.bf16.mxu1 %v13569_v40 }
 0x285   : > { %1777 = vmatpush1.bf16.msra.mxu0 %v13567_v51  ;;  %13211 = vmatpush1.bf16.msra.mxu1 %v13567_v51 }
 0x286   : > { %1778 = vmatprep.subr.bf16.mxu0 %v13572_v15  ;;  %13196 = vmatprep.subr.bf16.mxu1 %v13572_v15 }
 0x287   : > { %1621 = vmatmul.mubr.bf16.gmra.mrb[24].mxu0 %v948_v47  ;;  %1734 = vmatmul.mubr.bf16.gmra.mrb[24].mxu1 %v948_v47 }
 0x288   : > { %1630 = vmatprep.mubr.bf16.mxu0 %v951_v0  ;;  %1743 = vmatprep.mubr.bf16.mxu1 %v951_v0 }
 0x289   : > { %1779 = vmatpush1.bf16.msra.mxu0 %v13570_v36  ;;  %13212 = vmatpush1.bf16.msra.mxu1 %v13570_v36 }
 0x28a   : > { %1780 = vmatprep.subr.bf16.mxu0 %v13575_v2  ;;  %13197 = vmatprep.subr.bf16.mxu1 %v13575_v2 }
 0x28d   : > { %1781 = vmatpush1.bf16.msra.mxu0 %v13573_v27  ;;  %13213 = vmatpush1.bf16.msra.mxu1 %v13573_v27 }
 0x28e   : > { %1782 = vmatprep.subr.bf16.mxu0 %v13578_v63  ;;  %13198 = vmatprep.subr.bf16.mxu1 %v13578_v63 }
 0x28f   : > { %1631 = vmatmul.mubr.bf16.gmra.mrb[28].mxu0 %v950_v43  ;;  %1744 = vmatmul.mubr.bf16.gmra.mrb[28].mxu1 %v950_v43 }
 0x290   : > { %1786 = vmatprep.mubr.bf16.mxu0 %v14834_v44  ;;  %1826 = vmatprep.mubr.bf16.mxu1 %v14923_v25  ;;  %v1901_v44 = vunpack.c.l.s4 %v13978_v61 }
 0x291   : > { %1783 = vmatpush1.bf16.msra.mxu0 %v13576_v53  ;;  %13214 = vmatpush1.bf16.msra.mxu1 %v13576_v53 }
 0x292   : > { %1784 = vmatprep.subr.bf16.mxu0 %v13581_v21  ;;  %13199 = vmatprep.subr.bf16.mxu1 %v13581_v21 }
 0x295   : > { %1785 = vmatpush1.bf16.msra.mxu0 %v13579_v48  ;;  %13215 = vmatpush1.bf16.msra.mxu1 %v13579_v48 }
 0x298   : > { %1787 = vmatmul.mubr.bf16.vlgmr.msra.gmra.mrb[32].mxu0 %v14836_v56  ;;  %1827 = vmatmul.mubr.bf16.vlgmr.msra.gmra.mrb[32].mxu1 %v14943_v58  ;;  %v1902_v56 = vunpack.c.0.s8 %v1901_v44 }
 0x299   : > { %1796 = vmatprep.mubr.bf16.mxu0 %v14851_v59  ;;  %1836 = vmatprep.mubr.bf16.mxu1 %v14947_v11  ;;  %v13979_v59 = vmov 1934713408  }
 0x29a   : > { %v15005_v25 = vsub.s32 %v1902_v56, %v14786_v41 }
 0x2a0   : > { %1797 = vmatmul.mubr.bf16.gmra.mrb[36].mxu0 %v14862_v16  ;;  %1837 = vmatmul.mubr.bf16.gmra.mrb[36].mxu1 %v14967_v52  ;;  %v1932_v16 = vunpack.c.l.s4 %v13979_v59 }
 0x2a1   : > { %1806 = vmatprep.mubr.bf16.mxu0 %v14878_v30  ;;  %1846 = vmatprep.mubr.bf16.mxu1 %v14971_v12 }
 0x2a2   : > { %v1933_v30 = vunpack.c.0.s8 %v1932_v16 }
 0x2a4   : > { %v15029_v5 = vsub.s32 %v1933_v30, %v14786_v41 }
 0x2a8   : > { %1807 = vmatmul.mubr.bf16.gmra.mrb[40].mxu0 %v14892_v14  ;;  %1847 = vmatmul.mubr.bf16.gmra.mrb[40].mxu1 %v948_v47  ;;  %v21127_v14 = vmov 0.0  }
 0x2a9   : > { %1816 = vmatprep.mubr.bf16.mxu0 %v14899_v45  ;;  %1856 = vmatprep.mubr.bf16.mxu1 %v951_v0 }
 0x2b0   : > { %1817 = vmatmul.mubr.bf16.gmra.mrb[44].mxu0 %v14919_v55  ;;  %1857 = vmatmul.mubr.bf16.gmra.mrb[44].mxu1 %v950_v43 }
 0x32a   : > { %v1562_v58 = vpop.f32.mrb[0].mxu0  ;;  %v1675_v54 = vpop.f32.mrb[0].mxu1 }
 0x32b   : > { %v15007_v11 = vmul.f32 0.088388346, %v1562_v58  ;;  %v2955_v45 = vcombine.high %v1675_v54, %v21127_v14  ;;  %v15011_v17 = vrot.slane %v1675_v54, %v15005_v25  ;;  %v1564_v55 = vpop.f32.mrb[1].mxu0  ;;  %v1677_v4 = vpop.f32.mrb[1].mxu1 }
 0x32c   : > { %v15013_v10 = vmul.f32 0.088388346, %v1564_v55  ;;  %v2970_v7 = vcombine.high %v1677_v4, %v21127_v14  ;;  %v15017_v35 = vrot.slane %v1677_v4, %v15005_v25  ;;  %v1566_v18 = vpop.f32.mrb[2].mxu0  ;;  %v1679_v1 = vpop.f32.mrb[2].mxu1 }
 0x32d   : > { %v15021_v50 = vrot.slane %v15007_v11, %v15005_v25  ;;  %v15024_v42 = vrot.slane %v2955_v45, %v15005_v25  ;;  %v15026_v20 = vmul.f32 0.088388346, %v1566_v18  ;;  %v1568_v60 = vpop.f32.mrb[3].mxu0  ;;  %v1681_v62 = vpop.f32.mrb[3].mxu1  ;;  %v3021_v40 = vcombine.high %v1679_v1, %v21127_v14 }
 0x32e   : > { %v15033_v8 = vrot.slane %v15013_v10, %v15005_v25  ;;  %v15036_v38 = vrot.slane %v2970_v7, %v15005_v25  ;;  %v2985_v6 = vcombine.low %v15011_v17, %v15017_v35  ;;  %v2986_v39 = vcombine.high %v15011_v17, %v15017_v35 }
 0x32f   : > { %v15052_v12 = vrot.slane %v15026_v20, %v15005_v25  ;;  %v15056_v46 = vrot.slane %v1679_v1, %v15005_v25  ;;  %v15058_v34 = vmul.f32 0.088388346, %v1568_v60  ;;  %v3036_v13 = vcombine.high %v1681_v62, %v21127_v14 }
 0x330   : > { %v1929_v52 = vcombine.low %v15021_v50, %v15033_v8  ;;  %v1930_v33 = vcombine.high %v15021_v50, %v15033_v8  ;;  %v15062_v26 = vrot.slane %v1681_v62, %v15005_v25  ;;  %v15065_v51 = vrot.slane %v2985_v6, %v15029_v5 }
 0x331   : > { %v15068_v15 = vrot.slane %v3021_v40, %v15005_v25  ;;  %v15075_v47 = vrot.slane %v15058_v34, %v15005_v25  ;;  %v15078_v36 = vrot.slane %v3036_v13, %v15005_v25 }
 0x332   : > { %21686 = vst [vmem:[#allocation44_spill] sm:$0xff] %v15065_v51  ;;  %v1572_v49 = vpop.f32.mrb[4].mxu0  ;;  %v1685_v57 = vpop.f32.mrb[4].mxu1  ;;  %6955 = vrot.lane.b32.xlu0 %v15065_v51, %s13981_s19  ;;  %v15111_v16 = vrot.slane %v1930_v33, %v15029_v5  ;;  %v15161_v13 = vcombine.high %v15065_v51, %v21127_v14 }
 0x333   : > { %v15070_v19 = vmul.f32 0.088388346, %v1572_v49  ;;  %v3087_v23 = vcombine.high %v1685_v57, %v21127_v14  ;;  %v1574_v31 = vpop.f32.mrb[5].mxu0  ;;  %v1687_v3 = vpop.f32.mrb[5].mxu1  ;;  %v15087_v27 = vrot.slane %v1685_v57, %v15005_v25 }
 0x334   : > { %v1576_v0 = vpop.f32.mrb[6].mxu0  ;;  %v1689_v2 = vpop.f32.mrb[6].mxu1  ;;  %v15104_v44 = vmul.f32 0.088388346, %v1574_v31  ;;  %v3102_v56 = vcombine.high %v1687_v3, %v21127_v14  ;;  %v15108_v59 = vrot.slane %v1687_v3, %v15005_v25  ;;  %21688 = vst [vmem:[#allocation46_spill] sm:$0xff] %v15111_v16  ;;  %6703 = vrot.lane.b32.xlu1 %v15111_v16, %s13981_s19  ;;  %21696 = vst [vmem:[#allocation54_spill] sm:$0xff] %v15161_v13 }
 0x335   : > { %v1578_v28 = vpop.f32.mrb[7].mxu0  ;;  %v1691_v63 = vpop.f32.mrb[7].mxu1  ;;  %v15097_v21 = vrot.slane %v15070_v19, %v15005_v25  ;;  %v15102_v61 = vrot.slane %v3087_v23, %v15005_v25  ;;  %v15113_v30 = vmul.f32 0.088388346, %v1576_v0  ;;  %v3153_v58 = vcombine.high %v1689_v2, %v21127_v14 }
 0x336   : > { %v15118_v54 = vrot.slane %v15104_v44, %v15005_v25  ;;  %v15121_v45 = vrot.slane %v3102_v56, %v15005_v25  ;;  %v15136_v6 = vrot.slane %v1689_v2, %v15005_v25  ;;  %v15147_v23 = vmul.f32 0.088388346, %v1578_v28 }
 0x337   : > { %21687 = vst [vmem:[#allocation45_spill] sm:$0xff] %v15102_v61  ;;  %v15142_v49 = vrot.slane %v15113_v30, %v15005_v25  ;;  %v15145_v57 = vrot.slane %v3153_v58, %v15005_v25  ;;  %v3168_v0 = vcombine.high %v1691_v63, %v21127_v14  ;;  %v15151_v2 = vrot.slane %v1691_v63, %v15005_v25 }
 0x338   : > { %21689 = vst [vmem:[#allocation47_spill] sm:$0xff] %v15121_v45  ;;  %21690 = vst [vmem:[#allocation48_spill] sm:$0xff] %v15136_v6  ;;  %v15157_v56 = vrot.slane %v2986_v39, %v15029_v5  ;;  %v15165_v62 = vrot.slane %v15147_v23, %v15005_v25  ;;  %6957 = vrot.lane.b32.xlu1 %v15161_v13, %s13981_s19 }
 0x339   : > { %21691 = vst [vmem:[#allocation49_spill] sm:$0xff] %v15142_v49  ;;  %21692 = vst [vmem:[#allocation50_spill] sm:$0xff] %v15145_v57  ;;  %v15168_v63 = vrot.slane %v3168_v0, %v15005_v25  ;;  %v15186_v0 = vrot.slane %v1929_v52, %v15029_v5 }
 0x33a   : > { %v1582_v7 = vpop.f32.mrb[8].mxu0  ;;  %v1695_v18 = vpop.f32.mrb[8].mxu1  ;;  %21693 = vst [vmem:[#allocation51_spill] sm:$0xff] %v15147_v23  ;;  %21694 = vst [vmem:[#allocation52_spill] sm:$0xff] %v15151_v2  ;;  %6959 = vrot.lane.b32.xlu0 %v15157_v56, %s13981_s19 }
 0x33b   : > { %v1584_v33 = vpop.f32.mrb[9].mxu0  ;;  %v1697_v40 = vpop.f32.mrb[9].mxu1  ;;  %21695 = vst [vmem:[#allocation53_spill] sm:$0xff] %v15157_v56  ;;  %21697 = vst [vmem:[#allocation55_spill] sm:$0xff] %v15165_v62  ;;  %v1875_v60 = vmul.f32 0.088388346, %v1582_v7  ;;  %v3219_v39 = vcombine.high %v1695_v18, %v21127_v14  ;;  %v15201_v50 = vrot.slane %v1695_v18, %v15005_v25  ;;  %v15220_v18 = vcombine.high %v15157_v56, %v21127_v14 }
 0x33c   : > { %v1586_v31 = vpop.f32.mrb[10].mxu0  ;;  %v1699_v3 = vpop.f32.mrb[10].mxu1  ;;  %21698 = vst [vmem:[#allocation56_spill] sm:$0xff] %v15168_v63  ;;  %v1876_v35 = vmul.f32 0.088388346, %v1584_v33  ;;  %21699 = vst [vmem:[#allocation57_spill] sm:$0xff] %v15186_v0  ;;  %v15216_v33 = vrot.slane %v1697_v40, %v15005_v25 }
 0x33d   : > { %v1588_v58 = vpop.f32.mrb[11].mxu0  ;;  %v1701_v28 = vpop.f32.mrb[11].mxu1  ;;  %v2163_v17 = vcombine.high %v1875_v60, %v21127_v14  ;;  %v15194_v4 = vrot.slane %v1875_v60, %v15005_v25  ;;  %21702 = vst [vmem:[#allocation60_spill] sm:$0xff] %v15201_v50  ;;  %v15212_v60 = vrot.slane %v3219_v39, %v15005_v25  ;;  %21706 = vst [vmem:[#allocation64_spill] sm:$0xff] %v15220_v18  ;;  %v1877_v24 = vmul.f32 0.088388346, %v1586_v31 }
 0x33e   : > { %v2178_v8 = vcombine.high %v1876_v35, %v21127_v14  ;;  %v15205_v52 = vrot.slane %v1876_v35, %v15005_v25  ;;  %6699 = vrot.lane.b32.xlu0 %v15186_v0, %s13981_s19  ;;  %21705 = vst [vmem:[#allocation63_spill] sm:$0xff] %v15216_v33  ;;  %6961 = vrot.lane.b32.xlu1 %v15220_v18, %s13981_s19  ;;  %v1878_v31 = vmul.f32 0.088388346, %v1588_v58 }
 0x33f   : > { %21700 = vst [vmem:[#allocation58_spill] sm:$0xff] %v15194_v4  ;;  %v15198_v7 = vrot.slane %v2163_v17, %v15005_v25  ;;  %21704 = vst [vmem:[#allocation62_spill] sm:$0xff] %v15212_v60  ;;  %v3234_v17 = vcombine.high %v1697_v40, %v21127_v14  ;;  %v3285_v43 = vcombine.high %v1699_v3, %v21127_v14 }
 0x340   : > { %21703 = vst [vmem:[#allocation61_spill] sm:$0xff] %v15205_v52  ;;  %v15223_v53 = vrot.slane %v2178_v8, %v15005_v25  ;;  %v2229_v13 = vcombine.high %v1877_v24, %v21127_v14  ;;  %v15253_v18 = vrot.slane %v1877_v24, %v15005_v25  ;;  %v15256_v56 = vrot.slane %v1699_v3, %v15005_v25 }
 0x341   : > { %21701 = vst [vmem:[#allocation59_spill] sm:$0xff] %v15198_v7  ;;  %v15232_v40 = vrot.slane %v3234_v17, %v15005_v25  ;;  %v15259_v51 = vrot.slane %v3285_v43, %v15005_v25  ;;  %v3300_v17 = vcombine.high %v1701_v28, %v21127_v14  ;;  %v21713_v8 = vcombine.low %v15024_v42, %v15036_v38 }
 0x342   : > { %v1592_v1 = vpop.f32.mrb[12].mxu0  ;;  %v15207_v55 = vpop.f32.mrb[12].mxu1  ;;  %21707 = vst [vmem:[#allocation65_spill] sm:$0xff] %v15223_v53  ;;  %21709 = vst [vmem:[#allocation67_spill] sm:$0xff] %v15253_v18  ;;  %v15263_v53 = vrot.slane %v1701_v28, %v15005_v25  ;;  %v15273_v24 = vcombine.high %v15186_v0, %v21127_v14  ;;  %v15276_v3 = vrot.slane %v2229_v13, %v15005_v25 }
 0x343   : > { %v1594_v35 = vpop.f32.mrb[13].mxu0  ;;  %v1707_v48 = vpop.f32.mrb[13].mxu1  ;;  %21708 = vst [vmem:[#allocation66_spill] sm:$0xff] %v15232_v40  ;;  %21710 = vst [vmem:[#allocation68_spill] sm:$0xff] %v15256_v56  ;;  %v15269_v22 = vrot.slane %v21713_v8, %v15029_v5  ;;  %v2244_v43 = vcombine.high %v1878_v31, %v21127_v14  ;;  %v15280_v58 = vrot.slane %v1878_v31, %v15005_v25  ;;  %v1879_v13 = vmul.f32 0.088388346, %v1592_v1 }
 0x344   : > { %v1596_v9 = vpop.f32.mrb[14].mxu0  ;;  %v15229_v32 = vpop.f32.mrb[14].mxu1  ;;  %21711 = vst [vmem:[#allocation69_spill] sm:$0xff] %v15259_v51  ;;  %21712 = vst [vmem:[#allocation70_spill] sm:$0xff] %v15263_v53  ;;  %v15283_v28 = vrot.slane %v3300_v17, %v15005_v25  ;;  %6701 = vrot.lane.b32.xlu1 %v15273_v24, %s13981_s19  ;;  %v21722_v8 = vmov 0.0   ;;  %v15344_v51 = vrot.slane %v1707_v48, %v15005_v25 }
 0x345   : > { %v1598_v37 = vpop.f32.mrb[15].mxu0  ;;  %v15241_v39 = vpop.f32.mrb[15].mxu1  ;;  %21714 = vst [vmem:[#allocation71_spill] sm:$0xff] %v15269_v22  ;;  %21715 = vst [vmem:[#allocation72_spill] sm:$0xff] %v15273_v24  ;;  %6963 = vrot.lane.b32.xlu0 %v15269_v22, %s13981_s19  ;;  %v15302_v14 = vrot.slane %v2244_v43, %v15005_v25  ;;  %v21720_v43 = vcombine.high %v15024_v42, %v15036_v38  ;;  %v2295_v29 = vcombine.high %v1879_v13, %v21722_v8 }
 0x346   : > { %21716 = vst [vmem:[#allocation73_spill] sm:$0xff] %v15276_v3  ;;  %21717 = vst [vmem:[#allocation74_spill] sm:$0xff] %v15280_v58  ;;  %v3351_v60 = vcombine.high %v15207_v55, %v21722_v8  ;;  %v15336_v42 = vrot.slane %v1879_v13, %v15005_v25  ;;  %v15340_v38 = vrot.slane %v15207_v55, %v15005_v25 }
 0x347   : > { %21718 = vst [vmem:[#allocation75_spill] sm:$0xff] %v15283_v28  ;;  %21719 = vst [vmem:[#allocation76_spill] sm:$0xff] %v15302_v14  ;;  %v15320_v50 = vrot.slane %v21720_v43, %v15029_v5  ;;  %v1880_v43 = vmul.f32 0.088388346, %v1594_v35  ;;  %v3366_v28 = vcombine.high %v1707_v48, %v21722_v8  ;;  %v15348_v57 = vcombine.high %v15111_v16, %v21722_v8 }
 0x348   : > { %21723 = vst [vmem:[#allocation78_spill] sm:$0xff] %v15336_v42  ;;  %21724 = vst [vmem:[#allocation79_spill] sm:$0xff] %v15340_v38  ;;  %v15351_v1 = vrot.slane %v2295_v29, %v15005_v25  ;;  %v15354_v13 = vrot.slane %v3351_v60, %v15005_v25  ;;  %v1881_v14 = vmul.f32 0.088388346, %v1596_v9  ;;  %v3417_v53 = vcombine.high %v15229_v32, %v21722_v8 }
 0x349   : > { %21721 = vst [vmem:[#allocation77_spill] sm:$0xff] %v15320_v50  ;;  %6967 = vrot.lane.b32.xlu0 %v15320_v50, %s13981_s19  ;;  %21725 = vst [vmem:[#allocation80_spill] sm:$0xff] %v15344_v51  ;;  %v2310_v55 = vcombine.high %v1880_v43, %v21722_v8  ;;  %v15358_v35 = vrot.slane %v1880_v43, %v15005_v25  ;;  %v15361_v3 = vrot.slane %v3366_v28, %v15005_v25 }
 0x34a   : > { %v15285_v7 = vpop.f32.mrb[16].mxu0  ;;  %v15287_v40 = vpop.f32.mrb[16].mxu1  ;;  %21726 = vst [vmem:[#allocation81_spill] sm:$0xff] %v15348_v57  ;;  %21727 = vst [vmem:[#allocation82_spill] sm:$0xff] %v15351_v1  ;;  %6705 = vrot.lane.b32.xlu1 %v15348_v57, %s13981_s19  ;;  %v2361_v60 = vcombine.high %v1881_v14, %v21722_v8  ;;  %v1882_v43 = vmul.f32 0.088388346, %v1598_v37  ;;  %v1899_v37 = vcombine.high %v15007_v11, %v21722_v8 }
 0x34b   : > { %v15297_v31 = vpop.f32.mrb[17].mxu0  ;;  %v15299_v17 = vpop.f32.mrb[17].mxu1  ;;  %21728 = vst [vmem:[#allocation83_spill] sm:$0xff] %v15354_v13  ;;  %21729 = vst [vmem:[#allocation84_spill] sm:$0xff] %v15358_v35  ;;  %v15379_v18 = vrot.slane %v2310_v55, %v15005_v25  ;;  %v15398_v48 = vrot.slane %v1881_v14, %v15005_v25  ;;  %v15413_v55 = vrot.slane %v15229_v32, %v15005_v25 }
 0x34c   : > { %v15310_v33 = vpop.f32.mrb[18].mxu0  ;;  %v15312_v24 = vpop.f32.mrb[18].mxu1  ;;  %21730 = vst [vmem:[#allocation85_spill] sm:$0xff] %v15361_v3  ;;  %v15409_v11 = vrot.slane %v2361_v60, %v15005_v25  ;;  %v2376_v14 = vcombine.high %v1882_v43, %v21722_v8  ;;  %v15417_v38 = vrot.slane %v1882_v43, %v15005_v25  ;;  %v3432_v3 = vcombine.high %v15241_v39, %v21722_v8 }
 0x34d   : > { %v15325_v63 = vpop.f32.mrb[19].mxu0  ;;  %v15327_v0 = vpop.f32.mrb[19].mxu1  ;;  %21731 = vst [vmem:[#allocation86_spill] sm:$0xff] %v15379_v18  ;;  %21732 = vst [vmem:[#allocation87_spill] sm:$0xff] %v15398_v48  ;;  %v15423_v42 = vrot.slane %v15241_v39, %v15005_v25  ;;  %v15426_v56 = vrot.slane %v3417_v53, %v15005_v25  ;;  %v21738_v32 = vcombine.low %v15056_v46, %v15062_v26  ;;  %v1883_v18 = vmul.f32 0.088388346, %v15285_v7 }
 0x34e   : > { %21733 = vst [vmem:[#allocation88_spill] sm:$0xff] %v15409_v11  ;;  %21734 = vst [vmem:[#allocation89_spill] sm:$0xff] %v15413_v55  ;;  %v15436_v43 = vcombine.high %v15269_v22, %v21722_v8  ;;  %v15440_v1 = vrot.slane %v2376_v14, %v15005_v25  ;;  %v15447_v13 = vrot.slane %v3432_v3, %v15005_v25  ;;  %v1884_v14 = vmul.f32 0.088388346, %v15297_v31 }
 0x34f   : > { %21735 = vst [vmem:[#allocation90_spill] sm:$0xff] %v15417_v38  ;;  %21736 = vst [vmem:[#allocation91_spill] sm:$0xff] %v15423_v42  ;;  %v15432_v60 = vrot.slane %v21738_v32, %v15029_v5  ;;  %v2427_v7 = vcombine.high %v1883_v18, %v21722_v8  ;;  %v1914_v32 = vcombine.high %v15013_v10, %v21722_v8  ;;  %v1885_v48 = vmul.f32 0.088388346, %v15310_v33 }
 0x350   : > { %21737 = vst [vmem:[#allocation92_spill] sm:$0xff] %v15426_v56  ;;  %21740 = vst [vmem:[#allocation94_spill] sm:$0xff] %v15436_v43  ;;  %6965 = vrot.lane.b32.xlu1 %v15436_v43, %s13981_s19  ;;  %v15474_v55 = vrot.slane %v1899_v37, %v15005_v25  ;;  %v21743_v10 = vcombine.high %v15056_v46, %v15062_v26  ;;  %v15491_v11 = vrot.slane %v1883_v18, %v15005_v25 }
 0x351   : > { %21739 = vst [vmem:[#allocation93_spill] sm:$0xff] %v15432_v60  ;;  %21741 = vst [vmem:[#allocation95_spill] sm:$0xff] %v15440_v1  ;;  %6971 = vrot.lane.b32.xlu0 %v15432_v60, %s13981_s19  ;;  %v15494_v37 = vrot.slane %v2427_v7, %v15005_v25  ;;  %v3483_v31 = vcombine.high %v15287_v40, %v21722_v8  ;;  %v15500_v38 = vrot.slane %v15287_v40, %v15005_v25 }
 0x352   : > { %v15367_v29 = vpop.f32.mrb[20].mxu0  ;;  %v15369_v16 = vpop.f32.mrb[20].mxu1  ;;  %21742 = vst [vmem:[#allocation96_spill] sm:$0xff] %v15447_v13  ;;  %v15484_v22 = vrot.slane %v21743_v10, %v15029_v5  ;;  %21745 = vst [vmem:[#allocation98_spill] sm:$0xff] %v15491_v11  ;;  %v2442_v18 = vcombine.high %v1884_v14, %v21722_v8  ;;  %v15510_v10 = vrot.slane %v1884_v14, %v15005_v25  ;;  %v1886_v33 = vmul.f32 0.088388346, %v15325_v63 }
 0x353   : > { %v15374_v58 = vpop.f32.mrb[21].mxu0  ;;  %v15376_v28 = vpop.f32.mrb[21].mxu1  ;;  %21746 = vst [vmem:[#allocation99_spill] sm:$0xff] %v15494_v37  ;;  %21747 = vst [vmem:[#allocation100_spill] sm:$0xff] %v15500_v38  ;;  %v3498_v7 = vcombine.high %v15299_v17, %v21722_v8  ;;  %v15516_v13 = vrot.slane %v15299_v17, %v15005_v25  ;;  %v15519_v40 = vrot.slane %v3483_v31, %v15005_v25 }
 0x354   : > { %v15387_v9 = vpop.f32.mrb[22].mxu0  ;;  %v15389_v51 = vpop.f32.mrb[22].mxu1  ;;  %21744 = vst [vmem:[#allocation97_spill] sm:$0xff] %v15484_v22  ;;  %21748 = vst [vmem:[#allocation101_spill] sm:$0xff] %v15510_v10  ;;  %v15523_v56 = vcombine.high %v15320_v50, %v21722_v8  ;;  %v3549_v14 = vcombine.high %v15312_v24, %v21722_v8  ;;  %v15529_v52 = vrot.slane %v2442_v18, %v15005_v25 }
 0x355   : > { %v15400_v57 = vpop.f32.mrb[23].mxu0  ;;  %v15402_v35 = vpop.f32.mrb[23].mxu1  ;;  %6975 = vrot.lane.b32.xlu0 %v15484_v22, %s13981_s19  ;;  %21749 = vst [vmem:[#allocation102_spill] sm:$0xff] %v15516_v13  ;;  %21750 = vst [vmem:[#allocation103_spill] sm:$0xff] %v15519_v40  ;;  %v15536_v31 = vrot.slane %v3498_v7, %v15005_v25  ;;  %v1928_v50 = vrot.slane %v1914_v32, %v15005_v25  ;;  %v2493_v18 = vcombine.high %v1885_v48, %v21722_v8 }
 0x356   : > { %21751 = vst [vmem:[#allocation104_spill] sm:$0xff] %v15523_v56  ;;  %21752 = vst [vmem:[#allocation105_spill] sm:$0xff] %v15529_v52  ;;  %6969 = vrot.lane.b32.xlu1 %v15523_v56, %s13981_s19  ;;  %v15559_v56 = vrot.slane %v1885_v48, %v15005_v25  ;;  %v15570_v7 = vrot.slane %v15312_v24, %v15005_v25  ;;  %v15573_v52 = vrot.slane %v3549_v14, %v15005_v25 }
 0x357   : > { %21753 = vst [vmem:[#allocation106_spill] sm:$0xff] %v15536_v31  ;;  %v15566_v4 = vrot.slane %v2493_v18, %v15005_v25  ;;  %v3564_v37 = vcombine.high %v15327_v0, %v21722_v8  ;;  %v15584_v18 = vrot.slane %v15327_v0, %v15005_v25  ;;  %v1945_v31 = vcombine.low %v15474_v55, %v1928_v50 }
 0x358   : > { %21754 = vst [vmem:[#allocation107_spill] sm:$0xff] %v15559_v56  ;;  %21756 = vst [vmem:[#allocation109_spill] sm:$0xff] %v15570_v7  ;;  %v15589_v24 = vcombine.high %v15432_v60, %v21722_v8  ;;  %v2508_v40 = vcombine.high %v1886_v33, %v21722_v8  ;;  %v15597_v10 = vrot.slane %v1886_v33, %v15005_v25  ;;  %v1887_v0 = vmul.f32 0.088388346, %v15367_v29 }
 0x359   : > { %21755 = vst [vmem:[#allocation108_spill] sm:$0xff] %v15566_v4  ;;  %21757 = vst [vmem:[#allocation110_spill] sm:$0xff] %v15573_v52  ;;  %v1946_v11 = vcombine.high %v15474_v55, %v1928_v50  ;;  %v15602_v49 = vrot.slane %v3564_v37, %v15005_v25  ;;  %v15609_v23 = vrot.slane %v1945_v31, %v15029_v5  ;;  %v1890_v2 = vmul.f32 0.088388346, %v15400_v57 }
 0x35a   : > { %v15459_v53 = vpop.f32.mrb[24].mxu0  ;;  %v15461_v3 = vpop.f32.mrb[24].mxu1  ;;  %21758 = vst [vmem:[#allocation111_spill] sm:$0xff] %v15584_v18  ;;  %21759 = vst [vmem:[#allocation112_spill] sm:$0xff] %v15589_v24  ;;  %6973 = vrot.lane.b32.xlu1 %v15589_v24, %s13981_s19  ;;  %v15614_v33 = vrot.slane %v2508_v40, %v15005_v25  ;;  %v2559_v29 = vcombine.high %v1887_v0, %v21722_v8  ;;  %v15635_v60 = vrot.slane %v1887_v0, %v15005_v25 }
 0x35b   : > { %v15469_v42 = vpop.f32.mrb[25].mxu0  ;;  %v15471_v43 = vpop.f32.mrb[25].mxu1  ;;  %21760 = vst [vmem:[#allocation113_spill] sm:$0xff] %v15597_v10  ;;  %21761 = vst [vmem:[#allocation114_spill] sm:$0xff] %v15602_v49  ;;  %6707 = vrot.lane.b32.xlu0 %v15609_v23, %s13981_s19  ;;  %v15631_v41 = vrot.slane %v1946_v11, %v15029_v5  ;;  %v3615_v37 = vcombine.high %v15369_v16, %v21722_v8  ;;  %v15641_v55 = vrot.slane %v15369_v16, %v15005_v25 }
 0x35c   : > { %v15486_v39 = vpop.f32.mrb[26].mxu0  ;;  %v15488_v1 = vpop.f32.mrb[26].mxu1  ;;  %21762 = vst [vmem:[#allocation115_spill] sm:$0xff] %v15609_v23  ;;  %21763 = vst [vmem:[#allocation116_spill] sm:$0xff] %v15614_v33  ;;  %v1888_v40 = vmul.f32 0.088388346, %v15374_v58  ;;  %v3630_v11 = vcombine.high %v15376_v28, %v21722_v8  ;;  %v15652_v0 = vrot.slane %v15376_v28, %v15005_v25  ;;  %v15656_v33 = vcombine.high %v15484_v22, %v21722_v8 }
 0x35d   : > { %v15502_v46 = vpop.f32.mrb[27].mxu0  ;;  %v15504_v26 = vpop.f32.mrb[27].mxu1  ;;  %21764 = vst [vmem:[#allocation117_spill] sm:$0xff] %v15631_v41  ;;  %21765 = vst [vmem:[#allocation118_spill] sm:$0xff] %v15635_v60  ;;  %v15665_v58 = vrot.slane %v2559_v29, %v15005_v25  ;;  %v15668_v49 = vrot.slane %v3615_v37, %v15005_v25  ;;  %v1889_v28 = vmul.f32 0.088388346, %v15387_v9  ;;  %v3696_v10 = vcombine.high %v15402_v35, %v21722_v8 }
 0x35e   : > { %21766 = vst [vmem:[#allocation119_spill] sm:$0xff] %v15641_v55  ;;  %21767 = vst [vmem:[#allocation120_spill] sm:$0xff] %v15652_v0  ;;  %v2574_v22 = vcombine.high %v1888_v40, %v21722_v8  ;;  %v15677_v18 = vrot.slane %v1888_v40, %v15005_v25  ;;  %v15680_v7 = vrot.slane %v3630_v11, %v15005_v25  ;;  %6977 = vrot.lane.b32.xlu1 %v15656_v33, %s13981_s19 }
 0x35f   : > { %21768 = vst [vmem:[#allocation121_spill] sm:$0xff] %v15656_v33  ;;  %6711 = vrot.lane.b32.xlu0 %v15631_v41, %s13981_s19  ;;  %21769 = vst [vmem:[#allocation122_spill] sm:$0xff] %v15665_v58  ;;  %v2625_v56 = vcombine.high %v1889_v28, %v21722_v8  ;;  %v3681_v33 = vcombine.high %v15389_v51, %v21722_v8  ;;  %v15708_v0 = vrot.slane %v15389_v51, %v15005_v25 }
 0x360   : > { %21770 = vst [vmem:[#allocation123_spill] sm:$0xff] %v15668_v49  ;;  %21771 = vst [vmem:[#allocation124_spill] sm:$0xff] %v15677_v18  ;;  %v15694_v40 = vrot.slane %v2574_v22, %v15005_v25  ;;  %v15715_v29 = vrot.slane %v1889_v28, %v15005_v25  ;;  %v15725_v51 = vrot.slane %v15402_v35, %v15005_v25  ;;  %v1891_v35 = vmul.f32 0.088388346, %v15459_v53 }
 0x361   : > { %21772 = vst [vmem:[#allocation125_spill] sm:$0xff] %v15680_v7  ;;  %21774 = vst [vmem:[#allocation127_spill] sm:$0xff] %v15708_v0  ;;  %v15718_v18 = vrot.slane %v2625_v56, %v15005_v25  ;;  %v15732_v11 = vrot.slane %v3681_v33, %v15005_v25  ;;  %v21779_v56 = vcombine.low %v15052_v12, %v15075_v47 }
 0x362   : > { %v15550_v17 = vpop.f32.mrb[28].mxu0  ;;  %v15552_v32 = vpop.f32.mrb[28].mxu1  ;;  %21773 = vst [vmem:[#allocation126_spill] sm:$0xff] %v15694_v40  ;;  %21775 = vst [vmem:[#allocation128_spill] sm:$0xff] %v15715_v29  ;;  %v15742_v57 = vcombine.high %v15609_v23, %v21722_v8  ;;  %v2640_v49 = vcombine.high %v1890_v2, %v21722_v8  ;;  %v15751_v33 = vrot.slane %v1890_v2, %v15005_v25 }
 0x363   : > { %v15561_v13 = vpop.f32.mrb[29].mxu0  ;;  %v15563_v38 = vpop.f32.mrb[29].mxu1  ;;  %21776 = vst [vmem:[#allocation129_spill] sm:$0xff] %v15718_v18  ;;  %21777 = vst [vmem:[#allocation130_spill] sm:$0xff] %v15725_v51  ;;  %v15738_v28 = vrot.slane %v21779_v56, %v15029_v5  ;;  %v15754_v60 = vrot.slane %v3696_v10, %v15005_v25  ;;  %v2691_v2 = vcombine.high %v1891_v35, %v21722_v8  ;;  %v1892_v10 = vmul.f32 0.088388346, %v15469_v42 }
 0x364   : > { %v15576_v62 = vpop.f32.mrb[30].mxu0  ;;  %v15578_v48 = vpop.f32.mrb[30].mxu1  ;;  %21778 = vst [vmem:[#allocation131_spill] sm:$0xff] %v15732_v11  ;;  %21781 = vst [vmem:[#allocation133_spill] sm:$0xff] %v15742_v57  ;;  %6709 = vrot.lane.b32.xlu1 %v15742_v57, %s13981_s19  ;;  %v15775_v45 = vrot.slane %v2640_v49, %v15005_v25  ;;  %v21785_v42 = vcombine.high %v15052_v12, %v15075_v47  ;;  %v15792_v49 = vrot.slane %v1891_v35, %v15005_v25 }
 0x365   : > { %v15591_v14 = vpop.f32.mrb[31].mxu0  ;;  %v15593_v63 = vpop.f32.mrb[31].mxu1  ;;  %21780 = vst [vmem:[#allocation132_spill] sm:$0xff] %v15738_v28  ;;  %21782 = vst [vmem:[#allocation134_spill] sm:$0xff] %v15751_v33  ;;  %6715 = vrot.lane.b32.xlu0 %v15738_v28, %s13981_s19  ;;  %v15799_v0 = vrot.slane %v2691_v2, %v15005_v25  ;;  %v3747_v12 = vcombine.high %v15461_v3, %v21722_v8  ;;  %v15807_v47 = vrot.slane %v15461_v3, %v15005_v25 }
 0x366   : > { %21783 = vst [vmem:[#allocation135_spill] sm:$0xff] %v15754_v60  ;;  %21784 = vst [vmem:[#allocation136_spill] sm:$0xff] %v15775_v45  ;;  %v15789_v61 = vrot.slane %v21785_v42, %v15029_v5  ;;  %v2706_v35 = vcombine.high %v1892_v10, %v21722_v8  ;;  %v15811_v42 = vrot.slane %v1892_v10, %v15005_v25  ;;  %v1893_v57 = vmul.f32 0.088388346, %v15486_v39 }
 0x367   : > { %21786 = vst [vmem:[#allocation137_spill] sm:$0xff] %v15792_v49  ;;  %21787 = vst [vmem:[#allocation138_spill] sm:$0xff] %v15799_v0  ;;  %v3762_v51 = vcombine.high %v15471_v43, %v21722_v8  ;;  %v15817_v2 = vrot.slane %v15471_v43, %v15005_v25  ;;  %v15821_v53 = vcombine.high %v15631_v41, %v21722_v8  ;;  %v1894_v0 = vmul.f32 0.088388346, %v15502_v46 }
 0x368   : > { %21788 = vst [vmem:[#allocation139_spill] sm:$0xff] %v15807_v47  ;;  %21789 = vst [vmem:[#allocation140_spill] sm:$0xff] %v15811_v42  ;;  %v15829_v10 = vrot.slane %v3747_v12, %v15005_v25  ;;  %v15832_v18 = vrot.slane %v2706_v35, %v15005_v25  ;;  %v2757_v42 = vcombine.high %v1893_v57, %v21722_v8 }
 0x369   : > { %6719 = vrot.lane.b32.xlu0 %v15789_v61, %s13981_s19  ;;  %21790 = vst [vmem:[#allocation141_spill] sm:$0xff] %v15817_v2  ;;  %21791 = vst [vmem:[#allocation142_spill] sm:$0xff] %v15821_v53  ;;  %v15843_v39 = vrot.slane %v3762_v51, %v15005_v25  ;;  %6713 = vrot.lane.b32.xlu1 %v15821_v53, %s13981_s19  ;;  %v1965_v47 = vcombine.high %v15026_v20, %v21722_v8 }
 0x36a   : > { %21792 = vst [vmem:[#allocation143_spill] sm:$0xff] %v15829_v10  ;;  %21793 = vst [vmem:[#allocation144_spill] sm:$0xff] %v15832_v18  ;;  %v15871_v60 = vrot.slane %v1893_v57, %v15005_v25  ;;  %v3813_v51 = vcombine.high %v15488_v1, %v21722_v8  ;;  %v15877_v18 = vrot.slane %v15488_v1, %v15005_v25  ;;  %v1895_v10 = vmul.f32 0.088388346, %v15550_v17 }
 0x36b   : > { %v15643_v50 = vpop.f32.mrb[32].mxu0  ;;  %v15645_v31 = vpop.f32.mrb[32].mxu1  ;;  %21794 = vst [vmem:[#allocation145_spill] sm:$0xff] %v15843_v39  ;;  %v3828_v35 = vcombine.high %v15504_v26, %v21722_v8  ;;  %v15884_v2 = vrot.slane %v15504_v26, %v15005_v25  ;;  %v21798_v20 = vcombine.low %v15068_v15, %v15078_v36  ;;  %v15893_v39 = vrot.slane %v2757_v42, %v15005_v25 }
 0x36c   : > { %v15658_v4 = vpop.f32.mrb[33].mxu0  ;;  %v15660_v16 = vpop.f32.mrb[33].mxu1  ;;  %21795 = vst [vmem:[#allocation146_spill] sm:$0xff] %v15871_v60  ;;  %21796 = vst [vmem:[#allocation147_spill] sm:$0xff] %v15877_v18  ;;  %v15896_v1 = vrot.slane %v3813_v51, %v15005_v25  ;;  %v15900_v46 = vcombine.high %v15738_v28, %v21722_v8  ;;  %v2772_v26 = vcombine.high %v1894_v0, %v21722_v8 }
 0x36d   : > { %v15671_v52 = vpop.f32.mrb[34].mxu0  ;;  %v15673_v24 = vpop.f32.mrb[34].mxu1  ;;  %21797 = vst [vmem:[#allocation148_spill] sm:$0xff] %v15884_v2  ;;  %v15890_v57 = vrot.slane %v21798_v20, %v15029_v5  ;;  %21800 = vst [vmem:[#allocation150_spill] sm:$0xff] %v15893_v39  ;;  %v15905_v53 = vrot.slane %v1894_v0, %v15005_v25  ;;  %v15908_v20 = vrot.slane %v3828_v35, %v15005_v25 }
 0x36e   : > { %v15686_v37 = vpop.f32.mrb[35].mxu0  ;;  %v15688_v9 = vpop.f32.mrb[35].mxu1  ;;  %21801 = vst [vmem:[#allocation151_spill] sm:$0xff] %v15896_v1  ;;  %21802 = vst [vmem:[#allocation152_spill] sm:$0xff] %v15900_v46  ;;  %v1980_v17 = vcombine.high %v15058_v34, %v21722_v8  ;;  %6717 = vrot.lane.b32.xlu1 %v15900_v46, %s13981_s19  ;;  %v3879_v35 = vcombine.high %v15552_v32, %v21722_v8  ;;  %v21810_v0 = vcombine.high %v15068_v15, %v15078_v36 }
 0x36f   : > { %21799 = vst [vmem:[#allocation149_spill] sm:$0xff] %v15890_v57  ;;  %21803 = vst [vmem:[#allocation153_spill] sm:$0xff] %v15905_v53  ;;  %6979 = vrot.lane.b32.xlu0 %v15890_v57, %s13981_s19  ;;  %v15955_v34 = vrot.slane %v1965_v47, %v15005_v25  ;;  %v1896_v47 = vmul.f32 0.088388346, %v15561_v13  ;;  %v3894_v15 = vcombine.high %v15563_v38, %v21722_v8 }
 0x370   : > { %21804 = vst [vmem:[#allocation154_spill] sm:$0xff] %v15908_v20  ;;  %v15941_v2 = vrot.slane %v21810_v0, %v15029_v5  ;;  %v15964_v0 = vrot.slane %v1895_v10, %v15005_v25  ;;  %v1994_v36 = vrot.slane %v1980_v17, %v15005_v25  ;;  %v2031_v1 = vcombine.high %v15070_v19, %v21722_v8 }
 0x371   : > { %v2838_v13 = vcombine.high %v1896_v47, %v21722_v8  ;;  %v15991_v39 = vrot.slane %v1896_v47, %v15005_v25  ;;  %v15994_v17 = vrot.slane %v3894_v15, %v15005_v25  ;;  %v16042_v15 = vrot.slane %v15593_v63, %v15005_v25 }
 0x372   : > { %21811 = vst [vmem:[#allocation160_spill] sm:$0xff] %v15941_v2  ;;  %21812 = vst [vmem:[#allocation161_spill] sm:$0xff] %v15964_v0 }
 0x373   : > { %v15727_v7 = vpop.f32.mrb[36].mxu0  ;;  %v15729_v22 = vpop.f32.mrb[36].mxu1  ;;  %6983 = vrot.lane.b32.xlu0 %v15941_v2, %s13981_s19  ;;  %21817 = vst [vmem:[#allocation166_spill] sm:$0xff] %v15991_v39  ;;  %21818 = vst [vmem:[#allocation167_spill] sm:$0xff] %v15994_v17  ;;  %v16006_v47 = vrot.slane %v2838_v13, %v15005_v25  ;;  %v16022_v13 = vrot.slane %v15578_v48, %v15005_v25 }
 0x374   : > { %v15745_v40 = vpop.f32.mrb[37].mxu0  ;;  %v15747_v58 = vpop.f32.mrb[37].mxu1  ;;  %21824 = vst [vmem:[#allocation173_spill] sm:$0xff] %v16042_v15  ;;  %v4539_v15 = vcombine.high %v15645_v31, %v21722_v8 }
 0x375   : > { %v15758_v55 = vpop.f32.mrb[38].mxu0  ;;  %v15760_v23 = vpop.f32.mrb[38].mxu1  ;;  %21819 = vst [vmem:[#allocation168_spill] sm:$0xff] %v16006_v47  ;;  %21820 = vst [vmem:[#allocation169_spill] sm:$0xff] %v16022_v13 }
 0x376   : > { %v15770_v6 = vpop.f32.mrb[39].mxu0  ;;  %v15772_v56 = vpop.f32.mrb[39].mxu1 }
 0x37b   : > { %v15824_v3 = vpop.f32.mrb[40].mxu0  ;;  %v15826_v45 = vpop.f32.mrb[40].mxu1 }
 0x37c   : > { %v15838_v11 = vpop.f32.mrb[41].mxu0  ;;  %v15840_v33 = vpop.f32.mrb[41].mxu1 }
 0x37d   : > { %v15851_v43 = vpop.f32.mrb[42].mxu0  ;;  %v15853_v29 = vpop.f32.mrb[42].mxu1 }
 0x37e   : > { %v15860_v49 = vpop.f32.mrb[43].mxu0  ;;  %v15862_v12 = vpop.f32.mrb[43].mxu1 }
 0x383   : > { %v15914_v51 = vpop.f32.mrb[44].mxu0  ;;  %v15916_v28 = vpop.f32.mrb[44].mxu1 }
 0x384   : > { %21805 = vst [vmem:[#allocation155_spill] sm:$0xff] %v15914_v51  ;;  %21806 = vst [vmem:[#allocation156_spill] sm:$0xff] %v15916_v28  ;;  %v15926_v42 = vpop.f32.mrb[45].mxu0  ;;  %v15928_v41 = vpop.f32.mrb[45].mxu1  ;;  %v15931_v51 = vrot.slane %v2772_v26, %v15005_v25  ;;  %v2823_v28 = vcombine.high %v1895_v10, %v21722_v8  ;;  %v15971_v26 = vrot.slane %v3879_v35, %v15005_v25 }
 0x385   : > { %21807 = vst [vmem:[#allocation157_spill] sm:$0xff] %v15926_v42  ;;  %21808 = vst [vmem:[#allocation158_spill] sm:$0xff] %v15928_v41  ;;  %v15943_v18 = vpop.f32.mrb[46].mxu0  ;;  %v15945_v46 = vpop.f32.mrb[46].mxu1  ;;  %v15968_v41 = vrot.slane %v15552_v32, %v15005_v25  ;;  %v15983_v10 = vcombine.high %v15789_v61, %v21722_v8  ;;  %v1897_v32 = vmul.f32 0.088388346, %v15576_v62 }
 0x386   : > { %21809 = vst [vmem:[#allocation159_spill] sm:$0xff] %v15931_v51  ;;  %v15952_v42 = vpop.f32.mrb[47].mxu0  ;;  %21814 = vst [vmem:[#allocation163_spill] sm:$0xff] %v15971_v26  ;;  %v15979_v51 = vrot.slane %v15563_v38, %v15005_v25  ;;  %v15987_v35 = vrot.slane %v2823_v28, %v15005_v25  ;;  %v3945_v28 = vcombine.high %v15578_v48, %v21722_v8  ;;  %v16061_v17 = vpop.f32.mrb[47].mxu1  ;;  %v13982_v26 = vmov 1966171168  }
 0x387   : > { %21813 = vst [vmem:[#allocation162_spill] sm:$0xff] %v15968_v41  ;;  %6721 = vrot.lane.b32.xlu1 %v15983_v10, %s13981_s19  ;;  %v2889_v62 = vcombine.high %v1897_v32, %v21722_v8  ;;  %v16029_v20 = vrot.slane %v1897_v32, %v15005_v25  ;;  %v1898_v41 = vmul.f32 0.088388346, %v15591_v14  ;;  %v3960_v48 = vcombine.high %v15593_v63, %v21722_v8 }
 0x388   : > { %21815 = vst [vmem:[#allocation164_spill] sm:$0xff] %v15979_v51  ;;  %21816 = vst [vmem:[#allocation165_spill] sm:$0xff] %v15987_v35  ;;  %v2046_v51 = vcombine.high %v15104_v44, %v21722_v8  ;;  %v16035_v44 = vrot.slane %v3945_v28, %v15005_v25  ;;  %v2011_v38 = vcombine.low %v15955_v34, %v1994_v36  ;;  %v16063_v39 = vunpack.c.l.s4 %v13982_v26 }
 0x389   : > { %21821 = vst [vmem:[#allocation170_spill] sm:$0xff] %v16029_v20  ;;  %v16032_v19 = vrot.slane %v2889_v62, %v15005_v25  ;;  %v16047_v32 = vcombine.high %v15890_v57, %v21722_v8  ;;  %v2012_v62 = vcombine.high %v15955_v34, %v1994_v36  ;;  %v4011_v28 = vcombine.high %v15643_v50, %v21722_v8  ;;  %v17004_v57 = vld [vmem:[%s14484_s25 + $0x8] sm:$0xff] }
 0x38a   : > { %21823 = vst [vmem:[#allocation172_spill] sm:$0xff] %v16035_v44  ;;  %v2904_v14 = vcombine.high %v1898_v41, %v21722_v8  ;;  %v16054_v47 = vrot.slane %v1898_v41, %v15005_v25  ;;  %v16057_v35 = vrot.slane %v3960_v48, %v15005_v25  ;;  %v16066_v34 = vrot.slane %v2031_v1, %v15005_v25 }
 0x38b   : > { %21822 = vst [vmem:[#allocation171_spill] sm:$0xff] %v16032_v19  ;;  %21825 = vst [vmem:[#allocation174_spill] sm:$0xff] %v16047_v32  ;;  %v16071_v41 = vrot.slane %v2011_v38, %v15029_v5  ;;  %6981 = vrot.lane.b32.xlu1 %v16047_v32, %s13981_s19  ;;  %v16077_v48 = vcombine.high %v15113_v30, %v21722_v8  ;;  %v16087_v36 = vrot.slane %v2046_v51, %v15005_v25 }
 0x38c   : > { %21826 = vst [vmem:[#allocation175_spill] sm:$0xff] %v16054_v47  ;;  %21827 = vst [vmem:[#allocation176_spill] sm:$0xff] %v16057_v35  ;;  %v16080_v63 = vrot.slane %v2904_v14, %v15005_v25  ;;  %v4018_v30 = vrot.slane %v15643_v50, %v15005_v25  ;;  %v16102_v51 = vrot.slane %v2012_v62, %v15029_v5 }
 0x38d   : > { %21828 = vst [vmem:[#allocation177_spill] sm:$0xff] %v16071_v41  ;;  %6723 = vrot.lane.b32.xlu0 %v16071_v41, %s13981_s19  ;;  %v4025_v38 = vrot.slane %v4011_v28, %v15005_v25  ;;  %v4546_v1 = vrot.slane %v15645_v31, %v15005_v25  ;;  %v4026_v50 = vcombine.high %v15658_v4, %v21722_v8 }
 0x38e   : > { %21829 = vst [vmem:[#allocation178_spill] sm:$0xff] %v16080_v63  ;;  %21830 = vst [vmem:[#allocation179_spill] sm:$0xff] %v16102_v51  ;;  %v4033_v14 = vrot.slane %v15658_v4, %v15005_v25  ;;  %v4554_v26 = vcombine.high %v15660_v16, %v21722_v8  ;;  %v4561_v62 = vrot.slane %v15660_v16, %v15005_v25 }
 0x38f   : > { %v16119_v28 = vcombine.high %v15941_v2, %v21722_v8  ;;  %v4077_v63 = vcombine.high %v15671_v52, %v21722_v8  ;;  %v4553_v31 = vrot.slane %v4539_v15, %v15005_v25  ;;  %v4040_v4 = vrot.slane %v4026_v50, %v15005_v25 }
 0x390   : > { %v4041_v19 = vcombine.low %v4018_v30, %v4033_v14  ;;  %v4042_v35 = vcombine.high %v4018_v30, %v4033_v14  ;;  %v4568_v44 = vrot.slane %v4554_v26, %v15005_v25  ;;  %v4569_v47 = vcombine.low %v4546_v1, %v4561_v62 }
 0x391   : > { %21831 = vst [vmem:[#allocation180_spill] sm:$0xff] %v16119_v28  ;;  %6727 = vrot.lane.b32.xlu0 %v16102_v51, %s13981_s19  ;;  %v4570_v16 = vcombine.high %v4546_v1, %v4561_v62  ;;  %6985 = vrot.lane.b32.xlu1 %v16119_v28, %s13981_s19  ;;  %v4084_v20 = vrot.slane %v15671_v52, %v15005_v25 }
 0x392   : > { %v4049_v13 = vrot.slane %v4041_v19, %v15029_v5  ;;  %v4056_v0 = vrot.slane %v4042_v35, %v15029_v5  ;;  %v4057_v53 = vcombine.low %v4025_v38, %v4040_v4  ;;  %v4058_v15 = vcombine.high %v4025_v38, %v4040_v4 }
 0x393   : > { %v4577_v50 = vrot.slane %v4569_v47, %v15029_v5  ;;  %v4584_v30 = vrot.slane %v4570_v16, %v15029_v5  ;;  %v4585_v14 = vcombine.low %v4553_v31, %v4568_v44  ;;  %v4586_v26 = vcombine.high %v4553_v31, %v4568_v44 }
 0x394   : > { %v4065_v1 = vrot.slane %v4057_v53, %v15029_v5  ;;  %v4072_v62 = vrot.slane %v4058_v15, %v15029_v5  ;;  %v11179_v60 = vcombine.low %v4049_v13, %v4056_v0  ;;  %v12721_v28 = vcombine.high %v4049_v13, %v4056_v0 }
 0x395   : > { %v4593_v52 = vrot.slane %v4585_v14, %v15029_v5  ;;  %v4600_v19 = vrot.slane %v4586_v26, %v15029_v5  ;;  %v11579_v32 = vcombine.low %v4577_v50, %v4584_v30  ;;  %v12737_v35 = vcombine.high %v4577_v50, %v4584_v30 }
 0x396   : > { %v11186_v38 = vrot.slane %v11179_v60, %v15005_v25  ;;  %v11194_v47 = vrot.slane %v12721_v28, %v15005_v25  ;;  %v11195_v4 = vcombine.low %v4065_v1, %v4072_v62  ;;  %v12722_v16 = vcombine.high %v4065_v1, %v4072_v62 }
 0x397   : > { %v11586_v44 = vrot.slane %v11579_v32, %v15005_v25  ;;  %v11594_v53 = vrot.slane %v12737_v35, %v15005_v25  ;;  %v11595_v31 = vcombine.low %v4593_v52, %v4600_v19  ;;  %v12738_v15 = vcombine.high %v4593_v52, %v4600_v19 }
 0x398   : > { %v11202_v0 = vrot.slane %v11195_v4, %v15005_v25  ;;  %v11210_v13 = vrot.slane %v12722_v16, %v15005_v25  ;;  %v11211_v14 = vcombine.low %v11186_v38, %v11194_v47  ;;  %v4091_v26 = vrot.slane %v4077_v63, %v15005_v25 }
 0x399   : > { %v11602_v50 = vrot.slane %v11595_v31, %v15005_v25  ;;  %v11610_v60 = vrot.slane %v12738_v15, %v15005_v25  ;;  %v11611_v28 = vcombine.low %v11586_v44, %v11594_v53  ;;  %v4605_v30 = vcombine.high %v15673_v24, %v21722_v8 }
 0x39a   : > { %v16152_v32 = vrot.slane %v11211_v14, %v15029_v5  ;;  %v11219_v1 = vcombine.low %v11202_v0, %v11210_v13  ;;  %v4612_v62 = vrot.slane %v15673_v24, %v15005_v25  ;;  %v4092_v52 = vcombine.high %v15686_v37, %v21722_v8 }
 0x39b   : > { %v16159_v63 = vrot.slane %v11611_v28, %v15029_v5  ;;  %v11619_v19 = vcombine.low %v11602_v50, %v11610_v60  ;;  %v4619_v35 = vrot.slane %v4605_v30, %v15005_v25  ;;  %v4099_v38 = vrot.slane %v15686_v37, %v15005_v25 }
 0x39c   : > { %v16165_v47 = vrot.slane %v11219_v1, %v15029_v5  ;;  %v4106_v4 = vrot.slane %v4092_v52, %v15005_v25  ;;  %v4620_v24 = vcombine.high %v15688_v9, %v21722_v8  ;;  %v4627_v16 = vrot.slane %v15688_v9, %v15005_v25 }
 0x39d   : > { %v16173_v44 = vrot.slane %v11619_v19, %v15029_v5  ;;  %v4107_v53 = vcombine.low %v4084_v20, %v4099_v38  ;;  %v4108_v31 = vcombine.high %v4084_v20, %v4099_v38  ;;  %v21832_v37 = vcombine.low %v15087_v27, %v15108_v59 }
 0x39e   : > { %v11227_v0 = vcombine.low %v16152_v32, %v16165_v47  ;;  %v11228_v13 = vcombine.high %v16152_v32, %v16165_v47  ;;  %v4123_v14 = vcombine.low %v4091_v26, %v4106_v4  ;;  %v4124_v50 = vcombine.high %v4091_v26, %v4106_v4 }
 0x39f   : > { %v16179_v15 = vrot.slane %v21832_v37, %v15029_v5  ;;  %v11627_v9 = vcombine.low %v16159_v63, %v16173_v44  ;;  %v4115_v60 = vrot.slane %v4107_v53, %v15029_v5  ;;  %v4122_v28 = vrot.slane %v4108_v31, %v15029_v5 }
 0x3a0   : > { %v4131_v30 = vrot.slane %v4123_v14, %v15029_v5  ;;  %v4138_v1 = vrot.slane %v4124_v50, %v15029_v5  ;;  %v4634_v32 = vrot.slane %v4620_v24, %v15005_v25  ;;  %v4635_v26 = vcombine.low %v4612_v62, %v4627_v16 }
 0x3a1   : > { %21833 = vst [vmem:[#allocation181_spill] sm:$0xff] %v16179_v15  ;;  %6987 = vrot.lane.b32.xlu0 %v16179_v15, %s13981_s19  ;;  %v11229_v52 = vcombine.low %v4115_v60, %v4122_v28  ;;  %v12723_v19 = vcombine.high %v4115_v60, %v4122_v28  ;;  %v4636_v38 = vcombine.high %v4612_v62, %v4627_v16 }
 0x3a2   : > { %v16198_v47 = vcombine.high %v16071_v41, %v21722_v8  ;;  %v11245_v4 = vcombine.low %v4131_v30, %v4138_v1  ;;  %v12724_v53 = vcombine.high %v4131_v30, %v4138_v1  ;;  %v4643_v31 = vrot.slane %v4635_v26, %v15029_v5 }
 0x3a3   : > { %v4651_v37 = vcombine.low %v4619_v35, %v4634_v32  ;;  %v11236_v20 = vrot.slane %v11229_v52, %v15005_v25  ;;  %v11244_v14 = vrot.slane %v12723_v19, %v15005_v25  ;;  %v4650_v50 = vrot.slane %v4636_v38, %v15029_v5 }
 0x3a4   : > { %21834 = vst [vmem:[#allocation182_spill] sm:$0xff] %v16198_v47  ;;  %v4652_v24 = vcombine.high %v4619_v35, %v4634_v32  ;;  %6725 = vrot.lane.b32.xlu1 %v16198_v47, %s13981_s19  ;;  %v11252_v62 = vrot.slane %v11245_v4, %v15005_v25  ;;  %v11260_v16 = vrot.slane %v12724_v53, %v15005_v25 }
 0x3a5   : > { %v4659_v60 = vrot.slane %v4651_v37, %v15029_v5  ;;  %v21835_v28 = vcombine.high %v15087_v27, %v15108_v59  ;;  %v11261_v1 = vcombine.low %v11236_v20, %v11244_v14  ;;  %v11629_v35 = vcombine.low %v4643_v31, %v4650_v50 }
 0x3a6   : > { %v4666_v26 = vrot.slane %v4652_v24, %v15029_v5  ;;  %v12739_v32 = vcombine.high %v4643_v31, %v4650_v50  ;;  %v11269_v52 = vcombine.low %v11252_v62, %v11260_v16  ;;  %v4143_v19 = vcombine.high %v15727_v7, %v21722_v8 }
 0x3a7   : > { %v16213_v30 = vrot.slane %v21835_v28, %v15029_v5  ;;  %v4150_v38 = vrot.slane %v15727_v7, %v15005_v25  ;;  %v4671_v27 = vcombine.high %v15729_v22, %v21722_v8  ;;  %v11268_v59 = vrot.slane %v11261_v1, %v15029_v5 }
 0x3a8   : > { %v11636_v20 = vrot.slane %v11629_v35, %v15005_v25  ;;  %v11644_v4 = vrot.slane %v12739_v32, %v15005_v25  ;;  %v11645_v53 = vcombine.low %v4659_v60, %v4666_v26  ;;  %v11276_v31 = vrot.slane %v11269_v52, %v15029_v5 }
 0x3a9   : > { %21836 = vst [vmem:[#allocation183_spill] sm:$0xff] %v16213_v30  ;;  %6991 = vrot.lane.b32.xlu0 %v16213_v30, %s13981_s19  ;;  %v12740_v37 = vcombine.high %v4659_v60, %v4666_v26  ;;  %v4157_v14 = vrot.slane %v4143_v19, %v15005_v25  ;;  %v4678_v7 = vrot.slane %v15729_v22, %v15005_v25 }
 0x3aa   : > { %v11652_v50 = vrot.slane %v11645_v53, %v15005_v25  ;;  %v11661_v24 = vcombine.low %v11636_v20, %v11644_v4  ;;  %v4685_v62 = vrot.slane %v4671_v27, %v15005_v25  ;;  %v4158_v16 = vcombine.high %v15745_v40, %v21722_v8 }
 0x3ab   : > { %v11277_v28 = vcombine.low %v11268_v59, %v11276_v31  ;;  %v11278_v1 = vcombine.high %v11268_v59, %v11276_v31  ;;  %v11660_v35 = vrot.slane %v12740_v37, %v15005_v25  ;;  %v4165_v60 = vrot.slane %v15745_v40, %v15005_v25 }
 0x3ac   : > { %v11668_v26 = vrot.slane %v11661_v24, %v15029_v5  ;;  %v4172_v22 = vrot.slane %v4158_v16, %v15005_v25  ;;  %v4686_v32 = vcombine.high %v15747_v58, %v21722_v8  ;;  %v4693_v52 = vrot.slane %v15747_v58, %v15005_v25 }
 0x3ad   : > { %v13062_v19 = vpack.c.bf16 %v11277_v28, %v11227_v0  ;;  %v13102_v27 = vpack.c.bf16 %v11278_v1, %v11228_v13  ;;  %v11669_v20 = vcombine.low %v11652_v50, %v11660_v35  ;;  %v4173_v4 = vcombine.low %v4150_v38, %v4165_v60 }
 0x3ae   : > { %v4174_v59 = vcombine.high %v4150_v38, %v4165_v60  ;;  %v4189_v53 = vcombine.low %v4157_v14, %v4172_v22  ;;  %v4190_v31 = vcombine.high %v4157_v14, %v4172_v22  ;;  %v4700_v37 = vrot.slane %v4686_v32, %v15005_v25 }
 0x3af   : > { %13063 = vst [vmem:[%s16249_s9] sm:$0xff] %v13062_v19   ;;  %13176 = vst [vmem:[%s16249_s9 + $0x40] sm:$0xff] %v13102_v27   ;;  %v11676_v40 = vrot.slane %v11669_v20, %v15029_v5  ;;  %v4181_v24 = vrot.slane %v4173_v4, %v15029_v5  ;;  %v4701_v58 = vcombine.low %v4678_v7, %v4693_v52 }
 0x3b0   : > { %v4702_v0 = vcombine.high %v4678_v7, %v4693_v52  ;;  %v4188_v13 = vrot.slane %v4174_v59, %v15029_v5  ;;  %v4197_v38 = vrot.slane %v4189_v53, %v15029_v5  ;;  %v4204_v14 = vrot.slane %v4190_v31, %v15029_v5 }
 0x3b1   : > { %v4717_v50 = vcombine.low %v4685_v62, %v4700_v37  ;;  %v11677_v16 = vcombine.low %v11668_v26, %v11676_v40  ;;  %v11678_v28 = vcombine.high %v11668_v26, %v11676_v40  ;;  %v4709_v1 = vrot.slane %v4701_v58, %v15029_v5 }
 0x3b2   : > { %v4716_v35 = vrot.slane %v4702_v0, %v15029_v5  ;;  %v11279_v60 = vcombine.low %v4181_v24, %v4188_v13  ;;  %v12725_v22 = vcombine.high %v4181_v24, %v4188_v13  ;;  %v11295_v32 = vcombine.low %v4197_v38, %v4204_v14 }
 0x3b3   : > { %v12726_v19 = vcombine.high %v4197_v38, %v4204_v14  ;;  %v13082_v7 = vpack.c.bf16 %v11677_v16, %v11627_v9  ;;  %v21837_v52 = vcombine.high %v16159_v63, %v16173_v44  ;;  %v4718_v20 = vcombine.high %v4685_v62, %v4700_v37 }
 0x3b4   : > { %v4725_v26 = vrot.slane %v4717_v50, %v15029_v5  ;;  %v11286_v4 = vrot.slane %v11279_v60, %v15005_v25  ;;  %v11294_v59 = vrot.slane %v12725_v22, %v15005_v25  ;;  %v11302_v53 = vrot.slane %v11295_v32, %v15005_v25 }
 0x3b5   : > { %v13122_v27 = vpack.c.bf16 %v11678_v28, %v21837_v52  ;;  %v11310_v31 = vrot.slane %v12726_v19, %v15005_v25  ;;  %13172 = vst [vmem:[%s16249_s9 + $0x20] sm:$0xff] %v13082_v7   ;;  %v4732_v40 = vrot.slane %v4718_v20, %v15029_v5  ;;  %v11679_v9 = vcombine.low %v4709_v1, %v4716_v35 }
 0x3b6   : > { %v12741_v24 = vcombine.high %v4709_v1, %v4716_v35  ;;  %v16276_v63 = vcombine.high %v16102_v51, %v21722_v8  ;;  %v11311_v44 = vcombine.low %v11286_v4, %v11294_v59  ;;  %v4209_v37 = vcombine.high %v15758_v55, %v21722_v8  ;;  %v17001_v51 = vld [vmem:[%s14477_s27 + $0x8] sm:$0xff] }
 0x3b7   : > { %13180 = vst [vmem:[%s16249_s9 + $0x60] sm:$0xff] %v13122_v27   ;;  %v11319_v62 = vcombine.low %v11302_v53, %v11310_v31  ;;  %v4216_v58 = vrot.slane %v15758_v55, %v15005_v25  ;;  %v11686_v0 = vrot.slane %v11679_v9, %v15005_v25  ;;  %v11695_v38 = vcombine.low %v4725_v26, %v4732_v40 }
 0x3b8   : > { %21838 = vst [vmem:[#allocation184_spill] sm:$0xff] %v16276_v63  ;;  %v11694_v13 = vrot.slane %v12741_v24, %v15005_v25  ;;  %v12742_v14 = vcombine.high %v4725_v26, %v4732_v40  ;;  %6729 = vrot.lane.b32.xlu1 %v16276_v63, %s13981_s19  ;;  %v16287_v50 = vrot.slane %v11311_v44, %v15029_v5 }
 0x3b9   : > { %v16290_v16 = vrot.slane %v11319_v62, %v15029_v5  ;;  %v4223_v28 = vrot.slane %v4209_v37, %v15005_v25  ;;  %v4737_v55 = vcombine.high %v15760_v23, %v21722_v8  ;;  %v11702_v1 = vrot.slane %v11695_v38, %v15005_v25 }
 0x3ba   : > { %v11710_v35 = vrot.slane %v12742_v14, %v15005_v25  ;;  %v11711_v60 = vcombine.low %v11686_v0, %v11694_v13  ;;  %v4744_v22 = vrot.slane %v15760_v23, %v15005_v25  ;;  %v4224_v52 = vcombine.high %v15770_v6, %v21722_v8 }
 0x3bb   : > { %v11327_v32 = vcombine.low %v16287_v50, %v16290_v16  ;;  %v11328_v19 = vcombine.high %v16287_v50, %v16290_v16  ;;  %v4751_v7 = vrot.slane %v4737_v55, %v15005_v25  ;;  %v4231_v26 = vrot.slane %v15770_v6, %v15005_v25 }
 0x3bc   : > { %v16307_v27 = vrot.slane %v11711_v60, %v15029_v5  ;;  %v11719_v20 = vcombine.low %v11702_v1, %v11710_v35  ;;  %v4752_v23 = vcombine.high %v15772_v56, %v21722_v8  ;;  %v4238_v4 = vrot.slane %v4224_v52, %v15005_v25 }
 0x3bd   : > { %v4759_v59 = vrot.slane %v15772_v56, %v15005_v25  ;;  %v21839_v53 = vcombine.low %v15097_v21, %v15118_v54  ;;  %v16324_v40 = vcombine.high %v16179_v15, %v21722_v8  ;;  %v4239_v9 = vcombine.low %v4216_v58, %v4231_v26 }
 0x3be   : > { %v16327_v6 = vrot.slane %v11719_v20, %v15029_v5  ;;  %v4240_v24 = vcombine.high %v4216_v58, %v4231_v26  ;;  %v4766_v44 = vrot.slane %v4752_v23, %v15005_v25  ;;  %v4255_v62 = vcombine.low %v4223_v28, %v4238_v4 }
 0x3bf   : > { %v16320_v31 = vrot.slane %v21839_v53, %v15029_v5  ;;  %21841 = vst [vmem:[#allocation186_spill] sm:$0xff] %v16324_v40  ;;  %v4256_v37 = vcombine.high %v4223_v28, %v4238_v4  ;;  %v4767_v56 = vcombine.low %v4744_v22, %v4759_v59  ;;  %v4768_v0 = vcombine.high %v4744_v22, %v4759_v59 }
 0x3c0   : > { %v11727_v13 = vcombine.low %v16307_v27, %v16327_v6  ;;  %v11728_v38 = vcombine.high %v16307_v27, %v16327_v6  ;;  %v4247_v14 = vrot.slane %v4239_v9, %v15029_v5  ;;  %v4254_v55 = vrot.slane %v4240_v24, %v15029_v5  ;;  %6989 = vrot.lane.b32.xlu1 %v16324_v40, %s13981_s19 }
 0x3c1   : > { %21840 = vst [vmem:[#allocation185_spill] sm:$0xff] %v16320_v31  ;;  %6731 = vrot.lane.b32.xlu0 %v16320_v31, %s13981_s19  ;;  %v4263_v58 = vrot.slane %v4255_v62, %v15029_v5  ;;  %v4270_v28 = vrot.slane %v4256_v37, %v15029_v5  ;;  %v4775_v1 = vrot.slane %v4767_v56, %v15029_v5 }
 0x3c2   : > { %v4782_v35 = vrot.slane %v4768_v0, %v15029_v5  ;;  %v11329_v60 = vcombine.low %v4247_v14, %v4254_v55  ;;  %v12727_v22 = vcombine.high %v4247_v14, %v4254_v55  ;;  %v4783_v52 = vcombine.low %v4751_v7, %v4766_v44 }
 0x3c3   : > { %v4784_v20 = vcombine.high %v4751_v7, %v4766_v44  ;;  %v11345_v26 = vcombine.low %v4263_v58, %v4270_v28  ;;  %v12728_v23 = vcombine.high %v4263_v58, %v4270_v28  ;;  %v21842_v58 = vcombine.high %v15097_v21, %v15118_v54 }
 0x3c4   : > { %v11729_v4 = vcombine.low %v4775_v1, %v4782_v35  ;;  %v12743_v59 = vcombine.high %v4775_v1, %v4782_v35  ;;  %v11336_v53 = vrot.slane %v11329_v60, %v15005_v25  ;;  %v11344_v9 = vrot.slane %v12727_v22, %v15005_v25 }
 0x3c5   : > { %v4791_v24 = vrot.slane %v4783_v52, %v15029_v5  ;;  %v4798_v62 = vrot.slane %v4784_v20, %v15029_v5  ;;  %v11352_v37 = vrot.slane %v11345_v26, %v15005_v25  ;;  %v11360_v56 = vrot.slane %v12728_v23, %v15005_v25 }
 0x3c6   : > { %v11736_v0 = vrot.slane %v11729_v4, %v15005_v25  ;;  %v11744_v7 = vrot.slane %v12743_v59, %v15005_v25  ;;  %v11361_v44 = vcombine.low %v11336_v53, %v11344_v9  ;;  %v16356_v28 = vrot.slane %v21842_v58, %v15029_v5 }
 0x3c7   : > { %v11745_v14 = vcombine.low %v4791_v24, %v4798_v62  ;;  %v12744_v55 = vcombine.high %v4791_v24, %v4798_v62  ;;  %v11369_v1 = vcombine.low %v11352_v37, %v11360_v56  ;;  %v4275_v60 = vcombine.high %v15824_v3, %v21722_v8 }
 0x3c8   : > { %21843 = vst [vmem:[#allocation187_spill] sm:$0xff] %v16356_v28  ;;  %v11761_v35 = vcombine.low %v11736_v0, %v11744_v7  ;;  %v4282_v22 = vrot.slane %v15824_v3, %v15005_v25  ;;  %v11368_v52 = vrot.slane %v11361_v44, %v15029_v5  ;;  %6735 = vrot.lane.b32.xlu0 %v16356_v28, %s13981_s19 }
 0x3c9   : > { %v11752_v20 = vrot.slane %v11745_v14, %v15005_v25  ;;  %v11760_v26 = vrot.slane %v12744_v55, %v15005_v25  ;;  %v4803_v21 = vcombine.high %v15826_v45, %v21722_v8  ;;  %v11376_v54 = vrot.slane %v11369_v1, %v15029_v5 }
 0x3ca   : > { %v11768_v23 = vrot.slane %v11761_v35, %v15029_v5  ;;  %v4289_v4 = vrot.slane %v4275_v60, %v15005_v25  ;;  %v4810_v3 = vrot.slane %v15826_v45, %v15005_v25  ;;  %v4290_v9 = vcombine.high %v15838_v11, %v21722_v8 }
 0x3cb   : > { %v11769_v59 = vcombine.low %v11752_v20, %v11760_v26  ;;  %v4817_v53 = vrot.slane %v4803_v21, %v15005_v25  ;;  %v4297_v24 = vrot.slane %v15838_v11, %v15005_v25  ;;  %v11377_v62 = vcombine.low %v11368_v52, %v11376_v54 }
 0x3cc   : > { %v11378_v37 = vcombine.high %v11368_v52, %v11376_v54  ;;  %v4818_v56 = vcombine.high %v15840_v33, %v21722_v8  ;;  %v4825_v0 = vrot.slane %v15840_v33, %v15005_v25  ;;  %v4304_v7 = vrot.slane %v4290_v9, %v15005_v25 }
 0x3cd   : > { %v11776_v45 = vrot.slane %v11769_v59, %v15029_v5  ;;  %v4305_v44 = vcombine.low %v4282_v22, %v4297_v24  ;;  %v4306_v14 = vcombine.high %v4282_v22, %v4297_v24  ;;  %v13067_v11 = vpack.c.bf16 %v11377_v62, %v11327_v32 }
 0x3ce   : > { %v13107_v55 = vpack.c.bf16 %v11378_v37, %v11328_v19  ;;  %v4832_v58 = vrot.slane %v4818_v56, %v15005_v25  ;;  %v4833_v1 = vcombine.low %v4810_v3, %v4825_v0  ;;  %v4321_v22 = vcombine.low %v4289_v4, %v4304_v7 }
 0x3cf   : > { %v11777_v35 = vcombine.low %v11768_v23, %v11776_v45  ;;  %v11778_v60 = vcombine.high %v11768_v23, %v11776_v45  ;;  %v4313_v33 = vrot.slane %v4305_v44, %v15029_v5  ;;  %v4320_v52 = vrot.slane %v4306_v14, %v15029_v5  ;;  %13169 = vst [vmem:[%s16249_s9 + $0x8] sm:$0xff] %v13067_v11  }
 0x3d0   : > { %13177 = vst [vmem:[%s16249_s9 + $0x48] sm:$0xff] %v13107_v55   ;;  %v4322_v20 = vcombine.high %v4289_v4, %v4304_v7  ;;  %v4834_v32 = vcombine.high %v4810_v3, %v4825_v0  ;;  %v4841_v26 = vrot.slane %v4833_v1, %v15029_v5  ;;  %v4329_v54 = vrot.slane %v4321_v22, %v15029_v5 }
 0x3d1   : > { %v13087_v50 = vpack.c.bf16 %v11777_v35, %v11727_v13  ;;  %v13127_v16 = vpack.c.bf16 %v11778_v60, %v11728_v38  ;;  %v11379_v19 = vcombine.low %v4313_v33, %v4320_v52  ;;  %v12729_v21 = vcombine.high %v4313_v33, %v4320_v52 }
 0x3d2   : > { %v4336_v23 = vrot.slane %v4322_v20, %v15029_v5  ;;  %v4848_v59 = vrot.slane %v4834_v32, %v15029_v5  ;;  %v4849_v4 = vcombine.low %v4817_v53, %v4832_v58  ;;  %v4850_v13 = vcombine.high %v4817_v53, %v4832_v58 }
 0x3d3   : > { %13173 = vst [vmem:[%s16249_s9 + $0x28] sm:$0xff] %v13087_v50   ;;  %13181 = vst [vmem:[%s16249_s9 + $0x68] sm:$0xff] %v13127_v16   ;;  %v11386_v3 = vrot.slane %v11379_v19, %v15005_v25  ;;  %v11394_v9 = vrot.slane %v12729_v21, %v15005_v25  ;;  %v16412_v27 = vcombine.high %v16213_v30, %v21722_v8  ;;  %v21962_v30 = vld [vmem:[#allocation57_spill] sm:$0xff] }
 0x3d4   : > { %v11395_v6 = vcombine.low %v4329_v54, %v4336_v23  ;;  %v12730_v38 = vcombine.high %v4329_v54, %v4336_v23  ;;  %v4857_v24 = vrot.slane %v4849_v4, %v15029_v5  ;;  %v11779_v62 = vcombine.low %v4841_v26, %v4848_v59 }
 0x3d5   : > { %21844 = vst [vmem:[#allocation188_spill] sm:$0xff] %v16412_v27  ;;  %v11411_v37 = vcombine.low %v11386_v3, %v11394_v9  ;;  %v4864_v56 = vrot.slane %v4850_v13, %v15029_v5  ;;  %v12745_v0 = vcombine.high %v4841_v26, %v4848_v59  ;;  %6993 = vrot.lane.b32.xlu1 %v16412_v27, %s13981_s19 }
 0x3d6   : > { %v4341_v45 = vcombine.high %v15851_v43, %v21722_v8  ;;  %v11402_v53 = vrot.slane %v11395_v6, %v15005_v25  ;;  %v11410_v7 = vrot.slane %v12730_v38, %v15005_v25  ;;  %v11786_v44 = vrot.slane %v11779_v62, %v15005_v25 }
 0x3d7   : > { %v4348_v14 = vrot.slane %v15851_v43, %v15005_v25  ;;  %v16426_v11 = vrot.slane %v11411_v37, %v15029_v5  ;;  %v11794_v55 = vrot.slane %v12745_v0, %v15005_v25  ;;  %v11795_v58 = vcombine.low %v4857_v24, %v4864_v56 }
 0x3d8   : > { %v12746_v1 = vcombine.high %v4857_v24, %v4864_v56  ;;  %v11419_v35 = vcombine.low %v11402_v53, %v11410_v7  ;;  %v4355_v60 = vrot.slane %v4341_v45, %v15005_v25  ;;  %v4869_v33 = vcombine.high %v15853_v29, %v21722_v8 }
 0x3d9   : > { %v4876_v52 = vrot.slane %v15853_v29, %v15005_v25  ;;  %v11802_v22 = vrot.slane %v11795_v58, %v15005_v25  ;;  %v11811_v20 = vcombine.low %v11786_v44, %v11794_v55  ;;  %v4356_v32 = vcombine.high %v15860_v49, %v21722_v8 }
 0x3da   : > { %v11810_v43 = vrot.slane %v12746_v1, %v15005_v25  ;;  %v16439_v26 = vrot.slane %v11419_v35, %v15029_v5  ;;  %v4883_v50 = vrot.slane %v4869_v33, %v15005_v25  ;;  %v4363_v16 = vrot.slane %v15860_v49, %v15005_v25 }
 0x3db   : > { %v4884_v19 = vcombine.high %v15862_v12, %v21722_v8  ;;  %v16447_v29 = vrot.slane %v11811_v20, %v15029_v5  ;;  %v4370_v54 = vrot.slane %v4356_v32, %v15005_v25  ;;  %v4891_v23 = vrot.slane %v15862_v12, %v15005_v25 }
 0x3dc   : > { %v11819_v21 = vcombine.low %v11802_v22, %v11810_v43  ;;  %v11427_v59 = vcombine.low %v16426_v11, %v16439_v26  ;;  %v11428_v4 = vcombine.high %v16426_v11, %v16439_v26  ;;  %v4371_v3 = vcombine.low %v4348_v14, %v4363_v16 }
 0x3dd   : > { %v4372_v49 = vcombine.high %v4348_v14, %v4363_v16  ;;  %v4387_v13 = vcombine.low %v4355_v60, %v4370_v54  ;;  %v4388_v6 = vcombine.high %v4355_v60, %v4370_v54  ;;  %v4898_v38 = vrot.slane %v4884_v19, %v15005_v25 }
 0x3de   : > { %v16457_v9 = vrot.slane %v11819_v21, %v15029_v5  ;;  %v4379_v24 = vrot.slane %v4371_v3, %v15029_v5  ;;  %v4899_v12 = vcombine.low %v4876_v52, %v4891_v23  ;;  %v4900_v37 = vcombine.high %v4876_v52, %v4891_v23  ;;  %v21846_v3 = vld [vmem:[#allocation47_spill] sm:$0xff] }
 0x3df   : > { %v4386_v62 = vrot.slane %v4372_v49, %v15029_v5  ;;  %v4395_v45 = vrot.slane %v4387_v13, %v15029_v5  ;;  %v4402_v53 = vrot.slane %v4388_v6, %v15029_v5  ;;  %v4915_v35 = vcombine.low %v4883_v50, %v4898_v38 }
 0x3e0   : > { %v11827_v56 = vcombine.low %v16447_v29, %v16457_v9  ;;  %v11828_v0 = vcombine.high %v16447_v29, %v16457_v9  ;;  %v4907_v14 = vrot.slane %v4899_v12, %v15029_v5  ;;  %v4914_v55 = vrot.slane %v4900_v37, %v15029_v5 }
 0x3e1   : > { %v11429_v7 = vcombine.low %v4379_v24, %v4386_v62  ;;  %v12731_v44 = vcombine.high %v4379_v24, %v4386_v62  ;;  %v11445_v58 = vcombine.low %v4395_v45, %v4402_v53  ;;  %v12732_v1 = vcombine.high %v4395_v45, %v4402_v53 }
 0x3e2   : > { %v4916_v60 = vcombine.high %v4883_v50, %v4898_v38  ;;  %v11829_v22 = vcombine.low %v4907_v14, %v4914_v55  ;;  %v12747_v43 = vcombine.high %v4907_v14, %v4914_v55  ;;  %v4923_v16 = vrot.slane %v4915_v35, %v15029_v5  ;;  %v21845_v50 = vld [vmem:[#allocation45_spill] sm:$0xff] }
 0x3e3   : > { %v11436_v33 = vrot.slane %v11429_v7, %v15005_v25  ;;  %v11444_v52 = vrot.slane %v12731_v44, %v15005_v25  ;;  %v11452_v20 = vrot.slane %v11445_v58, %v15005_v25  ;;  %v11460_v32 = vrot.slane %v12732_v1, %v15005_v25  ;;  %v21852_v7 = vld [vmem:[#allocation155_spill] sm:$0xff] }
 0x3e4   : > { %v4930_v19 = vrot.slane %v4916_v60, %v15029_v5  ;;  %v11836_v54 = vrot.slane %v11829_v22, %v15005_v25  ;;  %v11844_v23 = vrot.slane %v12747_v43, %v15005_v25  ;;  %v21847_v49 = vcombine.low %v21845_v50, %v21846_v3 }
 0x3e5   : > { %v11461_v21 = vcombine.low %v11436_v33, %v11444_v52  ;;  %v11469_v6 = vcombine.low %v11452_v20, %v11460_v32  ;;  %v16486_v62 = vcombine.high %v16320_v31, %v21722_v8  ;;  %v21850_v45 = vcombine.high %v21845_v50, %v21846_v3  ;;  %v21853_v33 = vld [vmem:[#allocation156_spill] sm:$0xff]  ;;  %v21855_v50 = vld [vmem:[#allocation158_spill] sm:$0xff] }
 0x3e6   : > { %v16482_v13 = vrot.slane %v21847_v49, %v15029_v5  ;;  %v11845_v38 = vcombine.low %v4923_v16, %v4930_v19  ;;  %v12748_v24 = vcombine.high %v4923_v16, %v4930_v19  ;;  %v11861_v37 = vcombine.low %v11836_v54, %v11844_v23  ;;  %v21854_v16 = vld [vmem:[#allocation157_spill] sm:$0xff] }
 0x3e7   : > { %21849 = vst [vmem:[#allocation47_spill] sm:$0xff] %v16486_v62  ;;  %v11468_v12 = vrot.slane %v11461_v21, %v15029_v5  ;;  %v16495_v53 = vrot.slane %v21850_v45, %v15029_v5  ;;  %v4407_v44 = vcombine.high %v21852_v7, %v21722_v8  ;;  %v11476_v14 = vrot.slane %v11469_v6, %v15029_v5  ;;  %v16514_v21 = vpop.permute.xlu1 %6703 }
 0x3e8   : > { %21848 = vst [vmem:[#allocation45_spill] sm:$0xff] %v16482_v13  ;;  %6995 = vrot.lane.b32.xlu0 %v16482_v13, %s13981_s19  ;;  %v11852_v55 = vrot.slane %v11845_v38, %v15005_v25  ;;  %v11860_v58 = vrot.slane %v12748_v24, %v15005_v25  ;;  %6733 = vrot.lane.b32.xlu1 %v16486_v62, %s13981_s19 }
 0x3e9   : > { %21851 = vst [vmem:[#allocation189_spill] sm:$0xff] %v16495_v53  ;;  %v4414_v1 = vrot.slane %v21852_v7, %v15005_v25  ;;  %v11868_v35 = vrot.slane %v11861_v37, %v15029_v5  ;;  %v4421_v60 = vrot.slane %v4407_v44, %v15005_v25  ;;  %v4935_v52 = vcombine.high %v21853_v33, %v21722_v8 }
 0x3ea   : > { %v4942_v22 = vrot.slane %v21853_v33, %v15005_v25  ;;  %v11477_v43 = vcombine.low %v11468_v12, %v11476_v14  ;;  %v11478_v20 = vcombine.high %v11468_v12, %v11476_v14  ;;  %v11869_v32 = vcombine.low %v11852_v55, %v11860_v58 }
 0x3eb   : > { %v4422_v19 = vcombine.high %v21854_v16, %v21722_v8  ;;  %v4949_v54 = vrot.slane %v4935_v52, %v15005_v25  ;;  %v4429_v23 = vrot.slane %v21854_v16, %v15005_v25  ;;  %v4950_v3 = vcombine.high %v21855_v50, %v21722_v8  ;;  %v16539_v52 = vpop.permute.xlu0 %6955 }
 0x3ec   : > { %6999 = vrot.lane.b32.xlu0 %v16495_v53, %s13981_s19  ;;  %v4957_v49 = vrot.slane %v21855_v50, %v15005_v25  ;;  %v13072_v6 = vpack.c.bf16 %v11477_v43, %v11427_v59  ;;  %v13112_v38 = vpack.c.bf16 %v11478_v20, %v11428_v4  ;;  %v11876_v24 = vrot.slane %v11869_v32, %v15029_v5  ;;  %v16549_v20 = vpop.permute.xlu1 %6957 }
 0x3ed   : > { %v4436_v12 = vrot.slane %v4422_v19, %v15005_v25  ;;  %v4437_v37 = vcombine.low %v4414_v1, %v4429_v23  ;;  %v4438_v45 = vcombine.high %v4414_v1, %v4429_v23  ;;  %v4964_v7 = vrot.slane %v4950_v3, %v15005_v25 }
 0x3ee   : > { %v4965_v44 = vcombine.low %v4942_v22, %v4957_v49  ;;  %13170 = vst [vmem:[%s16249_s9 + $0x10] sm:$0xff] %v13072_v6   ;;  %13178 = vst [vmem:[%s16249_s9 + $0x50] sm:$0xff] %v13112_v38   ;;  %v11877_v14 = vcombine.low %v11868_v35, %v11876_v24  ;;  %v11878_v55 = vcombine.high %v11868_v35, %v11876_v24 }
 0x3ef   : > { %v4453_v58 = vcombine.low %v4421_v60, %v4436_v12  ;;  %v4454_v59 = vcombine.high %v4421_v60, %v4436_v12  ;;  %v4445_v11 = vrot.slane %v4437_v37, %v15029_v5  ;;  %v4452_v26 = vrot.slane %v4438_v45, %v15029_v5 }
 0x3f0   : > { %v4966_v4 = vcombine.high %v4942_v22, %v4957_v49  ;;  %v4973_v33 = vrot.slane %v4965_v44, %v15029_v5  ;;  %v13092_v1 = vpack.c.bf16 %v11877_v14, %v11827_v56  ;;  %v13132_v35 = vpack.c.bf16 %v11878_v55, %v11828_v0  ;;  %v16571_v44 = vpop.permute.xlu0 %6959 }
 0x3f1   : > { %v4461_v60 = vrot.slane %v4453_v58, %v15029_v5  ;;  %v4468_v43 = vrot.slane %v4454_v59, %v15029_v5  ;;  %v11479_v32 = vcombine.low %v4445_v11, %v4452_v26  ;;  %v12733_v22 = vcombine.high %v4445_v11, %v4452_v26  ;;  %v16574_v11 = vpop.permute.xlu1 %6961 }
 0x3f2   : > { %v4980_v16 = vrot.slane %v4966_v4, %v15029_v5  ;;  %v4981_v19 = vcombine.low %v4949_v54, %v4964_v7  ;;  %13174 = vst [vmem:[%s16249_s9 + $0x30] sm:$0xff] %v13092_v1   ;;  %13182 = vst [vmem:[%s16249_s9 + $0x70] sm:$0xff] %v13132_v35   ;;  %v4982_v56 = vcombine.high %v4949_v54, %v4964_v7 }
 0x3f3   : > { %v11495_v23 = vcombine.low %v4461_v60, %v4468_v43  ;;  %v12734_v50 = vcombine.high %v4461_v60, %v4468_v43  ;;  %v16556_v29 = vcombine.high %v16356_v28, %v21722_v8  ;;  %v11486_v9 = vrot.slane %v11479_v32, %v15005_v25  ;;  %v21959_v28 = vld [vmem:[#allocation63_spill] sm:$0xff] }
 0x3f4   : > { %v11494_v0 = vrot.slane %v12733_v22, %v15005_v25  ;;  %v4989_v3 = vrot.slane %v4981_v19, %v15029_v5  ;;  %v11879_v49 = vcombine.low %v4973_v33, %v4980_v16  ;;  %v4996_v24 = vrot.slane %v4982_v56, %v15029_v5 }
 0x3f5   : > { %21856 = vst [vmem:[#allocation155_spill] sm:$0xff] %v16556_v29  ;;  %v11502_v6 = vrot.slane %v11495_v23, %v15005_v25  ;;  %v11510_v38 = vrot.slane %v12734_v50, %v15005_v25  ;;  %v12749_v12 = vcombine.high %v4973_v33, %v4980_v16  ;;  %6737 = vrot.lane.b32.xlu1 %v16556_v29, %s13981_s19 }
 0x3f6   : > { %v11511_v54 = vcombine.low %v11486_v9, %v11494_v0  ;;  %v11886_v37 = vrot.slane %v11879_v49, %v15005_v25  ;;  %v4473_v45 = vcombine.high %v15943_v18, %v21722_v8  ;;  %v4480_v7 = vrot.slane %v15943_v18, %v15005_v25  ;;  %v16606_v49 = vpop.permute.xlu0 %6699 }
 0x3f7   : > { %v11519_v14 = vcombine.low %v11502_v6, %v11510_v38  ;;  %v11894_v55 = vrot.slane %v12749_v12, %v15005_v25  ;;  %v11895_v58 = vcombine.low %v4989_v3, %v4996_v24  ;;  %v12750_v59 = vcombine.high %v4989_v3, %v4996_v24  ;;  %v21857_v24 = vld [vmem:[#allocation48_spill] sm:$0xff] }
 0x3f8   : > { %v16577_v26 = vrot.slane %v11511_v54, %v15029_v5  ;;  %v4487_v4 = vrot.slane %v4473_v45, %v15005_v25  ;;  %v5001_v33 = vcombine.high %v15945_v46, %v21722_v8  ;;  %v5008_v18 = vrot.slane %v15945_v46, %v15005_v25  ;;  %v21858_v12 = vld [vmem:[#allocation52_spill] sm:$0xff] }
 0x3f9   : > { %v16585_v1 = vrot.slane %v11519_v14, %v15029_v5  ;;  %v11902_v35 = vrot.slane %v11895_v58, %v15005_v25  ;;  %v11910_v60 = vrot.slane %v12750_v59, %v15005_v25  ;;  %v11911_v43 = vcombine.low %v11886_v37, %v11894_v55 }
 0x3fa   : > { %v5015_v32 = vrot.slane %v5001_v33, %v15005_v25  ;;  %v4488_v22 = vcombine.high %v15952_v42, %v21722_v8  ;;  %v4495_v16 = vrot.slane %v15952_v42, %v15005_v25  ;;  %v5016_v19 = vcombine.high %v16061_v17, %v21722_v8 }
 0x3fb   : > { %v11527_v46 = vcombine.low %v16577_v26, %v16585_v1  ;;  %v11528_v23 = vcombine.high %v16577_v26, %v16585_v1  ;;  %v16601_v50 = vrot.slane %v11911_v43, %v15029_v5  ;;  %v11919_v56 = vcombine.low %v11902_v35, %v11910_v60 }
 0x3fc   : > { %v4502_v9 = vrot.slane %v4488_v22, %v15005_v25  ;;  %v4503_v0 = vcombine.low %v4480_v7, %v4495_v16  ;;  %v4504_v3 = vcombine.high %v4480_v7, %v4495_v16  ;;  %v5023_v42 = vrot.slane %v16061_v17, %v15005_v25  ;;  %v16622_v7 = vpop.permute.xlu1 %6701 }
 0x3fd   : > { %v16609_v6 = vrot.slane %v11919_v56, %v15029_v5  ;;  %v5030_v38 = vrot.slane %v5016_v19, %v15005_v25  ;;  %v21859_v54 = vcombine.low %v21857_v24, %v21858_v12  ;;  %v16620_v45 = vcombine.high %v16482_v13, %v21722_v8  ;;  %v21908_v13 = vld [vmem:[#allocation87_spill] sm:$0xff] }
 0x3fe   : > { %v4511_v17 = vrot.slane %v4503_v0, %v15029_v5  ;;  %v4518_v14 = vrot.slane %v4504_v3, %v15029_v5  ;;  %v4519_v55 = vcombine.low %v4487_v4, %v4502_v9  ;;  %v4520_v58 = vcombine.high %v4487_v4, %v4502_v9 }
 0x3ff   : > { %v16616_v37 = vrot.slane %v21859_v54, %v15029_v5  ;;  %21861 = vst [vmem:[#allocation157_spill] sm:$0xff] %v16620_v45  ;;  %v5031_v35 = vcombine.low %v5008_v18, %v5023_v42  ;;  %v5032_v60 = vcombine.high %v5008_v18, %v5023_v42  ;;  %6997 = vrot.lane.b32.xlu1 %v16620_v45, %s13981_s19 }
 0x400   : > { %v4527_v43 = vrot.slane %v4519_v55, %v15029_v5  ;;  %v4534_v22 = vrot.slane %v4520_v58, %v15029_v5  ;;  %v11529_v16 = vcombine.low %v4511_v17, %v4518_v14  ;;  %v12735_v19 = vcombine.high %v4511_v17, %v4518_v14  ;;  %v16640_v55 = vpop.permute.xlu0 %6963  ;;  %v16644_v59 = vpop.permute.xlu1 %6705 }
 0x401   : > { %21860 = vst [vmem:[#allocation156_spill] sm:$0xff] %v16616_v37  ;;  %7003 = vrot.lane.b32.xlu0 %v16616_v37, %s13981_s19  ;;  %v5039_v4 = vrot.slane %v5031_v35, %v15029_v5  ;;  %v5046_v56 = vrot.slane %v5032_v60, %v15029_v5  ;;  %v5047_v9 = vcombine.low %v5015_v32, %v5030_v38 }
 0x402   : > { %v5048_v0 = vcombine.high %v5015_v32, %v5030_v38  ;;  %v11536_v18 = vrot.slane %v11529_v16, %v15005_v25  ;;  %v11544_v3 = vrot.slane %v12735_v19, %v15005_v25  ;;  %v11545_v42 = vcombine.low %v4527_v43, %v4534_v22 }
 0x403   : > { %v12736_v54 = vcombine.high %v4527_v43, %v4534_v22  ;;  %v5055_v58 = vrot.slane %v5047_v9, %v15029_v5  ;;  %v11929_v14 = vcombine.low %v5039_v4, %v5046_v56  ;;  %v12751_v33 = vcombine.high %v5039_v4, %v5046_v56  ;;  %v21864_v4 = vld [vmem:[#allocation51_spill] sm:$0xff] }
 0x404   : > { %v5062_v17 = vrot.slane %v5048_v0, %v15029_v5  ;;  %v11552_v35 = vrot.slane %v11545_v42, %v15005_v25  ;;  %v11561_v38 = vcombine.low %v11536_v18, %v11544_v3  ;;  %v21862_v60 = vcombine.high %v21857_v24, %v21858_v12 }
 0x405   : > { %v11560_v32 = vrot.slane %v12736_v54, %v15005_v25  ;;  %v11936_v22 = vrot.slane %v11929_v14, %v15005_v25  ;;  %v11944_v16 = vrot.slane %v12751_v33, %v15005_v25  ;;  %v2112_v56 = vcombine.high %v21864_v4, %v21722_v8  ;;  %v16677_v14 = vpop.permute.xlu0 %6967 }
 0x406   : > { %v16652_v43 = vrot.slane %v21862_v60, %v15029_v5  ;;  %v11945_v19 = vcombine.low %v5055_v58, %v5062_v17  ;;  %v12752_v9 = vcombine.high %v5055_v58, %v5062_v17  ;;  %v16662_v18 = vcombine.high %v16495_v53, %v21722_v8  ;;  %v16684_v60 = vpop.permute.xlu1 %6965  ;;  %v21909_v53 = vld [vmem:[#allocation90_spill] sm:$0xff] }
 0x407   : > { %v11569_v0 = vcombine.low %v11552_v35, %v11560_v32  ;;  %v2077_v24 = vcombine.low %v16066_v34, %v16087_v36  ;;  %v11961_v3 = vcombine.low %v11936_v22, %v11944_v16  ;;  %v11568_v42 = vrot.slane %v11561_v38, %v15029_v5 }
 0x408   : > { %21863 = vst [vmem:[#allocation158_spill] sm:$0xff] %v16652_v43  ;;  %7007 = vrot.lane.b32.xlu0 %v16652_v43, %s13981_s19  ;;  %21865 = vst [vmem:[#allocation48_spill] sm:$0xff] %v16662_v18  ;;  %v11952_v12 = vrot.slane %v11945_v19, %v15005_v25  ;;  %v11960_v33 = vrot.slane %v12752_v9, %v15005_v25  ;;  %7001 = vrot.lane.b32.xlu1 %v16662_v18, %s13981_s19  ;;  %v5102_v35 = vunpack.c.0.s8 %v16063_v39  ;;  %v21900_v18 = vld [vmem:[#allocation79_spill] sm:$0xff] }
 0x409   : > { %v11576_v54 = vrot.slane %v11569_v0, %v15029_v5  ;;  %v16673_v58 = vrot.slane %v2077_v24, %v15029_v5  ;;  %v2078_v17 = vcombine.high %v16066_v34, %v16087_v36  ;;  %v16682_v32 = vrot.slane %v16077_v48, %v15005_v25  ;;  %v21869_v0 = vld [vmem:[#allocation42_spill] sm:$0xff] }
 0x40a   : > { %v11969_v38 = vcombine.low %v11952_v12, %v11960_v33  ;;  %v16687_v22 = vrot.slane %v2112_v56, %v15005_v25  ;;  %v16693_v39 = vcombine.high %v16616_v37, %v21722_v8  ;;  %v11968_v34 = vrot.slane %v11961_v3, %v15029_v5  ;;  %v16709_v56 = vld [vmem:[%s14484_s25] sm:$0xff] }
 0x40b   : > { %21866 = vst [vmem:[#allocation52_spill] sm:$0xff] %v16673_v58  ;;  %v11577_v16 = vcombine.low %v11568_v42, %v11576_v54  ;;  %v11578_v19 = vcombine.high %v11568_v42, %v11576_v54  ;;  %v16706_v4 = vrot.slane %v2078_v17, %v15029_v5  ;;  %v16712_v24 = vsub.s32 %v5102_v35, %v21869_v0  ;;  %v5067_v35 = vld [vmem:[%s14477_s27] sm:$0xff] }
 0x40c   : > { %6739 = vrot.lane.b32.xlu0 %v16673_v58, %s13981_s19  ;;  %21867 = vst [vmem:[#allocation51_spill] sm:$0xff] %v16693_v39  ;;  %v11976_v36 = vrot.slane %v11969_v38, %v15029_v5  ;;  %7005 = vrot.lane.b32.xlu1 %v16693_v39, %s13981_s19  ;;  %v16720_v26 = vcombine.high %v16652_v43, %v21722_v8  ;;  %v21878_v0 = vld [vmem:[#allocation61_spill] sm:$0xff]  ;;  %v21890_v39 = vld [vmem:[#allocation74_spill] sm:$0xff] }
 0x40d   : > { %v13077_v48 = vpack.c.bf16 %v11577_v16, %v11527_v46  ;;  %v13117_v9 = vpack.c.bf16 %v11578_v19, %v11528_v23  ;;  %21868 = vst [vmem:[#allocation190_spill] sm:$0xff] %v16706_v4  ;;  %v16726_v23 = vpop.permute.xlu0 %6971  ;;  %v21871_v3 = vcombine.low %v16601_v50, %v16609_v6  ;;  %v21872_v54 = vcombine.high %v16601_v50, %v16609_v6  ;;  %v16737_v16 = vpop.permute.xlu1 %6969  ;;  %v21873_v19 = vld [vmem:[#allocation49_spill] sm:$0xff] }
 0x40e   : > { %v11977_v12 = vcombine.low %v11968_v34, %v11976_v36  ;;  %v11978_v33 = vcombine.high %v11968_v34, %v11976_v36  ;;  %21870 = vst [vmem:[#allocation42_spill] sm:$0xff] %v16720_v26  ;;  %v5922_v38 = vrot.slane %v16709_v56, %v16712_v24  ;;  %v21874_v34 = vld [vmem:[#allocation55_spill] sm:$0xff] }
 0x40f   : > { %13171 = vst [vmem:[%s16249_s9 + $0x18] sm:$0xff] %v13077_v48   ;;  %13179 = vst [vmem:[%s16249_s9 + $0x58] sm:$0xff] %v13117_v9   ;;  %v21875_v36 = vcombine.low %v21873_v19, %v21874_v34  ;;  %v21877_v9 = vld [vmem:[#allocation58_spill] sm:$0xff] }
 0x410   : > { %6743 = vrot.lane.b32.xlu0 %v16706_v4, %s13981_s19  ;;  %v13097_v42 = vpack.c.bf16 %v11977_v12, %v21871_v3  ;;  %v13137_v17 = vpack.c.bf16 %v11978_v33, %v21872_v54  ;;  %7009 = vrot.lane.b32.xlu1 %v16720_v26, %s13981_s19  ;;  %v21879_v50 = vcombine.low %v21877_v9, %v21878_v0  ;;  %v21883_v3 = vld [vmem:[#allocation68_spill] sm:$0xff]  ;;  %v21884_v54 = vld [vmem:[#allocation70_spill] sm:$0xff] }
 0x411   : > { %v16745_v48 = vrot.slane %v21875_v36, %v15029_v5  ;;  %v21881_v12 = vcombine.high %v21877_v9, %v21878_v0  ;;  %v21885_v46 = vcombine.low %v21883_v3, %v21884_v54  ;;  %v21887_v36 = vcombine.high %v21883_v3, %v21884_v54  ;;  %v21897_v54 = vld [vmem:[#allocation84_spill] sm:$0xff]  ;;  %v16831_v29 = vpop.permute.xlu0 %6975 }
 0x412   : > { %v16751_v6 = vrot.slane %v21879_v50, %v15029_v5  ;;  %13175 = vst [vmem:[%s16249_s9 + $0x38] sm:$0xff] %v13097_v42   ;;  %13183 = vst [vmem:[%s16249_s9 + $0x78] sm:$0xff] %v13137_v17   ;;  %v21889_v50 = vld [vmem:[#allocation67_spill] sm:$0xff]  ;;  %v16789_v3 = vcombine.high %v16673_v58, %v21722_v8  ;;  %v5106_v42 = vrot.slane %v5067_v35, %v16712_v24  ;;  %v21896_v17 = vld [vmem:[#allocation78_spill] sm:$0xff] }
 0x413   : > { %21876 = vst [vmem:[#allocation49_spill] sm:$0xff] %v16745_v48  ;;  %v16757_v33 = vrot.slane %v21881_v12, %v15029_v5  ;;  %v16763_v1 = vrot.slane %v21885_v46, %v15029_v5  ;;  %v16769_v26 = vrot.slane %v21887_v36, %v15029_v5  ;;  %v21891_v9 = vcombine.low %v21889_v50, %v21890_v39 }
 0x414   : > { %21880 = vst [vmem:[#allocation55_spill] sm:$0xff] %v16751_v6  ;;  %v21893_v12 = vcombine.high %v21889_v50, %v21890_v39  ;;  %6747 = vrot.lane.b32.xlu0 %v16745_v48, %s13981_s19  ;;  %21895 = vst [vmem:[#allocation74_spill] sm:$0xff] %v16789_v3  ;;  %v21898_v36 = vcombine.low %v21896_v17, %v21897_v54  ;;  %v21901_v39 = vld [vmem:[#allocation80_spill] sm:$0xff]  ;;  %v5938_v45 = vrot.slane %v5922_v38, %v16712_v24 }
 0x415   : > { %21882 = vst [vmem:[#allocation58_spill] sm:$0xff] %v16757_v33  ;;  %21886 = vst [vmem:[#allocation61_spill] sm:$0xff] %v16763_v1  ;;  %v16777_v0 = vrot.slane %v21891_v9, %v15029_v5  ;;  %v21902_v50 = vcombine.low %v21900_v18, %v21901_v39  ;;  %v21904_v43 = vcombine.high %v21900_v18, %v21901_v39  ;;  %6741 = vrot.lane.b32.xlu1 %v16789_v3, %s13981_s19 }
 0x416   : > { %21888 = vst [vmem:[#allocation68_spill] sm:$0xff] %v16769_v26  ;;  %v16783_v46 = vrot.slane %v21893_v12, %v15029_v5  ;;  %v16796_v9 = vrot.slane %v21898_v36, %v15029_v5  ;;  %v21906_v37 = vcombine.high %v21896_v17, %v21897_v54  ;;  %v5930_v39 = vcombine.high %v5922_v38, %v5922_v38  ;;  %v21916_v54 = vld [vmem:[#allocation89_spill] sm:$0xff]  ;;  %v21922_v38 = vld [vmem:[#allocation98_spill] sm:$0xff] }
 0x417   : > { %21892 = vst [vmem:[#allocation70_spill] sm:$0xff] %v16777_v0  ;;  %v16802_v12 = vrot.slane %v21902_v50, %v15029_v5  ;;  %v16808_v58 = vrot.slane %v21904_v43, %v15029_v5  ;;  %v21912_v43 = vcombine.high %v21873_v19, %v21874_v34 }
 0x418   : > { %21894 = vst [vmem:[#allocation67_spill] sm:$0xff] %v16783_v46  ;;  %21899 = vst [vmem:[#allocation78_spill] sm:$0xff] %v16796_v9  ;;  %v16815_v36 = vrot.slane %v21906_v37, %v15029_v5  ;;  %v21910_v9 = vcombine.low %v21908_v13, %v21909_v53  ;;  %v21914_v37 = vcombine.high %v21908_v13, %v21909_v53  ;;  %v16857_v13 = vpop.permute.xlu1 %6973 }
 0x419   : > { %21903 = vst [vmem:[#allocation84_spill] sm:$0xff] %v16802_v12  ;;  %21905 = vst [vmem:[#allocation79_spill] sm:$0xff] %v16808_v58  ;;  %v16829_v18 = vrot.slane %v21912_v43, %v15029_v5  ;;  %v21923_v43 = vld [vmem:[#allocation101_spill] sm:$0xff] }
 0x41a   : > { %21907 = vst [vmem:[#allocation80_spill] sm:$0xff] %v16815_v36  ;;  %v16821_v50 = vrot.slane %v21910_v9, %v15029_v5  ;;  %v16837_v17 = vrot.slane %v21914_v37, %v15029_v5  ;;  %v21917_v9 = vld [vmem:[#allocation91_spill] sm:$0xff]  ;;  %v21924_v36 = vcombine.low %v21922_v38, %v21923_v43  ;;  %v21926_v53 = vcombine.high %v21922_v38, %v21923_v43  ;;  %v21928_v37 = vld [vmem:[#allocation100_spill] sm:$0xff]  ;;  %v21942_v12 = vld [vmem:[#allocation113_spill] sm:$0xff] }
 0x41b   : > { %21913 = vst [vmem:[#allocation90_spill] sm:$0xff] %v16829_v18  ;;  %v21920_v19 = vcombine.high %v21916_v54, %v21917_v9  ;;  %6751 = vrot.lane.b32.xlu0 %v16829_v18, %s13981_s19  ;;  %v21934_v38 = vld [vmem:[#allocation56_spill] sm:$0xff] }
 0x41c   : > { %21911 = vst [vmem:[#allocation87_spill] sm:$0xff] %v16821_v50  ;;  %21915 = vst [vmem:[#allocation191_spill] sm:$0xff] %v16837_v17  ;;  %v21918_v50 = vcombine.low %v21916_v54, %v21917_v9  ;;  %v16855_v62 = vrot.slane %v21924_v36, %v15029_v5  ;;  %v21929_v17 = vld [vmem:[#allocation102_spill] sm:$0xff]  ;;  %v16875_v36 = vcombine.high %v16706_v4, %v21722_v8 }
 0x41d   : > { %v16849_v34 = vrot.slane %v21920_v19, %v15029_v5  ;;  %v21930_v54 = vcombine.low %v21928_v37, %v21929_v17  ;;  %v5122_v19 = vrot.slane %v5106_v42, %v16712_v24 }
 0x41e   : > { %v16843_v3 = vrot.slane %v21918_v50, %v15029_v5  ;;  %21925 = vst [vmem:[#allocation98_spill] sm:$0xff] %v16855_v62  ;;  %v16863_v50 = vrot.slane %v21926_v53, %v15029_v5  ;;  %21932 = vst [vmem:[#allocation102_spill] sm:$0xff] %v16875_v36  ;;  %v21933_v62 = vld [vmem:[#allocation50_spill] sm:$0xff]  ;;  %6745 = vrot.lane.b32.xlu1 %v16875_v36, %s13981_s19 }
 0x41f   : > { %21921 = vst [vmem:[#allocation91_spill] sm:$0xff] %v16849_v34  ;;  %v16869_v9 = vrot.slane %v21930_v54, %v15029_v5  ;;  %v21935_v43 = vcombine.low %v21933_v62, %v21934_v38  ;;  %v5114_v34 = vcombine.high %v5106_v42, %v5106_v42  ;;  %v21937_v54 = vcombine.high %v21928_v37, %v21929_v17  ;;  %v21941_v42 = vld [vmem:[#allocation107_spill] sm:$0xff] }
 0x420   : > { %21919 = vst [vmem:[#allocation89_spill] sm:$0xff] %v16843_v3  ;;  %21927 = vst [vmem:[#allocation101_spill] sm:$0xff] %v16863_v50  ;;  %v5960_v50 = vcombine.high %v5938_v45, %v5938_v45  ;;  %v5099_v3 = vcombine.high %v5067_v35, %v5067_v35  ;;  %v21939_v4 = vcombine.high %v21933_v62, %v21934_v38 }
 0x421   : > { %21931 = vst [vmem:[#allocation100_spill] sm:$0xff] %v16869_v9  ;;  %v16882_v53 = vrot.slane %v21935_v43, %v15029_v5  ;;  %v16888_v9 = vrot.slane %v21937_v54, %v15029_v5  ;;  %v5952_v43 = vrot.slane %v5930_v39, %v16712_v24  ;;  %v5915_v35 = vcombine.high %v16709_v56, %v16709_v56  ;;  %v21945_v54 = vld [vmem:[#allocation109_spill] sm:$0xff] }
 0x422   : > { %v16896_v58 = vrot.slane %v21939_v4, %v15029_v5  ;;  %v21943_v17 = vcombine.low %v21941_v42, %v21942_v12  ;;  %v16921_v56 = vcombine.high %v16745_v48, %v21722_v8  ;;  %v16927_v39 = vcombine.high %v16829_v18, %v21722_v8  ;;  %v16942_v18 = vpop.permute.xlu1 %6977 }
 0x423   : > { %21936 = vst [vmem:[#allocation50_spill] sm:$0xff] %v16882_v53  ;;  %21938 = vst [vmem:[#allocation56_spill] sm:$0xff] %v16888_v9  ;;  %v21946_v9 = vld [vmem:[#allocation111_spill] sm:$0xff]  ;;  %7011 = vrot.lane.b32.xlu0 %v16882_v53, %s13981_s19  ;;  %v5144_v38 = vcombine.high %v5122_v19, %v5122_v19  ;;  %v5962_v40 = vcombine.high %v5952_v43, %v5952_v43 }
 0x424   : > { %21940 = vst [vmem:[#allocation192_spill] sm:$0xff] %v16896_v58  ;;  %v16905_v37 = vrot.slane %v21943_v17, %v15029_v5  ;;  %v21947_v36 = vcombine.low %v21945_v54, %v21946_v9  ;;  %v21949_v62 = vcombine.high %v21945_v54, %v21946_v9  ;;  %21951 = vst [vmem:[#allocation194_spill] sm:$0xff] %v16921_v56  ;;  %v16933_v9 = vpop.permute.xlu0 %6707  ;;  %v21953_v54 = vld [vmem:[#allocation43_spill] sm:$0xff]  ;;  %6749 = vrot.lane.b32.xlu1 %v16921_v56, %s13981_s19 }
 0x425   : > { %21952 = vst [vmem:[#allocation195_spill] sm:$0xff] %v16927_v39  ;;  %v16931_v17 = vrot.slane %v5915_v35, %v16712_v24  ;;  %v7214_v56 = vrot.slane %v5122_v19, %v21953_v54  ;;  %v7994_v63 = vrot.slane %v5962_v40, %v21953_v54 }
 0x426   : > { %21944 = vst [vmem:[#allocation193_spill] sm:$0xff] %v16905_v37  ;;  %v16911_v31 = vrot.slane %v21947_v36, %v15029_v5  ;;  %v16917_v4 = vrot.slane %v21949_v62, %v15029_v5  ;;  %v5113_v36 = vrot.slane %v5099_v3, %v16712_v24  ;;  %v7982_v62 = vrot.slane %v5938_v45, %v21953_v54 }
 0x427   : > { %v7990_v37 = vrot.slane %v5960_v50, %v21953_v54  ;;  %v21954_v3 = vcombine.low %v16682_v32, %v16687_v22  ;;  %v7986_v45 = vrot.slane %v5952_v43, %v21953_v54  ;;  %v21956_v50 = vcombine.high %v16682_v32, %v16687_v22  ;;  %7015 = vrot.lane.b32.xlu0 %v16896_v58, %s13981_s19 }
 0x428   : > { %21948 = vst [vmem:[#allocation109_spill] sm:$0xff] %v16911_v31  ;;  %21950 = vst [vmem:[#allocation111_spill] sm:$0xff] %v16917_v4  ;;  %v16939_v4 = vcombine.high %v16882_v53, %v21722_v8  ;;  %v5136_v31 = vrot.slane %v5114_v34, %v16712_v24  ;;  %v16961_v34 = vcombine.high %v16896_v58, %v21722_v8  ;;  %6753 = vrot.lane.b32.xlu1 %v16927_v39, %s13981_s19  ;;  %v16994_v39 = vpop.permute.xlu1 %6709 }
 0x429   : > { %v16950_v35 = vrot.slane %v21954_v3, %v15029_v5  ;;  %v16957_v53 = vrot.slane %v21956_v50, %v15029_v5  ;;  %v8619_v48 = vmul.f32 %v7982_v62, %v16606_v49  ;;  %v21958_v3 = vld [vmem:[#allocation60_spill] sm:$0xff]  ;;  %v7222_v32 = vrot.slane %v5144_v38, %v21953_v54 }
 0x42a   : > { %21957 = vst [vmem:[#allocation196_spill] sm:$0xff] %v16961_v34  ;;  %v21960_v15 = vcombine.low %v21958_v3, %v21959_v28  ;;  %v7218_v22 = vrot.slane %v5136_v31, %v21953_v54  ;;  %v5129_v50 = vrot.slane %v5113_v36, %v16712_v24  ;;  %v5945_v19 = vrot.slane %v16931_v17, %v16712_v24 }
 0x42b   : > { %21955 = vst [vmem:[#allocation43_spill] sm:$0xff] %v16950_v35  ;;  %v9003_v49 = vmul.f32 %v7982_v62, %v16539_v52  ;;  %v8621_v43 = vmul.f32 %v7990_v37, %v16514_v21  ;;  %v7851_v46 = vmul.f32 %v7214_v56, %v21962_v30  ;;  %v9005_v38 = vmul.f32 %v7990_v37, %v16571_v44  ;;  %v16989_v52 = vpop.permute.xlu0 %6711  ;;  %v21964_v21 = vld [vmem:[#allocation44_spill] sm:$0xff]  ;;  %v21965_v30 = vld [vmem:[#allocation46_spill] sm:$0xff] }
 0x42c   : > { %v16969_v27 = vrot.slane %v21960_v15, %v15029_v5  ;;  %v5146_v15 = vcombine.high %v5136_v31, %v5136_v31  ;;  %v9004_v58 = vmul.f32 %v7986_v45, %v16549_v20  ;;  %v16987_v12 = vcombine.high %v16950_v35, %v21722_v8  ;;  %6755 = vrot.lane.b32.xlu0 %v16950_v35, %s13981_s19  ;;  %v21966_v20 = vld [vmem:[#allocation53_spill] sm:$0xff]  ;;  %v21967_v37 = vld [vmem:[#allocation54_spill] sm:$0xff] }
 0x42d   : > { %v5961_v42 = vcombine.high %v5945_v19, %v5945_v19  ;;  %v8875_v62 = vmul.f32 %v7214_v56, %v21964_v21  ;;  %v7853_v31 = vmul.f32 %v7222_v32, %v21965_v30  ;;  %v8747_v0 = vadd.f32 %v8619_v48, %v7851_v46  ;;  %7013 = vrot.lane.b32.xlu1 %v16939_v4, %s13981_s19 }
 0x42e   : > { %21961 = vst [vmem:[#allocation60_spill] sm:$0xff] %v16969_v27  ;;  %21963 = vst [vmem:[#allocation63_spill] sm:$0xff] %v16987_v12  ;;  %v8877_v44 = vmul.f32 %v7222_v32, %v21966_v20  ;;  %v8876_v47 = vmul.f32 %v7218_v22, %v21967_v37  ;;  %v5145_v41 = vcombine.high %v5129_v50, %v5129_v50  ;;  %v21968_v20 = vld [vmem:[#allocation72_spill] sm:$0xff] }
 0x42f   : > { %v5115_v56 = vcombine.high %v5113_v36, %v5113_v36  ;;  %v9131_v21 = vadd.f32 %v9003_v49, %v8875_v62  ;;  %v8749_v30 = vadd.f32 %v8621_v43, %v7853_v31  ;;  %v7226_v48 = vrot.slane %v5146_v15, %v21953_v54 }
 0x430   : > { %v5931_v40 = vcombine.high %v16931_v17, %v16931_v17  ;;  %v9133_v46 = vadd.f32 %v9005_v38, %v8877_v44  ;;  %v9132_v32 = vadd.f32 %v9004_v58, %v8876_v47  ;;  %v7852_v37 = vmul.f32 %v7218_v22, %v21968_v20  ;;  %6759 = vrot.lane.b32.xlu0 %v16957_v53, %s13981_s19 }
 0x431   : > { %v17013_v35 = vrot.slane %v5961_v42, %v21953_v54  ;;  %v9259_v2 = vcombine.low %v8747_v0, %v8749_v30  ;;  %v9006_v36 = vmul.f32 %v7994_v63, %v16574_v11  ;;  %v5155_v49 = vrot.slane %v17001_v51, %v16712_v24  ;;  %v17030_v11 = vpop.permute.xlu0 %6715  ;;  %v21969_v42 = vld [vmem:[#allocation64_spill] sm:$0xff]  ;;  %7017 = vrot.lane.b32.xlu1 %v16961_v34, %s13981_s19 }
 0x432   : > { %v5971_v43 = vrot.slane %v17004_v57, %v16712_v24  ;;  %v17023_v17 = vrot.slane %v5945_v19, %v21953_v54  ;;  %v17026_v47 = vrot.slane %v5145_v41, %v21953_v54  ;;  %v8622_v58 = vmul.f32 %v7994_v63, %v16644_v59  ;;  %v17038_v19 = vpop.permute.xlu1 %6713 }
 0x433   : > { %v5143_v0 = vrot.slane %v5115_v56, %v16712_v24  ;;  %v8878_v22 = vmul.f32 %v7226_v48, %v21969_v42  ;;  %v17034_v15 = vrot.slane %v5129_v50, %v21953_v54  ;;  %v8620_v38 = vmul.f32 %v7986_v45, %v16622_v7  ;;  %v21972_v50 = vld [vmem:[#allocation81_spill] sm:$0xff] }
 0x434   : > { %v5959_v62 = vrot.slane %v5931_v40, %v16712_v24  ;;  %v10219_v31 = vcombine.low %v9131_v21, %v9133_v46  ;;  %v21970_v41 = vcombine.high %v21958_v3, %v21959_v28  ;;  %v9009_v59 = vmul.f32 %v17013_v35, %v16677_v14  ;;  %7019 = vrot.lane.b32.xlu0 %v16969_v27, %s13981_s19  ;;  %v21973_v28 = vld [vmem:[#allocation77_spill] sm:$0xff] }
 0x435   : > { %v7854_v44 = vmul.f32 %v7226_v48, %v21972_v50  ;;  %v9134_v7 = vadd.f32 %v9006_v36, %v8878_v22  ;;  %v5171_v45 = vrot.slane %v5155_v49, %v16712_v24  ;;  %v5987_v56 = vrot.slane %v5971_v43, %v16712_v24  ;;  %v21974_v48 = vld [vmem:[#allocation71_spill] sm:$0xff]  ;;  %6757 = vrot.lane.b32.xlu1 %v16987_v12, %s13981_s19 }
 0x436   : > { %v17046_v63 = vrot.slane %v21970_v41, %v15029_v5  ;;  %v5963_v21 = vcombine.high %v5959_v62, %v5959_v62  ;;  %v9007_v30 = vmul.f32 %v17023_v17, %v16640_v55  ;;  %v8881_v3 = vmul.f32 %v17026_v47, %v21973_v28  ;;  %v17069_v28 = vpop.permute.xlu0 %6719 }
 0x437   : > { %v8750_v40 = vadd.f32 %v8622_v58, %v7854_v44  ;;  %v5147_v46 = vcombine.high %v5143_v0, %v5143_v0  ;;  %v17060_v14 = vrot.slane %v9259_v2, %v15005_v25  ;;  %v8879_v20 = vmul.f32 %v17034_v15, %v21974_v48 }
 0x438   : > { %21971 = vst [vmem:[#allocation57_spill] sm:$0xff] %v17046_v63  ;;  %v8748_v36 = vadd.f32 %v8620_v38, %v7852_v37  ;;  %v6009_v42 = vcombine.high %v5987_v56, %v5987_v56  ;;  %v9137_v22 = vadd.f32 %v9009_v59, %v8881_v3  ;;  %v17067_v41 = vrot.slane %v5963_v21, %v21953_v54  ;;  %v17078_v38 = vpop.permute.xlu1 %6717 }
 0x439   : > { %v5163_v55 = vcombine.high %v5155_v49, %v5155_v49  ;;  %v5979_v50 = vcombine.high %v5971_v43, %v5971_v43  ;;  %v10227_v58 = vcombine.low %v9132_v32, %v9134_v7  ;;  %v17073_v2 = vcombine.high %v16957_v53, %v21722_v8  ;;  %7023 = vrot.lane.b32.xlu0 %v17046_v63, %s13981_s19 }
 0x43a   : > { %v17076_v44 = vrot.slane %v5987_v56, %v21953_v54  ;;  %v5193_v37 = vcombine.high %v5171_v45, %v5171_v45  ;;  %v9135_v48 = vadd.f32 %v9007_v30, %v8879_v20  ;;  %v9267_v59 = vcombine.low %v8748_v36, %v8750_v40  ;;  %v21977_v36 = vld [vmem:[#allocation104_spill] sm:$0xff] }
 0x43b   : > { %21975 = vst [vmem:[#allocation44_spill] sm:$0xff] %v17073_v2  ;;  %v17083_v49 = vrot.slane %v5959_v62, %v21953_v54  ;;  %v17086_v32 = vrot.slane %v5147_v46, %v21953_v54  ;;  %v17089_v43 = vrot.slane %v10219_v31, %v15005_v25  ;;  %v7246_v7 = vrot.slane %v5171_v45, %v21953_v54 }
 0x43c   : > { %v17093_v56 = vrot.slane %v5143_v0, %v21953_v54  ;;  %v17096_v21 = vrot.slane %v6009_v42, %v21953_v54  ;;  %6761 = vrot.lane.b32.xlu1 %v17073_v2, %s13981_s19  ;;  %v10235_v30 = vcombine.low %v9135_v48, %v9137_v22  ;;  %v9010_v62 = vmul.f32 %v17067_v41, %v16737_v16 }
 0x43d   : > { %v5185_v3 = vrot.slane %v5163_v55, %v16712_v24  ;;  %v6001_v31 = vrot.slane %v5979_v50, %v16712_v24  ;;  %v17105_v40 = vrot.slane %v10227_v58, %v15005_v25  ;;  %v17109_v0 = vcombine.high %v16969_v27, %v21722_v8  ;;  %6763 = vrot.lane.b32.xlu0 %v16751_v6, %s13981_s19  ;;  %v17125_v55 = vpop.permute.xlu0 %6979  ;;  %v21978_v50 = vld [vmem:[#allocation93_spill] sm:$0xff] }
 0x43e   : > { %v9011_v45 = vmul.f32 %v17076_v44, %v16726_v23  ;;  %v17114_v46 = vrot.slane %v5193_v37, %v21953_v54  ;;  %v17117_v20 = vrot.slane %v9267_v59, %v15005_v25  ;;  %v9008_v16 = vmul.f32 %v17083_v49, %v16684_v60  ;;  %v17136_v59 = vpop.permute.xlu1 %6721  ;;  %v21981_v27 = vld [vmem:[#allocation97_spill] sm:$0xff] }
 0x43f   : > { %21976 = vst [vmem:[#allocation46_spill] sm:$0xff] %v17109_v0  ;;  %v8882_v42 = vmul.f32 %v17086_v32, %v21977_v36  ;;  %v6011_v22 = vcombine.high %v6001_v31, %v6001_v31  ;;  %v8883_v23 = vmul.f32 %v7246_v7, %v21978_v50  ;;  %v17130_v58 = vcombine.high %v17046_v63, %v21722_v8  ;;  %v21980_v36 = vld [vmem:[#allocation94_spill] sm:$0xff] }
 0x440   : > { %v9013_v37 = vmul.f32 %v17096_v21, %v16831_v29  ;;  %v8625_v48 = vmul.f32 %v17013_v35, %v16989_v52  ;;  %v17139_v60 = vrot.slane %v10235_v30, %v15005_v25  ;;  %7021 = vrot.lane.b32.xlu1 %v17109_v0, %s13981_s19  ;;  %v8880_v50 = vmul.f32 %v17093_v56, %v21980_v36  ;;  %v21982_v52 = vld [vmem:[#allocation117_spill] sm:$0xff]  ;;  %v21983_v0 = vld [vmem:[#allocation62_spill] sm:$0xff] }
 0x441   : > { %21979 = vst [vmem:[#allocation53_spill] sm:$0xff] %v17130_v58  ;;  %v9138_v2 = vadd.f32 %v9010_v62, %v8882_v42  ;;  %v5195_v63 = vcombine.high %v5185_v3, %v5185_v3  ;;  %v17145_v12 = vadd.f32 %v9011_v45, %v8883_v23  ;;  %v8885_v29 = vmul.f32 %v17114_v46, %v21981_v27  ;;  %v21984_v36 = vld [vmem:[#allocation66_spill] sm:$0xff] }
 0x442   : > { %v8623_v35 = vmul.f32 %v17023_v17, %v16933_v9  ;;  %v7857_v30 = vmul.f32 %v17026_v47, %v21982_v52  ;;  %v9136_v34 = vadd.f32 %v9008_v16, %v8880_v50  ;;  %6767 = vrot.lane.b32.xlu0 %v16757_v33, %s13981_s19  ;;  %v21985_v62 = vcombine.low %v21983_v0, %v21984_v36  ;;  %v21988_v17 = vld [vmem:[#allocation115_spill] sm:$0xff] }
 0x443   : > { %v17163_v45 = vcombine.high %v16751_v6, %v21722_v8  ;;  %v8026_v27 = vrot.slane %v6011_v22, %v21953_v54  ;;  %v17166_v9 = vadd.f32 %v9013_v37, %v8885_v29  ;;  %v7855_v47 = vmul.f32 %v17034_v15, %v21988_v17  ;;  %v6984_v37 = vpop.permute.xlu0 %6983 }
 0x444   : > { %v17159_v42 = vrot.slane %v21985_v62, %v15029_v5  ;;  %v8018_v16 = vrot.slane %v6001_v31, %v21953_v54  ;;  %v8753_v23 = vadd.f32 %v8625_v48, %v7857_v30  ;;  %7025 = vrot.lane.b32.xlu1 %v17130_v58, %s13981_s19  ;;  %v10243_v50 = vcombine.low %v9136_v34, %v9138_v2  ;;  %v21993_v30 = vld [vmem:[#allocation132_spill] sm:$0xff] }
 0x445   : > { %21987 = vst [vmem:[#allocation72_spill] sm:$0xff] %v17163_v45  ;;  %v7258_v52 = vrot.slane %v5195_v63, %v21953_v54  ;;  %v5148_v62 = vcombine.high %v17001_v51, %v17001_v51  ;;  %v5964_v22 = vcombine.high %v17004_v57, %v17004_v57  ;;  %v8751_v29 = vadd.f32 %v8623_v35, %v7855_v47  ;;  %v17189_v63 = vpop.permute.xlu1 %6981 }
 0x446   : > { %21986 = vst [vmem:[#allocation54_spill] sm:$0xff] %v17159_v42  ;;  %v7250_v6 = vrot.slane %v5185_v3, %v21953_v54  ;;  %v21989_v15 = vcombine.high %v21983_v0, %v21984_v36  ;;  %v17187_v34 = vcombine.high %v16757_v33, %v21722_v8  ;;  %7027 = vrot.lane.b32.xlu0 %v17159_v42, %s13981_s19 }
 0x447   : > { %v9014_v57 = vmul.f32 %v8026_v27, %v16942_v18  ;;  %v8627_v51 = vmul.f32 %v17076_v44, %v17030_v11  ;;  %v5162_v2 = vrot.slane %v5148_v62, %v16712_v24  ;;  %v5978_v3 = vrot.slane %v5964_v22, %v16712_v24  ;;  %v21994_v44 = vld [vmem:[#allocation121_spill] sm:$0xff]  ;;  %v21995_v22 = vld [vmem:[#allocation112_spill] sm:$0xff] }
 0x448   : > { %v17183_v31 = vrot.slane %v21989_v15, %v15029_v5  ;;  %21991 = vst [vmem:[#allocation81_spill] sm:$0xff] %v17187_v34  ;;  %v9012_v48 = vmul.f32 %v8018_v16, %v16857_v13  ;;  %v17203_v35 = vcombine.high %v17159_v42, %v21722_v8  ;;  %v7859_v36 = vmul.f32 %v7246_v7, %v21993_v30  ;;  %v21996_v30 = vld [vmem:[#allocation133_spill] sm:$0xff] }
 0x449   : > { %v17207_v18 = vrot.slane %v10243_v50, %v15005_v25  ;;  %6765 = vrot.lane.b32.xlu1 %v17163_v45, %s13981_s19  ;;  %v9275_v11 = vcombine.low %v8751_v29, %v8753_v23  ;;  %v8886_v17 = vmul.f32 %v7258_v52, %v21994_v44  ;;  %v5178_v47 = vrot.slane %v5162_v2, %v16712_v24  ;;  %v6986_v0 = vpop.permute.xlu1 %6985 }
 0x44a   : > { %21990 = vst [vmem:[#allocation64_spill] sm:$0xff] %v17183_v31  ;;  %21992 = vst [vmem:[#allocation77_spill] sm:$0xff] %v17203_v35  ;;  %v8624_v13 = vmul.f32 %v17083_v49, %v16994_v39  ;;  %v8629_v62 = vmul.f32 %v17096_v21, %v17069_v28  ;;  %v8626_v7 = vmul.f32 %v17067_v41, %v17038_v19  ;;  %7031 = vrot.lane.b32.xlu0 %v17183_v31, %s13981_s19  ;;  %v6724_v39 = vpop.permute.xlu0 %6723  ;;  %v21997_v49 = vld [vmem:[#allocation142_spill] sm:$0xff] }
 0x44b   : > { %v5994_v50 = vrot.slane %v5978_v3, %v16712_v24  ;;  %v8884_v15 = vmul.f32 %v7250_v6, %v21995_v22  ;;  %v9142_v23 = vadd.f32 %v9014_v57, %v8886_v17  ;;  %v17223_v29 = vadd.f32 %v8627_v51, %v7859_v36  ;;  %v22000_v17 = vld [vmem:[#allocation65_spill] sm:$0xff] }
 0x44c   : > { %v7856_v44 = vmul.f32 %v17093_v56, %v21996_v30  ;;  %v7861_v28 = vmul.f32 %v17114_v46, %v15789_v61  ;;  %v7858_v19 = vmul.f32 %v17086_v32, %v21997_v49  ;;  %v5194_v41 = vcombine.high %v5178_v47, %v5178_v47 }
 0x44d   : > { %v6010_v21 = vcombine.high %v5994_v50, %v5994_v50  ;;  %v10259_v22 = vcombine.low %v17139_v60, %v17207_v18  ;;  %v9140_v42 = vadd.f32 %v9012_v48, %v8884_v15  ;;  %6769 = vrot.lane.b32.xlu1 %v17187_v34, %s13981_s19  ;;  %v17236_v57 = vrot.slane %v9275_v11, %v15005_v25  ;;  %v21999_v48 = vld [vmem:[#allocation59_spill] sm:$0xff]  ;;  %v22020_v18 = vld [vmem:[#allocation113_spill] sm:$0xff] }
 0x44e   : > { %v17240_v56 = vcombine.high %v17183_v31, %v21722_v8  ;;  %v8752_v61 = vadd.f32 %v8624_v13, %v7856_v44  ;;  %v17242_v46 = vadd.f32 %v8629_v62, %v7861_v28  ;;  %v8754_v32 = vadd.f32 %v8626_v7, %v7858_v19  ;;  %7035 = vrot.lane.b32.xlu0 %v16763_v1, %s13981_s19  ;;  %v22004_v44 = vld [vmem:[#allocation152_spill] sm:$0xff]  ;;  %v22019_v60 = vld [vmem:[#allocation107_spill] sm:$0xff] }
 0x44f   : > { %v8038_v51 = vrot.slane %v6010_v21, %v21953_v54  ;;  %v10277_v36 = vcombine.low %v9140_v42, %v9142_v23  ;;  %v22001_v15 = vcombine.low %v21999_v48, %v22000_v17  ;;  %v8628_v30 = vmul.f32 %v8018_v16, %v17078_v38 }
 0x450   : > { %21998 = vst [vmem:[#allocation71_spill] sm:$0xff] %v17240_v56  ;;  %v8630_v49 = vmul.f32 %v8026_v27, %v17136_v59  ;;  %v17257_v13 = vcombine.high %v16763_v1, %v21722_v8  ;;  %v8030_v62 = vrot.slane %v5994_v50, %v21953_v54  ;;  %v7270_v42 = vrot.slane %v5194_v41, %v21953_v54  ;;  %v6728_v59 = vpop.permute.xlu0 %6727  ;;  %v6726_v41 = vpop.permute.xlu1 %6725 }
 0x451   : > { %v17251_v11 = vrot.slane %v22001_v15, %v15029_v5  ;;  %v5164_v7 = vcombine.high %v5162_v2, %v5162_v2  ;;  %7029 = vrot.lane.b32.xlu1 %v17203_v35, %s13981_s19  ;;  %v7262_v23 = vrot.slane %v5178_v47, %v21953_v54  ;;  %v7860_v28 = vmul.f32 %v7250_v6, %v22004_v44  ;;  %v22007_v44 = vld [vmem:[#allocation179_spill] sm:$0xff] }
 0x452   : > { %22003 = vst [vmem:[#allocation93_spill] sm:$0xff] %v17257_v13  ;;  %v7862_v38 = vmul.f32 %v7258_v52, %v15983_v10  ;;  %v5980_v16 = vcombine.high %v5978_v3, %v5978_v3  ;;  %v9309_v27 = vcombine.low %v17223_v29, %v17242_v46  ;;  %v9283_v19 = vcombine.low %v8752_v61, %v8754_v32  ;;  %v22005_v3 = vld [vmem:[#allocation160_spill] sm:$0xff] }
 0x453   : > { %22002 = vst [vmem:[#allocation104_spill] sm:$0xff] %v17251_v11  ;;  %v9017_v21 = vmul.f32 %v8038_v51, %v6984_v37  ;;  %v5192_v50 = vrot.slane %v5164_v7, %v16712_v24  ;;  %v17270_v2 = vrot.slane %v10277_v36, %v15005_v25  ;;  %7039 = vrot.lane.b32.xlu0 %v16769_v26, %s13981_s19  ;;  %v22006_v37 = vld [vmem:[#allocation149_spill] sm:$0xff] }
 0x454   : > { %v8756_v47 = vadd.f32 %v8628_v30, %v7860_v28  ;;  %v8758_v6 = vadd.f32 %v8630_v49, %v7862_v38  ;;  %v6008_v10 = vrot.slane %v5980_v16, %v16712_v24  ;;  %v9015_v52 = vmul.f32 %v8030_v62, %v17125_v55 }
 0x455   : > { %v8889_v15 = vmul.f32 %v7270_v42, %v22005_v3  ;;  %v8633_v29 = vmul.f32 %v8038_v51, %v6728_v59  ;;  %v5196_v61 = vcombine.high %v5192_v50, %v5192_v50  ;;  %7033 = vrot.lane.b32.xlu1 %v17240_v56, %s13981_s19  ;;  %v8887_v46 = vmul.f32 %v7262_v23, %v22006_v37  ;;  %v6730_v3 = vpop.permute.xlu1 %6729 }
 0x456   : > { %v7266_v32 = vrot.slane %v5192_v50, %v21953_v54  ;;  %v8034_v36 = vrot.slane %v6008_v10, %v21953_v54  ;;  %v6012_v7 = vcombine.high %v6008_v10, %v6008_v10  ;;  %v8631_v49 = vmul.f32 %v8030_v62, %v6724_v39 }
 0x457   : > { %v9145_v30 = vadd.f32 %v9017_v21, %v8889_v15  ;;  %v7865_v28 = vmul.f32 %v7270_v42, %v22007_v44  ;;  %v7274_v55 = vrot.slane %v5196_v61, %v21953_v54  ;;  %v9290_v38 = vrot.slane %v9283_v19, %v15005_v25  ;;  %6771 = vrot.lane.b32.xlu0 %v17251_v11, %s13981_s19  ;;  %v22010_v42 = vld [vmem:[#allocation177_spill] sm:$0xff]  ;;  %v22011_v19 = vld [vmem:[#allocation174_spill] sm:$0xff]  ;;  %v22012_v61 = vld [vmem:[#allocation180_spill] sm:$0xff] }
 0x458   : > { %v22008_v51 = vcombine.high %v21999_v48, %v22000_v17  ;;  %v9016_v59 = vmul.f32 %v8034_v36, %v17189_v63  ;;  %v8042_v21 = vrot.slane %v6012_v7, %v21953_v54  ;;  %v9143_v39 = vadd.f32 %v9015_v52, %v8887_v46  ;;  %v17307_v46 = vpop.permute.xlu0 %6987  ;;  %v22015_v44 = vld [vmem:[#allocation184_spill] sm:$0xff] }
 0x459   : > { %v9317_v62 = vcombine.low %v8756_v47, %v8758_v6  ;;  %v7863_v50 = vmul.f32 %v7262_v23, %v22010_v42  ;;  %v8761_v10 = vadd.f32 %v8633_v29, %v7865_v28  ;;  %7037 = vrot.lane.b32.xlu1 %v17257_v13, %s13981_s19  ;;  %v8888_v15 = vmul.f32 %v7266_v32, %v22011_v19  ;;  %v22014_v6 = vld [vmem:[#allocation182_spill] sm:$0xff] }
 0x45a   : > { %v17291_v16 = vrot.slane %v22008_v51, %v15029_v5  ;;  %v8890_v37 = vmul.f32 %v7274_v55, %v22012_v61  ;;  %v9018_v48 = vmul.f32 %v8042_v21, %v6986_v0  ;;  %v8632_v17 = vmul.f32 %v8034_v36, %v6726_v41 }
 0x45b   : > { %v17302_v63 = vcombine.high %v16769_v26, %v21722_v8  ;;  %v10285_v7 = vcombine.low %v9143_v39, %v9145_v30  ;;  %v8759_v47 = vadd.f32 %v8631_v49, %v7863_v50  ;;  %v7864_v23 = vmul.f32 %v7266_v32, %v22014_v6  ;;  %v22165_v26 = vld [vmem:[#allocation194_spill] sm:$0xff] }
 0x45c   : > { %22009 = vst [vmem:[#allocation94_spill] sm:$0xff] %v17291_v16  ;;  %6775 = vrot.lane.b32.xlu0 %v17291_v16, %s13981_s19  ;;  %v9144_v52 = vadd.f32 %v9016_v59, %v8888_v15  ;;  %v9146_v29 = vadd.f32 %v9018_v48, %v8890_v37  ;;  %v7866_v28 = vmul.f32 %v7274_v55, %v22015_v44  ;;  %v17321_v55 = vld [vmem:[%s14477_s27 + $0x10] sm:$0xff]  ;;  %v17355_v61 = vpop.permute.xlu0 %6991 }
 0x45d   : > { %22013 = vst [vmem:[#allocation97_spill] sm:$0xff] %v17302_v63  ;;  %v8634_v0 = vmul.f32 %v8042_v21, %v6730_v3  ;;  %v10251_v41 = vcombine.low %v17089_v43, %v17105_v40  ;;  %v22016_v36 = vcombine.low %v17145_v12, %v17166_v9  ;;  %v9299_v32 = vcombine.low %v17236_v57, %v9290_v38  ;;  %v22017_v38 = vld [vmem:[#allocation70_spill] sm:$0xff] }
 0x45e   : > { %v9324_v49 = vrot.slane %v9317_v62, %v15005_v25  ;;  %7041 = vrot.lane.b32.xlu1 %v17302_v63, %s13981_s19  ;;  %v9325_v51 = vcombine.low %v8759_v47, %v8761_v10  ;;  %v10293_v59 = vcombine.low %v9144_v52, %v9146_v29  ;;  %v8760_v21 = vadd.f32 %v8632_v17, %v7864_v23  ;;  %v22023_v23 = vld [vmem:[#allocation67_spill] sm:$0xff]  ;;  %v22148_v63 = vld [vmem:[#allocation74_spill] sm:$0xff] }
 0x45f   : > { %v10276_v30 = vrot.slane %v22016_v36, %v15005_v25  ;;  %v8762_v39 = vadd.f32 %v8634_v0, %v7866_v28  ;;  %v9291_v43 = vcombine.low %v17060_v14, %v17117_v20  ;;  %v10266_v12 = vrot.slane %v10259_v22, %v15029_v5  ;;  %v17340_v20 = vld [vmem:[%s14484_s25 + $0x10] sm:$0xff]  ;;  %v22025_v0 = vld [vmem:[#allocation69_spill] sm:$0xff] }
 0x460   : > { %v9316_v9 = vrot.slane %v9309_v27, %v15005_v25  ;;  %v10292_v57 = vrot.slane %v10285_v7, %v15005_v25  ;;  %6779 = vrot.lane.b32.xlu0 %v22017_v38, %s13981_s19  ;;  %v17336_v62 = vcombine.high %v17251_v11, %v21722_v8  ;;  %v10300_v14 = vrot.slane %v10293_v59, %v15005_v25 }
 0x461   : > { %v10301_v40 = vcombine.low %v10276_v30, %v17270_v2  ;;  %v9333_v42 = vcombine.low %v8760_v21, %v8762_v39  ;;  %v22021_v22 = vcombine.high %v22019_v60, %v22020_v18  ;;  %v10258_v27 = vrot.slane %v10251_v41, %v15029_v5  ;;  %v22026_v41 = vld [vmem:[#allocation75_spill] sm:$0xff]  ;;  %v17387_v18 = vpop.permute.xlu0 %6731 }
 0x462   : > { %22018 = vst [vmem:[#allocation117_spill] sm:$0xff] %v17336_v62  ;;  %v9306_v50 = vrot.slane %v9299_v32, %v15029_v5  ;;  %v5204_v10 = vrot.slane %v17321_v55, %v16712_v24  ;;  %v9341_v3 = vcombine.low %v9316_v9, %v9324_v49  ;;  %6773 = vrot.lane.b32.xlu1 %v17336_v62, %s13981_s19 }
 0x463   : > { %v17346_v2 = vrot.slane %v22021_v22, %v15029_v5  ;;  %v9332_v19 = vrot.slane %v9325_v51, %v15005_v25  ;;  %v10309_v15 = vcombine.low %v10292_v57, %v10300_v14  ;;  %v9340_v37 = vrot.slane %v9333_v42, %v15005_v25  ;;  %v22030_v22 = vld [vmem:[#allocation119_spill] sm:$0xff] }
 0x464   : > { %v9298_v48 = vrot.slane %v9291_v43, %v15029_v5  ;;  %v10267_v17 = vcombine.low %v10258_v27, %v10266_v12  ;;  %v10268_v7 = vcombine.high %v10258_v27, %v10266_v12  ;;  %v6020_v47 = vrot.slane %v17340_v20, %v16712_v24  ;;  %6783 = vrot.lane.b32.xlu0 %v22023_v23, %s13981_s19  ;;  %v22031_v27 = vld [vmem:[#allocation120_spill] sm:$0xff] }
 0x465   : > { %22022 = vst [vmem:[#allocation62_spill] sm:$0xff] %v17346_v2  ;;  %v10308_v6 = vrot.slane %v10301_v40, %v15029_v5  ;;  %v17366_v52 = vcombine.high %v17291_v16, %v21722_v8  ;;  %v10316_v29 = vrot.slane %v10309_v15, %v15029_v5  ;;  %v9349_v44 = vcombine.low %v9332_v19, %v9340_v37  ;;  %v22158_v16 = vld [vmem:[#allocation51_spill] sm:$0xff] }
 0x466   : > { %v9307_v28 = vcombine.low %v9298_v48, %v9306_v50  ;;  %v22027_v36 = vcombine.low %v22025_v0, %v22026_v41  ;;  %v5212_v32 = vcombine.high %v5204_v10, %v5204_v10  ;;  %v6028_v49 = vcombine.high %v6020_v47, %v6020_v47 }
 0x467   : > { %22024 = vst [vmem:[#allocation66_spill] sm:$0xff] %v17366_v52  ;;  %v9348_v51 = vrot.slane %v9341_v3, %v15029_v5  ;;  %6777 = vrot.lane.b32.xlu1 %v17366_v52, %s13981_s19  ;;  %v10317_v59 = vcombine.low %v10308_v6, %v10316_v29  ;;  %v10318_v21 = vcombine.high %v10308_v6, %v10316_v29 }
 0x468   : > { %v17373_v30 = vrot.slane %v22027_v36, %v15029_v5  ;;  %v9356_v39 = vrot.slane %v9349_v44, %v15029_v5  ;;  %v9308_v43 = vcombine.high %v9298_v48, %v9306_v50  ;;  %v17381_v12 = vcombine.high %v22017_v38, %v21722_v8  ;;  %v6990_v48 = vpop.permute.xlu1 %6989  ;;  %v22038_v44 = vld [vmem:[#allocation118_spill] sm:$0xff]  ;;  %v22039_v36 = vld [vmem:[#allocation124_spill] sm:$0xff] }
 0x469   : > { %v5220_v40 = vrot.slane %v5204_v10, %v16712_v24  ;;  %v6036_v9 = vrot.slane %v6020_v47, %v16712_v24  ;;  %v12982_v57 = vpack.c.bf16 %v10317_v59, %v10267_v17  ;;  %v13022_v14 = vpack.c.bf16 %v10318_v21, %v10268_v7  ;;  %v22044_v21 = vld [vmem:[#allocation127_spill] sm:$0xff] }
 0x46a   : > { %22028 = vst [vmem:[#allocation115_spill] sm:$0xff] %v17373_v30  ;;  %22029 = vst [vmem:[#allocation132_spill] sm:$0xff] %v17381_v12  ;;  %7043 = vrot.lane.b32.xlu0 %v17373_v30, %s13981_s19  ;;  %v9357_v42 = vcombine.low %v9348_v51, %v9356_v39  ;;  %v9358_v60 = vcombine.high %v9348_v51, %v9356_v39  ;;  %v22032_v50 = vcombine.low %v22030_v22, %v22031_v27 }
 0x46b   : > { %v22034_v10 = vcombine.high %v22030_v22, %v22031_v27  ;;  %v5234_v15 = vrot.slane %v5212_v32, %v16712_v24  ;;  %v6050_v37 = vrot.slane %v6028_v49, %v16712_v24  ;;  %12983 = vst [vmem:[%s17404_s8] sm:$0xff] %v12982_v57   ;;  %13161 = vst [vmem:[%s17404_s8 + $0x40] sm:$0xff] %v13022_v14   ;;  %6781 = vrot.lane.b32.xlu1 %v17381_v12, %s13981_s19  ;;  %v22049_v57 = vld [vmem:[#allocation134_spill] sm:$0xff] }
 0x46c   : > { %v17393_v3 = vrot.slane %v22032_v50, %v15029_v5  ;;  %v22036_v17 = vcombine.high %v22025_v0, %v22026_v41  ;;  %v6058_v47 = vcombine.high %v6036_v9, %v6036_v9  ;;  %v12902_v6 = vpack.c.bf16 %v9357_v42, %v9307_v28  ;;  %v22045_v0 = vld [vmem:[#allocation130_spill] sm:$0xff] }
 0x46d   : > { %v17399_v19 = vrot.slane %v22034_v10, %v15029_v5  ;;  %v12942_v29 = vpack.c.bf16 %v9358_v60, %v9308_v43  ;;  %v22040_v32 = vcombine.low %v22038_v44, %v22039_v36  ;;  %v22042_v51 = vcombine.high %v22038_v44, %v22039_v36  ;;  %v22048_v43 = vld [vmem:[#allocation128_spill] sm:$0xff] }
 0x46e   : > { %22033 = vst [vmem:[#allocation121_spill] sm:$0xff] %v17393_v3  ;;  %v17414_v7 = vrot.slane %v22036_v17, %v15029_v5  ;;  %v22046_v41 = vcombine.low %v22044_v21, %v22045_v0  ;;  %v6060_v28 = vcombine.high %v6050_v37, %v6050_v37  ;;  %v22050_v14 = vcombine.low %v22048_v43, %v22049_v57  ;;  %v17590_v3 = vld [vmem:[%s14477_s27 + $0x18] sm:$0xff] }
 0x46f   : > { %22035 = vst [vmem:[#allocation112_spill] sm:$0xff] %v17399_v19  ;;  %v17420_v49 = vrot.slane %v22040_v32, %v15029_v5  ;;  %v17426_v59 = vrot.slane %v22042_v51, %v15029_v5  ;;  %v22052_v60 = vcombine.high %v22044_v21, %v22045_v0  ;;  %v17450_v27 = vcombine.high %v22023_v23, %v21722_v8  ;;  %v22057_v51 = vld [vmem:[#allocation137_spill] sm:$0xff]  ;;  %v22058_v21 = vld [vmem:[#allocation140_spill] sm:$0xff] }
 0x470   : > { %22037 = vst [vmem:[#allocation133_spill] sm:$0xff] %v17414_v7  ;;  %v17432_v39 = vrot.slane %v22046_v41, %v15029_v5  ;;  %v17438_v42 = vrot.slane %v22050_v14, %v15029_v5  ;;  %7047 = vrot.lane.b32.xlu0 %v17414_v7, %s13981_s19  ;;  %v5242_v50 = vcombine.high %v5220_v40, %v5220_v40  ;;  %12903 = vst [vmem:[%s17453_s28] sm:$0xff] %v12902_v6   ;;  %v22097_v19 = vld [vmem:[#allocation181_spill] sm:$0xff] }
 0x471   : > { %22041 = vst [vmem:[#allocation142_spill] sm:$0xff] %v17420_v49  ;;  %22043 = vst [vmem:[#allocation59_spill] sm:$0xff] %v17426_v59  ;;  %v17444_v22 = vrot.slane %v22052_v60, %v15029_v5  ;;  %v22055_v10 = vcombine.high %v22048_v43, %v22049_v57  ;;  %v5244_v44 = vcombine.high %v5234_v15, %v5234_v15  ;;  %6785 = vrot.lane.b32.xlu1 %v17450_v27, %s13981_s19  ;;  %v22063_v43 = vld [vmem:[#allocation73_spill] sm:$0xff]  ;;  %v6736_v60 = vpop.permute.xlu0 %6735 }
 0x472   : > { %22047 = vst [vmem:[#allocation65_spill] sm:$0xff] %v17432_v39  ;;  %22051 = vst [vmem:[#allocation152_spill] sm:$0xff] %v17438_v42  ;;  %v5197_v36 = vcombine.high %v17321_v55, %v17321_v55  ;;  %v6013_v32 = vcombine.high %v17340_v20, %v17340_v20  ;;  %v22059_v0 = vcombine.low %v22057_v51, %v22058_v21  ;;  %v22064_v20 = vld [vmem:[#allocation76_spill] sm:$0xff] }
 0x473   : > { %22053 = vst [vmem:[#allocation160_spill] sm:$0xff] %v17444_v22  ;;  %22054 = vst [vmem:[#allocation149_spill] sm:$0xff] %v17450_v27  ;;  %v17461_v17 = vrot.slane %v22055_v10, %v15029_v5  ;;  %v22061_v6 = vcombine.high %v22057_v51, %v22058_v21  ;;  %v8054_v55 = vrot.slane %v6058_v47, %v21953_v54  ;;  %v22067_v10 = vld [vmem:[#allocation139_spill] sm:$0xff]  ;;  %v6994_v22 = vpop.permute.xlu1 %6993 }
 0x474   : > { %13146 = vst [vmem:[%s17453_s28 + $0x40] sm:$0xff] %v12942_v29   ;;  %v17471_v41 = vrot.slane %v22059_v0, %v15029_v5  ;;  %v22065_v57 = vcombine.low %v22063_v43, %v22064_v20  ;;  %v22068_v0 = vld [vmem:[#allocation141_spill] sm:$0xff]  ;;  %v22073_v47 = vld [vmem:[#allocation147_spill] sm:$0xff]  ;;  %v17562_v39 = vrot.slane %v5234_v15, %v21953_v54  ;;  %v22094_v15 = vld [vmem:[#allocation188_spill] sm:$0xff] }
 0x475   : > { %22056 = vst [vmem:[#allocation179_spill] sm:$0xff] %v17461_v17  ;;  %v17477_v29 = vrot.slane %v22061_v6, %v15029_v5  ;;  %v22071_v51 = vcombine.high %v22067_v10, %v22068_v0  ;;  %v22074_v6 = vld [vmem:[#allocation148_spill] sm:$0xff] }
 0x476   : > { %22060 = vst [vmem:[#allocation177_spill] sm:$0xff] %v17471_v41  ;;  %v17486_v14 = vrot.slane %v22065_v57, %v15029_v5  ;;  %v22069_v41 = vcombine.low %v22067_v10, %v22068_v0  ;;  %v17507_v57 = vrot.slane %v6060_v28, %v21953_v54  ;;  %v8046_v10 = vrot.slane %v6036_v9, %v21953_v54  ;;  %v22080_v9 = vld [vmem:[#allocation146_spill] sm:$0xff] }
 0x477   : > { %22062 = vst [vmem:[#allocation174_spill] sm:$0xff] %v17477_v29  ;;  %v17498_v21 = vrot.slane %v22071_v51, %v15029_v5  ;;  %v22075_v29 = vcombine.low %v22073_v47, %v22074_v6  ;;  %v7286_v0 = vrot.slane %v5242_v50, %v21953_v54  ;;  %v17524_v28 = vrot.slane %v6050_v37, %v21953_v54  ;;  %v22081_v50 = vld [vmem:[#allocation153_spill] sm:$0xff] }
 0x478   : > { %22066 = vst [vmem:[#allocation180_spill] sm:$0xff] %v17486_v14  ;;  %v17492_v17 = vrot.slane %v22069_v41, %v15029_v5  ;;  %v22077_v41 = vcombine.high %v22073_v47, %v22074_v6  ;;  %6787 = vrot.lane.b32.xlu0 %v17486_v14, %s13981_s19  ;;  %v17527_v51 = vrot.slane %v5244_v44, %v21953_v54 }
 0x479   : > { %22072 = vst [vmem:[#allocation184_spill] sm:$0xff] %v17498_v21  ;;  %v17504_v42 = vrot.slane %v22075_v29, %v15029_v5  ;;  %v17521_v29 = vcombine.high %v17373_v30, %v21722_v8  ;;  %v5211_v47 = vrot.slane %v5197_v36, %v16712_v24  ;;  %v17531_v6 = vrot.slane %v6013_v32, %v16712_v24 }
 0x47a   : > { %22070 = vst [vmem:[#allocation182_spill] sm:$0xff] %v17492_v17  ;;  %v17513_v17 = vrot.slane %v22077_v41, %v15029_v5  ;;  %v22082_v41 = vcombine.low %v22080_v9, %v22081_v50  ;;  %v9021_v21 = vmul.f32 %v8054_v55, %v17355_v61  ;;  %v22084_v37 = vcombine.high %v22063_v43, %v22064_v20  ;;  %v22092_v20 = vld [vmem:[#allocation183_spill] sm:$0xff] }
 0x47b   : > { %22076 = vst [vmem:[#allocation107_spill] sm:$0xff] %v17504_v42  ;;  %22079 = vst [vmem:[#allocation69_spill] sm:$0xff] %v17521_v29  ;;  %v7278_v42 = vrot.slane %v5220_v40, %v21953_v54  ;;  %7045 = vrot.lane.b32.xlu1 %v17521_v29, %s13981_s19  ;;  %v22086_v36 = vcombine.high %v22080_v9, %v22081_v50  ;;  %v22089_v40 = vld [vmem:[#allocation164_spill] sm:$0xff]  ;;  %v9022_v59 = vmul.f32 %v17507_v57, %v6994_v22  ;;  %v22099_v29 = vld [vmem:[#allocation186_spill] sm:$0xff] }
 0x47c   : > { %22078 = vst [vmem:[#allocation113_spill] sm:$0xff] %v17513_v17  ;;  %v17537_v17 = vrot.slane %v22082_v41, %v15029_v5  ;;  %v17547_v44 = vrot.slane %v22084_v37, %v15029_v5  ;;  %v22088_v41 = vld [vmem:[#allocation162_spill] sm:$0xff]  ;;  %v9019_v43 = vmul.f32 %v8046_v10, %v17307_v46  ;;  %v8893_v37 = vmul.f32 %v7286_v0, %v22092_v20  ;;  %v6734_v20 = vpop.permute.xlu1 %6733 }
 0x47d   : > { %v17553_v32 = vrot.slane %v22086_v36, %v15029_v5  ;;  %v17571_v9 = vcombine.high %v17414_v7, %v21722_v8  ;;  %v8637_v50 = vmul.f32 %v8054_v55, %v6736_v60  ;;  %v9020_v36 = vmul.f32 %v17524_v28, %v6990_v48  ;;  %v22098_v48 = vld [vmem:[#allocation187_spill] sm:$0xff] }
 0x47e   : > { %22083 = vst [vmem:[#allocation75_spill] sm:$0xff] %v17537_v17  ;;  %22085 = vst [vmem:[#allocation119_spill] sm:$0xff] %v17547_v44  ;;  %v22090_v17 = vcombine.low %v22088_v41, %v22089_v40  ;;  %6791 = vrot.lane.b32.xlu0 %v17547_v44, %s13981_s19  ;;  %v5227_v22 = vrot.slane %v5211_v47, %v16712_v24  ;;  %v6043_v46 = vrot.slane %v17531_v6, %v16712_v24 }
 0x47f   : > { %22087 = vst [vmem:[#allocation120_spill] sm:$0xff] %v17553_v32  ;;  %22093 = vst [vmem:[#allocation124_spill] sm:$0xff] %v17571_v9  ;;  %v22095_v32 = vcombine.high %v22088_v41, %v22089_v40  ;;  %v8891_v55 = vmul.f32 %v7278_v42, %v22097_v19  ;;  %v9149_v60 = vadd.f32 %v9021_v21, %v8893_v37  ;;  %7049 = vrot.lane.b32.xlu1 %v17571_v9, %s13981_s19  ;;  %v22101_v19 = vld [vmem:[#allocation84_spill] sm:$0xff] }
 0x480   : > { %v17559_v61 = vrot.slane %v22090_v17, %v15029_v5  ;;  %v6996_v17 = vpop.permute.xlu0 %6995  ;;  %v8635_v2 = vmul.f32 %v8046_v10, %v17387_v18  ;;  %v8892_v7 = vmul.f32 %v17562_v39, %v22099_v29  ;;  %v6059_v27 = vcombine.high %v6043_v46, %v6043_v46  ;;  %v22104_v29 = vld [vmem:[#allocation166_spill] sm:$0xff] }
 0x481   : > { %v17583_v49 = vrot.slane %v22095_v32, %v15029_v5  ;;  %v9147_v41 = vadd.f32 %v9019_v43, %v8891_v55  ;;  %v22100_v32 = vld [vmem:[#allocation185_spill] sm:$0xff]  ;;  %v17600_v21 = vcombine.high %v17486_v14, %v21722_v8  ;;  %v5243_v37 = vcombine.high %v5227_v22, %v5227_v22 }
 0x482   : > { %22091 = vst [vmem:[#allocation118_spill] sm:$0xff] %v17559_v61  ;;  %v8894_v61 = vmul.f32 %v17527_v51, %v22094_v15  ;;  %v7869_v15 = vmul.f32 %v7286_v0, %v22098_v48  ;;  %v7867_v40 = vmul.f32 %v7278_v42, %v22100_v32  ;;  %7051 = vrot.lane.b32.xlu0 %v22101_v19, %s13981_s19 }
 0x483   : > { %22096 = vst [vmem:[#allocation127_spill] sm:$0xff] %v17583_v49  ;;  %22102 = vst [vmem:[#allocation130_spill] sm:$0xff] %v17600_v21  ;;  %v9148_v0 = vadd.f32 %v9020_v36, %v8892_v7  ;;  %v17604_v18 = vrot.slane %v17590_v3, %v16712_v24  ;;  %v5213_v10 = vcombine.high %v5211_v47, %v5211_v47  ;;  %v22109_v7 = vld [vmem:[#allocation169_spill] sm:$0xff]  ;;  %6789 = vrot.lane.b32.xlu1 %v17600_v21, %s13981_s19 }
 0x484   : > { %v9150_v30 = vadd.f32 %v9022_v59, %v8894_v61  ;;  %v8765_v49 = vadd.f32 %v8637_v50, %v7869_v15  ;;  %v22103_v59 = vld [vmem:[#allocation161_spill] sm:$0xff]  ;;  %v10319_v47 = vcombine.low %v9147_v41, %v9149_v60  ;;  %v7000_v15 = vpop.permute.xlu0 %6999 }
 0x485   : > { %v22105_v61 = vcombine.low %v22103_v59, %v22104_v29  ;;  %v22107_v43 = vcombine.high %v22103_v59, %v22104_v29  ;;  %v22110_v36 = vld [vmem:[#allocation173_spill] sm:$0xff]  ;;  %v8763_v59 = vadd.f32 %v8635_v2, %v7867_v40  ;;  %v22121_v2 = vld [vmem:[#allocation79_spill] sm:$0xff] }
 0x486   : > { %v22111_v55 = vcombine.low %v22109_v7, %v22110_v36  ;;  %v22113_v32 = vcombine.high %v22109_v7, %v22110_v36  ;;  %v10327_v29 = vcombine.low %v9148_v0, %v9150_v30  ;;  %v17648_v7 = vrot.slane %v6043_v46, %v21953_v54  ;;  %7055 = vrot.lane.b32.xlu0 %v22121_v2, %s13981_s19 }
 0x487   : > { %v17610_v42 = vrot.slane %v22105_v61, %v15029_v5  ;;  %v17616_v50 = vrot.slane %v22107_v43, %v15029_v5  ;;  %v17633_v43 = vrot.slane %v6059_v27, %v21953_v54  ;;  %v17654_v30 = vcombine.high %v17547_v44, %v21722_v8  ;;  %v17657_v27 = vld [vmem:[%s14484_s25 + $0x18] sm:$0xff] }
 0x488   : > { %v17622_v48 = vrot.slane %v22111_v55, %v15029_v5  ;;  %v17630_v61 = vrot.slane %v22113_v32, %v15029_v5  ;;  %v22115_v55 = vld [vmem:[#allocation170_spill] sm:$0xff]  ;;  %v9359_v40 = vcombine.low %v8763_v59, %v8765_v49  ;;  %v17660_v0 = vrot.slane %v5243_v37, %v21953_v54 }
 0x489   : > { %22106 = vst [vmem:[#allocation128_spill] sm:$0xff] %v17610_v42  ;;  %22108 = vst [vmem:[#allocation134_spill] sm:$0xff] %v17616_v50  ;;  %v6738_v50 = vpop.permute.xlu1 %6737  ;;  %v5241_v36 = vrot.slane %v5213_v10, %v16712_v24  ;;  %v10326_v46 = vrot.slane %v10319_v47, %v15005_v25  ;;  %v8636_v32 = vmul.f32 %v17524_v28, %v6734_v20  ;;  %6793 = vrot.lane.b32.xlu1 %v17654_v30, %s13981_s19  ;;  %v22123_v47 = vld [vmem:[#allocation47_spill] sm:$0xff] }
 0x48a   : > { %22112 = vst [vmem:[#allocation137_spill] sm:$0xff] %v17622_v48  ;;  %22114 = vst [vmem:[#allocation140_spill] sm:$0xff] %v17630_v61  ;;  %v22116_v48 = vld [vmem:[#allocation175_spill] sm:$0xff]  ;;  %v8638_v49 = vmul.f32 %v17507_v57, %v6738_v50  ;;  %v10334_v37 = vrot.slane %v10327_v29, %v15005_v25  ;;  %v9025_v59 = vmul.f32 %v17633_v43, %v7000_v15  ;;  %v22125_v57 = vld [vmem:[#allocation78_spill] sm:$0xff]  ;;  %v17690_v15 = vpop.permute.xlu0 %7003 }
 0x48b   : > { %v22117_v60 = vcombine.low %v22115_v55, %v22116_v48  ;;  %v22119_v42 = vcombine.high %v22115_v55, %v22116_v48  ;;  %22122 = vst [vmem:[#allocation139_spill] sm:$0xff] %v17654_v30  ;;  %v17667_v48 = vrot.slane %v5227_v22, %v21953_v54  ;;  %v6069_v55 = vrot.slane %v17657_v27, %v16712_v24  ;;  %v22124_v20 = vld [vmem:[#allocation155_spill] sm:$0xff] }
 0x48c   : > { %v6029_v10 = vcombine.high %v17531_v6, %v17531_v6  ;;  %v9023_v22 = vmul.f32 %v17648_v7, %v6996_v17  ;;  %v7868_v28 = vmul.f32 %v17562_v39, %v22123_v47  ;;  %6795 = vrot.lane.b32.xlu0 %v22125_v57, %s13981_s19  ;;  %v17688_v50 = vcombine.high %v22101_v19, %v21722_v8  ;;  %v22127_v6 = vld [vmem:[#allocation189_spill] sm:$0xff] }
 0x48d   : > { %v17639_v41 = vrot.slane %v22117_v60, %v15029_v5  ;;  %v17645_v21 = vrot.slane %v22119_v42, %v15029_v5  ;;  %v5269_v42 = vrot.slane %v17604_v18, %v16712_v24  ;;  %v7870_v60 = vmul.f32 %v17527_v51, %v22124_v20  ;;  %v22128_v47 = vld [vmem:[#allocation45_spill] sm:$0xff]  ;;  %v6998_v61 = vpop.permute.xlu1 %6997 }
 0x48e   : > { %22126 = vst [vmem:[#allocation141_spill] sm:$0xff] %v17688_v50  ;;  %v17693_v29 = vrot.slane %v9359_v40, %v15005_v25  ;;  %v8897_v17 = vmul.f32 %v17660_v0, %v22127_v6  ;;  %v5245_v39 = vcombine.high %v5241_v36, %v5241_v36  ;;  %v8895_v51 = vmul.f32 %v17667_v48, %v22128_v47 }
 0x48f   : > { %22118 = vst [vmem:[#allocation73_spill] sm:$0xff] %v17639_v41  ;;  %22120 = vst [vmem:[#allocation76_spill] sm:$0xff] %v17645_v21  ;;  %v5291_v21 = vcombine.high %v5269_v42, %v5269_v42  ;;  %v8764_v20 = vadd.f32 %v8636_v32, %v7868_v28  ;;  %v8766_v41 = vadd.f32 %v8638_v49, %v7870_v60  ;;  %7053 = vrot.lane.b32.xlu1 %v17688_v50, %s13981_s19  ;;  %v22129_v32 = vld [vmem:[#allocation80_spill] sm:$0xff] }
 0x490   : > { %v5261_v30 = vcombine.high %v17604_v18, %v17604_v18  ;;  %v10351_v19 = vcombine.low %v10326_v46, %v10334_v37  ;;  %v9153_v40 = vadd.f32 %v9025_v59, %v8897_v17  ;;  %v6085_v9 = vrot.slane %v6069_v55, %v16712_v24  ;;  %6799 = vrot.lane.b32.xlu0 %v22129_v32, %s13981_s19 }
 0x491   : > { %v6057_v6 = vrot.slane %v6029_v10, %v16712_v24  ;;  %v9151_v44 = vadd.f32 %v9023_v22, %v8895_v51  ;;  %v7310_v14 = vrot.slane %v5269_v42, %v21953_v54  ;;  %v7298_v47 = vrot.slane %v5241_v36, %v21953_v54  ;;  %v7008_v42 = vpop.permute.xlu0 %7007  ;;  %v22131_v36 = vld [vmem:[#allocation83_spill] sm:$0xff]  ;;  %v22132_v10 = vld [vmem:[#allocation85_spill] sm:$0xff]  ;;  %v7002_v52 = vpop.permute.xlu1 %7001 }
 0x492   : > { %v17711_v49 = vcombine.high %v22121_v2, %v21722_v8  ;;  %v6107_v28 = vcombine.high %v6085_v9, %v6085_v9  ;;  %v7318_v18 = vrot.slane %v5291_v21, %v21953_v54  ;;  %v7306_v37 = vrot.slane %v5245_v39, %v21953_v54 }
 0x493   : > { %v6061_v46 = vcombine.high %v6057_v6, %v6057_v6  ;;  %v9367_v59 = vcombine.low %v8764_v20, %v8766_v41  ;;  %v22133_v22 = vcombine.low %v22131_v36, %v22132_v10  ;;  %v5283_v17 = vrot.slane %v5261_v30, %v16712_v24  ;;  %v22135_v20 = vld [vmem:[#allocation156_spill] sm:$0xff] }
 0x494   : > { %22130 = vst [vmem:[#allocation147_spill] sm:$0xff] %v17711_v49  ;;  %7057 = vrot.lane.b32.xlu1 %v17711_v49, %s13981_s19  ;;  %v6077_v51 = vcombine.high %v6069_v55, %v6069_v55  ;;  %v17725_v50 = vrot.slane %v10351_v19, %v15029_v5  ;;  %v10335_v21 = vcombine.low %v9151_v44, %v9153_v40  ;;  %v22139_v19 = vld [vmem:[#allocation158_spill] sm:$0xff]  ;;  %v22140_v55 = vld [vmem:[#allocation48_spill] sm:$0xff] }
 0x495   : > { %v17721_v60 = vrot.slane %v22133_v22, %v15029_v5  ;;  %v17728_v39 = vrot.slane %v6085_v9, %v21953_v54  ;;  %v5246_v41 = vcombine.high %v17590_v3, %v17590_v3  ;;  %v8899_v49 = vmul.f32 %v7310_v14, %v22135_v20  ;;  %v22136_v22 = vld [vmem:[#allocation157_spill] sm:$0xff]  ;;  %v17756_v20 = vpop.permute.xlu0 %6739 }
 0x496   : > { %v17734_v2 = vrot.slane %v6057_v6, %v21953_v54  ;;  %v8896_v12 = vmul.f32 %v7298_v47, %v22136_v22  ;;  %v17741_v44 = vcombine.high %v22125_v57, %v21722_v8  ;;  %v17744_v9 = vrot.slane %v6107_v28, %v21953_v54 }
 0x497   : > { %22134 = vst [vmem:[#allocation148_spill] sm:$0xff] %v17721_v60  ;;  %7059 = vrot.lane.b32.xlu0 %v17721_v60, %s13981_s19  ;;  %v17747_v3 = vmul.f32 %v7318_v18, %v22139_v19  ;;  %v17750_v30 = vrot.slane %v6061_v46, %v21953_v54  ;;  %v8898_v40 = vmul.f32 %v7306_v37, %v22140_v55  ;;  %v22143_v55 = vld [vmem:[#allocation52_spill] sm:$0xff] }
 0x498   : > { %22137 = vst [vmem:[#allocation146_spill] sm:$0xff] %v17741_v44  ;;  %22138 = vst [vmem:[#allocation153_spill] sm:$0xff] %v17744_v9  ;;  %v9374_v6 = vrot.slane %v9367_v59, %v15005_v25  ;;  %6797 = vrot.lane.b32.xlu1 %v17741_v44, %s13981_s19  ;;  %v6099_v22 = vrot.slane %v6077_v51, %v16712_v24  ;;  %v22141_v28 = vcombine.high %v22131_v36, %v22132_v10  ;;  %v17775_v51 = vpop.permute.xlu1 %7005  ;;  %v22145_v10 = vld [vmem:[#allocation190_spill] sm:$0xff] }
 0x499   : > { %v5293_v57 = vcombine.high %v5283_v17, %v5283_v17  ;;  %v17766_v46 = vrot.slane %v10335_v21, %v15005_v25  ;;  %v17770_v59 = vmul.f32 %v17667_v48, %v22143_v55  ;;  %v5260_v44 = vrot.slane %v5246_v41, %v16712_v24  ;;  %v22147_v41 = vld [vmem:[#allocation49_spill] sm:$0xff] }
 0x49a   : > { %v17763_v19 = vrot.slane %v22141_v28, %v15029_v5  ;;  %v6062_v23 = vcombine.high %v17657_v27, %v17657_v27  ;;  %v17781_v36 = vcombine.high %v22129_v32, %v21722_v8  ;;  %v17785_v21 = vmul.f32 %v17660_v0, %v22145_v10  ;;  %v6744_v10 = vpop.permute.xlu0 %6743 }
 0x49b   : > { %v17789_v48 = vcombine.high %v17721_v60, %v21722_v8  ;;  %v17792_v28 = vmul.f32 %v7310_v14, %v22147_v41  ;;  %v9026_v27 = vmul.f32 %v17750_v30, %v7002_v52  ;;  %v7314_v55 = vrot.slane %v5283_v17, %v21953_v54  ;;  %v22153_v60 = vld [vmem:[#allocation102_spill] sm:$0xff] }
 0x49c   : > { %22142 = vst [vmem:[#allocation162_spill] sm:$0xff] %v17763_v19  ;;  %7063 = vrot.lane.b32.xlu0 %v17763_v19, %s13981_s19  ;;  %22144 = vst [vmem:[#allocation164_spill] sm:$0xff] %v17781_v36  ;;  %v6109_v62 = vcombine.high %v6099_v22, %v6099_v22  ;;  %v17797_v38 = vmul.f32 %v7298_v47, %v22148_v63  ;;  %v9391_v32 = vcombine.low %v17693_v29, %v9374_v6  ;;  %v22150_v63 = vld [vmem:[#allocation90_spill] sm:$0xff]  ;;  %v17817_v41 = vpop.permute.xlu1 %7009 }
 0x49d   : > { %22146 = vst [vmem:[#allocation183_spill] sm:$0xff] %v17789_v48  ;;  %v17801_v0 = vrot.slane %v6099_v22, %v21953_v54  ;;  %6801 = vrot.lane.b32.xlu1 %v17781_v36, %s13981_s19  ;;  %v7322_v14 = vrot.slane %v5293_v57, %v21953_v54  ;;  %v17808_v52 = vcombine.high %v17763_v19, %v21722_v8  ;;  %v22152_v57 = vld [vmem:[#allocation89_spill] sm:$0xff]  ;;  %v22154_v19 = vld [vmem:[#allocation82_spill] sm:$0xff] }
 0x49e   : > { %v9024_v17 = vmul.f32 %v17734_v2, %v6998_v61  ;;  %v17812_v47 = vmul.f32 %v7318_v18, %v22150_v63  ;;  %v6076_v29 = vrot.slane %v6062_v23, %v16712_v24  ;;  %v5262_v6 = vcombine.high %v5260_v44, %v5260_v44  ;;  %v22155_v61 = vld [vmem:[#allocation86_spill] sm:$0xff] }
 0x49f   : > { %22149 = vst [vmem:[#allocation188_spill] sm:$0xff] %v17808_v52  ;;  %v9027_v22 = vmul.f32 %v17728_v39, %v17690_v15  ;;  %v17822_v36 = vmul.f32 %v7306_v37, %v22153_v60  ;;  %v22156_v13 = vcombine.low %v22154_v19, %v22155_v61  ;;  %v5276_v23 = vrot.slane %v5260_v44, %v16712_v24  ;;  %v17842_v37 = vld [vmem:[%s14477_s27 + $0x20] sm:$0xff] }
 0x4a0   : > { %22151 = vst [vmem:[#allocation181_spill] sm:$0xff] %v17812_v47  ;;  %7067 = vrot.lane.b32.xlu0 %v22152_v57, %s13981_s19  ;;  %v9154_v63 = vadd.f32 %v9026_v27, %v8898_v40  ;;  %v17832_v11 = vmul.f32 %v7314_v55, %v22158_v16  ;;  %v17835_v15 = vrot.slane %v6109_v62, %v21953_v54  ;;  %22160 = vst [vmem:[#allocation185_spill] sm:$0xff] %v17842_v37  ;;  %v22162_v44 = vld [vmem:[#allocation42_spill] sm:$0xff]  ;;  %v17853_v16 = vpop.permute.xlu0 %6747  ;;  %v17866_v1 = vpop.permute.xlu1 %6741 }
 0x4a1   : > { %v17828_v18 = vrot.slane %v22156_v13, %v15029_v5  ;;  %v17839_v56 = vcombine.high %v22152_v57, %v21722_v8  ;;  %v17845_v60 = vrot.slane %v9391_v32, %v15029_v5  ;;  %v9029_v13 = vmul.f32 %v17744_v9, %v7008_v42  ;;  %7061 = vrot.lane.b32.xlu1 %v17789_v48, %s13981_s19  ;;  %v22167_v48 = vld [vmem:[#allocation91_spill] sm:$0xff] }
 0x4a2   : > { %v17849_v40 = vmul.f32 %v7322_v14, %v22162_v44  ;;  %v22163_v62 = vcombine.high %v22154_v19, %v22155_v61  ;;  %v9152_v57 = vadd.f32 %v9024_v17, %v8896_v12  ;;  %v6092_v32 = vrot.slane %v6076_v29, %v16712_v24  ;;  %v17875_v12 = vld [vmem:[%s14484_s25 + $0x20] sm:$0xff] }
 0x4a3   : > { %22157 = vst [vmem:[#allocation187_spill] sm:$0xff] %v17828_v18  ;;  %22159 = vst [vmem:[#allocation186_spill] sm:$0xff] %v17839_v56  ;;  %v17863_v35 = vmul.f32 %v7314_v55, %v22165_v26  ;;  %v5290_v42 = vrot.slane %v5262_v6, %v16712_v24  ;;  %v9155_v44 = vadd.f32 %v9027_v22, %v8899_v49  ;;  %v22170_v22 = vld [vmem:[#allocation195_spill] sm:$0xff] }
 0x4a4   : > { %22161 = vst [vmem:[#allocation161_spill] sm:$0xff] %v17845_v60  ;;  %v17859_v27 = vrot.slane %v22163_v62, %v15029_v5  ;;  %7071 = vrot.lane.b32.xlu0 %v22167_v48, %s13981_s19  ;;  %v5292_v31 = vcombine.high %v5276_v23, %v5276_v23  ;;  %v6078_v60 = vcombine.high %v6076_v29, %v6076_v29  ;;  %22168 = vst [vmem:[#allocation173_spill] sm:$0xff] %v17875_v12  ;;  %v17885_v29 = vpop.permute.xlu0 %6751  ;;  %v22174_v62 = vld [vmem:[#allocation92_spill] sm:$0xff] }
 0x4a5   : > { %22166 = vst [vmem:[#allocation169_spill] sm:$0xff] %v17863_v35  ;;  %v17872_v19 = vrot.slane %v17842_v37, %v16712_v24  ;;  %v10343_v17 = vcombine.low %v9152_v57, %v9154_v63  ;;  %v7326_v26 = vrot.slane %v5276_v23, %v21953_v54  ;;  %v17880_v55 = vcombine.high %v22167_v48, %v21722_v8  ;;  %v22180_v37 = vld [vmem:[#allocation50_spill] sm:$0xff] }
 0x4a6   : > { %22164 = vst [vmem:[#allocation166_spill] sm:$0xff] %v17859_v27  ;;  %v6108_v49 = vcombine.high %v6092_v32, %v6092_v32  ;;  %v9157_v6 = vadd.f32 %v9029_v13, %v17747_v3  ;;  %7065 = vrot.lane.b32.xlu1 %v17808_v52, %s13981_s19  ;;  %v17888_v61 = vmul.f32 %v7322_v14, %v22170_v22  ;;  %v22175_v3 = vld [vmem:[#allocation96_spill] sm:$0xff]  ;;  %v22178_v52 = vld [vmem:[#allocation87_spill] sm:$0xff]  ;;  %v6746_v22 = vpop.permute.xlu1 %6745 }
 0x4a7   : > { %22169 = vst [vmem:[#allocation170_spill] sm:$0xff] %v17880_v55  ;;  %v17892_v57 = vcombine.high %v17828_v18, %v21722_v8  ;;  %v17896_v23 = vcombine.high %v17859_v27, %v21722_v8  ;;  %v5294_v63 = vcombine.high %v5290_v42, %v5290_v42  ;;  %v22176_v13 = vcombine.low %v22174_v62, %v22175_v3 }
 0x4a8   : > { %22171 = vst [vmem:[#allocation175_spill] sm:$0xff] %v17888_v61  ;;  %v17906_v34 = vcombine.high %v22178_v52, %v21722_v8  ;;  %v17910_v14 = vrot.slane %v17875_v12, %v16712_v24  ;;  %6803 = vrot.lane.b32.xlu0 %v17828_v18, %s13981_s19  ;;  %v17915_v45 = vrot.slane %v6092_v32, %v21953_v54 }
 0x4a9   : > { %22172 = vst [vmem:[#allocation47_spill] sm:$0xff] %v17892_v57  ;;  %22173 = vst [vmem:[#allocation155_spill] sm:$0xff] %v17896_v23  ;;  %v17902_v48 = vrot.slane %v22176_v13, %v15029_v5  ;;  %v7334_v58 = vrot.slane %v5292_v31, %v21953_v54  ;;  %v6106_v13 = vrot.slane %v6078_v60, %v16712_v24  ;;  %v7012_v31 = vpop.permute.xlu0 %7011  ;;  %v22181_v60 = vld [vmem:[#allocation43_spill] sm:$0xff] }
 0x4aa   : > { %22179 = vst [vmem:[#allocation45_spill] sm:$0xff] %v17906_v34  ;;  %v5318_v35 = vrot.slane %v17872_v19, %v16712_v24  ;;  %v10350_v47 = vrot.slane %v10343_v17, %v15005_v25  ;;  %v17923_v33 = vmul.f32 %v7326_v26, %v22180_v37  ;;  %v17926_v12 = vrot.slane %v6108_v49, %v21953_v54 }
 0x4ab   : > { %22177 = vst [vmem:[#allocation189_spill] sm:$0xff] %v17902_v48  ;;  %v7330_v18 = vrot.slane %v5290_v42, %v21953_v54  ;;  %v10369_v34 = vcombine.low %v9155_v44, %v9157_v6  ;;  %v8641_v32 = vmul.f32 %v17633_v43, %v6744_v10  ;;  %7069 = vrot.lane.b32.xlu1 %v17839_v56, %s13981_s19  ;;  %v6750_v10 = vpop.permute.xlu1 %6749  ;;  %v22182_v44 = vld [vmem:[#allocation192_spill] sm:$0xff] }
 0x4ac   : > { %v17933_v61 = vmul.f32 %v7326_v26, %v22181_v60  ;;  %v6110_v9 = vcombine.high %v6106_v13, %v6106_v13  ;;  %v8639_v37 = vmul.f32 %v17648_v7, %v17756_v20  ;;  %v7338_v17 = vrot.slane %v5294_v63, %v21953_v54  ;;  %6807 = vrot.lane.b32.xlu0 %v17859_v27, %s13981_s19 }
 0x4ad   : > { %v6134_v49 = vrot.slane %v17910_v14, %v16712_v24  ;;  %v7342_v42 = vrot.slane %v5318_v35, %v21953_v54  ;;  %v9028_v43 = vmul.f32 %v17801_v0, %v17775_v51  ;;  %v8905_v26 = vmul.f32 %v7334_v58, %v22182_v44 }
 0x4ae   : > { %v17947_v6 = vrot.slane %v6106_v13, %v21953_v54  ;;  %v5340_v7 = vcombine.high %v5318_v35, %v5318_v35  ;;  %v10359_v20 = vcombine.low %v17766_v46, %v10350_v47  ;;  %v9030_v63 = vmul.f32 %v17835_v15, %v17817_v41  ;;  %v7016_v35 = vpop.permute.xlu0 %7015 }
 0x4af   : > { %v17953_v60 = vmul.f32 %v7330_v18, %v16939_v4  ;;  %v17956_v51 = vmul.f32 %v7334_v58, %v16957_v53  ;;  %v17959_v56 = vrot.slane %v10369_v34, %v15005_v25  ;;  %v8769_v44 = vadd.f32 %v8641_v32, %v17785_v21  ;;  %7073 = vrot.lane.b32.xlu1 %v17880_v55, %s13981_s19  ;;  %v22183_v4 = vld [vmem:[#allocation196_spill] sm:$0xff]  ;;  %v6754_v32 = vpop.permute.xlu1 %6753  ;;  %v22185_v55 = vld [vmem:[#allocation63_spill] sm:$0xff] }
 0x4b0   : > { %v17965_v46 = vrot.slane %v6110_v9, %v21953_v54  ;;  %v6156_v47 = vcombine.high %v6134_v49, %v6134_v49  ;;  %v8767_v41 = vadd.f32 %v8639_v37, %v17770_v59  ;;  %v8906_v13 = vmul.f32 %v7338_v17, %v22183_v4  ;;  %v22184_v58 = vld [vmem:[#allocation60_spill] sm:$0xff]  ;;  %6811 = vrot.lane.b32.xlu0 %v22178_v52, %s13981_s19 }
 0x4b1   : > { %v17970_v53 = vrot.slane %v6134_v49, %v21953_v54  ;;  %v17973_v34 = vmul.f32 %v7342_v42, %v22184_v58  ;;  %v9156_v21 = vadd.f32 %v9028_v43, %v17832_v11  ;;  %v17979_v9 = vmul.f32 %v7330_v18, %v22185_v55  ;;  %v22188_v43 = vld [vmem:[#allocation191_spill] sm:$0xff]  ;;  %v22190_v52 = vld [vmem:[#allocation44_spill] sm:$0xff] }
 0x4b2   : > { %v22186_v59 = vcombine.high %v22174_v62, %v22175_v3  ;;  %v7350_v49 = vrot.slane %v5340_v7, %v21953_v54  ;;  %v17989_v4 = vrot.slane %v10359_v20, %v15029_v5  ;;  %v9158_v11 = vadd.f32 %v9030_v63, %v17849_v40  ;;  %v6756_v62 = vpop.permute.xlu0 %6755  ;;  %v22191_v7 = vld [vmem:[#allocation88_spill] sm:$0xff]  ;;  %v22192_v40 = vld [vmem:[#allocation95_spill] sm:$0xff] }
 0x4b3   : > { %v17994_v58 = vcombine.high %v22188_v43, %v21722_v8  ;;  %v17997_v18 = vmul.f32 %v7338_v17, %v22190_v52  ;;  %v9375_v55 = vcombine.low %v8767_v41, %v8769_v44  ;;  %v8642_v27 = vmul.f32 %v17750_v30, %v6746_v22  ;;  %6805 = vrot.lane.b32.xlu1 %v17892_v57, %s13981_s19  ;;  %v22196_v41 = vld [vmem:[#allocation57_spill] sm:$0xff] }
 0x4b4   : > { %v17985_v37 = vrot.slane %v22186_v59, %v15029_v5  ;;  %v18003_v3 = vrot.slane %v6156_v47, %v21953_v54  ;;  %v22193_v20 = vcombine.low %v22191_v7, %v22192_v40  ;;  %v8643_v52 = vmul.f32 %v17728_v39, %v17853_v16  ;;  %v7014_v47 = vpop.permute.xlu1 %7013  ;;  %6815 = vrot.lane.b32.xlu0 %v22188_v43, %s13981_s19  ;;  %v22197_v39 = vld [vmem:[#allocation55_spill] sm:$0xff] }
 0x4b5   : > { %22189 = vst [vmem:[#allocation85_spill] sm:$0xff] %v17994_v58  ;;  %v9033_v17 = vmul.f32 %v17926_v12, %v7016_v35  ;;  %v18016_v30 = vcombine.high %v17902_v48, %v21722_v8  ;;  %v5310_v22 = vcombine.high %v17872_v19, %v17872_v19  ;;  %v8640_v44 = vmul.f32 %v17734_v2, %v17866_v1 }
 0x4b6   : > { %22187 = vst [vmem:[#allocation83_spill] sm:$0xff] %v17985_v37  ;;  %v18009_v63 = vrot.slane %v22193_v20, %v15029_v5  ;;  %v18025_v59 = vmul.f32 %v7350_v49, %v22196_v41  ;;  %v18028_v16 = vmul.f32 %v7342_v42, %v22197_v39  ;;  %v6126_v35 = vcombine.high %v17910_v14, %v17910_v14 }
 0x4b7   : > { %22195 = vst [vmem:[#allocation157_spill] sm:$0xff] %v18016_v30  ;;  %v10377_v19 = vcombine.low %v9156_v21, %v9158_v11  ;;  %v9031_v57 = vmul.f32 %v17915_v45, %v7012_v31  ;;  %v22198_v1 = vcombine.high %v22191_v7, %v22192_v40  ;;  %v18044_v42 = vrot.slane %v9375_v55, %v15005_v25  ;;  %v6760_v31 = vpop.permute.xlu0 %6759  ;;  %v22200_v55 = vld [vmem:[#allocation153_spill] sm:$0xff] }
 0x4b8   : > { %22194 = vst [vmem:[#allocation156_spill] sm:$0xff] %v18009_v63  ;;  %v8770_v14 = vadd.f32 %v8642_v27, %v17822_v36  ;;  %v8646_v39 = vmul.f32 %v17835_v15, %v6754_v32  ;;  %6809 = vrot.lane.b32.xlu1 %v17896_v23, %s13981_s19  ;;  %v18051_v21 = vadd.f32 %v8643_v52, %v17792_v28  ;;  %v7018_v15 = vpop.permute.xlu1 %7017 }
 0x4b9   : > { %v18039_v2 = vrot.slane %v22198_v1, %v15029_v5  ;;  %v9161_v11 = vadd.f32 %v9033_v17, %v8905_v26  ;;  %v9032_v7 = vmul.f32 %v17947_v6, %v7014_v47  ;;  %v5332_v40 = vrot.slane %v5310_v22, %v16712_v24  ;;  %7075 = vrot.lane.b32.xlu0 %v17902_v48, %s13981_s19  ;;  %v22204_v22 = vld [vmem:[#allocation58_spill] sm:$0xff]  ;;  %v22205_v47 = vld [vmem:[#allocation185_spill] sm:$0xff] }
 0x4ba   : > { %v8768_v1 = vadd.f32 %v8640_v44, %v17797_v38  ;;  %v8645_v41 = vmul.f32 %v22200_v55, %v17885_v29  ;;  %v8644_v36 = vmul.f32 %v17801_v0, %v6750_v10  ;;  %v6148_v27 = vrot.slane %v6126_v35, %v16712_v24  ;;  %v22202_v29 = vld [vmem:[#allocation175_spill] sm:$0xff]  ;;  %v22203_v0 = vld [vmem:[#allocation45_spill] sm:$0xff] }
 0x4bb   : > { %22199 = vst [vmem:[#allocation158_spill] sm:$0xff] %v18039_v2  ;;  %v10384_v28 = vrot.slane %v10377_v19, %v15005_v25  ;;  %v9159_v26 = vadd.f32 %v9031_v57, %v17923_v33  ;;  %v9034_v32 = vmul.f32 %v17965_v46, %v7018_v15  ;;  %v18067_v38 = vcombine.high %v17985_v37, %v21722_v8  ;;  %v18072_v10 = vpop.permute.xlu0 %7019 }
 0x4bc   : > { %v9383_v52 = vcombine.low %v8768_v1, %v8770_v14  ;;  %v8774_v17 = vadd.f32 %v8646_v39, %v22202_v29  ;;  %6813 = vrot.lane.b32.xlu1 %v22203_v0, %s13981_s19  ;;  %v18075_v44 = vmul.f32 %v7350_v49, %v22204_v22  ;;  %v5295_v33 = vcombine.high %v22205_v47, %v22205_v47  ;;  %v22206_v14 = vld [vmem:[#allocation181_spill] sm:$0xff]  ;;  %v6758_v29 = vpop.permute.xlu1 %6757 }
 0x4bd   : > { %22201 = vst [vmem:[#allocation48_spill] sm:$0xff] %v18067_v38  ;;  %v10385_v57 = vcombine.low %v9159_v26, %v9161_v11  ;;  %v9160_v35 = vadd.f32 %v9032_v7, %v17953_v60  ;;  %v8649_v19 = vmul.f32 %v17926_v12, %v6760_v31  ;;  %v9162_v55 = vadd.f32 %v9034_v32, %v8906_v13  ;;  %v22207_v39 = vld [vmem:[#allocation169_spill] sm:$0xff]  ;;  %v22208_v32 = vld [vmem:[#allocation46_spill] sm:$0xff] }
 0x4be   : > { %v8773_v1 = vadd.f32 %v8645_v41, %v22206_v14  ;;  %v8772_v15 = vadd.f32 %v8644_v36, %v22207_v39  ;;  %7079 = vrot.lane.b32.xlu0 %v17985_v37, %s13981_s19  ;;  %v7346_v49 = vrot.slane %v5332_v40, %v21953_v54  ;;  %v5342_v22 = vcombine.high %v5332_v40, %v5332_v40  ;;  %v22230_v37 = vld [vmem:[#allocation77_spill] sm:$0xff] }
 0x4bf   : > { %v10401_v20 = vcombine.low %v17959_v56, %v10384_v28  ;;  %v8647_v11 = vmul.f32 %v17915_v45, %v6756_v62  ;;  %v10393_v26 = vcombine.low %v9160_v35, %v9162_v55  ;;  %v18089_v60 = vrot.slane %v6148_v27, %v21953_v54  ;;  %v18094_v41 = vpop.permute.xlu0 %7023 }
 0x4c0   : > { %v9390_v12 = vrot.slane %v9383_v52, %v15005_v25  ;;  %v9417_v13 = vcombine.low %v8772_v15, %v8774_v17  ;;  %6817 = vrot.lane.b32.xlu1 %v17994_v58, %s13981_s19  ;;  %v6158_v31 = vcombine.high %v6148_v27, %v6148_v27  ;;  %v18097_v7 = vrot.slane %v5295_v33, %v16712_v24  ;;  %v6762_v28 = vpop.permute.xlu1 %6761  ;;  %v22209_v17 = vld [vmem:[#allocation173_spill] sm:$0xff] }
 0x4c1   : > { %v10392_v56 = vrot.slane %v10385_v57, %v15005_v25  ;;  %v8777_v45 = vadd.f32 %v8649_v19, %v17956_v51  ;;  %v10400_v62 = vrot.slane %v10393_v26, %v15005_v25  ;;  %v8648_v40 = vmul.f32 %v17947_v6, %v6758_v29 }
 0x4c2   : > { %v9409_v36 = vcombine.low %v18051_v21, %v8773_v1  ;;  %6819 = vrot.lane.b32.xlu0 %v18009_v63, %s13981_s19  ;;  %v18107_v27 = vmul.f32 %v7346_v49, %v22208_v32  ;;  %v7354_v52 = vrot.slane %v5342_v22, %v21953_v54  ;;  %v6111_v47 = vcombine.high %v22209_v17, %v22209_v17  ;;  %v18119_v21 = vld [vmem:[%s14477_s27 + $0x28] sm:$0xff] }
 0x4c3   : > { %v8775_v51 = vadd.f32 %v8647_v11, %v17933_v61  ;;  %v10409_v33 = vcombine.low %v10392_v56, %v10400_v62  ;;  %v8650_v57 = vmul.f32 %v17965_v46, %v6762_v28  ;;  %v18116_v6 = vcombine.high %v18009_v63, %v21722_v8  ;;  %v18126_v14 = vpop.permute.xlu0 %6763  ;;  %v18150_v56 = vld [vmem:[%s14484_s25 + $0x28] sm:$0xff] }
 0x4c4   : > { %v10408_v35 = vrot.slane %v10401_v20, %v15029_v5  ;;  %v9399_v19 = vcombine.low %v18044_v42, %v9390_v12  ;;  %v9424_v55 = vrot.slane %v9417_v13, %v15005_v25  ;;  %7077 = vrot.lane.b32.xlu1 %v18016_v30, %s13981_s19  ;;  %v5325_v61 = vrot.slane %v18097_v7, %v16712_v24  ;;  %v18134_v15 = vpop.permute.xlu1 %7021 }
 0x4c5   : > { %22210 = vst [vmem:[#allocation52_spill] sm:$0xff] %v18116_v6  ;;  %v9425_v46 = vcombine.low %v8775_v51, %v8777_v45  ;;  %v10416_v1 = vrot.slane %v10409_v33, %v15029_v5  ;;  %v8776_v39 = vadd.f32 %v8648_v40, %v17979_v9  ;;  %v8778_v20 = vadd.f32 %v8650_v57, %v17997_v18  ;;  %v22211_v18 = vld [vmem:[#allocation53_spill] sm:$0xff] }
 0x4c6   : > { %v9416_v42 = vrot.slane %v9409_v36, %v15005_v25  ;;  %6823 = vrot.lane.b32.xlu0 %v18039_v2, %s13981_s19  ;;  %v18139_v29 = vrot.slane %v6158_v31, %v21953_v54  ;;  %v6125_v22 = vrot.slane %v6111_v47, %v16712_v24  ;;  %v18144_v11 = vrot.slane %v18119_v21, %v16712_v24 }
 0x4c7   : > { %v10417_v26 = vcombine.low %v10408_v35, %v10416_v1  ;;  %v10418_v9 = vcombine.high %v10408_v35, %v10416_v1  ;;  %v9433_v12 = vcombine.low %v8776_v39, %v8778_v20  ;;  %v18147_v13 = vmul.f32 %v7354_v52, %v22211_v18  ;;  %v18155_v31 = vpop.permute.xlu0 %6767  ;;  %v22214_v35 = vld [vmem:[#allocation100_spill] sm:$0xff]  ;;  %v22217_v20 = vld [vmem:[#allocation81_spill] sm:$0xff] }
 0x4c8   : > { %v9406_v45 = vrot.slane %v9399_v19, %v15029_v5  ;;  %v9441_v62 = vcombine.low %v9416_v42, %v9424_v55  ;;  %7081 = vrot.lane.b32.xlu1 %v18067_v38, %s13981_s19  ;;  %v5341_v40 = vcombine.high %v5325_v61, %v5325_v61  ;;  %v5311_v36 = vcombine.high %v18097_v7, %v18097_v7  ;;  %v7026_v57 = vpop.permute.xlu1 %7025  ;;  %v22215_v55 = vld [vmem:[#allocation72_spill] sm:$0xff]  ;;  %v22219_v18 = vld [vmem:[#allocation161_spill] sm:$0xff] }
 0x4c9   : > { %v9432_v28 = vrot.slane %v9425_v46, %v15005_v25  ;;  %v22212_v32 = vcombine.low %v17725_v50, %v17989_v4  ;;  %v22213_v47 = vcombine.high %v17725_v50, %v17989_v4  ;;  %v9440_v33 = vrot.slane %v9433_v12, %v15005_v25 }
 0x4ca   : > { %7083 = vrot.lane.b32.xlu0 %v22214_v35, %s13981_s19  ;;  %v6141_v19 = vrot.slane %v6125_v22, %v16712_v24  ;;  %v18171_v7 = vmul.f32 %v7346_v49, %v22215_v55  ;;  %v5367_v46 = vrot.slane %v18144_v11, %v16712_v24  ;;  %v18177_v1 = vrot.slane %v18150_v56, %v16712_v24 }
 0x4cb   : > { %v12987_v17 = vpack.c.bf16 %v10417_v26, %v22212_v32  ;;  %v13027_v51 = vpack.c.bf16 %v10418_v9, %v22213_v47  ;;  %v9449_v50 = vcombine.low %v9432_v28, %v9440_v33  ;;  %v18182_v4 = vrot.slane %v5325_v61, %v21953_v54  ;;  %v18193_v42 = vpop.permute.xlu0 %7027 }
 0x4cc   : > { %v18186_v39 = vcombine.high %v18039_v2, %v21722_v8  ;;  %v18189_v49 = vmul.f32 %v7354_v52, %v22217_v20  ;;  %6821 = vrot.lane.b32.xlu1 %v18116_v6, %s13981_s19  ;;  %v6157_v26 = vcombine.high %v6141_v19, %v6141_v19  ;;  %v18196_v9 = vrot.slane %v5341_v40, %v21953_v54  ;;  %v22220_v40 = vld [vmem:[#allocation56_spill] sm:$0xff] }
 0x4cd   : > { %13154 = vst [vmem:[%s17404_s8 + $0x8] sm:$0xff] %v12987_v17   ;;  %13162 = vst [vmem:[%s17404_s8 + $0x48] sm:$0xff] %v13027_v51   ;;  %v18200_v61 = vcombine.high %v22214_v35, %v21722_v8  ;;  %v6127_v12 = vcombine.high %v6125_v22, %v6125_v22  ;;  %v9407_v28 = vcombine.low %v22219_v18, %v9406_v45  ;;  %v18207_v51 = vpop.permute.xlu1 %6765 }
 0x4ce   : > { %22216 = vst [vmem:[#allocation190_spill] sm:$0xff] %v18186_v39  ;;  %v9448_v32 = vrot.slane %v9441_v62, %v15029_v5  ;;  %v9456_v52 = vrot.slane %v9449_v50, %v15029_v5  ;;  %v5339_v17 = vrot.slane %v5311_v36, %v16712_v24  ;;  %v9408_v47 = vcombine.high %v22219_v18, %v9406_v45  ;;  %v22221_v18 = vld [vmem:[#allocation54_spill] sm:$0xff] }
 0x4cf   : > { %22218 = vst [vmem:[#allocation49_spill] sm:$0xff] %v18200_v61  ;;  %7087 = vrot.lane.b32.xlu0 %v22220_v40, %s13981_s19  ;;  %v6183_v33 = vrot.slane %v18177_v1, %v16712_v24  ;;  %v18214_v22 = vrot.slane %v5367_v46, %v21953_v54  ;;  %v5389_v55 = vcombine.high %v5367_v46, %v5367_v46 }
 0x4d0   : > { %v9037_v62 = vmul.f32 %v18003_v3, %v18094_v41  ;;  %v9457_v50 = vcombine.low %v9448_v32, %v9456_v52  ;;  %v9458_v20 = vcombine.high %v9448_v32, %v9456_v52  ;;  %v5359_v45 = vcombine.high %v18144_v11, %v18144_v11  ;;  %6825 = vrot.lane.b32.xlu1 %v18186_v39, %s13981_s19  ;;  %v18232_v41 = vpop.permute.xlu0 %7031  ;;  %v22223_v39 = vld [vmem:[#allocation98_spill] sm:$0xff] }
 0x4d1   : > { %v18221_v36 = vrot.slane %v6141_v19, %v21953_v54  ;;  %v18225_v35 = vmul.f32 %v18182_v4, %v22221_v18  ;;  %v18230_v46 = vrot.slane %v6157_v26, %v21953_v54  ;;  %v6155_v32 = vrot.slane %v6127_v12, %v16712_v24  ;;  %v22222_v18 = vld [vmem:[#allocation64_spill] sm:$0xff]  ;;  %v6770_v30 = vpop.permute.xlu1 %6769 }
 0x4d2   : > { %v9035_v11 = vmul.f32 %v17970_v53, %v18072_v10  ;;  %v12907_v19 = vpack.c.bf16 %v9457_v50, %v9407_v28  ;;  %v12947_v52 = vpack.c.bf16 %v9458_v20, %v9408_v47  ;;  %v5343_v6 = vcombine.high %v5339_v17, %v5339_v17  ;;  %v22224_v47 = vld [vmem:[#allocation61_spill] sm:$0xff] }
 0x4d3   : > { %v18239_v38 = vmul.f32 %v18196_v9, %v22222_v18  ;;  %6827 = vrot.lane.b32.xlu0 %v22223_v39, %s13981_s19  ;;  %v18244_v26 = vrot.slane %v5339_v17, %v21953_v54  ;;  %v6205_v2 = vcombine.high %v6183_v33, %v6183_v33  ;;  %v18247_v12 = vrot.slane %v5389_v55, %v21953_v54 }
 0x4d4   : > { %v9165_v10 = vadd.f32 %v9037_v62, %v18025_v59  ;;  %13139 = vst [vmem:[%s17453_s28 + $0x8] sm:$0xff] %v12907_v19   ;;  %13147 = vst [vmem:[%s17453_s28 + $0x48] sm:$0xff] %v12947_v52   ;;  %v18253_v28 = vrot.slane %v6183_v33, %v21953_v54  ;;  %v18257_v50 = vmul.f32 %v18214_v22, %v22224_v47  ;;  %7085 = vrot.lane.b32.xlu1 %v18200_v61, %s13981_s19  ;;  %v18262_v17 = vpop.permute.xlu0 %7035  ;;  %v22226_v62 = vld [vmem:[#allocation103_spill] sm:$0xff]  ;;  %v22227_v33 = vld [vmem:[#allocation106_spill] sm:$0xff] }
 0x4d5   : > { %v5381_v20 = vrot.slane %v5359_v45, %v16712_v24  ;;  %v18266_v55 = vcombine.high %v22220_v40, %v21722_v8  ;;  %v6159_v59 = vcombine.high %v6155_v32, %v6155_v32  ;;  %v22228_v19 = vcombine.low %v22226_v62, %v22227_v33  ;;  %v7030_v48 = vpop.permute.xlu1 %7029 }
 0x4d6   : > { %v6175_v18 = vcombine.high %v18177_v1, %v18177_v1  ;;  %v9163_v45 = vadd.f32 %v9035_v11, %v17973_v34  ;;  %v9038_v47 = vmul.f32 %v18139_v29, %v7026_v57  ;;  %v18279_v61 = vrot.slane %v6155_v32, %v21953_v54  ;;  %v22232_v34 = vld [vmem:[#allocation68_spill] sm:$0xff] }
 0x4d7   : > { %22225 = vst [vmem:[#allocation74_spill] sm:$0xff] %v18266_v55  ;;  %v18272_v52 = vrot.slane %v22228_v19, %v15029_v5  ;;  %v18282_v40 = vrot.slane %v5343_v6, %v21953_v54  ;;  %v18286_v63 = vmul.f32 %v18244_v26, %v22230_v37  ;;  %v22231_v19 = vld [vmem:[#allocation101_spill] sm:$0xff]  ;;  %v18291_v1 = vrot.slane %v6205_v2, %v21953_v54 }
 0x4d8   : > { %6831 = vrot.lane.b32.xlu0 %v22231_v19, %s13981_s19  ;;  %v18295_v57 = vmul.f32 %v18247_v12, %v22232_v34  ;;  %v18299_v32 = vcombine.high %v22223_v39, %v21722_v8  ;;  %v10419_v6 = vcombine.low %v9163_v45, %v9165_v10  ;;  %v8651_v37 = vmul.f32 %v17970_v53, %v18126_v14  ;;  %v18309_v34 = vpop.permute.xlu0 %7039  ;;  %v22235_v39 = vld [vmem:[#allocation104_spill] sm:$0xff] }
 0x4d9   : > { %22229 = vst [vmem:[#allocation90_spill] sm:$0xff] %v18272_v52  ;;  %v9036_v11 = vmul.f32 %v18089_v60, %v18134_v15  ;;  %v5391_v58 = vcombine.high %v5381_v20, %v5381_v20  ;;  %v8653_v2 = vmul.f32 %v18003_v3, %v18155_v31  ;;  %7089 = vrot.lane.b32.xlu1 %v18266_v55, %s13981_s19  ;;  %v22234_v15 = vld [vmem:[#allocation71_spill] sm:$0xff]  ;;  %v7034_v55 = vpop.permute.xlu1 %7033 }
 0x4da   : > { %22233 = vst [vmem:[#allocation102_spill] sm:$0xff] %v18299_v32  ;;  %v18312_v0 = vrot.slane %v6159_v59, %v21953_v54  ;;  %v6197_v10 = vrot.slane %v6175_v18, %v16712_v24  ;;  %v5344_v53 = vcombine.high %v18119_v21, %v18119_v21  ;;  %v9166_v14 = vadd.f32 %v9038_v47, %v18147_v13  ;;  %v22239_v18 = vld [vmem:[#allocation94_spill] sm:$0xff] }
 0x4db   : > { %v8914_v45 = vmul.f32 %v18282_v40, %v22234_v15  ;;  %v18322_v3 = vmul.f32 %v18182_v4, %v22235_v39  ;;  %v18325_v31 = vrot.slane %v5381_v20, %v21953_v54  ;;  %v22236_v21 = vcombine.high %v22226_v62, %v22227_v33 }
 0x4dc   : > { %7091 = vrot.lane.b32.xlu0 %v18272_v52, %s13981_s19  ;;  %v18337_v13 = vcombine.high %v22231_v19, %v21722_v8  ;;  %v18341_v4 = vmul.f32 %v18196_v9, %v22239_v18  ;;  %v6207_v39 = vcombine.high %v6197_v10, %v6197_v10  ;;  %v18344_v20 = vrot.slane %v10419_v6, %v15005_v25  ;;  %v18355_v9 = vpop.permute.xlu0 %6771 }
 0x4dd   : > { %v18333_v59 = vrot.slane %v22236_v21, %v15029_v5  ;;  %v8779_v47 = vadd.f32 %v8651_v37, %v18028_v16  ;;  %v9164_v15 = vadd.f32 %v9036_v11, %v18107_v27  ;;  %v18349_v62 = vrot.slane %v5391_v58, %v21953_v54  ;;  %6829 = vrot.lane.b32.xlu1 %v18299_v32, %s13981_s19  ;;  %v18371_v37 = vpop.permute.xlu1 %7037  ;;  %v22242_v11 = vld [vmem:[#allocation70_spill] sm:$0xff] }
 0x4de   : > { %22238 = vst [vmem:[#allocation86_spill] sm:$0xff] %v18337_v13  ;;  %v8781_v33 = vadd.f32 %v8653_v2, %v18075_v44  ;;  %v8654_v21 = vmul.f32 %v18139_v29, %v6770_v30  ;;  %v5358_v18 = vrot.slane %v5344_v53, %v16712_v24  ;;  %v6160_v6 = vcombine.high %v18150_v56, %v18150_v56  ;;  %v22240_v44 = vld [vmem:[#allocation93_spill] sm:$0xff] }
 0x4df   : > { %22237 = vst [vmem:[#allocation82_spill] sm:$0xff] %v18333_v59  ;;  %v10427_v16 = vcombine.low %v9164_v15, %v9166_v14  ;;  %v9041_v27 = vmul.f32 %v18230_v46, %v18232_v41  ;;  %v18363_v58 = vrot.slane %v6197_v10, %v21953_v54  ;;  %v18367_v30 = vmul.f32 %v18325_v31, %v22240_v44  ;;  %v22244_v14 = vld [vmem:[#allocation117_spill] sm:$0xff] }
 0x4e0   : > { %v8652_v29 = vmul.f32 %v18089_v60, %v18207_v51  ;;  %7095 = vrot.lane.b32.xlu0 %v18333_v59, %s13981_s19  ;;  %v18376_v56 = vrot.slane %v6207_v39, %v21953_v54  ;;  %v18380_v41 = vcombine.high %v18272_v52, %v21722_v8  ;;  %v18384_v2 = vmul.f32 %v18214_v22, %v22242_v11  ;;  %v22243_v51 = vld [vmem:[#allocation97_spill] sm:$0xff]  ;;  %v6776_v22 = vpop.permute.xlu0 %6775 }
 0x4e1   : > { %v9039_v10 = vmul.f32 %v18221_v36, %v18193_v42  ;;  %v9042_v60 = vmul.f32 %v18312_v0, %v7034_v55  ;;  %v18391_v53 = vmul.f32 %v18349_v62, %v22243_v51  ;;  %v18395_v39 = vmul.f32 %v18244_v26, %v22244_v14  ;;  %6833 = vrot.lane.b32.xlu1 %v18337_v13, %s13981_s19 }
 0x4e2   : > { %22241 = vst [vmem:[#allocation51_spill] sm:$0xff] %v18380_v41  ;;  %v9459_v15 = vcombine.low %v8779_v47, %v8781_v33  ;;  %v8782_v44 = vadd.f32 %v8654_v21, %v18189_v49  ;;  %v5374_v11 = vrot.slane %v5358_v18, %v16712_v24  ;;  %v18402_v42 = vrot.slane %v6160_v6, %v16712_v24  ;;  %v18412_v47 = vpop.permute.xlu1 %7041  ;;  %v22246_v33 = vld [vmem:[#allocation109_spill] sm:$0xff]  ;;  %v22247_v21 = vld [vmem:[#allocation67_spill] sm:$0xff] }
 0x4e3   : > { %v10434_v55 = vrot.slane %v10427_v16, %v15005_v25  ;;  %v9169_v51 = vadd.f32 %v9041_v27, %v18239_v38  ;;  %v9040_v52 = vmul.f32 %v18279_v61, %v7030_v48  ;;  %v18409_v26 = vcombine.high %v18333_v59, %v21722_v8  ;;  %v22248_v16 = vld [vmem:[#allocation66_spill] sm:$0xff]  ;;  %v22249_v48 = vld [vmem:[#allocation99_spill] sm:$0xff]  ;;  %v22250_v27 = vld [vmem:[#allocation105_spill] sm:$0xff] }
 0x4e4   : > { %v8780_v49 = vadd.f32 %v8652_v29, %v18171_v7  ;;  %7099 = vrot.lane.b32.xlu0 %v22246_v33, %s13981_s19  ;;  %v18418_v6 = vmul.f32 %v18247_v12, %v22247_v21  ;;  %v18422_v38 = vmul.f32 %v18282_v40, %v22248_v16  ;;  %v22251_v14 = vcombine.low %v22249_v48, %v22250_v27  ;;  %v18440_v40 = vpop.permute.xlu0 %6779 }
 0x4e5   : > { %22245 = vst [vmem:[#allocation42_spill] sm:$0xff] %v18409_v26  ;;  %v9167_v7 = vadd.f32 %v9039_v10, %v18225_v35  ;;  %v9170_v29 = vadd.f32 %v9042_v60, %v8914_v45  ;;  %v18433_v13 = vcombine.high %v22246_v33, %v21722_v8  ;;  %v5360_v32 = vcombine.high %v5358_v18, %v5358_v18 }
 0x4e6   : > { %v18428_v59 = vrot.slane %v22251_v14, %v15029_v5  ;;  %v18436_v12 = vrot.slane %v9459_v15, %v15005_v25  ;;  %v9467_v21 = vcombine.low %v8780_v49, %v8782_v44  ;;  %7093 = vrot.lane.b32.xlu1 %v18380_v41, %s13981_s19  ;;  %v6190_v16 = vrot.slane %v18402_v42, %v16712_v24  ;;  %v18450_v15 = vpop.permute.xlu1 %6773  ;;  %v22254_v44 = vld [vmem:[#allocation111_spill] sm:$0xff]  ;;  %v22255_v41 = vld [vmem:[#allocation132_spill] sm:$0xff] }
 0x4e7   : > { %22253 = vst [vmem:[#allocation195_spill] sm:$0xff] %v18433_v13  ;;  %v5390_v14 = vcombine.high %v5374_v11, %v5374_v11  ;;  %v10451_v35 = vcombine.low %v18344_v20, %v10434_v55  ;;  %v10435_v45 = vcombine.low %v9167_v7, %v9169_v51  ;;  %v9168_v10 = vadd.f32 %v9040_v52, %v18286_v63  ;;  %v22259_v7 = vld [vmem:[#allocation149_spill] sm:$0xff] }
 0x4e8   : > { %22252 = vst [vmem:[#allocation194_spill] sm:$0xff] %v18428_v59  ;;  %v9045_v18 = vmul.f32 %v18291_v1, %v18309_v34  ;;  %v9043_v60 = vmul.f32 %v18253_v28, %v18262_v17  ;;  %7103 = vrot.lane.b32.xlu0 %v22254_v44, %s13981_s19  ;;  %v7390_v49 = vrot.slane %v5374_v11, %v21953_v54 }
 0x4e9   : > { %v18457_v20 = vmul.f32 %v18325_v31, %v22255_v41  ;;  %v6206_v55 = vcombine.high %v6190_v16, %v6190_v16  ;;  %v10443_v63 = vcombine.low %v9168_v10, %v9170_v29  ;;  %v22256_v52 = vcombine.high %v22249_v48, %v22250_v27  ;;  %v18473_v31 = vpop.permute.xlu0 %6783  ;;  %v18483_v29 = vld [vmem:[%s14477_s27 + $0x30] sm:$0xff] }
 0x4ea   : > { %v18467_v17 = vcombine.high %v22254_v44, %v21722_v8  ;;  %v5388_v51 = vrot.slane %v5360_v32, %v16712_v24  ;;  %v9474_v11 = vrot.slane %v9467_v21, %v15005_v25  ;;  %7097 = vrot.lane.b32.xlu1 %v18409_v26, %s13981_s19  ;;  %v7398_v41 = vrot.slane %v5390_v14, %v21953_v54  ;;  %v22266_v44 = vld [vmem:[#allocation133_spill] sm:$0xff] }
 0x4eb   : > { %v18463_v34 = vrot.slane %v22256_v52, %v15029_v5  ;;  %v18478_v48 = vmul.f32 %v18349_v62, %v22259_v7  ;;  %v6176_v27 = vcombine.high %v18402_v42, %v18402_v42  ;;  %22260 = vst [vmem:[#allocation50_spill] sm:$0xff] %v18483_v29  ;;  %v18486_v32 = vrot.slane %v10451_v35, %v15029_v5  ;;  %v6778_v62 = vpop.permute.xlu1 %6777  ;;  %v22261_v42 = vld [vmem:[#allocation115_spill] sm:$0xff] }
 0x4ec   : > { %22258 = vst [vmem:[#allocation96_spill] sm:$0xff] %v18467_v17  ;;  %v10442_v21 = vrot.slane %v10435_v45, %v15005_v25  ;;  %v9173_v10 = vadd.f32 %v9045_v18, %v18295_v57  ;;  %v18491_v52 = vrot.slane %v6190_v16, %v21953_v54  ;;  %v9171_v14 = vadd.f32 %v9043_v60, %v18257_v50  ;;  %v22263_v16 = vld [vmem:[#allocation180_spill] sm:$0xff] }
 0x4ed   : > { %22257 = vst [vmem:[#allocation92_spill] sm:$0xff] %v18463_v34  ;;  %6835 = vrot.lane.b32.xlu0 %v18428_v59, %s13981_s19  ;;  %v18497_v7 = vmul.f32 %v7390_v49, %v22261_v42  ;;  %v18500_v26 = vrot.slane %v6206_v55, %v21953_v54  ;;  %v18504_v35 = vcombine.high %v18428_v59, %v21722_v8  ;;  %v18515_v60 = vld [vmem:[%s14484_s25 + $0x30] sm:$0xff]  ;;  %v7044_v59 = vpop.permute.xlu0 %7043 }
 0x4ee   : > { %v10450_v57 = vrot.slane %v10443_v63, %v15005_v25  ;;  %v18508_v45 = vmul.f32 %v7390_v49, %v22263_v16  ;;  %v5392_v50 = vcombine.high %v5388_v51, %v5388_v51  ;;  %v18512_v18 = vrot.slane %v18483_v29, %v16712_v24  ;;  %22265 = vst [vmem:[#allocation196_spill] sm:$0xff] %v18515_v60 }
 0x4ef   : > { %22262 = vst [vmem:[#allocation43_spill] sm:$0xff] %v18504_v35  ;;  %v9491_v42 = vcombine.low %v18436_v12, %v9474_v11  ;;  %v8657_v55 = vmul.f32 %v18230_v46, %v6776_v22  ;;  %7101 = vrot.lane.b32.xlu1 %v18433_v13, %s13981_s19  ;;  %v18522_v63 = vmul.f32 %v7398_v41, %v22266_v44  ;;  %v6782_v22 = vpop.permute.xlu1 %6781  ;;  %v22268_v44 = vld [vmem:[#allocation119_spill] sm:$0xff]  ;;  %v22271_v13 = vld [vmem:[#allocation110_spill] sm:$0xff] }
 0x4f0   : > { %22264 = vst [vmem:[#allocation192_spill] sm:$0xff] %v18508_v45  ;;  %v6204_v49 = vrot.slane %v6176_v27, %v16712_v24  ;;  %v10469_v16 = vcombine.low %v9171_v14, %v9173_v10  ;;  %v8655_v33 = vmul.f32 %v18221_v36, %v18355_v9  ;;  %v7394_v19 = vrot.slane %v5388_v51, %v21953_v54  ;;  %v22279_v45 = vld [vmem:[#allocation130_spill] sm:$0xff] }
 0x4f1   : > { %v18530_v12 = vcombine.high %v18463_v34, %v21722_v8  ;;  %v9044_v46 = vmul.f32 %v18363_v58, %v18371_v37  ;;  %6839 = vrot.lane.b32.xlu0 %v18463_v34, %s13981_s19  ;;  %v18537_v11 = vmul.f32 %v7398_v41, %v22268_v44  ;;  %v18541_v36 = vrot.slane %v18515_v60, %v16712_v24  ;;  %v7048_v44 = vpop.permute.xlu0 %7047 }
 0x4f2   : > { %v6208_v27 = vcombine.high %v6204_v49, %v6204_v49  ;;  %v10459_v9 = vcombine.low %v10442_v21, %v10450_v57  ;;  %v9046_v51 = vmul.f32 %v18376_v56, %v18412_v47  ;;  %v7402_v10 = vrot.slane %v5392_v50, %v21953_v54  ;;  %v22272_v21 = vld [vmem:[#allocation114_spill] sm:$0xff]  ;;  %v22275_v47 = vld [vmem:[#allocation193_spill] sm:$0xff] }
 0x4f3   : > { %22267 = vst [vmem:[#allocation60_spill] sm:$0xff] %v18530_v12  ;;  %22269 = vst [vmem:[#allocation63_spill] sm:$0xff] %v18537_v11  ;;  %v5416_v37 = vrot.slane %v18512_v18, %v16712_v24  ;;  %v18549_v14 = vrot.slane %v9491_v42, %v15029_v5  ;;  %v8785_v41 = vadd.f32 %v8657_v55, %v18341_v4  ;;  %7105 = vrot.lane.b32.xlu1 %v18467_v17, %s13981_s19  ;;  %v22277_v55 = vld [vmem:[#allocation69_spill] sm:$0xff] }
 0x4f4   : > { %v22273_v57 = vcombine.low %v22271_v13, %v22272_v21  ;;  %v18562_v50 = vcombine.high %v22275_v47, %v21722_v8  ;;  %v18565_v23 = vrot.slane %v10469_v16, %v15005_v25  ;;  %v8783_v42 = vadd.f32 %v8655_v33, %v18322_v3 }
 0x4f5   : > { %22270 = vst [vmem:[#allocation44_spill] sm:$0xff] %v18549_v14  ;;  %v18569_v4 = vrot.slane %v6204_v49, %v21953_v54  ;;  %v8920_v17 = vmul.f32 %v7394_v19, %v22277_v55  ;;  %v9172_v43 = vadd.f32 %v9044_v46, %v18367_v30  ;;  %v6786_v14 = vpop.permute.xlu1 %6785  ;;  %6843 = vrot.lane.b32.xlu0 %v22275_v47, %s13981_s19  ;;  %v22278_v49 = vld [vmem:[#allocation124_spill] sm:$0xff] }
 0x4f6   : > { %v18558_v34 = vrot.slane %v22273_v57, %v15029_v5  ;;  %22276 = vst [vmem:[#allocation95_spill] sm:$0xff] %v18562_v50  ;;  %v18576_v57 = vrot.slane %v6208_v27, %v21953_v54  ;;  %v6232_v16 = vrot.slane %v18541_v36, %v16712_v24  ;;  %v18581_v60 = vrot.slane %v5416_v37, %v21953_v54  ;;  %v6788_v27 = vpop.permute.xlu0 %6787 }
 0x4f7   : > { %v18584_v3 = vrot.slane %v10459_v9, %v15029_v5  ;;  %v9174_v33 = vadd.f32 %v9046_v51, %v18391_v53  ;;  %v8922_v30 = vmul.f32 %v7402_v10, %v22278_v49  ;;  %v5438_v46 = vcombine.high %v5416_v37, %v5416_v37  ;;  %6837 = vrot.lane.b32.xlu1 %v18504_v35, %s13981_s19 }
 0x4f8   : > { %22274 = vst [vmem:[#allocation88_spill] sm:$0xff] %v18558_v34  ;;  %v9475_v55 = vcombine.low %v8783_v42, %v8785_v41  ;;  %v8658_v47 = vmul.f32 %v18312_v0, %v6778_v62  ;;  %v18592_v11 = vmul.f32 %v7394_v19, %v22279_v45  ;;  %v22280_v9 = vcombine.high %v22271_v13, %v22272_v21  ;;  %v22282_v0 = vld [vmem:[#allocation62_spill] sm:$0xff]  ;;  %v22284_v41 = vld [vmem:[#allocation84_spill] sm:$0xff] }
 0x4f9   : > { %v8659_v53 = vmul.f32 %v18253_v28, %v18440_v40  ;;  %v9049_v51 = vmul.f32 %v18500_v26, %v7048_v44  ;;  %v18605_v62 = vcombine.high %v22282_v0, %v21722_v8  ;;  %v6254_v37 = vcombine.high %v6232_v16, %v6232_v16  ;;  %v7046_v45 = vpop.permute.xlu1 %7045  ;;  %6847 = vrot.lane.b32.xlu0 %v22282_v0, %s13981_s19  ;;  %v22285_v40 = vld [vmem:[#allocation139_spill] sm:$0xff] }
 0x4fa   : > { %v18598_v29 = vrot.slane %v22280_v9, %v15029_v5  ;;  %v8656_v19 = vmul.f32 %v18279_v61, %v18450_v15  ;;  %v18612_v13 = vrot.slane %v6232_v16, %v21953_v54  ;;  %v18616_v28 = vmul.f32 %v18581_v60, %v22284_v41  ;;  %v6792_v41 = vpop.permute.xlu0 %6791 }
 0x4fb   : > { %22283 = vst [vmem:[#allocation55_spill] sm:$0xff] %v18605_v62  ;;  %v18619_v44 = vmul.f32 %v7402_v10, %v22285_v40  ;;  %v10467_v21 = vcombine.low %v18486_v32, %v18584_v3  ;;  %v10477_v42 = vcombine.low %v9172_v43, %v9174_v33  ;;  %v9047_v61 = vmul.f32 %v18491_v52, %v7044_v59 }
 0x4fc   : > { %22281 = vst [vmem:[#allocation57_spill] sm:$0xff] %v18598_v29  ;;  %v18625_v15 = vrot.slane %v5438_v46, %v21953_v54  ;;  %v10468_v16 = vcombine.high %v18486_v32, %v18584_v3  ;;  %v18630_v49 = vrot.slane %v9475_v55, %v15005_v25  ;;  %v8786_v9 = vadd.f32 %v8658_v47, %v18422_v38 }
 0x4fd   : > { %v8662_v10 = vmul.f32 %v18376_v56, %v6786_v14  ;;  %6841 = vrot.lane.b32.xlu1 %v18530_v12, %s13981_s19  ;;  %v18637_v43 = vadd.f32 %v8659_v53, %v18384_v2  ;;  %v9177_v59 = vadd.f32 %v9049_v51, %v18522_v63  ;;  %v9048_v33 = vmul.f32 %v18569_v4, %v7046_v45  ;;  %v7050_v14 = vpop.permute.xlu1 %7049  ;;  %v22286_v51 = vld [vmem:[#allocation79_spill] sm:$0xff]  ;;  %v22361_v12 = vld [vmem:[#allocation48_spill] sm:$0xff] }
 0x4fe   : > { %v18642_v46 = vrot.slane %v6254_v37, %v21953_v54  ;;  %v8784_v55 = vadd.f32 %v8656_v19, %v18395_v39  ;;  %v8661_v38 = vmul.f32 %v18291_v1, %v18473_v31  ;;  %v8660_v56 = vmul.f32 %v18363_v58, %v6782_v22  ;;  %7107 = vrot.lane.b32.xlu0 %v18558_v34, %s13981_s19  ;;  %v18662_v31 = vpop.permute.xlu0 %7051  ;;  %v22288_v22 = vld [vmem:[#allocation116_spill] sm:$0xff] }
 0x4ff   : > { %v5408_v2 = vcombine.high %v18512_v18, %v18512_v18  ;;  %v10484_v63 = vrot.slane %v10477_v42, %v15005_v25  ;;  %v9175_v47 = vadd.f32 %v9047_v61, %v18497_v7  ;;  %v9050_v53 = vmul.f32 %v18576_v57, %v7050_v14  ;;  %v22287_v18 = vld [vmem:[#allocation108_spill] sm:$0xff] }
 0x500   : > { %v18657_v39 = vmul.f32 %v18625_v15, %v22286_v51  ;;  %v9483_v1 = vcombine.low %v8784_v55, %v8786_v9  ;;  %v8790_v58 = vadd.f32 %v8662_v10, %v18478_v48  ;;  %v22289_v37 = vcombine.low %v22287_v18, %v22288_v22 }
 0x501   : > { %6845 = vrot.lane.b32.xlu1 %v18562_v50, %s13981_s19  ;;  %v18672_v7 = vcombine.high %v18558_v34, %v21722_v8  ;;  %v10485_v45 = vcombine.low %v9175_v47, %v9177_v59  ;;  %v9176_v40 = vadd.f32 %v9048_v33, %v8920_v17  ;;  %v8665_v42 = vmul.f32 %v18500_v26, %v6792_v41  ;;  %v6790_v10 = vpop.permute.xlu1 %6789  ;;  %v22292_v26 = vld [vmem:[#allocation78_spill] sm:$0xff]  ;;  %v22296_v33 = vld [vmem:[#allocation63_spill] sm:$0xff] }
 0x502   : > { %v18668_v19 = vrot.slane %v22289_v37, %v15029_v5  ;;  %v9178_v48 = vadd.f32 %v9050_v53, %v8922_v30  ;;  %v8789_v61 = vadd.f32 %v8661_v38, %v18418_v6  ;;  %v8788_v9 = vadd.f32 %v8660_v56, %v18457_v20  ;;  %7111 = vrot.lane.b32.xlu0 %v18598_v29, %s13981_s19  ;;  %v18691_v41 = vpop.permute.xlu0 %7055 }
 0x503   : > { %22291 = vst [vmem:[#allocation175_spill] sm:$0xff] %v18672_v7  ;;  %v5430_v55 = vrot.slane %v5408_v2, %v16712_v24  ;;  %v6224_v14 = vcombine.high %v18541_v36, %v18541_v36  ;;  %v10501_v51 = vcombine.low %v18565_v23, %v10484_v63  ;;  %v8663_v17 = vmul.f32 %v18491_v52, %v6788_v27  ;;  %v22295_v52 = vld [vmem:[#allocation50_spill] sm:$0xff] }
 0x504   : > { %22290 = vst [vmem:[#allocation153_spill] sm:$0xff] %v18668_v19  ;;  %v10493_v59 = vcombine.low %v9176_v40, %v9178_v48  ;;  %v18686_v30 = vmul.f32 %v18581_v60, %v22292_v26  ;;  %v9490_v6 = vrot.slane %v9483_v1, %v15005_v25  ;;  %v9517_v20 = vcombine.low %v8788_v9, %v8790_v58 }
 0x505   : > { %6849 = vrot.lane.b32.xlu1 %v18605_v62, %s13981_s19  ;;  %v22293_v36 = vcombine.high %v22287_v18, %v22288_v22  ;;  %v5393_v27 = vcombine.high %v22295_v52, %v22295_v52  ;;  %v10492_v60 = vrot.slane %v10485_v45, %v15005_v25  ;;  %v8793_v38 = vadd.f32 %v8665_v42, %v22296_v33  ;;  %v6794_v47 = vpop.permute.xlu1 %6793  ;;  %v22298_v18 = vld [vmem:[#allocation192_spill] sm:$0xff] }
 0x506   : > { %v10500_v56 = vrot.slane %v10493_v59, %v15005_v25  ;;  %v8664_v2 = vmul.f32 %v18569_v4, %v6790_v10  ;;  %v9509_v63 = vcombine.low %v18637_v43, %v8789_v61  ;;  %6851 = vrot.lane.b32.xlu0 %v18668_v19, %s13981_s19  ;;  %v6246_v53 = vrot.slane %v6224_v14, %v16712_v24  ;;  %v22299_v4 = vld [vmem:[#allocation196_spill] sm:$0xff]  ;;  %v18722_v61 = vpop.permute.xlu0 %6795 }
 0x507   : > { %v18697_v23 = vrot.slane %v22293_v36, %v15029_v5  ;;  %v18711_v1 = vcombine.high %v18598_v29, %v21722_v8  ;;  %v5440_v58 = vcombine.high %v5430_v55, %v5430_v55  ;;  %v8791_v22 = vadd.f32 %v8663_v17, %v22298_v18 }
 0x508   : > { %v10509_v37 = vcombine.low %v10492_v60, %v10500_v56  ;;  %v8666_v45 = vmul.f32 %v18576_v57, %v6794_v47  ;;  %v6209_v43 = vcombine.high %v22299_v4, %v22299_v4  ;;  %v10508_v40 = vrot.slane %v10501_v51, %v15029_v5  ;;  %v18729_v51 = vld [vmem:[%s14477_s27 + $0x38] sm:$0xff] }
 0x509   : > { %22294 = vst [vmem:[#allocation58_spill] sm:$0xff] %v18697_v23  ;;  %22297 = vst [vmem:[#allocation185_spill] sm:$0xff] %v18711_v1  ;;  %v9499_v42 = vcombine.low %v18630_v49, %v9490_v6  ;;  %v9524_v48 = vrot.slane %v9517_v20, %v15005_v25  ;;  %7109 = vrot.lane.b32.xlu1 %v18672_v7, %s13981_s19  ;;  %v5407_v9 = vrot.slane %v5393_v27, %v16712_v24  ;;  %v18733_v26 = vpop.permute.xlu1 %7053  ;;  %v22301_v4 = vld [vmem:[#allocation121_spill] sm:$0xff] }
 0x50a   : > { %v9525_v10 = vcombine.low %v8791_v22, %v8793_v38  ;;  %v10516_v57 = vrot.slane %v10509_v37, %v15029_v5  ;;  %v8792_v14 = vadd.f32 %v8664_v2, %v18592_v11  ;;  %v8794_v17 = vadd.f32 %v8666_v45, %v18619_v44  ;;  %6855 = vrot.lane.b32.xlu0 %v18697_v23, %s13981_s19  ;;  %v18742_v44 = vld [vmem:[%s14484_s25 + $0x38] sm:$0xff]  ;;  %v18747_v33 = vpop.permute.xlu0 %6799 }
 0x50b   : > { %v9516_v49 = vrot.slane %v9509_v63, %v15005_v25  ;;  %v7410_v59 = vrot.slane %v5430_v55, %v21953_v54  ;;  %v6256_v6 = vcombine.high %v6246_v53, %v6246_v53  ;;  %v7418_v20 = vrot.slane %v5440_v58, %v21953_v54  ;;  %v22300_v22 = vld [vmem:[#allocation80_spill] sm:$0xff] }
 0x50c   : > { %v10517_v36 = vcombine.low %v10508_v40, %v10516_v57  ;;  %v10518_v52 = vcombine.high %v10508_v40, %v10516_v57  ;;  %v9533_v27 = vcombine.low %v8792_v14, %v8794_v17  ;;  %v18739_v11 = vrot.slane %v6209_v43, %v16712_v24  ;;  %v22304_v40 = vld [vmem:[#allocation147_spill] sm:$0xff]  ;;  %v22306_v17 = vld [vmem:[#allocation44_spill] sm:$0xff] }
 0x50d   : > { %v9506_v60 = vrot.slane %v9499_v42, %v15029_v5  ;;  %v9541_v55 = vcombine.low %v9516_v49, %v9524_v48  ;;  %7113 = vrot.lane.b32.xlu1 %v18711_v1, %s13981_s19  ;;  %v5423_v38 = vrot.slane %v5407_v9, %v16712_v24  ;;  %v18752_v56 = vrot.slane %v18729_v51, %v16712_v24  ;;  %v7058_v45 = vpop.permute.xlu1 %7057 }
 0x50e   : > { %v9532_v2 = vrot.slane %v9525_v10, %v15005_v25  ;;  %v12992_v63 = vpack.c.bf16 %v10517_v36, %v10467_v21  ;;  %v13032_v47 = vpack.c.bf16 %v10518_v52, %v10468_v16  ;;  %v9540_v58 = vrot.slane %v9533_v27, %v15005_v25  ;;  %7115 = vrot.lane.b32.xlu0 %v22301_v4, %s13981_s19  ;;  %v22303_v16 = vld [vmem:[#allocation141_spill] sm:$0xff]  ;;  %v18794_v10 = vpop.permute.xlu0 %7059 }
 0x50f   : > { %v18763_v18 = vrot.slane %v6246_v53, %v21953_v54  ;;  %v18767_v37 = vmul.f32 %v18625_v15, %v22300_v22  ;;  %v18773_v21 = vcombine.high %v18668_v19, %v21722_v8  ;;  %v18777_v32 = vrot.slane %v18742_v44, %v16712_v24 }
 0x510   : > { %13155 = vst [vmem:[%s17404_s8 + $0x10] sm:$0xff] %v12992_v63   ;;  %13163 = vst [vmem:[%s17404_s8 + $0x50] sm:$0xff] %v13032_v47   ;;  %v9549_v3 = vcombine.low %v9532_v2, %v9540_v58  ;;  %v18782_v53 = vmul.f32 %v7410_v59, %v22303_v16  ;;  %v18785_v15 = vrot.slane %v6256_v6, %v21953_v54  ;;  %v22307_v63 = vld [vmem:[#allocation112_spill] sm:$0xff] }
 0x511   : > { %22302 = vst [vmem:[#allocation181_spill] sm:$0xff] %v18773_v21  ;;  %v5409_v43 = vcombine.high %v5407_v9, %v5407_v9  ;;  %v18788_v42 = vmul.f32 %v7418_v20, %v22304_v40  ;;  %6853 = vrot.lane.b32.xlu1 %v18773_v21, %s13981_s19  ;;  %v6239_v48 = vrot.slane %v18739_v11, %v16712_v24  ;;  %v18809_v2 = vpop.permute.xlu1 %6797  ;;  %v22309_v21 = vld [vmem:[#allocation164_spill] sm:$0xff] }
 0x512   : > { %v18798_v57 = vcombine.high %v18697_v23, %v21722_v8  ;;  %v5439_v14 = vcombine.high %v5423_v38, %v5423_v38  ;;  %v9507_v49 = vcombine.low %v22306_v17, %v9506_v60  ;;  %v9548_v9 = vrot.slane %v9541_v55, %v15029_v5  ;;  %7119 = vrot.lane.b32.xlu0 %v22307_v63, %s13981_s19 }
 0x513   : > { %v9556_v6 = vrot.slane %v9549_v3, %v15029_v5  ;;  %v5465_v36 = vrot.slane %v18752_v56, %v16712_v24  ;;  %v9508_v52 = vcombine.high %v22306_v17, %v9506_v60  ;;  %v18807_v27 = vrot.slane %v5423_v38, %v21953_v54  ;;  %v22308_v60 = vld [vmem:[#allocation146_spill] sm:$0xff]  ;;  %v18827_v17 = vpop.permute.xlu0 %7063 }
 0x514   : > { %22305 = vst [vmem:[#allocation169_spill] sm:$0xff] %v18798_v57  ;;  %v6255_v47 = vcombine.high %v6239_v48, %v6239_v48  ;;  %v6281_v58 = vrot.slane %v18777_v32, %v16712_v24  ;;  %v5437_v16 = vrot.slane %v5409_v43, %v16712_v24  ;;  %v18820_v40 = vmul.f32 %v7410_v59, %v22308_v60 }
 0x515   : > { %v9557_v55 = vcombine.low %v9548_v9, %v9556_v6  ;;  %v9558_v22 = vcombine.high %v9548_v9, %v9556_v6  ;;  %v18816_v3 = vrot.slane %v5465_v36, %v21953_v54  ;;  %6857 = vrot.lane.b32.xlu1 %v18798_v57, %s13981_s19  ;;  %v18825_v38 = vrot.slane %v5439_v14, %v21953_v54  ;;  %v22310_v14 = vld [vmem:[#allocation148_spill] sm:$0xff] }
 0x516   : > { %v18830_v9 = vmul.f32 %v7418_v20, %v22309_v21  ;;  %v6225_v6 = vcombine.high %v18739_v11, %v18739_v11  ;;  %v9053_v59 = vmul.f32 %v18642_v46, %v18691_v41  ;;  %v5487_v1 = vcombine.high %v5465_v36, %v5465_v36  ;;  %v6802_v20 = vpop.permute.xlu1 %6801  ;;  %v22311_v21 = vld [vmem:[#allocation142_spill] sm:$0xff] }
 0x517   : > { %v12912_v43 = vpack.c.bf16 %v9557_v55, %v9507_v49  ;;  %v12952_v60 = vpack.c.bf16 %v9558_v22, %v9508_v52  ;;  %v18837_v57 = vrot.slane %v6239_v48, %v21953_v54  ;;  %v18841_v7 = vmul.f32 %v18807_v27, %v22310_v14  ;;  %6859 = vrot.lane.b32.xlu0 %v22311_v21, %s13981_s19  ;;  %v22313_v49 = vld [vmem:[#allocation89_spill] sm:$0xff]  ;;  %v18869_v22 = vpop.permute.xlu0 %7067 }
 0x518   : > { %v18844_v23 = vrot.slane %v6255_v47, %v21953_v54  ;;  %v18850_v41 = vcombine.high %v22301_v4, %v21722_v8  ;;  %v9051_v11 = vmul.f32 %v18612_v13, %v18662_v31  ;;  %v18857_v48 = vrot.slane %v6281_v58, %v21953_v54  ;;  %v22314_v47 = vld [vmem:[#allocation162_spill] sm:$0xff] }
 0x519   : > { %13140 = vst [vmem:[%s17453_s28 + $0x10] sm:$0xff] %v12912_v43   ;;  %13148 = vst [vmem:[%s17453_s28 + $0x50] sm:$0xff] %v12952_v60   ;;  %v18861_v36 = vmul.f32 %v18816_v3, %v22313_v49  ;;  %v5441_v52 = vcombine.high %v5437_v16, %v5437_v16  ;;  %v18865_v55 = vmul.f32 %v18825_v38, %v22314_v47 }
 0x51a   : > { %22312 = vst [vmem:[#allocation46_spill] sm:$0xff] %v18850_v41  ;;  %7117 = vrot.lane.b32.xlu1 %v18850_v41, %s13981_s19  ;;  %v6253_v31 = vrot.slane %v6225_v6, %v16712_v24  ;;  %v18873_v43 = vrot.slane %v5437_v16, %v21953_v54  ;;  %v5457_v60 = vcombine.high %v18752_v56, %v18752_v56  ;;  %v7062_v29 = vpop.permute.xlu1 %7061  ;;  %v22315_v6 = vld [vmem:[#allocation59_spill] sm:$0xff] }
 0x51b   : > { %v9181_v14 = vadd.f32 %v9053_v59, %v18657_v39  ;;  %v9054_v49 = vmul.f32 %v18785_v15, %v7058_v45  ;;  %v6303_v4 = vcombine.high %v6281_v58, %v6281_v58  ;;  %v18880_v47 = vrot.slane %v5487_v1, %v21953_v54  ;;  %6863 = vrot.lane.b32.xlu0 %v22315_v6, %s13981_s19  ;;  %v22317_v59 = vld [vmem:[#allocation183_spill] sm:$0xff] }
 0x51c   : > { %v8669_v41 = vmul.f32 %v18642_v46, %v18747_v33  ;;  %v18888_v16 = vcombine.high %v22307_v63, %v21722_v8  ;;  %v6257_v56 = vcombine.high %v6253_v31, %v6253_v31  ;;  %v6273_v39 = vcombine.high %v18777_v32, %v18777_v32 }
 0x51d   : > { %v9179_v45 = vadd.f32 %v9051_v11, %v18616_v28  ;;  %v8667_v1 = vmul.f32 %v18612_v13, %v18722_v61  ;;  %v9052_v46 = vmul.f32 %v18763_v18, %v18733_v26  ;;  %v18898_v33 = vrot.slane %v5441_v52, %v21953_v54  ;;  %v18909_v28 = vpop.permute.xlu0 %7071  ;;  %v22318_v13 = vld [vmem:[#allocation123_spill] sm:$0xff]  ;;  %v22319_v61 = vld [vmem:[#allocation125_spill] sm:$0xff] }
 0x51e   : > { %22316 = vst [vmem:[#allocation173_spill] sm:$0xff] %v18888_v16  ;;  %v18901_v58 = vrot.slane %v6253_v31, %v21953_v54  ;;  %v18905_v63 = vmul.f32 %v18873_v43, %v22317_v59  ;;  %7121 = vrot.lane.b32.xlu1 %v18888_v16, %s13981_s19  ;;  %v22320_v32 = vcombine.low %v22318_v13, %v22319_v61  ;;  %v22322_v59 = vld [vmem:[#allocation91_spill] sm:$0xff]  ;;  %v7066_v50 = vpop.permute.xlu1 %7065 }
 0x51f   : > { %v5479_v11 = vrot.slane %v5457_v60, %v16712_v24  ;;  %v10519_v52 = vcombine.low %v9179_v45, %v9181_v14  ;;  %v9182_v31 = vadd.f32 %v9054_v49, %v18788_v42  ;;  %v18920_v19 = vrot.slane %v6303_v4, %v21953_v54 }
 0x520   : > { %v18915_v26 = vrot.slane %v22320_v32, %v15029_v5  ;;  %v18924_v34 = vmul.f32 %v18880_v47, %v22322_v59  ;;  %v8797_v16 = vadd.f32 %v8669_v41, %v18767_v37  ;;  %v18928_v62 = vrot.slane %v6257_v56, %v21953_v54  ;;  %v22324_v37 = vld [vmem:[#allocation188_spill] sm:$0xff]  ;;  %v22327_v32 = vld [vmem:[#allocation187_spill] sm:$0xff] }
 0x521   : > { %v18934_v60 = vcombine.high %v22311_v21, %v21722_v8  ;;  %v6295_v4 = vrot.slane %v6273_v39, %v16712_v24  ;;  %v8795_v42 = vadd.f32 %v8667_v1, %v18686_v30  ;;  %v9180_v14 = vadd.f32 %v9052_v46, %v18782_v53  ;;  %v18944_v56 = vpop.permute.xlu0 %6803 }
 0x522   : > { %22321 = vst [vmem:[#allocation53_spill] sm:$0xff] %v18915_v26  ;;  %7123 = vrot.lane.b32.xlu0 %v18915_v26, %s13981_s19  ;;  %v8670_v49 = vmul.f32 %v18785_v15, %v6802_v20  ;;  %v8930_v41 = vmul.f32 %v18898_v33, %v22324_v37  ;;  %v18947_v45 = vrot.slane %v5479_v11, %v21953_v54 }
 0x523   : > { %22323 = vst [vmem:[#allocation72_spill] sm:$0xff] %v18934_v60  ;;  %6861 = vrot.lane.b32.xlu1 %v18934_v60, %s13981_s19  ;;  %v22325_v39 = vcombine.high %v22318_v13, %v22319_v61  ;;  %v5489_v53 = vcombine.high %v5479_v11, %v5479_v11  ;;  %v5442_v15 = vcombine.high %v18729_v51, %v18729_v51  ;;  %v18969_v11 = vpop.permute.xlu1 %7069 }
 0x524   : > { %v10526_v20 = vrot.slane %v10519_v52, %v15005_v25  ;;  %v10527_v1 = vcombine.low %v9180_v14, %v9182_v31  ;;  %v8668_v46 = vmul.f32 %v18763_v18, %v18809_v2  ;;  %v18962_v59 = vmul.f32 %v18807_v27, %v22327_v32 }
 0x525   : > { %v18953_v30 = vrot.slane %v22325_v39, %v15029_v5  ;;  %v9559_v37 = vcombine.low %v8795_v42, %v8797_v16  ;;  %v9057_v13 = vmul.f32 %v18844_v23, %v18827_v17  ;;  %v18967_v61 = vrot.slane %v6295_v4, %v21953_v54  ;;  %v22329_v16 = vld [vmem:[#allocation186_spill] sm:$0xff]  ;;  %v18987_v31 = vpop.permute.xlu0 %6807 }
 0x526   : > { %v18975_v51 = vcombine.high %v22315_v6, %v21722_v8  ;;  %v9055_v18 = vmul.f32 %v18837_v57, %v18794_v10  ;;  %v8798_v27 = vadd.f32 %v8670_v49, %v18830_v9  ;;  %v9058_v2 = vmul.f32 %v18928_v62, %v7066_v50  ;;  %v22330_v49 = vld [vmem:[#allocation166_spill] sm:$0xff] }
 0x527   : > { %22326 = vst [vmem:[#allocation81_spill] sm:$0xff] %v18953_v30  ;;  %7127 = vrot.lane.b32.xlu0 %v18953_v30, %s13981_s19  ;;  %v6305_v17 = vcombine.high %v6295_v4, %v6295_v4  ;;  %v18983_v52 = vmul.f32 %v18947_v45, %v22329_v16  ;;  %v7450_v42 = vrot.slane %v5489_v53, %v21953_v54  ;;  %v7074_v16 = vpop.permute.xlu1 %7073 }
 0x528   : > { %22328 = vst [vmem:[#allocation161_spill] sm:$0xff] %v18975_v51  ;;  %6865 = vrot.lane.b32.xlu1 %v18975_v51, %s13981_s19  ;;  %v5456_v14 = vrot.slane %v5442_v15, %v16712_v24  ;;  %v6258_v10 = vcombine.high %v18742_v44, %v18742_v44  ;;  %v10534_v9 = vrot.slane %v10527_v1, %v15005_v25  ;;  %v22331_v15 = vld [vmem:[#allocation65_spill] sm:$0xff] }
 0x529   : > { %v8796_v50 = vadd.f32 %v8668_v46, %v18820_v40  ;;  %v9056_v4 = vmul.f32 %v18901_v58, %v7062_v29  ;;  %v18998_v39 = vmul.f32 %v18825_v38, %v22330_v49  ;;  %v19001_v32 = vrot.slane %v9559_v37, %v15005_v25  ;;  %v22333_v40 = vld [vmem:[#allocation87_spill] sm:$0xff]  ;;  %v19023_v49 = vpop.permute.xlu0 %6811 }
 0x52a   : > { %v9185_v53 = vadd.f32 %v9057_v13, %v18865_v55  ;;  %v19008_v44 = vcombine.high %v18915_v26, %v21722_v8  ;;  %v19012_v29 = vmul.f32 %v18816_v3, %v22333_v40  ;;  %v9183_v38 = vadd.f32 %v9055_v18, %v18841_v7  ;;  %v22334_v55 = vld [vmem:[#allocation170_spill] sm:$0xff]  ;;  %v22335_v18 = vld [vmem:[#allocation47_spill] sm:$0xff] }
 0x52b   : > { %7131 = vrot.lane.b32.xlu0 %v22331_v15, %s13981_s19  ;;  %v9567_v1 = vcombine.low %v8796_v50, %v8798_v27  ;;  %v9186_v46 = vadd.f32 %v9058_v2, %v8930_v41  ;;  %v19016_v37 = vrot.slane %v6305_v17, %v21953_v54  ;;  %v19019_v13 = vmul.f32 %v7450_v42, %v22334_v55  ;;  %v19034_v17 = vpop.permute.xlu1 %6805  ;;  %v22336_v50 = vld [vmem:[#allocation160_spill] sm:$0xff] }
 0x52c   : > { %22332 = vst [vmem:[#allocation54_spill] sm:$0xff] %v19008_v44  ;;  %7125 = vrot.lane.b32.xlu1 %v19008_v44, %s13981_s19  ;;  %v5472_v26 = vrot.slane %v5456_v14, %v16712_v24  ;;  %v6272_v3 = vrot.slane %v6258_v10, %v16712_v24  ;;  %v5458_v40 = vcombine.high %v5456_v14, %v5456_v14  ;;  %v22339_v14 = vld [vmem:[#allocation155_spill] sm:$0xff] }
 0x52d   : > { %v10551_v51 = vcombine.low %v10526_v20, %v10534_v9  ;;  %v9184_v7 = vadd.f32 %v9056_v4, %v18905_v63  ;;  %v9061_v41 = vmul.f32 %v18920_v19, %v18909_v28  ;;  %v19032_v27 = vmul.f32 %v18873_v43, %v22335_v18  ;;  %v22338_v20 = vld [vmem:[#allocation191_spill] sm:$0xff] }
 0x52e   : > { %v10535_v2 = vcombine.low %v9183_v38, %v9185_v53  ;;  %v19040_v10 = vcombine.high %v18953_v30, %v21722_v8  ;;  %v19044_v63 = vmul.f32 %v18880_v47, %v22338_v20  ;;  %v19048_v28 = vmul.f32 %v18898_v33, %v22339_v14  ;;  %v22340_v53 = vld [vmem:[#allocation122_spill] sm:$0xff]  ;;  %v19061_v47 = vpop.permute.xlu0 %6815 }
 0x52f   : > { %7135 = vrot.lane.b32.xlu0 %v22336_v50, %s13981_s19  ;;  %v9574_v43 = vrot.slane %v9567_v1, %v15005_v25  ;;  %v9059_v9 = vmul.f32 %v18857_v48, %v18869_v22  ;;  %v10543_v4 = vcombine.low %v9184_v7, %v9186_v46  ;;  %v22341_v38 = vld [vmem:[#allocation126_spill] sm:$0xff]  ;;  %v19065_v33 = vcombine.high %v22331_v15, %v21722_v8  ;;  %v6810_v15 = vpop.permute.xlu1 %6809 }
 0x530   : > { %22337 = vst [vmem:[#allocation64_spill] sm:$0xff] %v19040_v10  ;;  %v22342_v55 = vcombine.low %v22340_v53, %v22341_v38  ;;  %7129 = vrot.lane.b32.xlu1 %v19040_v10, %s13981_s19  ;;  %v6288_v1 = vrot.slane %v6272_v3, %v16712_v24  ;;  %v5488_v20 = vcombine.high %v5472_v26, %v5472_v26 }
 0x531   : > { %22344 = vst [vmem:[#allocation103_spill] sm:$0xff] %v19065_v33  ;;  %v5486_v22 = vrot.slane %v5458_v40, %v16712_v24  ;;  %v19070_v46 = vrot.slane %v10551_v51, %v15029_v5  ;;  %v9189_v7 = vadd.f32 %v9061_v41, %v18924_v34  ;;  %v7454_v14 = vrot.slane %v5472_v26, %v21953_v54 }
 0x532   : > { %v19057_v18 = vrot.slane %v22342_v55, %v15029_v5  ;;  %v22345_v55 = vld [vmem:[#allocation45_spill] sm:$0xff]  ;;  %v10542_v44 = vrot.slane %v10535_v2, %v15005_v25  ;;  %v22346_v40 = vcombine.high %v22340_v53, %v22341_v38  ;;  %v6304_v30 = vcombine.high %v6288_v1, %v6288_v1 }
 0x533   : > { %v19076_v10 = vmul.f32 %v18947_v45, %v22345_v55  ;;  %v6274_v34 = vcombine.high %v6272_v3, %v6272_v3  ;;  %v9591_v26 = vcombine.low %v19001_v32, %v9574_v43  ;;  %v9187_v41 = vadd.f32 %v9059_v9, %v18861_v36  ;;  %v7076_v55 = vpop.permute.xlu0 %7075  ;;  %v22349_v38 = vld [vmem:[#allocation85_spill] sm:$0xff] }
 0x534   : > { %22343 = vst [vmem:[#allocation61_spill] sm:$0xff] %v19057_v18  ;;  %6867 = vrot.lane.b32.xlu0 %v19057_v18, %s13981_s19  ;;  %v19085_v51 = vrot.slane %v22346_v40, %v15029_v5  ;;  %v10550_v45 = vrot.slane %v10543_v4, %v15005_v25  ;;  %v19092_v2 = vcombine.high %v22336_v50, %v21722_v8  ;;  %v22351_v4 = vld [vmem:[#allocation189_spill] sm:$0xff] }
 0x535   : > { %7133 = vrot.lane.b32.xlu1 %v19065_v33, %s13981_s19  ;;  %v7462_v53 = vrot.slane %v5488_v20, %v21953_v54  ;;  %v19098_v40 = vmul.f32 %v7450_v42, %v22349_v38  ;;  %v19102_v32 = vcombine.high %v19057_v18, %v21722_v8  ;;  %v5490_v36 = vcombine.high %v5486_v22, %v5486_v22  ;;  %v6814_v38 = vpop.permute.xlu1 %6813 }
 0x536   : > { %22347 = vst [vmem:[#allocation106_spill] sm:$0xff] %v19085_v51  ;;  %22348 = vst [vmem:[#allocation77_spill] sm:$0xff] %v19092_v2  ;;  %v10569_v3 = vcombine.low %v9187_v41, %v9189_v7  ;;  %v8673_v43 = vmul.f32 %v18844_v23, %v18987_v31  ;;  %v19107_v9 = vrot.slane %v6288_v1, %v21953_v54  ;;  %v19122_v31 = vld [vmem:[%s14477_s27 + $0x40] sm:$0xff] }
 0x537   : > { %22350 = vst [vmem:[#allocation68_spill] sm:$0xff] %v19102_v32  ;;  %v19110_v33 = vmul.f32 %v7454_v14, %v22351_v4  ;;  %v8671_v42 = vmul.f32 %v18837_v57, %v18944_v56  ;;  %v9062_v20 = vmul.f32 %v19016_v37, %v7074_v16  ;;  %v19118_v7 = vrot.slane %v6304_v30, %v21953_v54  ;;  %v22352_v56 = vld [vmem:[#allocation156_spill] sm:$0xff]  ;;  %v19133_v4 = vld [vmem:[%s14484_s25 + $0x40] sm:$0xff]  ;;  %v22353_v30 = vld [vmem:[#allocation83_spill] sm:$0xff] }
 0x538   : > { %6871 = vrot.lane.b32.xlu0 %v19085_v51, %s13981_s19  ;;  %v6302_v23 = vrot.slane %v6274_v34, %v16712_v24  ;;  %v19125_v1 = vrot.slane %v9591_v26, %v15029_v5  ;;  %v10559_v41 = vcombine.low %v10542_v44, %v10550_v45  ;;  %v9060_v57 = vmul.f32 %v18967_v61, %v18969_v11  ;;  %v7080_v34 = vpop.permute.xlu0 %7079 }
 0x539   : > { %v19130_v16 = vmul.f32 %v7454_v14, %v22352_v56  ;;  %7137 = vrot.lane.b32.xlu1 %v19092_v2, %s13981_s19  ;;  %v8937_v18 = vmul.f32 %v7462_v53, %v22353_v30  ;;  %v7458_v50 = vrot.slane %v5486_v22, %v21953_v54  ;;  %v19140_v26 = vrot.slane %v5490_v36, %v21953_v54  ;;  %v6818_v30 = vpop.permute.xlu1 %6817  ;;  %v22354_v36 = vld [vmem:[#allocation152_spill] sm:$0xff] }
 0x53a   : > { %v6306_v60 = vcombine.high %v6302_v23, %v6302_v23  ;;  %v19143_v44 = vrot.slane %v10569_v3, %v15005_v25  ;;  %v8801_v11 = vadd.f32 %v8673_v43, %v18998_v39  ;;  %v19148_v14 = vcombine.high %v19085_v51, %v21722_v8  ;;  %v22355_v3 = vld [vmem:[#allocation158_spill] sm:$0xff] }
 0x53b   : > { %v19152_v45 = vrot.slane %v19122_v31, %v16712_v24  ;;  %v8799_v56 = vadd.f32 %v8671_v42, %v18962_v59  ;;  %v9190_v22 = vadd.f32 %v9062_v20, %v19019_v13  ;;  %v19159_v2 = vmul.f32 %v7462_v53, %v22355_v3  ;;  %v22356_v13 = vld [vmem:[#allocation131_spill] sm:$0xff]  ;;  %v22360_v3 = vld [vmem:[#allocation157_spill] sm:$0xff] }
 0x53c   : > { %6875 = vrot.lane.b32.xlu0 %v22354_v36, %s13981_s19  ;;  %v19163_v39 = vrot.slane %v19133_v4, %v16712_v24  ;;  %v19166_v43 = vrot.slane %v10559_v41, %v15029_v5  ;;  %v9188_v51 = vadd.f32 %v9060_v57, %v18983_v52  ;;  %v19170_v59 = vrot.slane %v6302_v23, %v21953_v54  ;;  %v22357_v42 = vld [vmem:[#allocation135_spill] sm:$0xff]  ;;  %v6820_v53 = vpop.permute.xlu0 %6819 }
 0x53d   : > { %v22358_v20 = vcombine.low %v22356_v13, %v22357_v42  ;;  %6869 = vrot.lane.b32.xlu1 %v19102_v32, %s13981_s19  ;;  %v8936_v21 = vmul.f32 %v7458_v50, %v22360_v3  ;;  %v19182_v41 = vrot.slane %v6306_v60, %v21953_v54  ;;  %v8938_v52 = vmul.f32 %v19140_v26, %v22361_v12  ;;  %v7078_v35 = vpop.permute.xlu1 %7077  ;;  %v22362_v12 = vld [vmem:[#allocation179_spill] sm:$0xff] }
 0x53e   : > { %v19188_v23 = vcombine.high %v22354_v36, %v21722_v8  ;;  %v9575_v57 = vcombine.low %v8799_v56, %v8801_v11  ;;  %v9065_v0 = vmul.f32 %v19118_v7, %v7080_v34  ;;  %v19195_v32 = vrot.slane %v19152_v45, %v16712_v24  ;;  %v22363_v11 = vld [vmem:[#allocation52_spill] sm:$0xff] }
 0x53f   : > { %v19176_v6 = vrot.slane %v22358_v20, %v15029_v5  ;;  %v8675_v20 = vmul.f32 %v18857_v48, %v19023_v49  ;;  %v10577_v3 = vcombine.low %v9188_v51, %v9190_v22  ;;  %v8674_v60 = vmul.f32 %v18928_v62, %v6810_v15 }
 0x540   : > { %6879 = vrot.lane.b32.xlu0 %v22362_v12, %s13981_s19  ;;  %v19202_v36 = vrot.slane %v19163_v39, %v16712_v24  ;;  %v19205_v56 = vmul.f32 %v7458_v50, %v22363_v11  ;;  %v10567_v48 = vcombine.low %v19070_v46, %v19166_v43  ;;  %v10568_v49 = vcombine.high %v19070_v46, %v19166_v43  ;;  %v6824_v11 = vpop.permute.xlu0 %6823  ;;  %v22378_v43 = vld [vmem:[#allocation56_spill] sm:$0xff] }
 0x541   : > { %22359 = vst [vmem:[#allocation71_spill] sm:$0xff] %v19176_v6  ;;  %v9063_v51 = vmul.f32 %v19107_v9, %v7076_v55  ;;  %v22364_v62 = vcombine.high %v22356_v13, %v22357_v42  ;;  %v8672_v34 = vmul.f32 %v18901_v58, %v19034_v17  ;;  %v8677_v50 = vmul.f32 %v18920_v19, %v19061_v47  ;;  %v7082_v47 = vpop.permute.xlu1 %7081 }
 0x542   : > { %v8678_v22 = vmul.f32 %v19016_v37, %v6818_v30  ;;  %6873 = vrot.lane.b32.xlu1 %v19148_v14, %s13981_s19  ;;  %v19227_v55 = vrot.slane %v19195_v32, %v21953_v54  ;;  %v19230_v13 = vrot.slane %v9575_v57, %v15005_v25  ;;  %v8803_v42 = vadd.f32 %v8675_v20, %v19012_v29 }
 0x543   : > { %v19216_v15 = vrot.slane %v22364_v62, %v15029_v5  ;;  %v9193_v62 = vadd.f32 %v9065_v0, %v8937_v18  ;;  %v9064_v58 = vmul.f32 %v19170_v59, %v7078_v35  ;;  %v10584_v19 = vrot.slane %v10577_v3, %v15005_v25 }
 0x544   : > { %v8802_v37 = vadd.f32 %v8674_v60, %v19048_v28  ;;  %v8676_v17 = vmul.f32 %v18967_v61, %v6814_v38  ;;  %7139 = vrot.lane.b32.xlu0 %v19176_v6, %s13981_s19  ;;  %v19241_v30 = vrot.slane %v19202_v36, %v21953_v54  ;;  %v9191_v57 = vadd.f32 %v9063_v51, %v19110_v33  ;;  %v22366_v38 = vld [vmem:[#allocation100_spill] sm:$0xff]  ;;  %v19260_v20 = vpop.permute.xlu0 %7083 }
 0x545   : > { %22365 = vst [vmem:[#allocation104_spill] sm:$0xff] %v19216_v15  ;;  %v9066_v0 = vmul.f32 %v19182_v41, %v7082_v47  ;;  %v19247_v35 = vcombine.high %v22362_v12, %v21722_v8  ;;  %v5536_v29 = vcombine.high %v19195_v32, %v19195_v32  ;;  %v8800_v61 = vadd.f32 %v8672_v34, %v19032_v27 }
 0x546   : > { %v8805_v28 = vadd.f32 %v8677_v50, %v19044_v63  ;;  %v8806_v18 = vadd.f32 %v8678_v22, %v19098_v40  ;;  %6877 = vrot.lane.b32.xlu1 %v19188_v23, %s13981_s19  ;;  %v19258_v33 = vmul.f32 %v19227_v55, %v22366_v38  ;;  %v10585_v3 = vcombine.low %v9191_v57, %v9193_v62  ;;  %v6822_v40 = vpop.permute.xlu1 %6821  ;;  %v22367_v62 = vld [vmem:[#allocation190_spill] sm:$0xff] }
 0x547   : > { %v9192_v60 = vadd.f32 %v9064_v58, %v8936_v21  ;;  %v8681_v51 = vmul.f32 %v19118_v7, %v6824_v11  ;;  %v9194_v32 = vadd.f32 %v9066_v0, %v8938_v52  ;;  %v10601_v27 = vcombine.low %v19143_v44, %v10584_v19  ;;  %v22368_v7 = vld [vmem:[#allocation129_spill] sm:$0xff]  ;;  %v22369_v52 = vld [vmem:[#allocation136_spill] sm:$0xff] }
 0x548   : > { %v9583_v34 = vcombine.low %v8800_v61, %v8802_v37  ;;  %v8804_v63 = vadd.f32 %v8676_v17, %v19076_v10  ;;  %7143 = vrot.lane.b32.xlu0 %v19216_v15, %s13981_s19  ;;  %v6352_v50 = vcombine.high %v19202_v36, %v19202_v36  ;;  %v8679_v22 = vmul.f32 %v19107_v9, %v6820_v53  ;;  %v19280_v19 = vpop.permute.xlu0 %7087 }
 0x549   : > { %v10593_v47 = vcombine.low %v9192_v60, %v9194_v32  ;;  %v7914_v21 = vmul.f32 %v19140_v26, %v22367_v62  ;;  %v22370_v44 = vcombine.low %v22368_v7, %v22369_v52  ;;  %v9609_v10 = vcombine.low %v8803_v42, %v8805_v28 }
 0x54a   : > { %v9617_v58 = vcombine.low %v8804_v63, %v8806_v18  ;;  %6881 = vrot.lane.b32.xlu1 %v19247_v35, %s13981_s19  ;;  %v5506_v9 = vcombine.high %v19152_v45, %v19152_v45  ;;  %v5491_v36 = vcombine.high %v19122_v31, %v19122_v31  ;;  %v10592_v26 = vrot.slane %v10585_v3, %v15005_v25  ;;  %v6826_v0 = vpop.permute.xlu1 %6825 }
 0x54b   : > { %v19276_v11 = vrot.slane %v22370_v44, %v15029_v5  ;;  %v8809_v53 = vadd.f32 %v8681_v51, %v19159_v2  ;;  %v10600_v37 = vrot.slane %v10593_v47, %v15005_v25  ;;  %v8680_v42 = vmul.f32 %v19170_v59, %v6822_v40 }
 0x54c   : > { %v10608_v17 = vrot.slane %v10601_v27, %v15029_v5  ;;  %v9590_v57 = vrot.slane %v9583_v34, %v15005_v25  ;;  %v19296_v45 = vcombine.high %v19176_v6, %v21722_v8  ;;  %v6322_v31 = vcombine.high %v19163_v39, %v19163_v39  ;;  %v19312_v60 = vpop.permute.xlu0 %6827 }
 0x54d   : > { %22371 = vst [vmem:[#allocation94_spill] sm:$0xff] %v19276_v11  ;;  %6883 = vrot.lane.b32.xlu0 %v19276_v11, %s13981_s19  ;;  %v8807_v2 = vadd.f32 %v8679_v22, %v19130_v16  ;;  %v10609_v61 = vcombine.low %v10592_v26, %v10600_v37  ;;  %v8682_v59 = vmul.f32 %v19182_v41, %v6826_v0  ;;  %v19348_v26 = vld [vmem:[%s14477_s27 + $0x48] sm:$0xff] }
 0x54e   : > { %22372 = vst [vmem:[#allocation93_spill] sm:$0xff] %v19296_v45  ;;  %v22373_v28 = vcombine.high %v22368_v7, %v22369_v52  ;;  %v9616_v38 = vrot.slane %v9609_v10, %v15005_v25  ;;  %v9624_v3 = vrot.slane %v9617_v58, %v15005_v25  ;;  %7141 = vrot.lane.b32.xlu1 %v19296_v45, %s13981_s19  ;;  %v19322_v40 = vpop.permute.xlu1 %7085  ;;  %v22379_v0 = vld [vmem:[#allocation98_spill] sm:$0xff] }
 0x54f   : > { %v5528_v16 = vrot.slane %v5506_v9, %v16712_v24  ;;  %v19316_v39 = vrot.slane %v5491_v36, %v16712_v24  ;;  %v9625_v41 = vcombine.low %v8807_v2, %v8809_v53  ;;  %v10616_v51 = vrot.slane %v10609_v61, %v15029_v5 }
 0x550   : > { %v19306_v18 = vrot.slane %v22373_v28, %v15029_v5  ;;  %v8808_v32 = vadd.f32 %v8680_v42, %v19205_v56  ;;  %v8810_v27 = vadd.f32 %v8682_v59, %v7914_v21  ;;  %v9599_v34 = vcombine.low %v19230_v13, %v9590_v57  ;;  %v19335_v52 = vpop.permute.xlu0 %6831 }
 0x551   : > { %v6344_v63 = vrot.slane %v6322_v31, %v16712_v24  ;;  %v19328_v22 = vcombine.high %v19216_v15, %v21722_v8  ;;  %v6307_v47 = vcombine.high %v19133_v4, %v19133_v4  ;;  %v10617_v62 = vcombine.low %v10608_v17, %v10616_v51  ;;  %v22380_v31 = vld [vmem:[#allocation101_spill] sm:$0xff] }
 0x552   : > { %22374 = vst [vmem:[#allocation70_spill] sm:$0xff] %v19306_v18  ;;  %6887 = vrot.lane.b32.xlu0 %v19306_v18, %s13981_s19  ;;  %v10618_v56 = vcombine.high %v10608_v17, %v10616_v51  ;;  %v7478_v21 = vrot.slane %v5536_v29, %v21953_v54  ;;  %v9633_v13 = vcombine.low %v8808_v32, %v8810_v27  ;;  %v7090_v42 = vpop.permute.xlu1 %7089  ;;  %v22376_v17 = vld [vmem:[#allocation182_spill] sm:$0xff]  ;;  %v22397_v15 = vld [vmem:[#allocation109_spill] sm:$0xff] }
 0x553   : > { %22375 = vst [vmem:[#allocation97_spill] sm:$0xff] %v19328_v22  ;;  %v9641_v7 = vcombine.low %v9616_v38, %v9624_v3  ;;  %7145 = vrot.lane.b32.xlu1 %v19328_v22, %s13981_s19  ;;  %v5538_v44 = vcombine.high %v5528_v16, %v5528_v16  ;;  %v6354_v10 = vcombine.high %v6344_v63, %v6344_v63  ;;  %v19390_v32 = vld [vmem:[%s14484_s25 + $0x48] sm:$0xff] }
 0x554   : > { %v5521_v58 = vrot.slane %v19316_v39, %v16712_v24  ;;  %v9632_v4 = vrot.slane %v9625_v41, %v15005_v25  ;;  %v12997_v29 = vpack.c.bf16 %v10617_v62, %v10567_v48  ;;  %v13037_v9 = vpack.c.bf16 %v10618_v56, %v10568_v49  ;;  %v19377_v28 = vpop.permute.xlu0 %7091 }
 0x555   : > { %v9640_v36 = vrot.slane %v9633_v13, %v15005_v25  ;;  %v9606_v53 = vrot.slane %v9599_v34, %v15029_v5  ;;  %v19352_v37 = vrot.slane %v6352_v50, %v21953_v54  ;;  %v19358_v48 = vcombine.high %v19276_v11, %v21722_v8 }
 0x556   : > { %7147 = vrot.lane.b32.xlu0 %v22376_v17, %s13981_s19  ;;  %v6321_v46 = vrot.slane %v6307_v47, %v16712_v24  ;;  %13156 = vst [vmem:[%s17404_s8 + $0x18] sm:$0xff] %v12997_v29   ;;  %13164 = vst [vmem:[%s17404_s8 + $0x58] sm:$0xff] %v13037_v9   ;;  %v8941_v49 = vmul.f32 %v7478_v21, %v22378_v43  ;;  %v19366_v50 = vmul.f32 %v19227_v55, %v22379_v0  ;;  %v22381_v47 = vld [vmem:[#allocation184_spill] sm:$0xff]  ;;  %v22383_v43 = vld [vmem:[#allocation49_spill] sm:$0xff] }
 0x557   : > { %22377 = vst [vmem:[#allocation117_spill] sm:$0xff] %v19358_v48  ;;  %v9649_v57 = vcombine.low %v9632_v4, %v9640_v36  ;;  %v19369_v2 = vmul.f32 %v7478_v21, %v22380_v31  ;;  %v7474_v61 = vrot.slane %v5528_v16, %v21953_v54  ;;  %v19373_v59 = vrot.slane %v6344_v63, %v21953_v54  ;;  %v19394_v63 = vpop.permute.xlu1 %6829  ;;  %v22384_v0 = vld [vmem:[#allocation74_spill] sm:$0xff] }
 0x558   : > { %6885 = vrot.lane.b32.xlu1 %v19358_v48, %s13981_s19  ;;  %v5537_v38 = vcombine.high %v5521_v58, %v5521_v58  ;;  %v19381_v3 = vrot.slane %v19348_v26, %v16712_v24  ;;  %v9648_v55 = vrot.slane %v9641_v7, %v15029_v5  ;;  %v7482_v51 = vrot.slane %v5538_v44, %v21953_v54  ;;  %v19413_v29 = vpop.permute.xlu0 %7095 }
 0x559   : > { %v9656_v41 = vrot.slane %v9649_v57, %v15029_v5  ;;  %v19387_v16 = vrot.slane %v6354_v10, %v21953_v54  ;;  %v9607_v27 = vcombine.low %v19125_v1, %v9606_v53  ;;  %v6337_v34 = vrot.slane %v6321_v46, %v16712_v24 }
 0x55a   : > { %7151 = vrot.lane.b32.xlu0 %v22381_v47, %s13981_s19  ;;  %v19400_v62 = vcombine.high %v19306_v18, %v21722_v8  ;;  %v5507_v56 = vcombine.high %v19316_v39, %v19316_v39  ;;  %v9608_v21 = vcombine.high %v19125_v1, %v9606_v53  ;;  %v19406_v44 = vrot.slane %v5521_v58, %v21953_v54 }
 0x55b   : > { %v9657_v13 = vcombine.low %v9648_v55, %v9656_v41  ;;  %v9658_v7 = vcombine.high %v9648_v55, %v9656_v41  ;;  %v6353_v10 = vcombine.high %v6337_v34, %v6337_v34  ;;  %v19411_v4 = vrot.slane %v5537_v38, %v21953_v54  ;;  %v6834_v38 = vpop.permute.xlu1 %6833  ;;  %v22385_v55 = vld [vmem:[#allocation177_spill] sm:$0xff] }
 0x55c   : > { %22382 = vst [vmem:[#allocation67_spill] sm:$0xff] %v19400_v62  ;;  %6889 = vrot.lane.b32.xlu1 %v19400_v62, %s13981_s19  ;;  %v5563_v39 = vrot.slane %v19381_v3, %v16712_v24  ;;  %v19419_v1 = vrot.slane %v19390_v32, %v16712_v24  ;;  %v9069_v58 = vmul.f32 %v19352_v37, %v19280_v19 }
 0x55d   : > { %v12917_v9 = vpack.c.bf16 %v9657_v13, %v9607_v27  ;;  %v12957_v36 = vpack.c.bf16 %v9658_v7, %v9608_v21  ;;  %v6323_v53 = vcombine.high %v6321_v46, %v6321_v46  ;;  %v8940_v57 = vmul.f32 %v7474_v61, %v22383_v43  ;;  %v22387_v27 = vld [vmem:[#allocation102_spill] sm:$0xff] }
 0x55e   : > { %v8942_v31 = vmul.f32 %v7482_v51, %v22384_v0  ;;  %6891 = vrot.lane.b32.xlu0 %v22385_v55, %s13981_s19  ;;  %v19429_v41 = vcombine.high %v22376_v17, %v21722_v8  ;;  %v5535_v62 = vrot.slane %v5507_v56, %v16712_v24  ;;  %v9067_v19 = vmul.f32 %v19241_v30, %v19260_v20  ;;  %v22388_v13 = vld [vmem:[#allocation86_spill] sm:$0xff] }
 0x55f   : > { %13141 = vst [vmem:[%s17453_s28 + $0x18] sm:$0xff] %v12917_v9   ;;  %13149 = vst [vmem:[%s17453_s28 + $0x58] sm:$0xff] %v12957_v36   ;;  %v19437_v46 = vrot.slane %v6337_v34, %v21953_v54  ;;  %v19440_v21 = vmul.f32 %v7474_v61, %v22387_v27  ;;  %v19443_v7 = vmul.f32 %v7482_v51, %v22388_v13  ;;  %v22389_v43 = vld [vmem:[#allocation90_spill] sm:$0xff]  ;;  %v19460_v34 = vpop.permute.xlu0 %7099  ;;  %v7094_v13 = vpop.permute.xlu1 %7093 }
 0x560   : > { %22386 = vst [vmem:[#allocation66_spill] sm:$0xff] %v19429_v41  ;;  %v19447_v0 = vmul.f32 %v19406_v44, %v22389_v43  ;;  %v19450_v56 = vrot.slane %v6353_v10, %v21953_v54  ;;  %v22390_v17 = vld [vmem:[#allocation82_spill] sm:$0xff]  ;;  %7149 = vrot.lane.b32.xlu1 %v19429_v41, %s13981_s19  ;;  %v6379_v61 = vrot.slane %v19419_v1, %v16712_v24 }
 0x561   : > { %v19454_v20 = vmul.f32 %v19411_v4, %v22390_v17  ;;  %v9197_v51 = vadd.f32 %v9069_v58, %v8941_v49  ;;  %v9070_v9 = vmul.f32 %v19387_v16, %v7090_v42  ;;  %v6351_v36 = vrot.slane %v6323_v53, %v16712_v24  ;;  %v22391_v43 = vld [vmem:[#allocation174_spill] sm:$0xff] }
 0x562   : > { %v5585_v27 = vcombine.high %v5563_v39, %v5563_v39  ;;  %v8685_v10 = vmul.f32 %v19352_v37, %v19335_v52  ;;  %v19467_v17 = vrot.slane %v5563_v39, %v21953_v54  ;;  %6895 = vrot.lane.b32.xlu0 %v22391_v43, %s13981_s19  ;;  %v19473_v41 = vcombine.high %v22381_v47, %v21722_v8 }
 0x563   : > { %v5539_v49 = vcombine.high %v5535_v62, %v5535_v62  ;;  %v9195_v42 = vadd.f32 %v9067_v19, %v19258_v33  ;;  %v9068_v58 = vmul.f32 %v19373_v59, %v19322_v40  ;;  %v19479_v53 = vrot.slane %v5535_v62, %v21953_v54  ;;  %v7104_v48 = vpop.permute.xlu0 %7103  ;;  %v22393_v33 = vld [vmem:[#allocation143_spill] sm:$0xff]  ;;  %v22394_v19 = vld [vmem:[#allocation145_spill] sm:$0xff]  ;;  %v7098_v11 = vpop.permute.xlu1 %7097 }
 0x564   : > { %22392 = vst [vmem:[#allocation99_spill] sm:$0xff] %v19473_v41  ;;  %v6355_v52 = vcombine.high %v6351_v36, %v6351_v36  ;;  %v8683_v37 = vmul.f32 %v19241_v30, %v19312_v60  ;;  %v19484_v39 = vrot.slane %v6379_v61, %v21953_v54  ;;  %7153 = vrot.lane.b32.xlu1 %v19473_v41, %s13981_s19 }
 0x565   : > { %v6401_v47 = vcombine.high %v6379_v61, %v6379_v61  ;;  %v22395_v18 = vcombine.low %v22393_v33, %v22394_v19  ;;  %v10619_v62 = vcombine.low %v9195_v42, %v9197_v51  ;;  %v9198_v22 = vadd.f32 %v9070_v9, %v8942_v31 }
 0x566   : > { %v19495_v45 = vrot.slane %v5585_v27, %v21953_v54  ;;  %v5555_v30 = vcombine.high %v19381_v3, %v19381_v3  ;;  %v8813_v60 = vadd.f32 %v8685_v10, %v19369_v2  ;;  %v19502_v61 = vmul.f32 %v19467_v17, %v22397_v15  ;;  %v22399_v2 = vld [vmem:[#allocation51_spill] sm:$0xff] }
 0x567   : > { %v19492_v40 = vrot.slane %v22395_v18, %v15029_v5  ;;  %v19505_v41 = vrot.slane %v5539_v49, %v21953_v54  ;;  %v19511_v18 = vcombine.high %v22385_v55, %v21722_v8  ;;  %v9196_v31 = vadd.f32 %v9068_v58, %v8940_v57  ;;  %v19527_v10 = vpop.permute.xlu0 %6835  ;;  %v22402_v58 = vld [vmem:[#allocation111_spill] sm:$0xff]  ;;  %v19544_v55 = vpop.permute.xlu1 %7101 }
 0x568   : > { %v19514_v3 = vrot.slane %v6351_v36, %v21953_v54  ;;  %v8944_v51 = vmul.f32 %v19479_v53, %v22399_v2  ;;  %v19519_v15 = vrot.slane %v6355_v52, %v21953_v54  ;;  %v8811_v9 = vadd.f32 %v8683_v37, %v19366_v50 }
 0x569   : > { %22396 = vst [vmem:[#allocation105_spill] sm:$0xff] %v19492_v40  ;;  %7155 = vrot.lane.b32.xlu0 %v19492_v40, %s13981_s19  ;;  %22398 = vst [vmem:[#allocation132_spill] sm:$0xff] %v19511_v18  ;;  %v19523_v27 = vrot.slane %v6401_v47, %v21953_v54  ;;  %6893 = vrot.lane.b32.xlu1 %v19511_v18, %s13981_s19  ;;  %v6371_v57 = vcombine.high %v19419_v1, %v19419_v1  ;;  %v22403_v18 = vld [vmem:[#allocation42_spill] sm:$0xff] }
 0x56a   : > { %v22400_v36 = vcombine.high %v22393_v33, %v22394_v19  ;;  %v10626_v42 = vrot.slane %v10619_v62, %v15005_v25  ;;  %v10627_v50 = vcombine.low %v9196_v31, %v9198_v22  ;;  %v8949_v47 = vmul.f32 %v19495_v45, %v22402_v58  ;;  %v22405_v62 = vld [vmem:[#allocation194_spill] sm:$0xff]  ;;  %v22407_v58 = vld [vmem:[#allocation107_spill] sm:$0xff] }
 0x56b   : > { %v5577_v52 = vrot.slane %v5555_v30, %v16712_v24  ;;  %v9659_v37 = vcombine.low %v8811_v9, %v8813_v60  ;;  %v8686_v2 = vmul.f32 %v19387_v16, %v6834_v38  ;;  %v8946_v1 = vmul.f32 %v19505_v41, %v22403_v18 }
 0x56c   : > { %v19535_v49 = vrot.slane %v22400_v36, %v15029_v5  ;;  %v19550_v33 = vcombine.high %v22391_v43, %v21722_v8  ;;  %v9073_v22 = vmul.f32 %v19450_v56, %v19413_v29  ;;  %v9074_v19 = vmul.f32 %v19519_v15, %v7098_v11  ;;  %v22406_v29 = vld [vmem:[#allocation92_spill] sm:$0xff] }
 0x56d   : > { %v19557_v16 = vmul.f32 %v19406_v44, %v22405_v62  ;;  %v5540_v38 = vcombine.high %v19348_v26, %v19348_v26  ;;  %v9071_v30 = vmul.f32 %v19437_v46, %v19377_v28  ;;  %v8684_v60 = vmul.f32 %v19373_v59, %v19394_v63  ;;  %v6840_v44 = vpop.permute.xlu0 %6839 }
 0x56e   : > { %22401 = vst [vmem:[#allocation149_spill] sm:$0xff] %v19535_v49  ;;  %7159 = vrot.lane.b32.xlu0 %v19535_v49, %s13981_s19  ;;  %22404 = vst [vmem:[#allocation115_spill] sm:$0xff] %v19550_v33  ;;  %v6393_v18 = vrot.slane %v6371_v57, %v16712_v24  ;;  %6897 = vrot.lane.b32.xlu1 %v19550_v33, %s13981_s19  ;;  %v19570_v11 = vmul.f32 %v19411_v4, %v22406_v29  ;;  %v7106_v57 = vpop.permute.xlu1 %7105 }
 0x56f   : > { %v10634_v31 = vrot.slane %v10627_v50, %v15005_v25  ;;  %v9072_v26 = vmul.f32 %v19514_v3, %v7094_v13  ;;  %v7506_v9 = vrot.slane %v5577_v52, %v21953_v54  ;;  %v5587_v28 = vcombine.high %v5577_v52, %v5577_v52 }
 0x570   : > { %v19576_v36 = vrot.slane %v9659_v37, %v15005_v25  ;;  %v8814_v59 = vadd.f32 %v8686_v2, %v19443_v7  ;;  %v6403_v63 = vcombine.high %v6393_v18, %v6393_v18  ;;  %v19583_v4 = vcombine.high %v19492_v40, %v21722_v8 }
 0x571   : > { %v9201_v50 = vadd.f32 %v9073_v22, %v19454_v20  ;;  %v9202_v13 = vadd.f32 %v9074_v19, %v8946_v1  ;;  %v5554_v62 = vrot.slane %v5540_v38, %v16712_v24  ;;  %v6356_v52 = vcombine.high %v19390_v32, %v19390_v32  ;;  %v19597_v40 = vpop.permute.xlu0 %6843  ;;  %v22409_v22 = vld [vmem:[#allocation195_spill] sm:$0xff] }
 0x572   : > { %7163 = vrot.lane.b32.xlu0 %v22407_v58, %s13981_s19  ;;  %22408 = vst [vmem:[#allocation180_spill] sm:$0xff] %v19583_v4  ;;  %v9199_v37 = vadd.f32 %v9071_v30, %v19447_v0  ;;  %v8812_v7 = vadd.f32 %v8684_v60, %v19440_v21  ;;  %v9077_v2 = vmul.f32 %v19523_v27, %v7104_v48  ;;  %v19608_v38 = vpop.permute.xlu1 %6837  ;;  %v22410_v30 = vld [vmem:[#allocation113_spill] sm:$0xff] }
 0x573   : > { %v19593_v29 = vrot.slane %v6393_v18, %v21953_v54  ;;  %7157 = vrot.lane.b32.xlu1 %v19583_v4, %s13981_s19  ;;  %v10651_v20 = vcombine.low %v10626_v42, %v10634_v31  ;;  %v9200_v1 = vadd.f32 %v9072_v26, %v8944_v51  ;;  %v19600_v19 = vmul.f32 %v7506_v9, %v22409_v22 }
 0x574   : > { %v7514_v32 = vrot.slane %v5587_v28, %v21953_v54  ;;  %v9667_v0 = vcombine.low %v8812_v7, %v8814_v59  ;;  %v9075_v21 = vmul.f32 %v19484_v39, %v19460_v34  ;;  %v19606_v48 = vrot.slane %v6403_v63, %v21953_v54  ;;  %v22412_v34 = vld [vmem:[#allocation193_spill] sm:$0xff]  ;;  %v22413_v59 = vld [vmem:[#allocation43_spill] sm:$0xff] }
 0x575   : > { %v19614_v51 = vcombine.high %v19535_v49, %v21722_v8  ;;  %v10635_v42 = vcombine.low %v9199_v37, %v9201_v50  ;;  %v10643_v60 = vcombine.low %v9200_v1, %v9202_v13  ;;  %v5570_v18 = vrot.slane %v5554_v62, %v16712_v24  ;;  %v19628_v7 = vpop.permute.xlu0 %6847  ;;  %v22414_v50 = vld [vmem:[#allocation138_spill] sm:$0xff]  ;;  %v22415_v13 = vld [vmem:[#allocation144_spill] sm:$0xff] }
 0x576   : > { %7167 = vrot.lane.b32.xlu0 %v22410_v30, %s13981_s19  ;;  %v6370_v31 = vrot.slane %v6356_v52, %v16712_v24  ;;  %v9205_v26 = vadd.f32 %v9077_v2, %v8949_v47  ;;  %v19620_v28 = vmul.f32 %v19467_v17, %v22412_v34  ;;  %v19624_v63 = vmul.f32 %v19479_v53, %v22413_v59  ;;  %v22418_v17 = vld [vmem:[#allocation96_spill] sm:$0xff]  ;;  %v22419_v2 = vld [vmem:[#allocation62_spill] sm:$0xff] }
 0x577   : > { %22411 = vst [vmem:[#allocation133_spill] sm:$0xff] %v19614_v51  ;;  %7161 = vrot.lane.b32.xlu1 %v19614_v51, %s13981_s19  ;;  %v22416_v37 = vcombine.low %v22414_v50, %v22415_v13  ;;  %v19637_v47 = vrot.slane %v10651_v20, %v15029_v5  ;;  %v8950_v52 = vmul.f32 %v7514_v32, %v22418_v17  ;;  %v22420_v51 = vld [vmem:[#allocation60_spill] sm:$0xff] }
 0x578   : > { %v19642_v53 = vmul.f32 %v19495_v45, %v22419_v2  ;;  %v5556_v22 = vcombine.high %v5554_v62, %v5554_v62  ;;  %v19645_v34 = vrot.slane %v9667_v0, %v15005_v25  ;;  %v9203_v59 = vadd.f32 %v9075_v21, %v19502_v61 }
 0x579   : > { %v19634_v1 = vrot.slane %v22416_v37, %v15029_v5  ;;  %v19650_v4 = vmul.f32 %v19505_v41, %v22420_v51  ;;  %v6842_v37 = vpop.permute.xlu1 %6841  ;;  %v19656_v20 = vcombine.high %v22407_v58, %v21722_v8  ;;  %v10642_v45 = vrot.slane %v10635_v42, %v15005_v25  ;;  %v7108_v41 = vpop.permute.xlu0 %7107  ;;  %v22422_v51 = vld [vmem:[#allocation95_spill] sm:$0xff] }
 0x57a   : > { %v10650_v62 = vrot.slane %v10643_v60, %v15005_v25  ;;  %v6386_v0 = vrot.slane %v6370_v31, %v16712_v24  ;;  %v5586_v17 = vcombine.high %v5570_v18, %v5570_v18  ;;  %v10669_v61 = vcombine.low %v9203_v59, %v9205_v26 }
 0x57b   : > { %22417 = vst [vmem:[#allocation119_spill] sm:$0xff] %v19634_v1  ;;  %6899 = vrot.lane.b32.xlu0 %v19634_v1, %s13981_s19  ;;  %22421 = vst [vmem:[#allocation110_spill] sm:$0xff] %v19656_v20  ;;  %v8689_v21 = vmul.f32 %v19450_v56, %v6840_v44  ;;  %7165 = vrot.lane.b32.xlu1 %v19656_v20, %s13981_s19  ;;  %v19665_v2 = vmul.f32 %v7506_v9, %v22422_v51  ;;  %v22429_v44 = vld [vmem:[#allocation75_spill] sm:$0xff] }
 0x57c   : > { %v22423_v58 = vcombine.high %v22414_v50, %v22415_v13  ;;  %v8687_v60 = vmul.f32 %v19437_v46, %v19527_v10  ;;  %v6402_v49 = vcombine.high %v6386_v0, %v6386_v0  ;;  %v5584_v26 = vrot.slane %v5556_v22, %v16712_v24  ;;  %v22426_v50 = vld [vmem:[#allocation55_spill] sm:$0xff] }
 0x57d   : > { %v6372_v56 = vcombine.high %v6370_v31, %v6370_v31  ;;  %v9078_v59 = vmul.f32 %v19606_v48, %v7106_v57  ;;  %v7518_v9 = vrot.slane %v5570_v18, %v21953_v54  ;;  %v6846_v51 = vpop.permute.xlu1 %6845  ;;  %v10659_v46 = vcombine.low %v10642_v45, %v10650_v62  ;;  %v7112_v45 = vpop.permute.xlu0 %7111 }
 0x57e   : > { %v19671_v42 = vrot.slane %v22423_v58, %v15029_v5  ;;  %v19684_v58 = vcombine.high %v22410_v30, %v21722_v8  ;;  %v9076_v10 = vmul.f32 %v19593_v29, %v19544_v55  ;;  %v7526_v31 = vrot.slane %v5586_v17, %v21953_v54 }
 0x57f   : > { %v19690_v13 = vmul.f32 %v7514_v32, %v22426_v50  ;;  %v19693_v57 = vrot.slane %v10669_v61, %v15005_v25  ;;  %v8817_v18 = vadd.f32 %v8689_v21, %v19570_v11  ;;  %v19697_v22 = vrot.slane %v6386_v0, %v21953_v54  ;;  %v22428_v21 = vld [vmem:[#allocation88_spill] sm:$0xff] }
 0x580   : > { %22424 = vst [vmem:[#allocation114_spill] sm:$0xff] %v19671_v42  ;;  %6903 = vrot.lane.b32.xlu0 %v19671_v42, %s13981_s19  ;;  %22425 = vst [vmem:[#allocation69_spill] sm:$0xff] %v19684_v58  ;;  %7169 = vrot.lane.b32.xlu1 %v19684_v58, %s13981_s19  ;;  %v19703_v55 = vcombine.high %v19634_v1, %v21722_v8  ;;  %v8815_v62 = vadd.f32 %v8687_v60, %v19557_v16  ;;  %v22430_v58 = vld [vmem:[#allocation153_spill] sm:$0xff] }
 0x581   : > { %v19707_v32 = vrot.slane %v6402_v49, %v21953_v54  ;;  %v6400_v17 = vrot.slane %v6372_v56, %v16712_v24  ;;  %v5588_v61 = vcombine.high %v5584_v26, %v5584_v26  ;;  %v9206_v11 = vadd.f32 %v9078_v59, %v8950_v52  ;;  %v6850_v50 = vpop.permute.xlu1 %6849  ;;  %v22431_v60 = vld [vmem:[#allocation57_spill] sm:$0xff]  ;;  %v6852_v59 = vpop.permute.xlu0 %6851 }
 0x582   : > { %22427 = vst [vmem:[#allocation124_spill] sm:$0xff] %v19703_v55  ;;  %v8951_v0 = vmul.f32 %v7518_v9, %v22428_v21  ;;  %v19714_v20 = vmul.f32 %v7518_v9, %v22430_v58  ;;  %v7522_v1 = vrot.slane %v5584_v26, %v21953_v54  ;;  %v19718_v16 = vrot.slane %v10659_v46, %v15029_v5  ;;  %v22432_v9 = vld [vmem:[#allocation58_spill] sm:$0xff]  ;;  %v22433_v26 = vld [vmem:[#allocation151_spill] sm:$0xff] }
 0x583   : > { %v9204_v49 = vadd.f32 %v9076_v10, %v19600_v19  ;;  %v8953_v56 = vmul.f32 %v7526_v31, %v22431_v60  ;;  %v6404_v30 = vcombine.high %v6400_v17, %v6400_v17  ;;  %v9675_v52 = vcombine.low %v8815_v62, %v8817_v18  ;;  %v22434_v46 = vld [vmem:[#allocation154_spill] sm:$0xff] }
 0x584   : > { %6907 = vrot.lane.b32.xlu0 %v22429_v44, %s13981_s19  ;;  %6901 = vrot.lane.b32.xlu1 %v19703_v55, %s13981_s19  ;;  %v19726_v21 = vcombine.high %v19671_v42, %v21722_v8  ;;  %v19729_v58 = vmul.f32 %v7526_v31, %v22432_v9  ;;  %v22435_v33 = vcombine.low %v22433_v26, %v22434_v46  ;;  %v22437_v9 = vld [vmem:[#allocation175_spill] sm:$0xff] }
 0x585   : > { %v8691_v10 = vmul.f32 %v19484_v39, %v19597_v40  ;;  %v9081_v18 = vmul.f32 %v19707_v32, %v7112_v45  ;;  %v19741_v62 = vrot.slane %v6400_v17, %v21953_v54  ;;  %v7530_v60 = vrot.slane %v5588_v61, %v21953_v54  ;;  %v7110_v43 = vpop.permute.xlu1 %7109  ;;  %v22440_v61 = vld [vmem:[#allocation185_spill] sm:$0xff] }
 0x586   : > { %v19735_v19 = vrot.slane %v22435_v33, %v15029_v5  ;;  %v10677_v55 = vcombine.low %v9204_v49, %v9206_v11  ;;  %v8690_v31 = vmul.f32 %v19519_v15, %v6842_v37  ;;  %v8952_v42 = vmul.f32 %v7522_v1, %v22437_v9  ;;  %v22438_v33 = vld [vmem:[#allocation120_spill] sm:$0xff] }
 0x587   : > { %v19750_v39 = vcombine.high %v22429_v44, %v21722_v8  ;;  %v8688_v45 = vmul.f32 %v19514_v3, %v19608_v38  ;;  %v9079_v17 = vmul.f32 %v19697_v22, %v7108_v41  ;;  %v8298_v15 = vrot.slane %v6404_v30, %v21953_v54  ;;  %v19759_v37 = vld [vmem:[%s14477_s27 + $0x50] sm:$0xff]  ;;  %v6856_v3 = vpop.permute.xlu0 %6855 }
 0x588   : > { %22436 = vst [vmem:[#allocation130_spill] sm:$0xff] %v19735_v19  ;;  %6911 = vrot.lane.b32.xlu0 %v22438_v33, %s13981_s19  ;;  %v19764_v11 = vrot.slane %v9675_v52, %v15005_v25  ;;  %v8693_v49 = vmul.f32 %v19523_v27, %v19628_v7  ;;  %v8694_v9 = vmul.f32 %v19606_v48, %v6850_v50  ;;  %v19772_v38 = vld [vmem:[%s14484_s25 + $0x50] sm:$0xff] }
 0x589   : > { %22439 = vst [vmem:[#allocation84_spill] sm:$0xff] %v19750_v39  ;;  %6905 = vrot.lane.b32.xlu1 %v19726_v21, %s13981_s19  ;;  %v8819_v30 = vadd.f32 %v8691_v10, %v19620_v28  ;;  %v9209_v41 = vadd.f32 %v9081_v18, %v8953_v56  ;;  %v9080_v40 = vmul.f32 %v19741_v62, %v7110_v43  ;;  %v7114_v48 = vpop.permute.xlu1 %7113 }
 0x58a   : > { %v8954_v44 = vmul.f32 %v7530_v60, %v22440_v61  ;;  %v10684_v52 = vrot.slane %v10677_v55, %v15005_v25  ;;  %v8818_v6 = vadd.f32 %v8690_v31, %v19650_v4  ;;  %v8692_v27 = vmul.f32 %v19593_v29, %v6846_v51  ;;  %v22441_v55 = vld [vmem:[#allocation181_spill] sm:$0xff] }
 0x58b   : > { %v19784_v7 = vrot.slane %v19759_v37, %v16712_v24  ;;  %v8816_v28 = vadd.f32 %v8688_v45, %v19624_v63  ;;  %v9207_v50 = vadd.f32 %v9079_v17, %v8951_v0  ;;  %v9082_v43 = vmul.f32 %v8298_v15, %v7114_v48  ;;  %v19795_v51 = vpop.permute.xlu0 %7115 }
 0x58c   : > { %7171 = vrot.lane.b32.xlu0 %v19735_v19, %s13981_s19  ;;  %v19789_v56 = vrot.slane %v19772_v38, %v16712_v24  ;;  %v8821_v4 = vadd.f32 %v8693_v49, %v19642_v53  ;;  %v8822_v29 = vadd.f32 %v8694_v9, %v19690_v13  ;;  %v7928_v10 = vmul.f32 %v7522_v1, %v22441_v55  ;;  %v22446_v9 = vld [vmem:[#allocation150_spill] sm:$0xff] }
 0x58d   : > { %6909 = vrot.lane.b32.xlu1 %v19750_v39, %s13981_s19  ;;  %v22442_v63 = vcombine.high %v22433_v26, %v22434_v46  ;;  %v10685_v18 = vcombine.low %v9207_v50, %v9209_v41  ;;  %v9208_v31 = vadd.f32 %v9080_v40, %v8952_v42  ;;  %v8697_v45 = vmul.f32 %v19707_v32, %v6856_v3  ;;  %v6854_v49 = vpop.permute.xlu1 %6853  ;;  %v22445_v32 = vld [vmem:[#allocation169_spill] sm:$0xff] }
 0x58e   : > { %v9210_v53 = vadd.f32 %v9082_v43, %v8954_v44  ;;  %v10701_v13 = vcombine.low %v19693_v57, %v10684_v52  ;;  %v9683_v17 = vcombine.low %v8816_v28, %v8818_v6  ;;  %v8820_v61 = vadd.f32 %v8692_v27, %v19665_v2 }
 0x58f   : > { %v19802_v0 = vrot.slane %v22442_v63, %v15029_v5  ;;  %v19811_v1 = vcombine.high %v22438_v33, %v21722_v8  ;;  %v8695_v26 = vmul.f32 %v19697_v22, %v6852_v59  ;;  %v5612_v42 = vrot.slane %v19784_v7, %v16712_v24  ;;  %v19822_v57 = vpop.permute.xlu0 %7119  ;;  %v22447_v22 = vld [vmem:[#allocation159_spill] sm:$0xff] }
 0x590   : > { %v10693_v46 = vcombine.low %v9208_v31, %v9210_v53  ;;  %v19818_v44 = vrot.slane %v19789_v56, %v16712_v24  ;;  %v9709_v6 = vcombine.low %v8819_v30, %v8821_v4  ;;  %v9717_v2 = vcombine.low %v8820_v61, %v8822_v29 }
 0x591   : > { %22443 = vst [vmem:[#allocation139_spill] sm:$0xff] %v19802_v0  ;;  %7175 = vrot.lane.b32.xlu0 %v19802_v0, %s13981_s19  ;;  %22444 = vst [vmem:[#allocation79_spill] sm:$0xff] %v19811_v1  ;;  %6913 = vrot.lane.b32.xlu1 %v19811_v1, %s13981_s19  ;;  %v7930_v40 = vmul.f32 %v7530_v60, %v22445_v32  ;;  %v22448_v59 = vcombine.low %v22446_v9, %v22447_v22  ;;  %v6858_v50 = vpop.permute.xlu1 %6857 }
 0x592   : > { %v10692_v41 = vrot.slane %v10685_v18, %v15005_v25  ;;  %v8825_v52 = vadd.f32 %v8697_v45, %v19729_v58  ;;  %v10700_v30 = vrot.slane %v10693_v46, %v15005_v25  ;;  %v8696_v27 = vmul.f32 %v19741_v62, %v6854_v49 }
 0x593   : > { %v19829_v3 = vrot.slane %v22448_v59, %v15029_v5  ;;  %v10708_v48 = vrot.slane %v10701_v13, %v15029_v5  ;;  %v9690_v28 = vrot.slane %v9683_v17, %v15005_v25  ;;  %v7534_v60 = vrot.slane %v5612_v42, %v21953_v54  ;;  %v19851_v31 = vpop.permute.xlu0 %6859 }
 0x594   : > { %v19842_v43 = vcombine.high %v19735_v19, %v21722_v8  ;;  %v8823_v58 = vadd.f32 %v8695_v26, %v19714_v20  ;;  %v10709_v4 = vcombine.low %v10692_v41, %v10700_v30  ;;  %v8698_v29 = vmul.f32 %v8298_v15, %v6858_v50  ;;  %v22456_v50 = vld [vmem:[#allocation118_spill] sm:$0xff] }
 0x595   : > { %22449 = vst [vmem:[#allocation108_spill] sm:$0xff] %v19829_v3  ;;  %6915 = vrot.lane.b32.xlu0 %v19829_v3, %s13981_s19  ;;  %v5604_v62 = vcombine.high %v19784_v7, %v19784_v7  ;;  %v9716_v55 = vrot.slane %v9709_v6, %v15005_v25  ;;  %v9724_v63 = vrot.slane %v9717_v2, %v15005_v25  ;;  %v19863_v49 = vpop.permute.xlu1 %7117 }
 0x596   : > { %22450 = vst [vmem:[#allocation116_spill] sm:$0xff] %v19842_v43  ;;  %v5634_v18 = vcombine.high %v5612_v42, %v5612_v42  ;;  %7173 = vrot.lane.b32.xlu1 %v19842_v43, %s13981_s19  ;;  %v22451_v45 = vcombine.high %v22446_v9, %v22447_v22  ;;  %v9725_v15 = vcombine.low %v8823_v58, %v8825_v52  ;;  %v22478_v43 = vld [vmem:[#allocation81_spill] sm:$0xff] }
 0x597   : > { %v10716_v53 = vrot.slane %v10709_v4, %v15029_v5  ;;  %v8824_v7 = vadd.f32 %v8696_v27, %v7928_v10  ;;  %v8826_v13 = vadd.f32 %v8698_v29, %v7930_v40  ;;  %v9699_v17 = vcombine.low %v19764_v11, %v9690_v28  ;;  %v19879_v40 = vpop.permute.xlu0 %6863 }
 0x598   : > { %v19857_v20 = vrot.slane %v22451_v45, %v15029_v5  ;;  %v6420_v61 = vcombine.high %v19789_v56, %v19789_v56  ;;  %v19869_v26 = vcombine.high %v19802_v0, %v21722_v8  ;;  %v5589_v46 = vcombine.high %v19759_v37, %v19759_v37  ;;  %v22460_v45 = vld [vmem:[#allocation142_spill] sm:$0xff] }
 0x599   : > { %v10717_v42 = vcombine.low %v10708_v48, %v10716_v53  ;;  %v10718_v10 = vcombine.high %v10708_v48, %v10716_v53  ;;  %v9733_v6 = vcombine.low %v8824_v7, %v8826_v13  ;;  %v5626_v11 = vrot.slane %v5604_v62, %v16712_v24  ;;  %v7122_v28 = vpop.permute.xlu1 %7121 }
 0x59a   : > { %22452 = vst [vmem:[#allocation78_spill] sm:$0xff] %v19857_v20  ;;  %6919 = vrot.lane.b32.xlu0 %v19857_v20, %s13981_s19  ;;  %22453 = vst [vmem:[#allocation50_spill] sm:$0xff] %v19869_v26  ;;  %v9741_v2 = vcombine.low %v9716_v55, %v9724_v63  ;;  %v6450_v56 = vcombine.high %v19818_v44, %v19818_v44  ;;  %v7542_v32 = vrot.slane %v5634_v18, %v21953_v54  ;;  %v22459_v55 = vld [vmem:[#allocation121_spill] sm:$0xff] }
 0x59b   : > { %7177 = vrot.lane.b32.xlu1 %v19869_v26, %s13981_s19  ;;  %v6405_v37 = vcombine.high %v19772_v38, %v19772_v38  ;;  %v9732_v9 = vrot.slane %v9725_v15, %v15005_v25  ;;  %v22454_v22 = vcombine.low %v19637_v47, %v19718_v16  ;;  %v22455_v41 = vcombine.high %v19637_v47, %v19718_v16 }
 0x59c   : > { %v9740_v30 = vrot.slane %v9733_v6, %v15005_v25  ;;  %v9706_v27 = vrot.slane %v9699_v17, %v15029_v5  ;;  %v6442_v48 = vrot.slane %v6420_v61, %v16712_v24  ;;  %v19897_v38 = vcombine.high %v19829_v3, %v21722_v8 }
 0x59d   : > { %v13002_v59 = vpack.c.bf16 %v10717_v42, %v22454_v22  ;;  %v13042_v52 = vpack.c.bf16 %v10718_v10, %v22455_v41  ;;  %v19900_v58 = vrot.slane %v5589_v46, %v16712_v24  ;;  %v22458_v47 = vcombine.low %v19576_v36, %v19645_v34  ;;  %v19919_v36 = vpop.permute.xlu0 %7123  ;;  %v19928_v42 = vpop.permute.xlu1 %6861  ;;  %v22462_v10 = vld [vmem:[#allocation127_spill] sm:$0xff] }
 0x59e   : > { %7179 = vrot.lane.b32.xlu0 %v22456_v50, %s13981_s19  ;;  %22457 = vst [vmem:[#allocation63_spill] sm:$0xff] %v19897_v38  ;;  %v19910_v4 = vrot.slane %v19818_v44, %v21953_v54  ;;  %v9749_v29 = vcombine.low %v9732_v9, %v9740_v30  ;;  %v5636_v62 = vcombine.high %v5626_v11, %v5626_v11  ;;  %v22461_v44 = vld [vmem:[#allocation112_spill] sm:$0xff]  ;;  %v22464_v41 = vld [vmem:[#allocation59_spill] sm:$0xff] }
 0x59f   : > { %v9698_v16 = vrot.slane %v22458_v47, %v15029_v5  ;;  %13157 = vst [vmem:[%s17404_s8 + $0x20] sm:$0xff] %v13002_v59   ;;  %13165 = vst [vmem:[%s17404_s8 + $0x60] sm:$0xff] %v13042_v52   ;;  %v8955_v63 = vmul.f32 %v7534_v60, %v22459_v55  ;;  %v8310_v18 = vrot.slane %v6450_v56, %v21953_v54  ;;  %6917 = vrot.lane.b32.xlu1 %v19897_v38, %s13981_s19  ;;  %v19954_v47 = vld [vmem:[%s14484_s25 + $0x58] sm:$0xff] }
 0x5a0   : > { %v19915_v15 = vmul.f32 %v7534_v60, %v22460_v45  ;;  %v6452_v53 = vcombine.high %v6442_v48, %v6442_v48  ;;  %v9748_v34 = vrot.slane %v9741_v2, %v15029_v5  ;;  %v8957_v7 = vmul.f32 %v7542_v32, %v22461_v44  ;;  %v19937_v2 = vld [vmem:[%s14477_s27 + $0x58] sm:$0xff]  ;;  %v22467_v44 = vld [vmem:[#allocation46_spill] sm:$0xff] }
 0x5a1   : > { %v9756_v13 = vrot.slane %v9749_v29, %v15029_v5  ;;  %v6419_v17 = vrot.slane %v6405_v37, %v16712_v24  ;;  %v9707_v61 = vcombine.low %v9698_v16, %v9706_v27  ;;  %v7538_v46 = vrot.slane %v5626_v11, %v21953_v54  ;;  %v19962_v55 = vpop.permute.xlu1 %6865  ;;  %v22465_v45 = vld [vmem:[#allocation128_spill] sm:$0xff]  ;;  %v22470_v38 = vld [vmem:[#allocation161_spill] sm:$0xff] }
 0x5a2   : > { %v5619_v60 = vrot.slane %v19900_v58, %v16712_v24  ;;  %7183 = vrot.lane.b32.xlu0 %v22462_v10, %s13981_s19  ;;  %v19934_v6 = vcombine.high %v19857_v20, %v21722_v8  ;;  %v9708_v56 = vcombine.high %v9698_v16, %v9706_v27  ;;  %v7546_v11 = vrot.slane %v5636_v62, %v21953_v54  ;;  %v19951_v27 = vpop.permute.xlu0 %7127 }
 0x5a3   : > { %v9757_v37 = vcombine.low %v9748_v34, %v9756_v13  ;;  %v9758_v9 = vcombine.high %v9748_v34, %v9756_v13  ;;  %v9083_v22 = vmul.f32 %v19910_v4, %v19795_v51  ;;  %v19943_v59 = vrot.slane %v6442_v48, %v21953_v54 }
 0x5a4   : > { %22463 = vst [vmem:[#allocation192_spill] sm:$0xff] %v19934_v6  ;;  %v7933_v52 = vmul.f32 %v7542_v32, %v22464_v41  ;;  %v19947_v30 = vrot.slane %v6452_v53, %v21953_v54  ;;  %6921 = vrot.lane.b32.xlu1 %v19934_v6, %s13981_s19  ;;  %v6435_v51 = vrot.slane %v6419_v17, %v16712_v24  ;;  %v22469_v41 = vld [vmem:[#allocation72_spill] sm:$0xff] }
 0x5a5   : > { %v12922_v16 = vpack.c.bf16 %v9757_v37, %v9707_v61  ;;  %v12962_v29 = vpack.c.bf16 %v9758_v9, %v9708_v56  ;;  %v19959_v48 = vrot.slane %v19937_v2, %v16712_v24  ;;  %v9085_v32 = vmul.f32 %v8310_v18, %v19822_v57  ;;  %v22468_v61 = vld [vmem:[#allocation173_spill] sm:$0xff] }
 0x5a6   : > { %v5635_v62 = vcombine.high %v5619_v60, %v5619_v60  ;;  %6923 = vrot.lane.b32.xlu0 %v22465_v45, %s13981_s19  ;;  %v19968_v53 = vcombine.high %v22456_v50, %v21722_v8  ;;  %v5605_v34 = vcombine.high %v19900_v58, %v19900_v58  ;;  %v8956_v13 = vmul.f32 %v7538_v46, %v22467_v44 }
 0x5a7   : > { %13142 = vst [vmem:[%s17453_s28 + $0x20] sm:$0xff] %v12922_v16   ;;  %13150 = vst [vmem:[%s17453_s28 + $0x60] sm:$0xff] %v12962_v29   ;;  %v8958_v56 = vmul.f32 %v7546_v11, %v22468_v61  ;;  %v19978_v57 = vrot.slane %v19954_v47, %v16712_v24  ;;  %v6421_v37 = vcombine.high %v6419_v17, %v6419_v17  ;;  %v19991_v16 = vpop.permute.xlu0 %7131 }
 0x5a8   : > { %22466 = vst [vmem:[#allocation196_spill] sm:$0xff] %v19968_v53  ;;  %v19981_v9 = vrot.slane %v5619_v60, %v21953_v54  ;;  %v19984_v50 = vmul.f32 %v7538_v46, %v22469_v41  ;;  %v6451_v6 = vcombine.high %v6435_v51, %v6435_v51  ;;  %v19987_v58 = vmul.f32 %v7546_v11, %v22470_v38  ;;  %v20003_v11 = vpop.permute.xlu1 %7125  ;;  %v22471_v41 = vld [vmem:[#allocation134_spill] sm:$0xff] }
 0x5a9   : > { %7181 = vrot.lane.b32.xlu1 %v19968_v53, %s13981_s19  ;;  %v9211_v29 = vadd.f32 %v9083_v22, %v8955_v63  ;;  %v9086_v44 = vmul.f32 %v19947_v30, %v7122_v28  ;;  %v19995_v17 = vrot.slane %v6435_v51, %v21953_v54  ;;  %v5661_v60 = vrot.slane %v19959_v48, %v16712_v24 }
 0x5aa   : > { %v9213_v46 = vadd.f32 %v9085_v32, %v8957_v7  ;;  %v20000_v61 = vrot.slane %v5635_v62, %v21953_v54  ;;  %v5633_v38 = vrot.slane %v5605_v34, %v16712_v24  ;;  %6927 = vrot.lane.b32.xlu0 %v22471_v41, %s13981_s19  ;;  %v20009_v28 = vcombine.high %v22462_v10, %v21722_v8  ;;  %v22473_v32 = vld [vmem:[#allocation53_spill] sm:$0xff] }
 0x5ab   : > { %v9084_v63 = vmul.f32 %v19943_v59, %v19863_v49  ;;  %v8701_v22 = vmul.f32 %v8310_v18, %v19879_v40  ;;  %v6477_v7 = vrot.slane %v19978_v57, %v16712_v24  ;;  %v6449_v51 = vrot.slane %v6421_v37, %v16712_v24  ;;  %v20027_v49 = vpop.permute.xlu0 %7135  ;;  %v22474_v40 = vld [vmem:[#allocation163_spill] sm:$0xff] }
 0x5ac   : > { %22472 = vst [vmem:[#allocation80_spill] sm:$0xff] %v20009_v28  ;;  %v8959_v62 = vmul.f32 %v19981_v9, %v22473_v32  ;;  %v20020_v34 = vrot.slane %v6451_v6, %v21953_v54  ;;  %v20023_v53 = vrot.slane %v5661_v60, %v21953_v54  ;;  %v22475_v18 = vld [vmem:[#allocation167_spill] sm:$0xff]  ;;  %v8699_v37 = vmul.f32 %v19910_v4, %v19851_v31 }
 0x5ad   : > { %7185 = vrot.lane.b32.xlu1 %v20009_v28, %s13981_s19  ;;  %v22476_v10 = vcombine.low %v22474_v40, %v22475_v18  ;;  %v9214_v32 = vadd.f32 %v9086_v44, %v8958_v56  ;;  %v5683_v6 = vcombine.high %v5661_v60, %v5661_v60  ;;  %v6453_v3 = vcombine.high %v6449_v51, %v6449_v51  ;;  %v7130_v28 = vpop.permute.xlu1 %7129  ;;  %v22480_v56 = vld [vmem:[#allocation65_spill] sm:$0xff] }
 0x5ae   : > { %v10719_v26 = vcombine.low %v9211_v29, %v9213_v46  ;;  %v8961_v19 = vmul.f32 %v20000_v61, %v22478_v43  ;;  %v5637_v0 = vcombine.high %v5633_v38, %v5633_v38  ;;  %v20043_v1 = vcombine.high %v22465_v45, %v21722_v8  ;;  %v22503_v45 = vld [vmem:[#allocation68_spill] sm:$0xff] }
 0x5af   : > { %v20033_v20 = vrot.slane %v22476_v10, %v15029_v5  ;;  %v9212_v10 = vadd.f32 %v9084_v63, %v8956_v13  ;;  %v8829_v39 = vadd.f32 %v8701_v22, %v7933_v52  ;;  %v20046_v31 = vrot.slane %v6477_v7, %v21953_v54  ;;  %v20057_v44 = vpop.permute.xlu0 %6867 }
 0x5b0   : > { %22479 = vst [vmem:[#allocation147_spill] sm:$0xff] %v20043_v1  ;;  %v20049_v4 = vrot.slane %v5633_v38, %v21953_v54  ;;  %v20053_v43 = vmul.f32 %v20023_v53, %v22480_v56  ;;  %v6499_v29 = vcombine.high %v6477_v7, %v6477_v7  ;;  %v5653_v13 = vcombine.high %v19959_v48, %v19959_v48 }
 0x5b1   : > { %22477 = vst [vmem:[#allocation141_spill] sm:$0xff] %v20033_v20  ;;  %7187 = vrot.lane.b32.xlu0 %v20033_v20, %s13981_s19  ;;  %6925 = vrot.lane.b32.xlu1 %v20043_v1, %s13981_s19  ;;  %v22481_v52 = vcombine.high %v22474_v40, %v22475_v18  ;;  %v8827_v46 = vadd.f32 %v8699_v37, %v19915_v15  ;;  %v20080_v40 = vpop.permute.xlu1 %7133 }
 0x5b2   : > { %v10727_v38 = vcombine.low %v9212_v10, %v9214_v32  ;;  %v20069_v63 = vrot.slane %v5683_v6, %v21953_v54  ;;  %v20072_v22 = vrot.slane %v6453_v3, %v21953_v54  ;;  %v10726_v7 = vrot.slane %v10719_v26, %v15005_v25  ;;  %v22485_v10 = vld [vmem:[#allocation160_spill] sm:$0xff] }
 0x5b3   : > { %v20065_v60 = vrot.slane %v22481_v52, %v15029_v5  ;;  %v9089_v48 = vmul.f32 %v20020_v34, %v19951_v27  ;;  %v20078_v56 = vrot.slane %v5637_v0, %v21953_v54  ;;  %v20086_v15 = vcombine.high %v22471_v41, %v21722_v8  ;;  %v22484_v27 = vld [vmem:[#allocation54_spill] sm:$0xff] }
 0x5b4   : > { %v9759_v18 = vcombine.low %v8827_v46, %v8829_v39  ;;  %v9087_v3 = vmul.f32 %v19995_v17, %v19919_v36  ;;  %v20091_v26 = vrot.slane %v6449_v51, %v21953_v54  ;;  %v8960_v0 = vmul.f32 %v20049_v4, %v22484_v27  ;;  %v6872_v36 = vpop.permute.xlu0 %6871 }
 0x5b5   : > { %22482 = vst [vmem:[#allocation44_spill] sm:$0xff] %v20065_v60  ;;  %7191 = vrot.lane.b32.xlu0 %v20065_v60, %s13981_s19  ;;  %22483 = vst [vmem:[#allocation146_spill] sm:$0xff] %v20086_v15  ;;  %v8700_v37 = vmul.f32 %v19943_v59, %v19928_v42  ;;  %v8702_v32 = vmul.f32 %v19947_v30, %v19962_v55  ;;  %v20100_v6 = vrot.slane %v6499_v29, %v21953_v54  ;;  %v22486_v30 = vld [vmem:[#allocation64_spill] sm:$0xff]  ;;  %v20113_v29 = vpop.permute.xlu1 %7137 }
 0x5b6   : > { %v5675_v39 = vrot.slane %v5653_v13, %v16712_v24  ;;  %6929 = vrot.lane.b32.xlu1 %v20086_v15, %s13981_s19  ;;  %v10734_v51 = vrot.slane %v10727_v38, %v15005_v25  ;;  %v8965_v52 = vmul.f32 %v20069_v63, %v22485_v10  ;;  %v9090_v46 = vmul.f32 %v20072_v22, %v7130_v28  ;;  %v22487_v13 = vld [vmem:[#allocation137_spill] sm:$0xff] }
 0x5b7   : > { %v6469_v42 = vcombine.high %v19978_v57, %v19978_v57  ;;  %v9217_v59 = vadd.f32 %v9089_v48, %v8961_v19  ;;  %v8962_v55 = vmul.f32 %v20078_v56, %v22486_v30  ;;  %v20119_v38 = vcombine.high %v20033_v20, %v21722_v8  ;;  %v22489_v15 = vld [vmem:[#allocation61_spill] sm:$0xff] }
 0x5b8   : > { %v5638_v27 = vcombine.high %v19937_v2, %v19937_v2  ;;  %v20124_v28 = vrot.slane %v9759_v18, %v15005_v25  ;;  %v9215_v57 = vadd.f32 %v9087_v3, %v8959_v62  ;;  %v9088_v19 = vmul.f32 %v20091_v26, %v20003_v11  ;;  %v20138_v2 = vpop.permute.xlu0 %6875 }
 0x5b9   : > { %7195 = vrot.lane.b32.xlu0 %v22487_v13, %s13981_s19  ;;  %22488 = vst [vmem:[#allocation164_spill] sm:$0xff] %v20119_v38  ;;  %v6454_v48 = vcombine.high %v19954_v47, %v19954_v47  ;;  %v8828_v10 = vadd.f32 %v8700_v37, %v19984_v50  ;;  %v8830_v30 = vadd.f32 %v8702_v32, %v19987_v58  ;;  %v20144_v58 = vpop.permute.xlu1 %6869 }
 0x5ba   : > { %v20134_v20 = vmul.f32 %v19981_v9, %v22489_v15  ;;  %v5685_v1 = vcombine.high %v5675_v39, %v5675_v39  ;;  %7189 = vrot.lane.b32.xlu1 %v20119_v38, %s13981_s19  ;;  %v10751_v62 = vcombine.low %v10726_v7, %v10734_v51  ;;  %v9218_v18 = vadd.f32 %v9090_v46, %v8962_v55  ;;  %v22490_v9 = vld [vmem:[#allocation140_spill] sm:$0xff] }
 0x5bb   : > { %v6491_v11 = vrot.slane %v6469_v42, %v16712_v24  ;;  %v7570_v47 = vrot.slane %v5675_v39, %v21953_v54  ;;  %v10735_v3 = vcombine.low %v9215_v57, %v9217_v59  ;;  %v9093_v50 = vmul.f32 %v20100_v6, %v20027_v49  ;;  %v22492_v49 = vld [vmem:[#allocation106_spill] sm:$0xff]  ;;  %v22494_v57 = vld [vmem:[#allocation168_spill] sm:$0xff] }
 0x5bc   : > { %v20150_v15 = vcombine.high %v20065_v60, %v21722_v8  ;;  %v5652_v7 = vrot.slane %v5638_v27, %v16712_v24  ;;  %v9091_v37 = vmul.f32 %v20046_v31, %v19991_v16  ;;  %v9216_v32 = vadd.f32 %v9088_v19, %v8960_v0  ;;  %v20161_v55 = vpop.permute.xlu0 %6879  ;;  %v22493_v27 = vld [vmem:[#allocation165_spill] sm:$0xff] }
 0x5bd   : > { %7199 = vrot.lane.b32.xlu0 %v22490_v9, %s13981_s19  ;;  %v6501_v39 = vcombine.high %v6491_v11, %v6491_v11  ;;  %v6468_v51 = vrot.slane %v6454_v48, %v16712_v24  ;;  %v9767_v46 = vcombine.low %v8828_v10, %v8830_v30  ;;  %v7937_v42 = vmul.f32 %v20000_v61, %v22492_v49  ;;  %v22497_v61 = vld [vmem:[#allocation103_spill] sm:$0xff]  ;;  %v6874_v49 = vpop.permute.xlu1 %6873 }
 0x5be   : > { %22491 = vst [vmem:[#allocation148_spill] sm:$0xff] %v20150_v15  ;;  %v7578_v59 = vrot.slane %v5685_v1, %v21953_v54  ;;  %7193 = vrot.lane.b32.xlu1 %v20150_v15, %s13981_s19  ;;  %v22495_v38 = vcombine.low %v22493_v27, %v22494_v57  ;;  %v20170_v0 = vrot.slane %v10751_v62, %v15029_v5  ;;  %v22500_v15 = vld [vmem:[#allocation152_spill] sm:$0xff] }
 0x5bf   : > { %v10743_v19 = vcombine.low %v9216_v32, %v9218_v18  ;;  %v20173_v48 = vrot.slane %v6491_v11, %v21953_v54  ;;  %v8964_v1 = vmul.f32 %v7570_v47, %v22497_v61  ;;  %v10742_v10 = vrot.slane %v10735_v3, %v15005_v25  ;;  %v22499_v3 = vld [vmem:[#allocation77_spill] sm:$0xff] }
 0x5c0   : > { %v20167_v16 = vrot.slane %v22495_v38, %v15029_v5  ;;  %v9221_v30 = vadd.f32 %v9093_v50, %v8965_v52  ;;  %v20181_v38 = vcombine.high %v22487_v13, %v21722_v8  ;;  %v5668_v62 = vrot.slane %v5652_v7, %v16712_v24  ;;  %v7140_v13 = vpop.permute.xlu0 %7139 }
 0x5c1   : > { %v9219_v18 = vadd.f32 %v9091_v37, %v20053_v43  ;;  %v20186_v11 = vrot.slane %v6501_v39, %v21953_v54  ;;  %v6484_v32 = vrot.slane %v6468_v51, %v16712_v24  ;;  %v5654_v61 = vcombine.high %v5652_v7, %v5652_v7 }
 0x5c2   : > { %22496 = vst [vmem:[#allocation89_spill] sm:$0xff] %v20167_v16  ;;  %6931 = vrot.lane.b32.xlu0 %v20167_v16, %s13981_s19  ;;  %22498 = vst [vmem:[#allocation162_spill] sm:$0xff] %v20181_v38  ;;  %v20190_v52 = vrot.slane %v9767_v46, %v15005_v25  ;;  %v8966_v50 = vmul.f32 %v7578_v59, %v22499_v3  ;;  %v20195_v60 = vmul.f32 %v20023_v53, %v22500_v15  ;;  %v6878_v15 = vpop.permute.xlu1 %6877 }
 0x5c3   : > { %7197 = vrot.lane.b32.xlu1 %v20181_v38, %s13981_s19  ;;  %v22501_v43 = vcombine.high %v22493_v27, %v22494_v57  ;;  %v10750_v7 = vrot.slane %v10743_v19, %v15005_v25  ;;  %v8705_v39 = vmul.f32 %v20020_v34, %v6872_v36  ;;  %v6500_v46 = vcombine.high %v6484_v32, %v6484_v32  ;;  %v20317_v38 = vld [vmem:[%s14484_s25 + $0x60] sm:$0xff] }
 0x5c4   : > { %v6470_v3 = vcombine.high %v6468_v51, %v6468_v51  ;;  %v10769_v41 = vcombine.low %v9219_v18, %v9221_v30  ;;  %v20209_v53 = vmul.f32 %v20049_v4, %v22503_v45  ;;  %v20215_v27 = vcombine.high %v22490_v9, %v21722_v8 }
 0x5c5   : > { %v20203_v37 = vrot.slane %v22501_v43, %v15029_v5  ;;  %v5684_v57 = vcombine.high %v5668_v62, %v5668_v62  ;;  %v8703_v19 = vmul.f32 %v19995_v17, %v20057_v44  ;;  %v20221_v34 = vmul.f32 %v20069_v63, %v22362_v12  ;;  %v7144_v12 = vpop.permute.xlu0 %7143 }
 0x5c6   : > { %22504 = vst [vmem:[#allocation123_spill] sm:$0xff] %v20215_v27  ;;  %v7938_v45 = vmul.f32 %v20078_v56, %v19148_v14  ;;  %v5682_v4 = vrot.slane %v5654_v61, %v16712_v24  ;;  %v9092_v36 = vmul.f32 %v20173_v48, %v20080_v40  ;;  %v9094_v51 = vmul.f32 %v20186_v11, %v20113_v29 }
 0x5c7   : > { %22502 = vst [vmem:[#allocation183_spill] sm:$0xff] %v20203_v37  ;;  %6935 = vrot.lane.b32.xlu0 %v20203_v37, %s13981_s19  ;;  %v7582_v30 = vrot.slane %v5668_v62, %v21953_v54  ;;  %v20232_v18 = vmul.f32 %v7570_v47, %v19188_v23  ;;  %7201 = vrot.lane.b32.xlu1 %v20215_v27, %s13981_s19  ;;  %v6882_v23 = vpop.permute.xlu1 %6881  ;;  %v22505_v47 = vld [vmem:[#allocation73_spill] sm:$0xff] }
 0x5c8   : > { %v10759_v17 = vcombine.low %v10742_v10, %v10750_v7  ;;  %v8833_v44 = vadd.f32 %v8705_v39, %v7937_v42  ;;  %v8358_v14 = vrot.slane %v6500_v46, %v21953_v54  ;;  %v6498_v63 = vrot.slane %v6470_v3, %v16712_v24  ;;  %v22507_v39 = vld [vmem:[#allocation71_spill] sm:$0xff] }
 0x5c9   : > { %v20239_v56 = vrot.slane %v10769_v41, %v15005_v25  ;;  %v20242_v40 = vrot.slane %v5684_v57, %v21953_v54  ;;  %v7942_v29 = vmul.f32 %v7578_v59, %v19247_v35  ;;  %v20249_v10 = vcombine.high %v20167_v16, %v21722_v8  ;;  %v22508_v35 = vld [vmem:[#allocation94_spill] sm:$0xff]  ;;  %v6884_v3 = vpop.permute.xlu0 %6883 }
 0x5ca   : > { %v8831_v42 = vadd.f32 %v8703_v19, %v20134_v20  ;;  %v8350_v62 = vrot.slane %v6484_v32, %v21953_v54  ;;  %v5686_v61 = vcombine.high %v5682_v4, %v5682_v4  ;;  %v6502_v41 = vcombine.high %v6498_v63, %v6498_v63  ;;  %v22509_v19 = vld [vmem:[#allocation104_spill] sm:$0xff] }
 0x5cb   : > { %6939 = vrot.lane.b32.xlu0 %v22505_v47, %s13981_s19  ;;  %22506 = vst [vmem:[#allocation125_spill] sm:$0xff] %v20249_v10  ;;  %v9220_v43 = vadd.f32 %v9092_v36, %v8964_v1  ;;  %v9222_v7 = vadd.f32 %v9094_v51, %v8966_v50  ;;  %v8967_v46 = vmul.f32 %v7582_v30, %v22507_v39  ;;  %v7142_v51 = vpop.permute.xlu1 %7141  ;;  %v22512_v39 = vld [vmem:[#allocation172_spill] sm:$0xff] }
 0x5cc   : > { %6933 = vrot.lane.b32.xlu1 %v20249_v10, %s13981_s19  ;;  %v20257_v59 = vmul.f32 %v7582_v30, %v22508_v35  ;;  %v20260_v57 = vrot.slane %v10759_v17, %v15029_v5  ;;  %v9775_v27 = vcombine.low %v8831_v42, %v8833_v44  ;;  %v9097_v20 = vmul.f32 %v8358_v14, %v7144_v12  ;;  %v22510_v30 = vld [vmem:[#allocation76_spill] sm:$0xff] }
 0x5cd   : > { %v8354_v32 = vrot.slane %v6498_v63, %v21953_v54  ;;  %v8707_v1 = vmul.f32 %v20046_v31, %v20138_v2  ;;  %v8706_v50 = vmul.f32 %v20072_v22, %v6874_v49  ;;  %v8969_v36 = vmul.f32 %v20242_v40, %v22509_v19  ;;  %v6888_v42 = vpop.permute.xlu0 %6887  ;;  %v22513_v35 = vld [vmem:[#allocation176_spill] sm:$0xff] }
 0x5ce   : > { %v20272_v17 = vcombine.high %v20203_v37, %v21722_v8  ;;  %v9095_v44 = vmul.f32 %v8350_v62, %v7140_v13  ;;  %v7586_v12 = vrot.slane %v5682_v4, %v21953_v54  ;;  %v7594_v63 = vrot.slane %v5686_v61, %v21953_v54 }
 0x5cf   : > { %6943 = vrot.lane.b32.xlu0 %v22510_v30, %s13981_s19  ;;  %v8362_v31 = vrot.slane %v6502_v41, %v21953_v54  ;;  %v10777_v2 = vcombine.low %v9220_v43, %v9222_v7  ;;  %v8704_v22 = vmul.f32 %v20091_v26, %v20144_v58  ;;  %v8710_v49 = vmul.f32 %v20186_v11, %v6882_v23  ;;  %v7146_v43 = vpop.permute.xlu1 %7145 }
 0x5d0   : > { %22511 = vst [vmem:[#allocation91_spill] sm:$0xff] %v20272_v17  ;;  %6937 = vrot.lane.b32.xlu1 %v20272_v17, %s13981_s19  ;;  %v22514_v13 = vcombine.low %v22512_v39, %v22513_v35  ;;  %v20291_v61 = vrot.slane %v9775_v27, %v15005_v25  ;;  %v9225_v41 = vadd.f32 %v9097_v20, %v8969_v36  ;;  %v22517_v27 = vld [vmem:[#allocation93_spill] sm:$0xff] }
 0x5d1   : > { %v9096_v26 = vmul.f32 %v8354_v32, %v7142_v51  ;;  %v8709_v58 = vmul.f32 %v20100_v6, %v20161_v55  ;;  %v8834_v11 = vadd.f32 %v8706_v50, %v7938_v45  ;;  %v8708_v23 = vmul.f32 %v20173_v48, %v6878_v15  ;;  %v22518_v20 = vld [vmem:[#allocation97_spill] sm:$0xff]  ;;  %v20308_v15 = vpop.permute.xlu0 %7147  ;;  %v22519_v45 = vld [vmem:[#allocation171_spill] sm:$0xff]  ;;  %v22520_v50 = vld [vmem:[#allocation178_spill] sm:$0xff] }
 0x5d2   : > { %v20286_v19 = vrot.slane %v22514_v13, %v15029_v5  ;;  %v20300_v7 = vcombine.high %v22505_v47, %v21722_v8  ;;  %v9223_v13 = vadd.f32 %v9095_v44, %v8967_v46  ;;  %v8968_v4 = vmul.f32 %v7586_v12, %v22517_v27 }
 0x5d3   : > { %v8970_v36 = vmul.f32 %v7594_v63, %v22518_v20  ;;  %v9098_v51 = vmul.f32 %v8362_v31, %v7146_v43  ;;  %v10784_v6 = vrot.slane %v10777_v2, %v15005_v25  ;;  %v8832_v55 = vadd.f32 %v8704_v22, %v20209_v53  ;;  %v6886_v22 = vpop.permute.xlu1 %6885 }
 0x5d4   : > { %22515 = vst [vmem:[#allocation188_spill] sm:$0xff] %v20286_v19  ;;  %7203 = vrot.lane.b32.xlu0 %v20286_v19, %s13981_s19  ;;  %22516 = vst [vmem:[#allocation187_spill] sm:$0xff] %v20300_v7  ;;  %v8838_v48 = vadd.f32 %v8710_v49, %v7942_v29  ;;  %6941 = vrot.lane.b32.xlu1 %v20300_v7, %s13981_s19  ;;  %v22521_v17 = vcombine.low %v22519_v45, %v22520_v50 }
 0x5d5   : > { %v10785_v44 = vcombine.low %v9223_v13, %v9225_v41  ;;  %v9224_v27 = vadd.f32 %v9096_v26, %v8968_v4  ;;  %v8713_v20 = vmul.f32 %v8358_v14, %v6888_v42  ;;  %v9226_v43 = vadd.f32 %v9098_v51, %v8970_v36  ;;  %v22524_v42 = vld [vmem:[#allocation70_spill] sm:$0xff]  ;;  %v22527_v36 = vld [vmem:[#allocation117_spill] sm:$0xff] }
 0x5d6   : > { %v20314_v46 = vrot.slane %v22521_v17, %v15029_v5  ;;  %v8837_v53 = vadd.f32 %v8709_v58, %v20221_v34  ;;  %v9783_v29 = vcombine.low %v8832_v55, %v8834_v11  ;;  %v8836_v2 = vadd.f32 %v8708_v23, %v20232_v18  ;;  %v20337_v58 = vpop.permute.xlu0 %7151 }
 0x5d7   : > { %v20325_v17 = vcombine.high %v22510_v30, %v21722_v8  ;;  %v8835_v49 = vadd.f32 %v8707_v1, %v20195_v60  ;;  %v8711_v14 = vmul.f32 %v8350_v62, %v6884_v3  ;;  %v7945_v4 = vmul.f32 %v20242_v40, %v22524_v42  ;;  %v20348_v1 = vld [vmem:[%s14477_s27 + $0x60] sm:$0xff] }
 0x5d8   : > { %22522 = vst [vmem:[#allocation186_spill] sm:$0xff] %v20314_v46  ;;  %6947 = vrot.lane.b32.xlu0 %v20314_v46, %s13981_s19  ;;  %v10793_v41 = vcombine.low %v9224_v27, %v9226_v43  ;;  %v10801_v34 = vcombine.low %v20239_v56, %v10784_v6  ;;  %v9817_v26 = vcombine.low %v8836_v2, %v8838_v48  ;;  %v6890_v6 = vpop.permute.xlu1 %6889 }
 0x5d9   : > { %22523 = vst [vmem:[#allocation166_spill] sm:$0xff] %v20325_v17  ;;  %v20333_v18 = vrot.slane %v20317_v38, %v16712_v24  ;;  %6945 = vrot.lane.b32.xlu1 %v20325_v17, %s13981_s19  ;;  %v22525_v60 = vcombine.high %v22519_v45, %v22520_v50  ;;  %v10792_v40 = vrot.slane %v10785_v44, %v15005_v25  ;;  %v22529_v50 = vld [vmem:[#allocation67_spill] sm:$0xff] }
 0x5da   : > { %v8841_v3 = vadd.f32 %v8713_v20, %v7945_v4  ;;  %v10800_v56 = vrot.slane %v10793_v41, %v15005_v25  ;;  %v8712_v11 = vmul.f32 %v8354_v32, %v6886_v22  ;;  %v9809_v23 = vcombine.low %v8835_v49, %v8837_v53  ;;  %v20366_v43 = vpop.permute.xlu0 %6891 }
 0x5db   : > { %v20343_v62 = vrot.slane %v22525_v60, %v15029_v5  ;;  %v9790_v13 = vrot.slane %v9783_v29, %v15005_v25  ;;  %v7944_v51 = vmul.f32 %v7586_v12, %v22527_v36  ;;  %v20356_v55 = vcombine.high %v20286_v19, %v21722_v8 }
 0x5dc   : > { %v8839_v48 = vadd.f32 %v8711_v14, %v20257_v59  ;;  %v10809_v45 = vcombine.low %v10792_v40, %v10800_v56  ;;  %v7946_v44 = vmul.f32 %v7594_v63, %v22529_v50  ;;  %v8714_v27 = vmul.f32 %v8362_v31, %v6890_v6  ;;  %v20379_v42 = vpop.permute.xlu1 %7149 }
 0x5dd   : > { %22526 = vst [vmem:[#allocation87_spill] sm:$0xff] %v20343_v62  ;;  %6951 = vrot.lane.b32.xlu0 %v20343_v62, %s13981_s19  ;;  %22528 = vst [vmem:[#allocation170_spill] sm:$0xff] %v20356_v55  ;;  %v10808_v32 = vrot.slane %v10801_v34, %v15029_v5  ;;  %v9824_v20 = vrot.slane %v9817_v26, %v15005_v25  ;;  %v5694_v12 = vrot.slane %v20348_v1, %v16712_v24 }
 0x5de   : > { %7205 = vrot.lane.b32.xlu1 %v20356_v55, %s13981_s19  ;;  %v22530_v59 = vcombine.high %v22512_v39, %v22513_v35  ;;  %v9825_v63 = vcombine.low %v8839_v48, %v8841_v3  ;;  %v10816_v31 = vrot.slane %v10809_v45, %v15029_v5  ;;  %v8840_v29 = vadd.f32 %v8712_v11, %v7944_v51  ;;  %v20394_v3 = vpop.permute.xlu0 %6895  ;;  %v22542_v55 = vld [vmem:[#allocation132_spill] sm:$0xff] }
 0x5df   : > { %v8842_v2 = vadd.f32 %v8714_v27, %v7946_v44  ;;  %v9816_v22 = vrot.slane %v9809_v23, %v15005_v25  ;;  %v9799_v49 = vcombine.low %v20291_v61, %v9790_v13  ;;  %v6526_v14 = vrot.slane %v20333_v18, %v16712_v24 }
 0x5e0   : > { %v20372_v53 = vrot.slane %v22530_v59, %v15029_v5  ;;  %v20385_v39 = vcombine.high %v20314_v46, %v21722_v8  ;;  %v10768_v35 = vcombine.high %v20170_v0, %v20260_v57  ;;  %v10817_v4 = vcombine.low %v10808_v32, %v10816_v31  ;;  %v7154_v51 = vpop.permute.xlu1 %7153 }
 0x5e1   : > { %v10818_v41 = vcombine.high %v10808_v32, %v10816_v31  ;;  %v9833_v34 = vcombine.low %v8840_v29, %v8842_v2  ;;  %v9791_v61 = vcombine.low %v20124_v28, %v20190_v52  ;;  %v9841_v26 = vcombine.low %v9816_v22, %v9824_v20 }
 0x5e2   : > { %22531 = vst [vmem:[#allocation47_spill] sm:$0xff] %v20372_v53  ;;  %7207 = vrot.lane.b32.xlu0 %v20372_v53, %s13981_s19  ;;  %22532 = vst [vmem:[#allocation191_spill] sm:$0xff] %v20385_v39  ;;  %v5710_v60 = vrot.slane %v5694_v12, %v16712_v24  ;;  %v6548_v40 = vcombine.high %v6526_v14, %v6526_v14  ;;  %6949 = vrot.lane.b32.xlu1 %v20385_v39, %s13981_s19  ;;  %v20415_v50 = vpop.permute.xlu0 %7155 }
 0x5e3   : > { %v9832_v56 = vrot.slane %v9825_v63, %v15005_v25  ;;  %v22533_v11 = vcombine.low %v20170_v0, %v20260_v57  ;;  %v13047_v13 = vpack.c.bf16 %v10818_v41, %v10768_v35  ;;  %v9840_v36 = vrot.slane %v9833_v34, %v15005_v25 }
 0x5e4   : > { %v9806_v28 = vrot.slane %v9799_v49, %v15029_v5  ;;  %v5702_v52 = vcombine.high %v5694_v12, %v5694_v12  ;;  %v20404_v6 = vcombine.high %v20343_v62, %v21722_v8  ;;  %v6518_v45 = vcombine.high %v20333_v18, %v20333_v18  ;;  %v20421_v63 = vpop.permute.xlu1 %6893 }
 0x5e5   : > { %v13007_v23 = vpack.c.bf16 %v10817_v4, %v22533_v11  ;;  %13166 = vst [vmem:[%s17404_s8 + $0x68] sm:$0xff] %v13047_v13   ;;  %v9849_v48 = vcombine.low %v9832_v56, %v9840_v36  ;;  %v5687_v0 = vcombine.high %v20348_v1, %v20348_v1  ;;  %v9798_v57 = vrot.slane %v9791_v61, %v15029_v5  ;;  %v20441_v56 = vld [vmem:[%s14477_s27 + $0x68] sm:$0xff] }
 0x5e6   : > { %22534 = vst [vmem:[#allocation155_spill] sm:$0xff] %v20404_v6  ;;  %6953 = vrot.lane.b32.xlu1 %v20404_v6, %s13981_s19  ;;  %v9848_v44 = vrot.slane %v9841_v26, %v15029_v5  ;;  %v5732_v27 = vcombine.high %v5710_v60, %v5710_v60  ;;  %v8374_v32 = vrot.slane %v6548_v40, %v21953_v54  ;;  %v20434_v4 = vpop.permute.xlu0 %7159  ;;  %v22543_v6 = vld [vmem:[#allocation115_spill] sm:$0xff] }
 0x5e7   : > { %13158 = vst [vmem:[%s17404_s8 + $0x28] sm:$0xff] %v13007_v23   ;;  %v9856_v20 = vrot.slane %v9849_v48, %v15029_v5  ;;  %v9807_v12 = vcombine.low %v9798_v57, %v9806_v28  ;;  %v9808_v59 = vcombine.high %v9798_v57, %v9806_v28  ;;  %v5724_v18 = vrot.slane %v5702_v52, %v16712_v24  ;;  %v22536_v28 = vld [vmem:[#allocation184_spill] sm:$0xff]  ;;  %v20462_v57 = vld [vmem:[%s14484_s25 + $0x68] sm:$0xff] }
 0x5e8   : > { %v20425_v1 = vcombine.high %v20372_v53, %v21722_v8  ;;  %v6540_v2 = vrot.slane %v6518_v45, %v16712_v24  ;;  %v5701_v22 = vrot.slane %v5687_v0, %v16712_v24  ;;  %v8366_v49 = vrot.slane %v6526_v14, %v21953_v54  ;;  %v20438_v40 = vpop.permute.xlu1 %6897  ;;  %v22544_v53 = vld [vmem:[#allocation105_spill] sm:$0xff] }
 0x5e9   : > { %v9857_v31 = vcombine.low %v9848_v44, %v9856_v20  ;;  %v9858_v29 = vcombine.high %v9848_v44, %v9856_v20  ;;  %v6503_v35 = vcombine.high %v20317_v38, %v20317_v38  ;;  %v7606_v8 = vrot.slane %v5732_v27, %v21953_v54 }
 0x5ea   : > { %22535 = vst [vmem:[#allocation122_spill] sm:$0xff] %v20425_v1  ;;  %7209 = vrot.lane.b32.xlu1 %v20425_v1, %s13981_s19  ;;  %v6550_v61 = vcombine.high %v6540_v2, %v6540_v2  ;;  %v7598_v26 = vrot.slane %v5710_v60, %v21953_v54  ;;  %v9101_v14 = vmul.f32 %v8374_v32, %v20337_v58  ;;  %v20449_v36 = vpop.permute.xlu0 %7163  ;;  %v22537_v58 = vld [vmem:[#allocation182_spill] sm:$0xff] }
 0x5eb   : > { %v12927_v41 = vpack.c.bf16 %v9857_v31, %v9807_v12  ;;  %v12967_v34 = vpack.c.bf16 %v9858_v29, %v9808_v59  ;;  %v5734_v38 = vcombine.high %v5724_v18, %v5724_v18  ;;  %v5717_v11 = vrot.slane %v5701_v22, %v16712_v24  ;;  %v22538_v31 = vld [vmem:[#allocation177_spill] sm:$0xff] }
 0x5ec   : > { %v9099_v23 = vmul.f32 %v8366_v49, %v20308_v15  ;;  %v6517_v13 = vrot.slane %v6503_v35, %v16712_v24  ;;  %v8973_v60 = vmul.f32 %v7606_v8, %v22536_v28  ;;  %v20453_v52 = vrot.slane %v6550_v61, %v21953_v54  ;;  %v20464_v15 = vpop.permute.xlu1 %7157  ;;  %v22539_v35 = vld [vmem:[#allocation174_spill] sm:$0xff] }
 0x5ed   : > { %13143 = vst [vmem:[%s17453_s28 + $0x28] sm:$0xff] %v12927_v41   ;;  %13151 = vst [vmem:[%s17453_s28 + $0x68] sm:$0xff] %v12967_v34   ;;  %v20457_v48 = vrot.slane %v20441_v56, %v16712_v24  ;;  %v8971_v45 = vmul.f32 %v7598_v26, %v22537_v58  ;;  %v7602_v0 = vrot.slane %v5724_v18, %v21953_v54 }
 0x5ee   : > { %v9229_v44 = vadd.f32 %v9101_v14, %v8973_v60  ;;  %v8370_v27 = vrot.slane %v6540_v2, %v21953_v54  ;;  %v7610_v20 = vrot.slane %v5734_v38, %v21953_v54  ;;  %v5733_v12 = vcombine.high %v5717_v11, %v5717_v11  ;;  %v20471_v61 = vpop.permute.xlu0 %7167  ;;  %v22540_v38 = vld [vmem:[#allocation66_spill] sm:$0xff] }
 0x5ef   : > { %v9227_v59 = vadd.f32 %v9099_v23, %v8971_v45  ;;  %v7947_v29 = vmul.f32 %v7598_v26, %v22538_v31  ;;  %v7949_v41 = vmul.f32 %v7606_v8, %v22539_v35  ;;  %v6533_v34 = vrot.slane %v6517_v13, %v16712_v24  ;;  %v22541_v31 = vld [vmem:[#allocation99_spill] sm:$0xff] }
 0x5f0   : > { %v9102_v18 = vmul.f32 %v20453_v52, %v7154_v51  ;;  %v5759_v28 = vrot.slane %v20457_v48, %v16712_v24  ;;  %v6559_v2 = vrot.slane %v20462_v57, %v16712_v24  ;;  %v5703_v14 = vcombine.high %v5701_v22, %v5701_v22  ;;  %v20483_v58 = vpop.permute.xlu1 %7161 }
 0x5f1   : > { %v8972_v60 = vmul.f32 %v7602_v0, %v22540_v38  ;;  %v8717_v23 = vmul.f32 %v8374_v32, %v20394_v3  ;;  %v20481_v26 = vrot.slane %v5717_v11, %v21953_v54  ;;  %v6549_v8 = vcombine.high %v6533_v34, %v6533_v34 }
 0x5f2   : > { %v10819_v45 = vcombine.low %v9227_v59, %v9229_v44  ;;  %v9100_v51 = vmul.f32 %v8370_v27, %v20379_v42  ;;  %v8974_v35 = vmul.f32 %v7610_v20, %v22541_v31  ;;  %v20488_v1 = vrot.slane %v5733_v12, %v21953_v54  ;;  %v20495_v11 = vpop.permute.xlu0 %6899 }
 0x5f3   : > { %v8715_v22 = vmul.f32 %v8366_v49, %v20366_v43  ;;  %v7948_v38 = vmul.f32 %v7602_v0, %v22542_v55  ;;  %v20493_v3 = vmul.f32 %v7610_v20, %v22543_v6  ;;  %v6519_v32 = vcombine.high %v6517_v13, %v6517_v13  ;;  %v22545_v0 = vld [vmem:[#allocation149_spill] sm:$0xff] }
 0x5f4   : > { %v9230_v39 = vadd.f32 %v9102_v18, %v8974_v35  ;;  %v6575_v44 = vrot.slane %v6559_v2, %v16712_v24  ;;  %v5731_v42 = vrot.slane %v5703_v14, %v16712_v24  ;;  %v5781_v59 = vcombine.high %v5759_v28, %v5759_v28  ;;  %v20507_v6 = vpop.permute.xlu1 %7165 }
 0x5f5   : > { %v8845_v31 = vadd.f32 %v8717_v23, %v7949_v41  ;;  %v20500_v12 = vrot.slane %v6533_v34, %v21953_v54  ;;  %v8975_v43 = vmul.f32 %v20481_v26, %v22544_v53  ;;  %v20505_v55 = vrot.slane %v6549_v8, %v21953_v54 }
 0x5f6   : > { %v20510_v49 = vrot.slane %v10819_v45, %v15005_v25  ;;  %v9228_v13 = vadd.f32 %v9100_v51, %v8972_v60  ;;  %v8977_v20 = vmul.f32 %v20488_v1, %v22545_v0  ;;  %v7630_v41 = vrot.slane %v5759_v28, %v21953_v54  ;;  %v20517_v23 = vpop.permute.xlu0 %6903 }
 0x5f7   : > { %v8843_v18 = vadd.f32 %v8715_v22, %v7947_v29  ;;  %v6547_v34 = vrot.slane %v6519_v32, %v16712_v24  ;;  %v7618_v14 = vrot.slane %v5731_v42, %v21953_v54  ;;  %v6597_v53 = vcombine.high %v6575_v44, %v6575_v44 }
 0x5f8   : > { %v10827_v8 = vcombine.low %v9228_v13, %v9230_v39  ;;  %v20520_v35 = vrot.slane %v6575_v44, %v21953_v54  ;;  %v7638_v45 = vrot.slane %v5781_v59, %v21953_v54  ;;  %v5735_v60 = vcombine.high %v5731_v42, %v5731_v42  ;;  %v20525_v29 = vpop.permute.xlu1 %7169  ;;  %v22546_v59 = vld [vmem:[#allocation107_spill] sm:$0xff] }
 0x5f9   : > { %v9859_v51 = vcombine.low %v8843_v18, %v8845_v31  ;;  %v5751_v0 = vcombine.high %v20457_v48, %v20457_v48  ;;  %v6567_v28 = vcombine.high %v6559_v2, %v6559_v2  ;;  %v5736_v22 = vcombine.high %v20441_v56, %v20441_v56  ;;  %v22547_v2 = vld [vmem:[#allocation180_spill] sm:$0xff] }
 0x5fa   : > { %v9103_v32 = vmul.f32 %v20500_v12, %v20415_v50  ;;  %v8716_v39 = vmul.f32 %v8370_v27, %v20421_v63  ;;  %v9105_v44 = vmul.f32 %v20505_v55, %v20434_v4  ;;  %v6552_v42 = vcombine.high %v20462_v57, %v20462_v57  ;;  %v20544_v18 = vpop.permute.xlu0 %6907  ;;  %v22548_v63 = vld [vmem:[#allocation113_spill] sm:$0xff] }
 0x5fb   : > { %v8979_v31 = vmul.f32 %v7630_v41, %v22546_v59  ;;  %v20538_v48 = vrot.slane %v6547_v34, %v21953_v54  ;;  %v8976_v13 = vmul.f32 %v7618_v14, %v22547_v2  ;;  %v20542_v56 = vrot.slane %v6597_v53, %v21953_v54 }
 0x5fc   : > { %v10834_v50 = vrot.slane %v10827_v8, %v15005_v25  ;;  %v8981_v27 = vmul.f32 %v7638_v45, %v22548_v63  ;;  %v6551_v4 = vcombine.high %v6547_v34, %v6547_v34  ;;  %v7626_v62 = vrot.slane %v5735_v60, %v21953_v54  ;;  %v20554_v2 = vpop.permute.xlu1 %6901 }
 0x5fd   : > { %v20550_v57 = vrot.slane %v9859_v51, %v15005_v25  ;;  %v5773_v59 = vrot.slane %v5751_v0, %v16712_v24  ;;  %v6589_v46 = vrot.slane %v6567_v28, %v16712_v24  ;;  %v5750_v53 = vrot.slane %v5736_v22, %v16712_v24 }
 0x5fe   : > { %v9231_v19 = vadd.f32 %v9103_v32, %v8975_v43  ;;  %v20557_v17 = vadd.f32 %v8716_v39, %v7948_v38  ;;  %v9233_v8 = vadd.f32 %v9105_v44, %v8977_v20  ;;  %v6566_v63 = vrot.slane %v6552_v42, %v16712_v24  ;;  %v20566_v28 = vpop.permute.xlu0 %6911  ;;  %v22550_v43 = vld [vmem:[#allocation133_spill] sm:$0xff]  ;;  %v22551_v32 = vld [vmem:[#allocation119_spill] sm:$0xff] }
 0x5ff   : > { %22549 = vst [vmem:[#allocation126_spill] sm:$0xff] %v20550_v57  ;;  %v8718_v34 = vmul.f32 %v20453_v52, %v20438_v40  ;;  %v9107_v60 = vmul.f32 %v20520_v35, %v20449_v36  ;;  %v9109_v51 = vmul.f32 %v20542_v56, %v20471_v61  ;;  %v6599_v0 = vcombine.high %v6589_v46, %v6589_v46  ;;  %v22552_v40 = vld [vmem:[#allocation114_spill] sm:$0xff]  ;;  %v22553_v44 = vld [vmem:[#allocation75_spill] sm:$0xff] }
 0x600   : > { %v10851_v22 = vcombine.low %v20510_v49, %v10834_v50  ;;  %v8394_v38 = vrot.slane %v6551_v4, %v21953_v54  ;;  %v8978_v20 = vmul.f32 %v7626_v62, %v22550_v43  ;;  %v20573_v39 = vmul.f32 %v20481_v26, %v22551_v32  ;;  %v6906_v42 = vpop.permute.xlu1 %6905  ;;  %v22554_v50 = vld [vmem:[#allocation124_spill] sm:$0xff] }
 0x601   : > { %v20577_v52 = vmul.f32 %v20488_v1, %v22552_v40  ;;  %v5783_v36 = vcombine.high %v5773_v59, %v5773_v59  ;;  %v20580_v61 = vmul.f32 %v7630_v41, %v22553_v44  ;;  %v5766_v7 = vrot.slane %v5750_v53, %v16712_v24 }
 0x602   : > { %v10835_v49 = vcombine.low %v9231_v19, %v9233_v8  ;;  %v20584_v4 = vmul.f32 %v7618_v14, %v22554_v50  ;;  %v6582_v43 = vrot.slane %v6566_v63, %v16712_v24  ;;  %v5752_v30 = vcombine.high %v5750_v53, %v5750_v53  ;;  %v7172_v10 = vpop.permute.xlu0 %7171 }
 0x603   : > { %v20588_v26 = vadd.f32 %v8718_v34, %v20493_v3  ;;  %v9235_v32 = vadd.f32 %v9107_v60, %v8979_v31  ;;  %v9237_v1 = vadd.f32 %v9109_v51, %v8981_v27  ;;  %v8410_v40 = vrot.slane %v6599_v0, %v21953_v54 }
 0x604   : > { %v9104_v41 = vmul.f32 %v20538_v48, %v20464_v15  ;;  %v9106_v44 = vmul.f32 %v8394_v38, %v20483_v58  ;;  %v6598_v19 = vcombine.high %v6582_v43, %v6582_v43  ;;  %v6568_v8 = vcombine.high %v6566_v63, %v6566_v63  ;;  %v6910_v3 = vpop.permute.xlu1 %6909 }
 0x605   : > { %v7634_v14 = vrot.slane %v5773_v59, %v21953_v54  ;;  %v8402_v50 = vrot.slane %v6589_v46, %v21953_v54  ;;  %v7642_v53 = vrot.slane %v5783_v36, %v21953_v54  ;;  %v5782_v34 = vcombine.high %v5766_v7, %v5766_v7 }
 0x606   : > { %v20598_v31 = vrot.slane %v10851_v22, %v15029_v5  ;;  %v20601_v27 = vmul.f32 %v7638_v45, %v22438_v33  ;;  %v7954_v15 = vmul.f32 %v7626_v62, %v19726_v21  ;;  %v5780_v58 = vrot.slane %v5752_v30, %v16712_v24  ;;  %v7176_v51 = vpop.permute.xlu0 %7175  ;;  %v22555_v45 = vld [vmem:[#allocation110_spill] sm:$0xff]  ;;  %v22556_v62 = vld [vmem:[#allocation69_spill] sm:$0xff] }
 0x607   : > { %v20606_v63 = vrot.slane %v10835_v49, %v15005_v25  ;;  %v10869_v59 = vcombine.low %v9235_v32, %v9237_v1  ;;  %v9110_v60 = vmul.f32 %v8410_v40, %v20525_v29  ;;  %v9232_v0 = vadd.f32 %v9104_v41, %v8976_v13  ;;  %v22557_v1 = vld [vmem:[#allocation84_spill] sm:$0xff] }
 0x608   : > { %v9234_v22 = vadd.f32 %v9106_v44, %v8978_v20  ;;  %v8422_v36 = vrot.slane %v6598_v19, %v21953_v54  ;;  %v6596_v33 = vrot.slane %v6568_v8, %v16712_v24  ;;  %v8980_v21 = vmul.f32 %v7634_v14, %v22555_v45  ;;  %v6914_v37 = vpop.permute.xlu1 %6913  ;;  %v22558_v19 = vld [vmem:[#allocation79_spill] sm:$0xff] }
 0x609   : > { %v9108_v30 = vmul.f32 %v8402_v50, %v20507_v6  ;;  %v8982_v49 = vmul.f32 %v7642_v53, %v22556_v62  ;;  %v7654_v47 = vrot.slane %v5782_v34, %v21953_v54  ;;  %v8414_v32 = vrot.slane %v6582_v43, %v21953_v54 }
 0x60a   : > { %v7956_v29 = vmul.f32 %v7634_v14, %v22557_v1  ;;  %v5784_v46 = vcombine.high %v5780_v58, %v5780_v58  ;;  %v6600_v13 = vcombine.high %v6596_v33, %v6596_v33  ;;  %v20620_v20 = vrot.slane %v10869_v59, %v15005_v25  ;;  %v6916_v8 = vpop.permute.xlu0 %6915  ;;  %v22559_v1 = vld [vmem:[#allocation139_spill] sm:$0xff] }
 0x60b   : > { %v8719_v41 = vmul.f32 %v20500_v12, %v20495_v11  ;;  %v9238_v44 = vadd.f32 %v9110_v60, %v8982_v49  ;;  %v7958_v6 = vmul.f32 %v7642_v53, %v22558_v19  ;;  %v10843_v45 = vcombine.low %v9232_v0, %v9234_v22 }
 0x60c   : > { %v7646_v34 = vrot.slane %v5766_v7, %v21953_v54  ;;  %v9113_v62 = vmul.f32 %v8422_v36, %v7176_v51  ;;  %v8418_v43 = vrot.slane %v6596_v33, %v21953_v54  ;;  %v9236_v16 = vadd.f32 %v9108_v30, %v8980_v21  ;;  %v7174_v57 = vpop.permute.xlu1 %7173 }
 0x60d   : > { %v8721_v14 = vmul.f32 %v20505_v55, %v20517_v23  ;;  %v8985_v59 = vmul.f32 %v7654_v47, %v22559_v1  ;;  %v7650_v9 = vrot.slane %v5780_v58, %v21953_v54  ;;  %v8722_v11 = vmul.f32 %v8394_v38, %v6906_v42  ;;  %v22560_v23 = vld [vmem:[#allocation130_spill] sm:$0xff] }
 0x60e   : > { %v9111_v12 = vmul.f32 %v8414_v32, %v7172_v10  ;;  %v7658_v53 = vrot.slane %v5784_v46, %v21953_v54  ;;  %v8426_v60 = vrot.slane %v6600_v13, %v21953_v54  ;;  %v8847_v7 = vadd.f32 %v8719_v41, %v20573_v39  ;;  %v6920_v33 = vpop.permute.xlu0 %6919  ;;  %v22561_v46 = vld [vmem:[#allocation116_spill] sm:$0xff] }
 0x60f   : > { %v10877_v51 = vcombine.low %v9236_v16, %v9238_v44  ;;  %v8720_v0 = vmul.f32 %v20538_v48, %v20554_v2  ;;  %v8726_v22 = vmul.f32 %v8410_v40, %v6914_v37  ;;  %v10850_v55 = vrot.slane %v10843_v45, %v15005_v25  ;;  %v22562_v48 = vld [vmem:[#allocation50_spill] sm:$0xff] }
 0x610   : > { %v8983_v21 = vmul.f32 %v7646_v34, %v22560_v23  ;;  %v9241_v58 = vadd.f32 %v9113_v62, %v8985_v59  ;;  %v9112_v30 = vmul.f32 %v8418_v43, %v7174_v57  ;;  %v8849_v10 = vadd.f32 %v8721_v14, %v20577_v52  ;;  %v7178_v16 = vpop.permute.xlu1 %7177  ;;  %v22563_v62 = vld [vmem:[#allocation108_spill] sm:$0xff] }
 0x611   : > { %v8725_v38 = vmul.f32 %v20542_v56, %v20566_v28  ;;  %v8724_v42 = vmul.f32 %v8402_v50, %v6910_v3  ;;  %v8984_v39 = vmul.f32 %v7650_v9, %v22561_v46  ;;  %v8850_v49 = vadd.f32 %v8722_v11, %v7954_v15 }
 0x612   : > { %v9239_v13 = vadd.f32 %v9111_v12, %v8983_v21  ;;  %v8986_v37 = vmul.f32 %v7658_v53, %v22562_v48  ;;  %v9114_v2 = vmul.f32 %v8426_v60, %v7178_v16  ;;  %v10884_v40 = vrot.slane %v10877_v51, %v15005_v25  ;;  %v20647_v44 = vpop.permute.xlu0 %7179  ;;  %v5081_v21 = vld [vmem:[%s14477_s27 + $0x70] sm:$0xff] }
 0x613   : > { %v8723_v41 = vmul.f32 %v20520_v35, %v20544_v18  ;;  %v8848_v57 = vadd.f32 %v8720_v0, %v20584_v4  ;;  %v8854_v52 = vadd.f32 %v8726_v22, %v7958_v6  ;;  %v9240_v28 = vadd.f32 %v9112_v30, %v8984_v39  ;;  %v22564_v35 = vld [vmem:[#allocation78_spill] sm:$0xff] }
 0x614   : > { %v10885_v56 = vcombine.low %v9239_v13, %v9241_v58  ;;  %v8729_v50 = vmul.f32 %v8422_v36, %v6920_v33  ;;  %v9242_v3 = vadd.f32 %v9114_v2, %v8986_v37  ;;  %v10859_v15 = vcombine.low %v20606_v63, %v10850_v55  ;;  %v6918_v1 = vpop.permute.xlu1 %6917 }
 0x615   : > { %v8853_v19 = vadd.f32 %v8725_v38, %v20601_v27  ;;  %v8852_v45 = vadd.f32 %v8724_v42, %v7956_v29  ;;  %v7959_v14 = vmul.f32 %v7646_v34, %v22563_v62  ;;  %v9883_v59 = vcombine.low %v8848_v57, %v8850_v49 }
 0x616   : > { %v8727_v11 = vmul.f32 %v8414_v32, %v6916_v8  ;;  %v7961_v18 = vmul.f32 %v7654_v47, %v22564_v35  ;;  %v10893_v4 = vcombine.low %v9240_v28, %v9242_v3  ;;  %v9875_v6 = vcombine.low %v8847_v7, %v8849_v10  ;;  %v20655_v0 = vpop.permute.xlu0 %7183  ;;  %v22565_v47 = vld [vmem:[#allocation63_spill] sm:$0xff]  ;;  %v22566_v7 = vld [vmem:[#allocation192_spill] sm:$0xff] }
 0x617   : > { %v10901_v12 = vcombine.low %v20620_v20, %v10884_v40  ;;  %v8851_v36 = vadd.f32 %v8723_v41, %v20580_v61  ;;  %v9917_v51 = vcombine.low %v8852_v45, %v8854_v52  ;;  %v10892_v27 = vrot.slane %v10885_v56, %v15005_v25  ;;  %v22568_v41 = vld [vmem:[#allocation126_spill] sm:$0xff] }
 0x618   : > { %v8857_v63 = vadd.f32 %v8729_v50, %v7961_v18  ;;  %v10900_v29 = vrot.slane %v10893_v4, %v15005_v25  ;;  %v8728_v34 = vmul.f32 %v8418_v43, %v6918_v1  ;;  %v10866_v32 = vrot.slane %v10859_v15, %v15029_v5  ;;  %v6922_v20 = vpop.permute.xlu1 %6921 }
 0x619   : > { %v9909_v8 = vcombine.low %v8851_v36, %v8853_v19  ;;  %v7960_v22 = vmul.f32 %v7650_v9, %v22565_v47  ;;  %v7962_v33 = vmul.f32 %v7658_v53, %v22566_v7  ;;  %v9890_v55 = vrot.slane %v9883_v59, %v15005_v25 }
 0x61a   : > { %v8855_v61 = vadd.f32 %v8727_v11, %v7959_v14  ;;  %v10909_v23 = vcombine.low %v10892_v27, %v10900_v29  ;;  %v8730_v58 = vmul.f32 %v8426_v60, %v6922_v20  ;;  %v22567_v30 = vcombine.low %v20557_v17, %v20588_v26  ;;  %v20671_v42 = vpop.permute.xlu0 %6923  ;;  %v5897_v14 = vld [vmem:[%s14484_s25 + $0x70] sm:$0xff] }
 0x61b   : > { %v9882_v43 = vrot.slane %v9875_v6, %v15005_v25  ;;  %v10908_v38 = vrot.slane %v10901_v12, %v15029_v5  ;;  %v9924_v9 = vrot.slane %v9917_v51, %v15005_v25  ;;  %v8856_v39 = vadd.f32 %v8728_v34, %v7960_v22 }
 0x61c   : > { %v9874_v10 = vrot.slane %v22567_v30, %v15005_v25  ;;  %v9925_v53 = vcombine.low %v8855_v61, %v8857_v63  ;;  %v10916_v46 = vrot.slane %v10909_v23, %v15029_v5  ;;  %v8858_v16 = vadd.f32 %v8730_v58, %v7962_v33  ;;  %v20678_v13 = vpop.permute.xlu1 %7181  ;;  %v20708_v61 = vld [vmem:[%s14477_s27 + $0x78] sm:$0xff] }
 0x61d   : > { %v10867_v60 = vcombine.low %v20598_v31, %v10866_v32  ;;  %v10868_v49 = vcombine.high %v20598_v31, %v10866_v32  ;;  %v9916_v17 = vrot.slane %v9909_v8, %v15005_v25  ;;  %v5792_v26 = vrot.slane %v5081_v21, %v16712_v24 }
 0x61e   : > { %v9899_v48 = vcombine.low %v9882_v43, %v9890_v55  ;;  %v10917_v37 = vcombine.low %v10908_v38, %v10916_v46  ;;  %v10918_v2 = vcombine.high %v10908_v38, %v10916_v46  ;;  %v9933_v40 = vcombine.low %v8856_v39, %v8858_v16  ;;  %v20681_v56 = vpop.permute.xlu0 %6927  ;;  %v20722_v46 = vld [vmem:[%s14484_s25 + $0x78] sm:$0xff] }
 0x61f   : > { %v9891_v57 = vcombine.low %v22568_v41, %v9874_v10  ;;  %v9941_v52 = vcombine.low %v9916_v17, %v9924_v9  ;;  %v9932_v31 = vrot.slane %v9925_v53, %v15005_v25  ;;  %v5800_v15 = vcombine.high %v5792_v26, %v5792_v26 }
 0x620   : > { %v13012_v28 = vpack.c.bf16 %v10917_v37, %v10867_v60  ;;  %v13052_v50 = vpack.c.bf16 %v10918_v2, %v10868_v49  ;;  %v9940_v3 = vrot.slane %v9933_v40, %v15005_v25  ;;  %v20685_v19 = vpop.permute.xlu1 %7185  ;;  %v5785_v45 = vcombine.high %v5081_v21, %v5081_v21  ;;  %v22569_v2 = vld [vmem:[#allocation118_spill] sm:$0xff] }
 0x621   : > { %v9906_v62 = vrot.slane %v9899_v48, %v15029_v5  ;;  %v9898_v11 = vrot.slane %v9891_v57, %v15029_v5  ;;  %v9948_v35 = vrot.slane %v9941_v52, %v15029_v5  ;;  %v5808_v18 = vrot.slane %v5792_v26, %v16712_v24  ;;  %v22570_v57 = vld [vmem:[#allocation128_spill] sm:$0xff] }
 0x622   : > { %13159 = vst [vmem:[%s17404_s8 + $0x30] sm:$0xff] %v13012_v28   ;;  %13167 = vst [vmem:[%s17404_s8 + $0x70] sm:$0xff] %v13052_v50   ;;  %v9949_v1 = vcombine.low %v9932_v31, %v9940_v3  ;;  %v6608_v6 = vrot.slane %v5897_v14, %v16712_v24  ;;  %v5822_v12 = vrot.slane %v5800_v15, %v16712_v24  ;;  %v22571_v50 = vld [vmem:[#allocation127_spill] sm:$0xff] }
 0x623   : > { %v20691_v59 = vpop.permute.xlu0 %7187  ;;  %v5799_v36 = vrot.slane %v5785_v45, %v16712_v24  ;;  %v6601_v51 = vcombine.high %v5897_v14, %v5897_v14  ;;  %v9907_v63 = vcombine.low %v9898_v11, %v9906_v62  ;;  %v9908_v29 = vcombine.high %v9898_v11, %v9906_v62 }
 0x624   : > { %v9956_v4 = vrot.slane %v9949_v1, %v15029_v5  ;;  %v20700_v27 = vpop.permute.xlu1 %6925  ;;  %v5830_v47 = vcombine.high %v5808_v18, %v5808_v18  ;;  %v6616_v33 = vcombine.high %v6608_v6, %v6608_v6  ;;  %v6624_v20 = vrot.slane %v6608_v6, %v16712_v24  ;;  %v22572_v1 = vld [vmem:[#allocation134_spill] sm:$0xff]  ;;  %v22573_v6 = vld [vmem:[#allocation196_spill] sm:$0xff] }
 0x625   : > { %v5832_v23 = vcombine.high %v5822_v12, %v5822_v12  ;;  %v5815_v21 = vrot.slane %v5799_v36, %v16712_v24  ;;  %v6615_v58 = vrot.slane %v6601_v51, %v16712_v24  ;;  %v7662_v30 = vrot.slane %v5808_v18, %v21953_v54  ;;  %v22574_v51 = vld [vmem:[#allocation80_spill] sm:$0xff] }
 0x626   : > { %v9957_v34 = vcombine.low %v9948_v35, %v9956_v4  ;;  %v9958_v32 = vcombine.high %v9948_v35, %v9956_v4  ;;  %v6646_v10 = vcombine.high %v6624_v20, %v6624_v20  ;;  %v7670_v38 = vrot.slane %v5830_v47, %v21953_v54  ;;  %v22575_v47 = vld [vmem:[#allocation147_spill] sm:$0xff] }
 0x627   : > { %v20702_v8 = vpop.permute.xlu0 %7191  ;;  %v6638_v9 = vrot.slane %v6616_v33, %v16712_v24  ;;  %v5841_v53 = vrot.slane %v20708_v61, %v16712_v24  ;;  %v8430_v39 = vrot.slane %v6624_v20, %v21953_v54  ;;  %v7666_v16 = vrot.slane %v5822_v12, %v21953_v54 }
 0x628   : > { %v12932_v22 = vpack.c.bf16 %v9957_v34, %v9907_v63  ;;  %v12972_v7 = vpack.c.bf16 %v9958_v32, %v9908_v29  ;;  %v20705_v55 = vpop.permute.xlu1 %6929  ;;  %v5801_v60 = vcombine.high %v5799_v36, %v5799_v36  ;;  %v7674_v26 = vrot.slane %v5832_v23, %v21953_v54  ;;  %v22576_v23 = vld [vmem:[#allocation141_spill] sm:$0xff] }
 0x629   : > { %v6648_v17 = vcombine.high %v6638_v9, %v6638_v9  ;;  %v6631_v48 = vrot.slane %v6615_v58, %v16712_v24  ;;  %v5831_v37 = vcombine.high %v5815_v21, %v5815_v21  ;;  %v8987_v40 = vmul.f32 %v7662_v30, %v22569_v2 }
 0x62a   : > { %13144 = vst [vmem:[%s17453_s28 + $0x30] sm:$0xff] %v12932_v22   ;;  %13152 = vst [vmem:[%s17453_s28 + $0x70] sm:$0xff] %v12972_v7   ;;  %v8438_v41 = vrot.slane %v6646_v10, %v21953_v54  ;;  %v7963_v52 = vmul.f32 %v7662_v30, %v22570_v57  ;;  %v20735_v31 = vrot.slane %v20722_v46, %v16712_v24 }
 0x62b   : > { %v20715_v43 = vpop.permute.xlu0 %7195  ;;  %v8989_v3 = vmul.f32 %v7670_v38, %v22571_v50  ;;  %v20741_v15 = vrot.slane %v5815_v21, %v21953_v54  ;;  %v6647_v45 = vcombine.high %v6631_v48, %v6631_v48  ;;  %v5857_v62 = vrot.slane %v5841_v53, %v16712_v24 }
 0x62c   : > { %v20726_v49 = vpop.permute.xlu1 %7189  ;;  %v20745_v14 = vrot.slane %v6638_v9, %v21953_v54  ;;  %v7965_v11 = vmul.f32 %v7670_v38, %v22572_v1  ;;  %v5829_v35 = vrot.slane %v5801_v60, %v16712_v24  ;;  %v6617_v18 = vcombine.high %v6615_v58, %v6615_v58  ;;  %v22577_v60 = vld [vmem:[#allocation44_spill] sm:$0xff] }
 0x62d   : > { %v8988_v12 = vmul.f32 %v7666_v16, %v22573_v6  ;;  %v8442_v36 = vrot.slane %v6648_v17, %v21953_v54  ;;  %v8990_v63 = vmul.f32 %v7674_v26, %v22574_v51  ;;  %v7686_v29 = vrot.slane %v5831_v37, %v21953_v54 }
 0x62e   : > { %v9115_v34 = vmul.f32 %v8430_v39, %v20647_v44  ;;  %v9117_v32 = vmul.f32 %v8438_v41, %v20655_v0  ;;  %v20758_v22 = vmul.f32 %v7666_v16, %v22575_v47  ;;  %v6673_v7 = vrot.slane %v20735_v31, %v16712_v24 }
 0x62f   : > { %v20737_v28 = vpop.permute.xlu0 %7199  ;;  %v20765_v20 = vrot.slane %v6631_v48, %v21953_v54  ;;  %v8991_v21 = vmul.f32 %v20741_v15, %v22576_v23  ;;  %v20770_v58 = vrot.slane %v6647_v45, %v21953_v54  ;;  %v5879_v44 = vcombine.high %v5857_v62, %v5857_v62  ;;  %v22578_v48 = vld [vmem:[#allocation146_spill] sm:$0xff] }
 0x630   : > { %v20749_v4 = vpop.permute.xlu1 %7193  ;;  %v7694_v0 = vrot.slane %v5857_v62, %v21953_v54  ;;  %v6645_v30 = vrot.slane %v6617_v18, %v16712_v24  ;;  %v5833_v10 = vcombine.high %v5829_v35, %v5829_v35  ;;  %v5849_v38 = vcombine.high %v5841_v53, %v5841_v53 }
 0x631   : > { %v8733_v16 = vmul.f32 %v8438_v41, %v20681_v56  ;;  %v8993_v17 = vmul.f32 %v7686_v29, %v22577_v60  ;;  %v7966_v37 = vmul.f32 %v7674_v26, %v22578_v48  ;;  %v7682_v2 = vrot.slane %v5829_v35, %v21953_v54  ;;  %v22579_v26 = vld [vmem:[#allocation137_spill] sm:$0xff] }
 0x632   : > { %v20780_v57 = vadd.f32 %v9115_v34, %v8987_v40  ;;  %v20782_v50 = vadd.f32 %v9117_v32, %v8989_v3  ;;  %v20785_v45 = vrot.slane %v6673_v7, %v21953_v54  ;;  %v6695_v62 = vcombine.high %v6673_v7, %v6673_v7 }
 0x633   : > { %v8731_v53 = vmul.f32 %v8430_v39, %v20671_v42  ;;  %v9118_v56 = vmul.f32 %v8442_v36, %v20685_v19  ;;  %v7702_v41 = vrot.slane %v5879_v44, %v21953_v54  ;;  %v6649_v18 = vcombine.high %v6645_v30, %v6645_v30  ;;  %v22580_v19 = vld [vmem:[#allocation164_spill] sm:$0xff] }
 0x634   : > { %v20762_v33 = vpop.permute.xlu0 %6931  ;;  %v20793_v6 = vmul.f32 %v7694_v0, %v22579_v26  ;;  %v20796_v40 = vrot.slane %v6645_v30, %v21953_v54  ;;  %v7690_v3 = vrot.slane %v5833_v10, %v21953_v54  ;;  %v5871_v35 = vrot.slane %v5849_v38, %v16712_v24  ;;  %v22581_v10 = vld [vmem:[#allocation140_spill] sm:$0xff] }
 0x635   : > { %v20774_v9 = vpop.permute.xlu1 %7197  ;;  %v9116_v42 = vmul.f32 %v20745_v14, %v20678_v13  ;;  %v8861_v39 = vadd.f32 %v8733_v16, %v7965_v11  ;;  %v20805_v34 = vmul.f32 %v7682_v2, %v22580_v19  ;;  %v6665_v32 = vcombine.high %v20735_v31, %v20735_v31 }
 0x636   : > { %v9121_v7 = vmul.f32 %v20770_v58, %v20702_v8  ;;  %v20814_v23 = vrot.slane %v6695_v62, %v21953_v54  ;;  %v5834_v13 = vcombine.high %v20708_v61, %v20708_v61  ;;  %v8859_v11 = vadd.f32 %v8731_v53, %v7963_v52  ;;  %v22582_v8 = vld [vmem:[#allocation148_spill] sm:$0xff] }
 0x637   : > { %v9246_v30 = vadd.f32 %v9118_v56, %v8990_v63  ;;  %v8997_v38 = vmul.f32 %v7702_v41, %v22581_v10  ;;  %v8458_v31 = vrot.slane %v6649_v18, %v21953_v54  ;;  %v9119_v16 = vmul.f32 %v20765_v20, %v20691_v59  ;;  %v22583_v18 = vld [vmem:[#allocation89_spill] sm:$0xff] }
 0x638   : > { %v8734_v60 = vmul.f32 %v8442_v36, %v20705_v55  ;;  %v20826_v48 = vmul.f32 %v7690_v3, %v22582_v8  ;;  %v5881_v62 = vcombine.high %v5871_v35, %v5871_v35  ;;  %v9244_v19 = vadd.f32 %v9116_v42, %v8988_v12  ;;  %v22584_v12 = vld [vmem:[#allocation183_spill] sm:$0xff]  ;;  %v22585_v8 = vld [vmem:[#allocation73_spill] sm:$0xff] }
 0x639   : > { %v20787_v1 = vpop.permute.xlu0 %6935  ;;  %v20800_v51 = vpop.permute.xlu1 %7201  ;;  %v9959_v47 = vcombine.low %v8859_v11, %v8861_v39  ;;  %v6687_v61 = vrot.slane %v6665_v32, %v16712_v24  ;;  %v6650_v52 = vcombine.high %v20722_v46, %v20722_v46  ;;  %v8732_v63 = vmul.f32 %v20745_v14, %v20700_v27 }
 0x63a   : > { %v9249_v53 = vadd.f32 %v9121_v7, %v8993_v17  ;;  %v7698_v59 = vrot.slane %v5871_v35, %v21953_v54  ;;  %v5848_v55 = vrot.slane %v5834_v13, %v16712_v24  ;;  %v10927_v36 = vcombine.low %v9244_v19, %v9246_v30  ;;  %v22586_v7 = vld [vmem:[#allocation125_spill] sm:$0xff] }
 0x63b   : > { %v20837_v10 = vmul.f32 %v20741_v15, %v22583_v18  ;;  %v7969_v42 = vmul.f32 %v7686_v29, %v22584_v12  ;;  %v6697_v39 = vcombine.high %v6687_v61, %v6687_v61  ;;  %v9247_v32 = vadd.f32 %v9119_v16, %v8991_v21  ;;  %v22590_v12 = vld [vmem:[#allocation91_spill] sm:$0xff] }
 0x63c   : > { %v8862_v11 = vadd.f32 %v8734_v60, %v7966_v37  ;;  %v7706_v46 = vrot.slane %v5881_v62, %v21953_v54  ;;  %v20842_v27 = vmul.f32 %v7694_v0, %v22585_v8  ;;  %v20845_v17 = vrot.slane %v9959_v47, %v15005_v25  ;;  %v22587_v37 = vld [vmem:[#allocation162_spill] sm:$0xff] }
 0x63d   : > { %v20816_v44 = vpop.permute.xlu0 %6939  ;;  %v20848_v35 = vrot.slane %v6687_v61, %v21953_v54  ;;  %v7968_v15 = vmul.f32 %v7682_v2, %v22586_v7  ;;  %v6664_v13 = vrot.slane %v6650_v52, %v16712_v24  ;;  %v8860_v29 = vadd.f32 %v8732_v63, %v20758_v22  ;;  %v22588_v61 = vld [vmem:[#allocation123_spill] sm:$0xff]  ;;  %v22589_v63 = vld [vmem:[#allocation76_spill] sm:$0xff] }
 0x63e   : > { %v6934_v26 = vpop.permute.xlu1 %6933  ;;  %v10935_v21 = vcombine.low %v9247_v32, %v9249_v53  ;;  %v20854_v30 = vmul.f32 %v7698_v59, %v22587_v37  ;;  %v5864_v0 = vrot.slane %v5848_v55, %v16712_v24  ;;  %v20860_v47 = vrot.slane %v10927_v36, %v15005_v25 }
 0x63f   : > { %v9123_v60 = vmul.f32 %v20785_v45, %v20715_v43  ;;  %v9125_v2 = vmul.f32 %v20814_v23, %v20737_v28  ;;  %v8474_v62 = vrot.slane %v6697_v39, %v21953_v54  ;;  %v9967_v22 = vcombine.low %v8860_v29, %v8862_v11  ;;  %v22591_v39 = vld [vmem:[#allocation187_spill] sm:$0xff]  ;;  %v22592_v29 = vld [vmem:[#allocation166_spill] sm:$0xff] }
 0x640   : > { %v9120_v19 = vmul.f32 %v20796_v40, %v20726_v49  ;;  %v8998_v52 = vmul.f32 %v7706_v46, %v22588_v61  ;;  %v7973_v53 = vmul.f32 %v7702_v41, %v22589_v63  ;;  %v7970_v36 = vmul.f32 %v7690_v3, %v22590_v12 }
 0x641   : > { %v6944_v56 = vpop.permute.xlu0 %6943  ;;  %v6680_v32 = vrot.slane %v6664_v13, %v16712_v24  ;;  %v7710_v43 = vrot.slane %v5864_v0, %v21953_v54  ;;  %v5850_v8 = vcombine.high %v5848_v55, %v5848_v55  ;;  %v20875_v28 = vrot.slane %v10935_v21, %v15005_v25 }
 0x642   : > { %v6938_v14 = vpop.permute.xlu1 %6937  ;;  %v7972_v11 = vmul.f32 %v7698_v59, %v22591_v39  ;;  %v7974_v49 = vmul.f32 %v7706_v46, %v22592_v29  ;;  %v5880_v37 = vcombine.high %v5864_v0, %v5864_v0  ;;  %v20880_v61 = vadd.f32 %v9123_v60, %v20793_v6  ;;  %v22593_v0 = vld [vmem:[#allocation188_spill] sm:$0xff] }
 0x643   : > { %v20882_v41 = vadd.f32 %v9125_v2, %v8997_v38  ;;  %v6696_v3 = vcombine.high %v6680_v32, %v6680_v32  ;;  %v6666_v63 = vcombine.high %v6664_v13, %v6664_v13  ;;  %v20885_v12 = vrot.slane %v9967_v22, %v15005_v25  ;;  %v22594_v2 = vld [vmem:[#allocation186_spill] sm:$0xff] }
 0x644   : > { %v20888_v55 = vadd.f32 %v9120_v19, %v20805_v34  ;;  %v9122_v21 = vmul.f32 %v8458_v31, %v20749_v4  ;;  %v8738_v59 = vmul.f32 %v8458_v31, %v6938_v14  ;;  %v8737_v46 = vmul.f32 %v20770_v58, %v20787_v1 }
 0x645   : > { %v8478_v6 = vrot.slane %v6680_v32, %v21953_v54  ;;  %v20895_v38 = vmul.f32 %v7710_v43, %v22593_v0  ;;  %v5878_v13 = vrot.slane %v5850_v8, %v16712_v24  ;;  %v8736_v60 = vmul.f32 %v20796_v40, %v6934_v26 }
 0x646   : > { %v20857_v16 = vpop.permute.xlu0 %7203  ;;  %v6942_v18 = vpop.permute.xlu1 %6941  ;;  %v7975_v22 = vmul.f32 %v7710_v43, %v22594_v2  ;;  %v7718_v19 = vrot.slane %v5880_v37, %v21953_v54  ;;  %v10969_v31 = vcombine.low %v20880_v61, %v20882_v41  ;;  %v8735_v58 = vmul.f32 %v20765_v20, %v20762_v33  ;;  %v22595_v37 = vld [vmem:[#allocation87_spill] sm:$0xff] }
 0x647   : > { %v8486_v1 = vrot.slane %v6696_v3, %v21953_v54  ;;  %v6694_v14 = vrot.slane %v6666_v63, %v16712_v24  ;;  %v9250_v32 = vadd.f32 %v9122_v21, %v20826_v48  ;;  %v8741_v40 = vmul.f32 %v20814_v23, %v6944_v56  ;;  %v22596_v56 = vld [vmem:[#allocation47_spill] sm:$0xff] }
 0x648   : > { %v8866_v26 = vadd.f32 %v8738_v59, %v7970_v36  ;;  %v8740_v43 = vmul.f32 %v20848_v35, %v6942_v18  ;;  %v8865_v29 = vadd.f32 %v8737_v46, %v7969_v42  ;;  %v7714_v0 = vrot.slane %v5878_v13, %v21953_v54 }
 0x649   : > { %v6698_v2 = vcombine.high %v6694_v14, %v6694_v14  ;;  %v9126_v33 = vmul.f32 %v8474_v62, %v20800_v51  ;;  %v8739_v20 = vmul.f32 %v20785_v45, %v20816_v44  ;;  %v8864_v24 = vadd.f32 %v8736_v60, %v7968_v15 }
 0x64a   : > { %v6948_v7 = vpop.permute.xlu0 %6947  ;;  %v8863_v48 = vadd.f32 %v8735_v58, %v20837_v10  ;;  %v9001_v36 = vmul.f32 %v7718_v19, %v22596_v56  ;;  %v5882_v18 = vcombine.high %v5878_v13, %v5878_v13  ;;  %v9124_v42 = vmul.f32 %v20848_v35, %v20774_v9 }
 0x64b   : > { %v6946_v39 = vpop.permute.xlu1 %6945  ;;  %v8869_v63 = vadd.f32 %v8741_v40, %v7973_v53  ;;  %v9983_v21 = vcombine.low %v8864_v24, %v8866_v26  ;;  %v8868_v59 = vadd.f32 %v8740_v43, %v7972_v11  ;;  %v10943_v51 = vcombine.low %v20888_v55, %v9250_v32 }
 0x64c   : > { %v8742_v34 = vmul.f32 %v8474_v62, %v6946_v39  ;;  %v7977_v39 = vmul.f32 %v7718_v19, %v22595_v37  ;;  %v8743_v62 = vmul.f32 %v8478_v6, %v6948_v7  ;;  %v8482_v45 = vrot.slane %v6694_v14, %v21953_v54  ;;  %v22597_v7 = vld [vmem:[#allocation191_spill] sm:$0xff] }
 0x64d   : > { %v8490_v44 = vrot.slane %v6698_v2, %v21953_v54  ;;  %v9975_v10 = vcombine.low %v8863_v48, %v8865_v29  ;;  %v9254_v15 = vadd.f32 %v9126_v33, %v8998_v52  ;;  %v7722_v35 = vrot.slane %v5882_v18, %v21953_v54  ;;  %v22598_v52 = vld [vmem:[#allocation155_spill] sm:$0xff]  ;;  %v22600_v48 = vld [vmem:[#allocation122_spill] sm:$0xff] }
 0x64e   : > { %v8870_v3 = vadd.f32 %v8742_v34, %v7974_v49  ;;  %v8867_v49 = vadd.f32 %v8739_v20, %v20842_v27  ;;  %v9252_v53 = vadd.f32 %v9124_v42, %v20854_v30  ;;  %v9990_v55 = vrot.slane %v9983_v21, %v15005_v25 }
 0x64f   : > { %v6952_v4 = vpop.permute.xlu0 %6951  ;;  %v7976_v19 = vmul.f32 %v7714_v0, %v22597_v7  ;;  %v9127_v58 = vmul.f32 %v8478_v6, %v20857_v16  ;;  %v8871_v14 = vadd.f32 %v8743_v62, %v7975_v22  ;;  %v7978_v32 = vmul.f32 %v7722_v35, %v22598_v52  ;;  %v22599_v16 = vld [vmem:[#allocation170_spill] sm:$0xff] }
 0x650   : > { %v7206_v8 = vpop.permute.xlu1 %7205  ;;  %v8745_v23 = vmul.f32 %v8486_v1, %v6952_v4  ;;  %v10017_v13 = vcombine.low %v8868_v59, %v8870_v3  ;;  %v10009_v11 = vcombine.low %v8867_v49, %v8869_v63  ;;  %v9982_v40 = vrot.slane %v9975_v10, %v15005_v25 }
 0x651   : > { %v9128_v54 = vmul.f32 %v8482_v45, %v7206_v8  ;;  %v10950_v2 = vrot.slane %v10943_v51, %v15005_v25  ;;  %v9000_v6 = vmul.f32 %v7714_v0, %v22599_v16  ;;  %v9255_v24 = vadd.f32 %v9127_v58, %v20895_v38 }
 0x652   : > { %v8873_v60 = vadd.f32 %v8745_v23, %v7977_v39  ;;  %v10024_v26 = vrot.slane %v10017_v13, %v15005_v25  ;;  %v10016_v33 = vrot.slane %v10009_v11, %v15005_v25  ;;  %v9999_v20 = vcombine.low %v9982_v40, %v9990_v55 }
 0x653   : > { %v9002_v23 = vmul.f32 %v7722_v35, %v22600_v48  ;;  %v9991_v8 = vcombine.low %v20845_v17, %v20885_v12  ;;  %v9256_v42 = vadd.f32 %v9128_v54, %v9000_v6  ;;  %v22601_v38 = vcombine.low %v20780_v57, %v20782_v50 }
 0x654   : > { %v7208_v46 = vpop.permute.xlu0 %7207  ;;  %v6950_v37 = vpop.permute.xlu1 %6949  ;;  %v10025_v43 = vcombine.low %v8871_v14, %v8873_v60  ;;  %v10041_v18 = vcombine.low %v10016_v33, %v10024_v26  ;;  %v10976_v17 = vrot.slane %v10969_v31, %v15005_v25  ;;  %v10959_v12 = vcombine.low %v20875_v28, %v10950_v2 }
 0x655   : > { %v9129_v34 = vmul.f32 %v8486_v1, %v7208_v46  ;;  %v8744_v9 = vmul.f32 %v8482_v45, %v6950_v37  ;;  %v10977_v1 = vcombine.low %v9252_v53, %v9254_v15  ;;  %v10926_v46 = vrot.slane %v22601_v38, %v15005_v25 }
 0x656   : > { %v10032_v63 = vrot.slane %v10025_v43, %v15005_v25  ;;  %v10006_v37 = vrot.slane %v9999_v20, %v15029_v5  ;;  %v10048_v15 = vrot.slane %v10041_v18, %v15029_v5  ;;  %v10966_v28 = vrot.slane %v10959_v12, %v15029_v5 }
 0x657   : > { %v9257_v30 = vadd.f32 %v9129_v34, %v9001_v36  ;;  %v8872_v29 = vadd.f32 %v8744_v9, %v7976_v19  ;;  %v10984_v36 = vrot.slane %v10977_v1, %v15005_v25  ;;  %v10951_v45 = vcombine.low %v10926_v46, %v20860_v47 }
 0x658   : > { %v6954_v4 = vpop.permute.xlu1 %6953 }
 0x659   : > { %v8746_v27 = vmul.f32 %v8490_v44, %v6954_v4  ;;  %v10985_v21 = vcombine.low %v9255_v24, %v9257_v30  ;;  %v11001_v10 = vcombine.low %v10976_v17, %v10984_v36  ;;  %v10958_v60 = vrot.slane %v10951_v45, %v15029_v5 }
 0x65b   : > { %v8874_v39 = vadd.f32 %v8746_v27, %v7978_v32  ;;  %v10992_v57 = vrot.slane %v10985_v21, %v15005_v25  ;;  %v11008_v34 = vrot.slane %v11001_v10, %v15029_v5  ;;  %v10968_v11 = vcombine.high %v10958_v60, %v10966_v28 }
 0x65c   : > { %v7210_v22 = vpop.permute.xlu1 %7209 }
 0x65d   : > { %v10033_v3 = vcombine.low %v8872_v29, %v8874_v39  ;;  %v9130_v56 = vmul.f32 %v8490_v44, %v7210_v22  ;;  %v9998_v44 = vrot.slane %v9991_v8, %v15029_v5 }
 0x65f   : > { %v10040_v59 = vrot.slane %v10033_v3, %v15005_v25  ;;  %v9258_v0 = vadd.f32 %v9130_v56, %v9002_v23  ;;  %v10007_v41 = vcombine.low %v9998_v44, %v10006_v37  ;;  %v10008_v31 = vcombine.high %v9998_v44, %v10006_v37 }
 0x661   : > { %v10049_v51 = vcombine.low %v10032_v63, %v10040_v59  ;;  %v10993_v62 = vcombine.low %v9256_v42, %v9258_v0 }
 0x663   : > { %v10056_v50 = vrot.slane %v10049_v51, %v15029_v5  ;;  %v11000_v61 = vrot.slane %v10993_v62, %v15005_v25  ;;  %v10967_v25 = vcombine.low %v10958_v60, %v10966_v28 }
 0x665   : > { %v10057_v49 = vcombine.low %v10048_v15, %v10056_v50  ;;  %v10058_v47 = vcombine.high %v10048_v15, %v10056_v50  ;;  %v11009_v13 = vcombine.low %v10992_v57, %v11000_v61 }
 0x667   : > { %v12937_v9 = vpack.c.bf16 %v10057_v49, %v10007_v41  ;;  %v12977_v35 = vpack.c.bf16 %v10058_v47, %v10008_v31  ;;  %v11016_v53 = vrot.slane %v11009_v13, %v15029_v5 }
 0x669   : > { %13145 = vst [vmem:[%s17453_s28 + $0x38] sm:$0xff] %v12937_v9   ;;  %13153 = vst [vmem:[%s17453_s28 + $0x78] sm:$0xff] %v12977_v35   ;;  %v11017_v55 = vcombine.low %v11008_v34, %v11016_v53  ;;  %v11018_v7 = vcombine.high %v11008_v34, %v11016_v53 }
 0x66b   : > { %v13017_v19 = vpack.c.bf16 %v11017_v55, %v10967_v25  ;;  %v13057_v4 = vpack.c.bf16 %v11018_v7, %v10968_v11 }
 0x66d   : > { %13160 = vst [vmem:[%s17404_s8 + $0x38] sm:$0xff] %v13017_v19   ;;  %13168 = vst [vmem:[%s17404_s8 + $0x78] sm:$0xff] %v13057_v4  }
 0x66e   : > { %s22602_s22 = sld [smem:[#allocation34_spill]]  ;;  %s22603_s23 = sld [smem:[#allocation35_spill]] }
 0x66f   : > { %s12181_s7 = sshll.u32 %s17453_s28, 4  ;;  %s22604_s1 = sld [smem:[#allocation201_spill]]  ;;  %s12182_s7 = int_to_ptr.vmem [resolvable:$true] %s12181_s7 }
 0x670   : > { %s13983_s19 = smov 1024   ;;  %p22605_p12 = scmp.ne.s32.totalorder %s21664_s24, 0 }
 0x671   : > { %s13984_s0 = smov 2048   ;;  %s13987_s28 = smov 4  }
 0x672   : > { %13232 = sst [smem:[#allocation18]] (%p22605_p12), %s13983_s19 }
 0x673   : > { %13233 = sst [smem:[#allocation18 + $0x1]] (%p22605_p12), %s13984_s0 }
 0x674   : > { %s12788_s4 = sshll.u32 %s22602_s22, 4  ;;  %s12789_s5 = sshll.u32 %s22603_s23, 6 }
 0x675   : > { %s12162_s30 = sadd.s32 %s12789_s5, %s12788_s4  ;;  %s13985_s22 = smov 16  }
 0x676   : > { %s20970_s6 = sshll.u32 %s12162_s30, 6  ;;  %13234 = sst [smem:[#allocation18 + $0x2]] (%p22605_p12), %s13985_s22 }
 0x677   : > { %s12164_s25 = scalar_lea.hbm %s22604_s1, %s20970_s6  ;;  %s13986_s23 = smov 64  }
 0x678   : > { %13235 = sst [smem:[#allocation18 + $0x3]] (%p22605_p12), %s13986_s23  ;;  %s13988_s4 = smov [#allocation17]  }
 0x679   : > { %13236 = sst [smem:[#allocation18 + $0x4]] (%p22605_p12), %s13986_s23  ;;  %s13989_s5 = smov 0  }
 0x67a   : > { %13237 = sst [smem:[#allocation18 + $0x5]] (%p22605_p12), %s13987_s28 }
 0x67b   : > { %13238 = dma.general (%p22605_p12), %s12182_s7, 2048, %s12164_s25, %s12140_s13, %s13988_s4, [#allocation18], %s13989_s5, 0  }
 0x67c   : > { %s22606_s27 = sld [smem:[#allocation202_spill]]  ;;  %s12228_s19 = sshll.u32 %s17404_s8, 4  ;;  %s12229_s19 = int_to_ptr.vmem [resolvable:$true] %s12228_s19 }
 0x67d   : > { %s13990_s0 = smov 1024   ;;  %s13991_s13 = smov 2048  }
 0x67e   : > { %13239 = sst [smem:[#allocation20]] (%p22605_p12), %s13990_s0  ;;  %s13992_s7 = smov 16  }
 0x67f   : > { %13240 = sst [smem:[#allocation20 + $0x1]] (%p22605_p12), %s13991_s13  ;;  %s13993_s25 = smov 64  }
 0x680   : > { %13241 = sst [smem:[#allocation20 + $0x2]] (%p22605_p12), %s13992_s7  ;;  %s13994_s22 = smov 4  }
 0x681   : > { %13242 = sst [smem:[#allocation20 + $0x3]] (%p22605_p12), %s13993_s25  ;;  %s13995_s23 = smov [#allocation19]  }
 0x682   : > { %s12211_s1 = scalar_lea.hbm %s22606_s27, %s20970_s6  ;;  %13243 = sst [smem:[#allocation20 + $0x4]] (%p22605_p12), %s13993_s25 }
 0x683   : > { %13244 = sst [smem:[#allocation20 + $0x5]] (%p22605_p12), %s13994_s22  ;;  %s13996_s8 = smov 0  }
 0x684   : > { %13245 = dma.general (%p22605_p12), %s12229_s19, 2048, %s12211_s1, %s12145_s26, %s13995_s23, [#allocation20], %s13996_s8, 0  }
 0x685   : > { %s22607_s5 = sld [smem:[#allocation203_spill]]  ;;  %s12275_s20 = sshll.u32 %s16249_s9, 4  ;;  %s12276_s20 = int_to_ptr.vmem [resolvable:$true] %s12275_s20 }
 0x686   : > { %s13997_s27 = smov 1024   ;;  %s13998_s1 = smov 2048  }
 0x687   : > { %13246 = sst [smem:[#allocation22]] (%p22605_p12), %s13997_s27  ;;  %s13999_s19 = smov 16  }
 0x688   : > { %13247 = sst [smem:[#allocation22 + $0x1]] (%p22605_p12), %s13998_s1  ;;  %s14000_s0 = smov 64  }
 0x689   : > { %13248 = sst [smem:[#allocation22 + $0x2]] (%p22605_p12), %s13999_s19  ;;  %s14001_s13 = smov 4  }
 0x68a   : > { %13249 = sst [smem:[#allocation22 + $0x3]] (%p22605_p12), %s14000_s0  ;;  %s14003_s9 = smov 0  }
 0x68b   : > { %s12258_s30 = scalar_lea.hbm %s22607_s5, %s20970_s6  ;;  %13250 = sst [smem:[#allocation22 + $0x4]] (%p22605_p12), %s14000_s0 }
 0x68c   : > { %13251 = sst [smem:[#allocation22 + $0x5]] (%p22605_p12), %s14001_s13  ;;  %s14002_s6 = smov [#allocation21]  }
 0x68d   : > { %13252 = dma.general (%p22605_p12), %s12276_s20, 2048, %s12258_s30, %s12145_s26, %s14002_s6, [#allocation22], %s14003_s9, 0  }
 0x68e PF: > { %p13291_p5 = scmp.ge.s32.totalorder %s13964_s18, 2  ;;  %s12303_s7 = sand.u32 1, %s13936_s11  }
 0x68f   : > { %p22608_p1 = scmp.ne.s32.totalorder %s21667_s14, 0  ;;  %s12304_s25 = scalar_lea.sflag [#allocation4], %s12303_s7 }
 0x691   : > { %p13277_p0 = pnand %p13291_p5, %p22608_p1 }
 0x693   : > { %13903 = dma.done.wait (!%p13277_p0), %s12304_s25, 2048  }
 0x694   : > { %13905 = vsyncadd (!%p13277_p0), %s12304_s25, 4294965248  ;;  %s22609_s22 = sadd.s32 4294967294, %s13964_s18  }
 0x695   : > { %s12312_s23 = sand.u32 1, %s22609_s22  }
 0x696   : > { %s12313_s8 = scalar_lea.sflag [#allocation15], %s12312_s23 }
 0x697   : > { %13907 = dma.done.wait (!%p13277_p0), %s12313_s8, 4096  }
 0x698   : > { %13909 = vsyncadd (!%p13277_p0), %s12313_s8, 4294963200  ;;  %s35_s18 = sadd.s32 1, %s13964_s18   ;;  %s22611_s27 = sld [smem:[#allocation31_spill]] }
 0x699   : > { %p21039_p11 = scmp.ge.s32.totalorder %s35_s18, 6   ;;  %s22612_s30 = sld [smem:[#allocation32_spill]] }
 0x69a   : > { %s22613_s11 = sld [smem:[#allocation40_spill]]  ;;  %s22614_s14 = sld [smem:[#allocation33_spill]] }
 0x69b   : > { %s22615_s13 = sld [smem:[#allocation41_spill]]  ;;  %s22616_s21 = sld [smem:[#allocation37_spill]] }
 0x69c   : > { %s22617_s26 = sld [smem:[#allocation38_spill]]  ;;  %s22618_s28 = smov %s13920_s29 }
 0x69d   : > { %s22619_s29 = smov %s14208_s15  ;;  %s22620_s9 = smov %s13932_s10 }
 0x69e   : > { %s22625_s15 = smov %s13960_s17  ;;  %34 = sbr.rel (!%p21039_p11) target bundleno = 25 (0x19), region = 182 }
 0x6a0   : > { %s22621_s10 = smov %s22613_s11  ;;  %s22622_s11 = smov %s13940_s12 }
 0x6a1   : > { %s22623_s12 = smov %s22614_s14  ;;  %s22624_s14 = smov %s13956_s16 }
 0x6a2   : > { %s22626_s16 = smov %s22616_s21  ;;  %s22627_s17 = smov %s22617_s26 }
 0x6a5   :  { %12327 = vsyncpa [#allocation3], 1 }
 0x6a6   :  { %12329 = vsyncpa [#allocation3 + $0x1], 1 }
 0x6a7   :  { %12330 = vsyncpa [#allocation6], 1 }
 0x6a8   :  { %12332 = vsyncpa [#allocation6 + $0x1], 1 }
 0x6a9   :  { %12333 = vsyncpa [#allocation9], 1 }
 0x6aa   :  { %12335 = vsyncpa [#allocation9 + $0x1], 1 }
 0x6ab   :  { %12336 = vsyncpa [#allocation12], 1 }
 0x6ac   :  { %12337 = vsyncpa [#allocation4], 1 }
 0x6ad   :  { %12339 = vsyncpa [#allocation4 + $0x1], 1 }
 0x6ae   :  { %12340 = vsyncpa [#allocation15], 1 }
 0x6af   :  { %12342 = vsyncpa [#allocation15 + $0x1], 1 }

</bundles_post_ra>
